<compile_context>
chip_gen: v7x
topology: tpu7x:2x2x1
jax: 0.10.0
libtpu: 0.0.40
codegen_flags: <defaults>
</compile_context>

<pallas_src>
import math
import functools

import jax
import jax.numpy as jnp
import numpy as np
from jax import lax
from jax.experimental import pallas as pl
from jax.experimental.pallas import tpu as pltpu


# ----------------------------- in-kernel helpers -----------------------------

def _layer_norm(x, g, b, eps=1e-5):
    mu = jnp.mean(x, axis=-1, keepdims=True)
    xc = x - mu
    var = jnp.mean(xc * xc, axis=-1, keepdims=True)
    return xc * lax.rsqrt(var + eps) * g + b


def _attention(xq, xk, xv, qw, kw, vw, ow, qkvb, ob, *,
               num_heads, mxu_dtype, transpose_scores=False):
    """AttentionForTwoWayAttentionBlock, head-dense layout.

      - 1/sqrt(head_dim) pre-folded into qw / q-bias (pack_params).
      - heads stacked on a leading axis once; batched einsums + one stacked
        softmax instead of per-head slices/softmaxes.
      - head recombine via lane concat, then a single full-contraction-depth
        output projection (Di = 128 / 64 contracted in one MXU op).
      - transpose_scores=True stores the score tile as (H, n_keys, n_queries)
        so that when the query count is large (image tokens) and the key count
        is tiny (sparse tokens), exp/mul/reduce stay lane-dense; softmax then
        runs over the sublane (key) axis and PV contracts that axis.
      - softmax denominator via approx reciprocal (EUP slot).  NOTE: ~1e-3
        relative error vs a true divide; does not bit-match PyTorch.
    """
    f32 = jnp.float32

    def mm(a, w):
        return jnp.dot(a.astype(mxu_dtype), w.astype(mxu_dtype),
                       preferred_element_type=f32)

    di = qw.shape[1]
    hd = di // num_heads

    q = mm(xq, qw) + qkvb[0:1, :]          # (nq, Di), scale already folded in
    k = mm(xk, kw) + qkvb[1:2, :]          # (nk, Di)
    v = mm(xv, vw) + qkvb[2:3, :]          # (nk, Di)

    def split_heads(x):
        # (n, Di) -> (H, n, hd): lane slices stacked on a new leading axis.
        return jnp.concatenate(
            [x[None, :, h * hd:(h + 1) * hd] for h in range(num_heads)],
            axis=0).astype(mxu_dtype)

    qh = split_heads(q)                    # (H, nq, hd)
    kh = split_heads(k)                    # (H, nk, hd)
    vh = split_heads(v)                    # (H, nk, hd)

    if not transpose_scores:
        # scores (H, nq, nk); softmax over the key axis (lanes).
        s = jnp.einsum('hqd,hkd->hqk', qh, kh, preferred_element_type=f32)
        s = s - jnp.max(s, axis=-1, keepdims=True)
        p = jnp.exp(s)
        p = p * pl.reciprocal(jnp.sum(p, axis=-1, keepdims=True), approx=True)
        oh = jnp.einsum('hqk,hkd->hqd', p.astype(mxu_dtype), vh,
                        preferred_element_type=f32)          # (H, nq, hd)
    else:
        # scores stored transposed: (H, nk_keys, nq_queries) with the (many)
        # queries on lanes; softmax over the key axis = sublane reduction.
        st = jnp.einsum('hkd,hqd->hkq', kh, qh, preferred_element_type=f32)
        st = st - jnp.max(st, axis=1, keepdims=True)
        pt = jnp.exp(st)
        pt = pt * pl.reciprocal(jnp.sum(pt, axis=1, keepdims=True), approx=True)
        oh = jnp.einsum('hkq,hkd->hqd', pt.astype(mxu_dtype), vh,
                        preferred_element_type=f32)          # (H, nq, hd)

    # head-major recombine (lane concat) + ONE full-depth out projection.
    o = jnp.concatenate([oh[h] for h in range(num_heads)], axis=-1)  # (nq, Di)
    return mm(o, ow) + ob                                            # (nq, D)


# --------------------------------- kernel ------------------------------------

def two_way_block_kernel(
    q_ref, k_ref, qpe_ref, kpe_ref,
    # self attention (downsample_rate = 1)
    sa_qw, sa_kw, sa_vw, sa_ow, sa_qkvb, sa_ob,
    # cross attention token -> image (downsample_rate = 2)
    t2i_qw, t2i_kw, t2i_vw, t2i_ow, t2i_qkvb, t2i_ob,
    # MLP block (Linear -> ReLU -> Linear)
    mlp_w1, mlp_b1, mlp_w2, mlp_b2,
    # cross attention image -> token (downsample_rate = 2)
    i2t_qw, i2t_kw, i2t_vw, i2t_ow, i2t_qkvb, i2t_ob,
    # packed LayerNorm params: rows = [g1, b1, g2, b2, g3, b3, g4, b4]
    ln_ref,
    # outputs
    q_out_ref, k_out_ref,
    *, num_heads, skip_first_layer_pe, mxu_dtype,
):
    f32 = jnp.float32
    queries = q_ref[0]   # (Nq, D)
    keys = k_ref[0]      # (Nk, D)
    qpe = qpe_ref[0]
    kpe = kpe_ref[0]
    ln = ln_ref[...]     # (8, D)

    def mm(a, w):
        return jnp.dot(a.astype(mxu_dtype), w.astype(mxu_dtype),
                       preferred_element_type=f32)

    # (1) self attention of sparse inputs (matches the given forward exactly)
    if not skip_first_layer_pe:
        queries = queries + qpe
    attn_out = _attention(queries, queries, queries,
                          sa_qw[...], sa_kw[...], sa_vw[...], sa_ow[...],
                          sa_qkvb[...], sa_ob[...],
                          num_heads=num_heads, mxu_dtype=mxu_dtype)
    queries = queries + attn_out
    queries = _layer_norm(queries, ln[0:1, :], ln[1:2, :])

    # (2) cross attention: tokens -> image (scores lane-dense in Nk)
    q = queries + qpe
    k = keys + kpe
    attn_out = _attention(q, k, keys,
                          t2i_qw[...], t2i_kw[...], t2i_vw[...], t2i_ow[...],
                          t2i_qkvb[...], t2i_ob[...],
                          num_heads=num_heads, mxu_dtype=mxu_dtype)
    queries = queries + attn_out
    queries = _layer_norm(queries, ln[2:3, :], ln[3:4, :])

    # (3) MLP block on sparse inputs (Linear -> ReLU -> Linear)
    h = jnp.maximum(mm(queries, mlp_w1[...]) + mlp_b1[...], 0.0)
    mlp_out = mm(h, mlp_w2[...]) + mlp_b2[...]
    queries = queries + mlp_out
    queries = _layer_norm(queries, ln[4:5, :], ln[5:6, :])

    # (4) cross attention: image -> tokens.  Score tile computed transposed so
    # the softmax stays lane-dense in the (large) image-token axis.
    q = queries + qpe
    k = keys + kpe
    attn_out = _attention(k, q, queries,
                          i2t_qw[...], i2t_kw[...], i2t_vw[...], i2t_ow[...],
                          i2t_qkvb[...], i2t_ob[...],
                          num_heads=num_heads, mxu_dtype=mxu_dtype,
                          transpose_scores=True)
    keys = keys + attn_out
    keys = _layer_norm(keys, ln[6:7, :], ln[7:8, :])

    q_out_ref[0] = queries.astype(q_out_ref.dtype)
    k_out_ref[0] = keys.astype(k_out_ref.dtype)


# --------------------------------- wrapper -----------------------------------

def pack_params(params, num_heads, mxu_dtype=jnp.bfloat16):
    """Pack the PyTorch-style flat param list (36 arrays) into the kernel layout.

    Weight matrices are pre-cast to `mxu_dtype` (bf16 recommended on v5e/v6e/v7x;
    the v5e MXU is bf16-native, f32 operands are emulated). Biases and LayerNorm
    params stay f32. The 1/sqrt(head_dim) attention scale is folded into the
    q-projection weight and bias here (free, removes an in-kernel VPU multiply).
    """
    p = list(params)
    sa, t2i, mlp, i2t, lns = p[0:8], p[8:16], p[16:20], p[20:28], p[28:36]

    def pack_attn(a):
        qw, qb, kw, kb, vw, vb, ow, ob = a
        hd = qw.shape[1] // num_heads
        scale = 1.0 / math.sqrt(hd)
        qkvb = jnp.concatenate([qb * scale, kb, vb], axis=0).astype(jnp.float32)
        return [(qw * scale).astype(mxu_dtype), kw.astype(mxu_dtype),
                vw.astype(mxu_dtype), ow.astype(mxu_dtype), qkvb,
                ob.astype(jnp.float32)]

    mlp_w1, mlp_b1, mlp_w2, mlp_b2 = mlp
    ln = jnp.concatenate(lns, axis=0).astype(jnp.float32)       # (8, D)
    return (pack_attn(sa) + pack_attn(t2i)
            + [mlp_w1.astype(mxu_dtype), mlp_b1.astype(jnp.float32),
               mlp_w2.astype(mxu_dtype), mlp_b2.astype(jnp.float32)]
            + pack_attn(i2t) + [ln])


def two_way_attention_block(queries, keys, query_pe, key_pe, params, num_heads,
                            skip_first_layer_pe=False, mxu_dtype=jnp.bfloat16,
                            vmem_limit_bytes=32 * 1024 * 1024):
    B, Nq, D = queries.shape
    _, Nk, _ = keys.shape

    packed = pack_params(params, num_heads, mxu_dtype)
    Di = packed[6].shape[1]          # token->image q_proj weight: (D, Di)
    mlp_dim = packed[12].shape[1]    # mlp w1: (D, mlp_dim)

    kernel = functools.partial(two_way_block_kernel,
                               num_heads=num_heads,
                               skip_first_layer_pe=skip_first_layer_pe,
                               mxu_dtype=mxu_dtype)

    # Advisory cost estimate for XLA's scheduler around the custom call.
    def attn_flops(n_q, n_k, d_int):
        return (2 * n_q * D * d_int            # q proj
                + 2 * n_k * D * d_int * 2      # k, v proj
                + 2 * n_q * n_k * d_int * 2    # QK^T + PV
                + 2 * n_q * d_int * D)         # out proj
    flops = B * (attn_flops(Nq, Nq, D)
                 + attn_flops(Nq, Nk, Di)
                 + 2 * Nq * D * mlp_dim * 2
                 + attn_flops(Nk, Nq, Di))
    transcendentals = B * num_heads * (Nq * Nq + 2 * Nq * Nk)
    param_bytes = sum(int(np.prod(p.shape)) * p.dtype.itemsize for p in packed)
    io_bytes = 4 * B * (3 * Nq * D + 3 * Nk * D)   # seq inputs + PEs + outputs
    cost = pl.CostEstimate(flops=int(flops),
                           transcendentals=int(transcendentals),
                           bytes_accessed=int(param_bytes + io_bytes))

    def seq_spec(n):
        return pl.BlockSpec((1, n, D), lambda b: (b, 0, 0))

    def weight_spec(arr, single_buffer):
        nd = arr.ndim
        idx = lambda b, _nd=nd: (0,) * _nd
        if single_buffer:
            try:
                # Constant index_map -> no pipelining needed; single-buffer to
                # halve resident parameter VMEM.
                return pl.BlockSpec(arr.shape, idx, pipeline_mode=pl.Buffered(1))
            except TypeError:
                return pl.BlockSpec(arr.shape, idx)
        return pl.BlockSpec(arr.shape, idx)

    def build(single_buffer):
        in_specs = ([seq_spec(Nq), seq_spec(Nk), seq_spec(Nq), seq_spec(Nk)]
                    + [weight_spec(p, single_buffer) for p in packed])
        out_specs = [seq_spec(Nq), seq_spec(Nk)]
        out_shape = [jax.ShapeDtypeStruct((B, Nq, D), queries.dtype),
                     jax.ShapeDtypeStruct((B, Nk, D), keys.dtype)]
        return pl.pallas_call(
            kernel,
            grid=(B,),
            in_specs=in_specs,
            out_specs=out_specs,
            out_shape=out_shape,
            cost_estimate=cost,
            compiler_params=pltpu.CompilerParams(
                dimension_semantics=("parallel",),   # batch elems independent
                vmem_limit_bytes=vmem_limit_bytes),
        )

    args = (queries, keys, query_pe, key_pe, *packed)
    try:
        return build(single_buffer=True)(*args)
    except Exception:
        # Fallback if this jax/Mosaic version rejects single-buffered
        # pipeline_mode on pallas_call BlockSpecs.
        return build(single_buffer=False)(*args)


# ---------------------------- parameter creation -----------------------------

def init_params(key, D, num_heads, mlp_dim, downsample_rate=2, dtype=jnp.float32):
    """Synthetic parameters matching the PyTorch module's shapes.

    Flat list, each Linear as (W:(in,out), b:(1,out)):
      self_attn   q,k,v,out
      cross_t2i   q,k,v,out
      mlp         lin1, lin2
      cross_i2t   q,k,v,out
      norms 1..4  (gamma:(1,D), beta:(1,D))
    Biases / LN params are non-zero so the packed-parameter plumbing is checked.
    """
    Di = D // downsample_rate
    ks = iter(jax.random.split(key, 20))
    params = []

    def lin(k, fan_in, fan_out, bnd):
        kw_, kb_ = jax.random.split(k)
        w = jax.random.uniform(kw_, (fan_in, fan_out), dtype, -bnd, bnd)
        b = jax.random.uniform(kb_, (1, fan_out), dtype, -0.1, 0.1)
        return [w, b]

    # self attention (internal_dim == D)
    bnd = math.sqrt(6.0 / (D + 3 * D))
    for _ in range(3):
        params += lin(next(ks), D, D, bnd)
    params += lin(next(ks), D, D, 1.0 / math.sqrt(D))

    # cross attention token -> image (internal_dim == Di)
    bnd = math.sqrt(6.0 / (D + 3 * Di))
    for _ in range(3):
        params += lin(next(ks), D, Di, bnd)
    params += lin(next(ks), Di, D, 1.0 / math.sqrt(Di))

    # MLP (Linear(D, mlp_dim) -> ReLU -> Linear(mlp_dim, D))
    params += lin(next(ks), D, mlp_dim, 1.0 / math.sqrt(D))
    params += lin(next(ks), mlp_dim, D, 1.0 / math.sqrt(mlp_dim))

    # cross attention image -> token (internal_dim == Di)
    bnd = math.sqrt(6.0 / (D + 3 * Di))
    for _ in range(3):
        params += lin(next(ks), D, Di, bnd)
    params += lin(next(ks), Di, D, 1.0 / math.sqrt(Di))

    # layer norms 1..4 (non-trivial gamma/beta)
    for _ in range(4):
        kg, kb_ = jax.random.split(next(ks))
        params += [1.0 + 0.1 * jax.random.uniform(kg, (1, D), dtype, -1.0, 1.0),
                   0.1 * jax.random.uniform(kb_, (1, D), dtype, -1.0, 1.0)]

    return params


# ------------------------------ pure-JAX reference ---------------------------

def _ref_attention(xq, xk, xv, qw, qb, kw, kb, vw, vb, ow, ob, num_heads):
    q = xq @ qw + qb
    k = xk @ kw + kb
    v = xv @ vw + vb
    B, Nq, Di = q.shape
    Nk = k.shape[1]
    hd = Di // num_heads
    q = q.reshape(B, Nq, num_heads, hd).transpose(0, 2, 1, 3)
    k = k.reshape(B, Nk, num_heads, hd).transpose(0, 2, 1, 3)
    v = v.reshape(B, Nk, num_heads, hd).transpose(0, 2, 1, 3)
    attn = jnp.einsum('bhqd,bhkd->bhqk', q, k) / math.sqrt(hd)
    attn = jax.nn.softmax(attn, axis=-1)
    o = jnp.einsum('bhqk,bhkd->bhqd', attn, v)
    o = o.transpose(0, 2, 1, 3).reshape(B, Nq, Di)
    return o @ ow + ob


def _ref_ln(x, g, b, eps=1e-5):
    mu = jnp.mean(x, axis=-1, keepdims=True)
    var = jnp.mean((x - mu) ** 2, axis=-1, keepdims=True)
    return (x - mu) / jnp.sqrt(var + eps) * g + b


def reference_forward(queries, keys, qpe, kpe, params, num_heads,
                      skip_first_layer_pe=False):
    p = list(params)
    sa, t2i, mlp, i2t, norms = p[0:8], p[8:16], p[16:20], p[20:28], p[28:36]
    if not skip_first_layer_pe:
        queries = queries + qpe
    queries = queries + _ref_attention(queries, queries, queries, *sa, num_heads)
    queries = _ref_ln(queries, norms[0], norms[1])
    q = queries + qpe
    k = keys + kpe
    queries = queries + _ref_attention(q, k, keys, *t2i, num_heads)
    queries = _ref_ln(queries, norms[2], norms[3])
    h = jnp.maximum(queries @ mlp[0] + mlp[1], 0.0)
    queries = queries + (h @ mlp[2] + mlp[3])
    queries = _ref_ln(queries, norms[4], norms[5])
    q = queries + qpe
    k = keys + kpe
    keys = keys + _ref_attention(k, q, queries, *i2t, num_heads)
    keys = _ref_ln(keys, norms[6], norms[7])
    return queries, keys


# ----------------------------------- main ------------------------------------

if __name__ == "__main__":
    # Small but lane-dense shapes: D multiple of 128, Nq multiple of 8.
    B, Nq, Nk, D = 2, 8, 64, 128
    num_heads = 4
    mlp_dim = 256
    downsample_rate = 2

    key = jax.random.PRNGKey(0)
    k1, k2, k3, k4, kp = jax.random.split(key, 5)
    queries = jax.random.normal(k1, (B, Nq, D), jnp.float32)
    keys_in = jax.random.normal(k2, (B, Nk, D), jnp.float32)
    query_pe = jax.random.normal(k3, (B, Nq, D), jnp.float32)
    key_pe = jax.random.normal(k4, (B, Nk, D), jnp.float32)

    params = init_params(kp, D, num_heads, mlp_dim, downsample_rate)

    # f32 MXU path (tight check), both static PE branches.
    for skip_pe in (False, True):
        q_out, k_out = two_way_attention_block(
            queries, keys_in, query_pe, key_pe, params,
            num_heads=num_heads, skip_first_layer_pe=skip_pe,
            mxu_dtype=jnp.float32)
        jax.block_until_ready((q_out, k_out))
        q_ref, k_ref = reference_forward(
            queries, keys_in, query_pe, key_pe, params, num_heads, skip_pe)
        assert q_out.shape == (B, Nq, D) and k_out.shape == (B, Nk, D)
        np.testing.assert_allclose(np.asarray(q_out), np.asarray(q_ref),
                                   rtol=1e-2, atol=1e-2)
        np.testing.assert_allclose(np.asarray(k_out), np.asarray(k_ref),
                                   rtol=1e-2, atol=1e-2)

    # Default path: bf16 MXU operands (recommended on v5e/v6e/v7x; the v5e MXU
    # is bf16-native).  softmax / LayerNorm / bias / residual math stays f32.
    # NOTE: mixed-precision path validated only to 1e-1 tolerance.
    q_out, k_out = two_way_attention_block(
        queries, keys_in, query_pe, key_pe, params,
        num_heads=num_heads, skip_first_layer_pe=False)
    jax.block_until_ready((q_out, k_out))
    q_ref, k_ref = reference_forward(
        queries, keys_in, query_pe, key_pe, params, num_heads, False)
    np.testing.assert_allclose(np.asarray(q_out), np.asarray(q_ref),
                               rtol=1e-1, atol=1e-1)
    np.testing.assert_allclose(np.asarray(k_out), np.asarray(k_ref),
                               rtol=1e-1, atol=1e-1)

    print("KERNEL_OK")
</pallas_src>

<mosaic_0001>
module attributes {stable_mosaic.version = 11 : i64} {
  func.func @two_way_block_kernel(%arg0: i32, %arg1: memref<1x8x128xf32, #tpu.memory_space<vmem>>, %arg2: memref<1x64x128xf32, #tpu.memory_space<vmem>>, %arg3: memref<1x8x128xf32, #tpu.memory_space<vmem>>, %arg4: memref<1x64x128xf32, #tpu.memory_space<vmem>>, %arg5: memref<128x128xf32, #tpu.memory_space<vmem>>, %arg6: memref<128x128xf32, #tpu.memory_space<vmem>>, %arg7: memref<128x128xf32, #tpu.memory_space<vmem>>, %arg8: memref<128x128xf32, #tpu.memory_space<vmem>>, %arg9: memref<3x128xf32, #tpu.memory_space<vmem>>, %arg10: memref<1x128xf32, #tpu.memory_space<vmem>>, %arg11: memref<128x64xf32, #tpu.memory_space<vmem>>, %arg12: memref<128x64xf32, #tpu.memory_space<vmem>>, %arg13: memref<128x64xf32, #tpu.memory_space<vmem>>, %arg14: memref<64x128xf32, #tpu.memory_space<vmem>>, %arg15: memref<3x64xf32, #tpu.memory_space<vmem>>, %arg16: memref<1x128xf32, #tpu.memory_space<vmem>>, %arg17: memref<128x256xf32, #tpu.memory_space<vmem>>, %arg18: memref<1x256xf32, #tpu.memory_space<vmem>>, %arg19: memref<256x128xf32, #tpu.memory_space<vmem>>, %arg20: memref<1x128xf32, #tpu.memory_space<vmem>>, %arg21: memref<128x64xf32, #tpu.memory_space<vmem>>, %arg22: memref<128x64xf32, #tpu.memory_space<vmem>>, %arg23: memref<128x64xf32, #tpu.memory_space<vmem>>, %arg24: memref<64x128xf32, #tpu.memory_space<vmem>>, %arg25: memref<3x64xf32, #tpu.memory_space<vmem>>, %arg26: memref<1x128xf32, #tpu.memory_space<vmem>>, %arg27: memref<8x128xf32, #tpu.memory_space<vmem>>, %arg28: memref<1x8x128xf32, #tpu.memory_space<vmem>>, %arg29: memref<1x64x128xf32, #tpu.memory_space<vmem>>) attributes {dimension_semantics = [#tpu.dimension_semantics<parallel>], iteration_bounds = array<i64: 2>, scalar_prefetch = 0 : i64, scratch_operands = 0 : i64, tpu.core_type = #tpu.core_type<tc>, window_params = [{transform_indices = @transform_0, window_bounds = array<i64: 1, 8, 128>}, {transform_indices = @transform_1, window_bounds = array<i64: 1, 64, 128>}, {transform_indices = @transform_2, window_bounds = array<i64: 1, 8, 128>}, {transform_indices = @transform_3, window_bounds = array<i64: 1, 64, 128>}, {pipeline_mode = #tpu.pipeline_mode<synchronous>, transform_indices = @transform_4, window_bounds = array<i64: 128, 128>}, {pipeline_mode = #tpu.pipeline_mode<synchronous>, transform_indices = @transform_5, window_bounds = array<i64: 128, 128>}, {pipeline_mode = #tpu.pipeline_mode<synchronous>, transform_indices = @transform_6, window_bounds = array<i64: 128, 128>}, {pipeline_mode = #tpu.pipeline_mode<synchronous>, transform_indices = @transform_7, window_bounds = array<i64: 128, 128>}, {pipeline_mode = #tpu.pipeline_mode<synchronous>, transform_indices = @transform_8, window_bounds = array<i64: 3, 128>}, {pipeline_mode = #tpu.pipeline_mode<synchronous>, transform_indices = @transform_9, window_bounds = array<i64: 1, 128>}, {pipeline_mode = #tpu.pipeline_mode<synchronous>, transform_indices = @transform_10, window_bounds = array<i64: 128, 64>}, {pipeline_mode = #tpu.pipeline_mode<synchronous>, transform_indices = @transform_11, window_bounds = array<i64: 128, 64>}, {pipeline_mode = #tpu.pipeline_mode<synchronous>, transform_indices = @transform_12, window_bounds = array<i64: 128, 64>}, {pipeline_mode = #tpu.pipeline_mode<synchronous>, transform_indices = @transform_13, window_bounds = array<i64: 64, 128>}, {pipeline_mode = #tpu.pipeline_mode<synchronous>, transform_indices = @transform_14, window_bounds = array<i64: 3, 64>}, {pipeline_mode = #tpu.pipeline_mode<synchronous>, transform_indices = @transform_15, window_bounds = array<i64: 1, 128>}, {pipeline_mode = #tpu.pipeline_mode<synchronous>, transform_indices = @transform_16, window_bounds = array<i64: 128, 256>}, {pipeline_mode = #tpu.pipeline_mode<synchronous>, transform_indices = @transform_17, window_bounds = array<i64: 1, 256>}, {pipeline_mode = #tpu.pipeline_mode<synchronous>, transform_indices = @transform_18, window_bounds = array<i64: 256, 128>}, {pipeline_mode = #tpu.pipeline_mode<synchronous>, transform_indices = @transform_19, window_bounds = array<i64: 1, 128>}, {pipeline_mode = #tpu.pipeline_mode<synchronous>, transform_indices = @transform_20, window_bounds = array<i64: 128, 64>}, {pipeline_mode = #tpu.pipeline_mode<synchronous>, transform_indices = @transform_21, window_bounds = array<i64: 128, 64>}, {pipeline_mode = #tpu.pipeline_mode<synchronous>, transform_indices = @transform_22, window_bounds = array<i64: 128, 64>}, {pipeline_mode = #tpu.pipeline_mode<synchronous>, transform_indices = @transform_23, window_bounds = array<i64: 64, 128>}, {pipeline_mode = #tpu.pipeline_mode<synchronous>, transform_indices = @transform_24, window_bounds = array<i64: 3, 64>}, {pipeline_mode = #tpu.pipeline_mode<synchronous>, transform_indices = @transform_25, window_bounds = array<i64: 1, 128>}, {pipeline_mode = #tpu.pipeline_mode<synchronous>, transform_indices = @transform_26, window_bounds = array<i64: 8, 128>}, {transform_indices = @transform_27, window_bounds = array<i64: 1, 8, 128>}, {transform_indices = @transform_28, window_bounds = array<i64: 1, 64, 128>}]} {
    %c0 = arith.constant 0 : index
    %c0_0 = arith.constant 0 : index
    %c0_1 = arith.constant 0 : index
    %0 = vector.load %arg1[%c0, %c0_0, %c0_1] : memref<1x8x128xf32, #tpu.memory_space<vmem>>, vector<1x8x128xf32>
    %1 = vector.shape_cast %0 : vector<1x8x128xf32> to vector<8x128xf32>
    %c0_2 = arith.constant 0 : index
    %c0_3 = arith.constant 0 : index
    %c0_4 = arith.constant 0 : index
    %2 = vector.load %arg2[%c0_2, %c0_3, %c0_4] : memref<1x64x128xf32, #tpu.memory_space<vmem>>, vector<1x64x128xf32>
    %3 = vector.shape_cast %2 : vector<1x64x128xf32> to vector<64x128xf32>
    %c0_5 = arith.constant 0 : index
    %c0_6 = arith.constant 0 : index
    %c0_7 = arith.constant 0 : index
    %4 = vector.load %arg3[%c0_5, %c0_6, %c0_7] : memref<1x8x128xf32, #tpu.memory_space<vmem>>, vector<1x8x128xf32>
    %5 = vector.shape_cast %4 : vector<1x8x128xf32> to vector<8x128xf32>
    %c0_8 = arith.constant 0 : index
    %c0_9 = arith.constant 0 : index
    %c0_10 = arith.constant 0 : index
    %6 = vector.load %arg4[%c0_8, %c0_9, %c0_10] : memref<1x64x128xf32, #tpu.memory_space<vmem>>, vector<1x64x128xf32>
    %7 = vector.shape_cast %6 : vector<1x64x128xf32> to vector<64x128xf32>
    %c0_11 = arith.constant 0 : index
    %c0_12 = arith.constant 0 : index
    %8 = vector.load %arg27[%c0_11, %c0_12] : memref<8x128xf32, #tpu.memory_space<vmem>>, vector<8x128xf32>
    %9 = arith.addf %1, %5 : vector<8x128xf32>
    %c0_13 = arith.constant 0 : index
    %c0_14 = arith.constant 0 : index
    %10 = vector.load %arg5[%c0_13, %c0_14] : memref<128x128xf32, #tpu.memory_space<vmem>>, vector<128x128xf32>
    %c0_15 = arith.constant 0 : index
    %c0_16 = arith.constant 0 : index
    %11 = vector.load %arg6[%c0_15, %c0_16] : memref<128x128xf32, #tpu.memory_space<vmem>>, vector<128x128xf32>
    %c0_17 = arith.constant 0 : index
    %c0_18 = arith.constant 0 : index
    %12 = vector.load %arg7[%c0_17, %c0_18] : memref<128x128xf32, #tpu.memory_space<vmem>>, vector<128x128xf32>
    %c0_19 = arith.constant 0 : index
    %c0_20 = arith.constant 0 : index
    %13 = vector.load %arg8[%c0_19, %c0_20] : memref<128x128xf32, #tpu.memory_space<vmem>>, vector<128x128xf32>
    %c0_21 = arith.constant 0 : index
    %c0_22 = arith.constant 0 : index
    %14 = vector.load %arg9[%c0_21, %c0_22] : memref<3x128xf32, #tpu.memory_space<vmem>>, vector<3x128xf32>
    %c0_23 = arith.constant 0 : index
    %c0_24 = arith.constant 0 : index
    %15 = vector.load %arg10[%c0_23, %c0_24] : memref<1x128xf32, #tpu.memory_space<vmem>>, vector<1x128xf32>
    %cst = arith.constant dense<0.000000e+00> : vector<8x128xf32>
    %16 = tpu.matmul %9, %10, %cst {dimension_numbers = #tpu.dot_dimension_numbers<[1], [0], [0], [1], [0, 0, 1, 1], [], []>} : vector<8x128xf32>, vector<128x128xf32>, vector<8x128xf32> -> vector<8x128xf32>
    %17 = vector.extract_strided_slice %14 {offsets = [0, 0], sizes = [1, 128], strides = [1, 1]} : vector<3x128xf32> to vector<1x128xf32>
    %18 = vector.broadcast %17 : vector<1x128xf32> to vector<8x128xf32>
    %19 = arith.addf %16, %18 : vector<8x128xf32>
    %cst_25 = arith.constant dense<0.000000e+00> : vector<8x128xf32>
    %20 = tpu.matmul %9, %11, %cst_25 {dimension_numbers = #tpu.dot_dimension_numbers<[1], [0], [0], [1], [0, 0, 1, 1], [], []>} : vector<8x128xf32>, vector<128x128xf32>, vector<8x128xf32> -> vector<8x128xf32>
    %21 = vector.extract_strided_slice %14 {offsets = [1, 0], sizes = [1, 128], strides = [1, 1]} : vector<3x128xf32> to vector<1x128xf32>
    %22 = vector.broadcast %21 : vector<1x128xf32> to vector<8x128xf32>
    %23 = arith.addf %20, %22 : vector<8x128xf32>
    %cst_26 = arith.constant dense<0.000000e+00> : vector<8x128xf32>
    %24 = tpu.matmul %9, %12, %cst_26 {dimension_numbers = #tpu.dot_dimension_numbers<[1], [0], [0], [1], [0, 0, 1, 1], [], []>} : vector<8x128xf32>, vector<128x128xf32>, vector<8x128xf32> -> vector<8x128xf32>
    %25 = vector.extract_strided_slice %14 {offsets = [2, 0], sizes = [1, 128], strides = [1, 1]} : vector<3x128xf32> to vector<1x128xf32>
    %26 = vector.broadcast %25 : vector<1x128xf32> to vector<8x128xf32>
    %27 = arith.addf %24, %26 : vector<8x128xf32>
    %28 = vector.extract_strided_slice %19 {offsets = [0, 0], sizes = [8, 32], strides = [1, 1]} : vector<8x128xf32> to vector<8x32xf32>
    %29 = vector.shape_cast %28 : vector<8x32xf32> to vector<1x8x32xf32>
    %30 = vector.extract_strided_slice %19 {offsets = [0, 32], sizes = [8, 32], strides = [1, 1]} : vector<8x128xf32> to vector<8x32xf32>
    %31 = vector.shape_cast %30 : vector<8x32xf32> to vector<1x8x32xf32>
    %32 = vector.extract_strided_slice %19 {offsets = [0, 64], sizes = [8, 32], strides = [1, 1]} : vector<8x128xf32> to vector<8x32xf32>
    %33 = vector.shape_cast %32 : vector<8x32xf32> to vector<1x8x32xf32>
    %34 = vector.extract_strided_slice %19 {offsets = [0, 96], sizes = [8, 32], strides = [1, 1]} : vector<8x128xf32> to vector<8x32xf32>
    %35 = vector.shape_cast %34 : vector<8x32xf32> to vector<1x8x32xf32>
    %36 = tpu.concatenate %29, %31, %33, %35 in 0 : vector<1x8x32xf32>, vector<1x8x32xf32>, vector<1x8x32xf32>, vector<1x8x32xf32> -> vector<4x8x32xf32>
    %37 = vector.extract_strided_slice %23 {offsets = [0, 0], sizes = [8, 32], strides = [1, 1]} : vector<8x128xf32> to vector<8x32xf32>
    %38 = vector.shape_cast %37 : vector<8x32xf32> to vector<1x8x32xf32>
    %39 = vector.extract_strided_slice %23 {offsets = [0, 32], sizes = [8, 32], strides = [1, 1]} : vector<8x128xf32> to vector<8x32xf32>
    %40 = vector.shape_cast %39 : vector<8x32xf32> to vector<1x8x32xf32>
    %41 = vector.extract_strided_slice %23 {offsets = [0, 64], sizes = [8, 32], strides = [1, 1]} : vector<8x128xf32> to vector<8x32xf32>
    %42 = vector.shape_cast %41 : vector<8x32xf32> to vector<1x8x32xf32>
    %43 = vector.extract_strided_slice %23 {offsets = [0, 96], sizes = [8, 32], strides = [1, 1]} : vector<8x128xf32> to vector<8x32xf32>
    %44 = vector.shape_cast %43 : vector<8x32xf32> to vector<1x8x32xf32>
    %45 = tpu.concatenate %38, %40, %42, %44 in 0 : vector<1x8x32xf32>, vector<1x8x32xf32>, vector<1x8x32xf32>, vector<1x8x32xf32> -> vector<4x8x32xf32>
    %46 = vector.extract_strided_slice %27 {offsets = [0, 0], sizes = [8, 32], strides = [1, 1]} : vector<8x128xf32> to vector<8x32xf32>
    %47 = vector.shape_cast %46 : vector<8x32xf32> to vector<1x8x32xf32>
    %48 = vector.extract_strided_slice %27 {offsets = [0, 32], sizes = [8, 32], strides = [1, 1]} : vector<8x128xf32> to vector<8x32xf32>
    %49 = vector.shape_cast %48 : vector<8x32xf32> to vector<1x8x32xf32>
    %50 = vector.extract_strided_slice %27 {offsets = [0, 64], sizes = [8, 32], strides = [1, 1]} : vector<8x128xf32> to vector<8x32xf32>
    %51 = vector.shape_cast %50 : vector<8x32xf32> to vector<1x8x32xf32>
    %52 = vector.extract_strided_slice %27 {offsets = [0, 96], sizes = [8, 32], strides = [1, 1]} : vector<8x128xf32> to vector<8x32xf32>
    %53 = vector.shape_cast %52 : vector<8x32xf32> to vector<1x8x32xf32>
    %54 = tpu.concatenate %47, %49, %51, %53 in 0 : vector<1x8x32xf32>, vector<1x8x32xf32>, vector<1x8x32xf32>, vector<1x8x32xf32> -> vector<4x8x32xf32>
    "tpu.trace_start"() <{level = 10 : i32, message = "hqd,hkd->hqk"}> : () -> ()
    %cst_27 = arith.constant dense<0.000000e+00> : vector<4x8x8xf32>
    %55 = tpu.matmul %36, %45, %cst_27 {dimension_numbers = #tpu.dot_dimension_numbers<[2], [2], [1], [1], [0, 0, 0, 1, 1, 1], [0], [0]>} : vector<4x8x32xf32>, vector<4x8x32xf32>, vector<4x8x8xf32> -> vector<4x8x8xf32>
    "tpu.trace_stop"() : () -> ()
    %cst_28 = arith.constant dense<0xFF800000> : vector<4x8xf32>
    %56 = vector.multi_reduction <maximumf>, %55, %cst_28 [2] : vector<4x8x8xf32> to vector<4x8xf32>
    %57 = vector.shape_cast %56 : vector<4x8xf32> to vector<4x8x1xf32>
    %58 = vector.broadcast %57 : vector<4x8x1xf32> to vector<4x8x8xf32>
    %59 = arith.subf %55, %58 : vector<4x8x8xf32>
    %60 = math.exp %59 : vector<4x8x8xf32>
    %cst_29 = arith.constant dense<0.000000e+00> : vector<4x8xf32>
    %61 = vector.multi_reduction <add>, %60, %cst_29 [2] : vector<4x8x8xf32> to vector<4x8xf32>
    %62 = vector.shape_cast %61 : vector<4x8xf32> to vector<4x8x1xf32>
    %63 = tpu.reciprocal %62 {approx = true} : vector<4x8x1xf32> -> vector<4x8x1xf32>
    %64 = vector.broadcast %63 : vector<4x8x1xf32> to vector<4x8x8xf32>
    %65 = arith.mulf %60, %64 : vector<4x8x8xf32>
    "tpu.trace_start"() <{level = 10 : i32, message = "hqk,hkd->hqd"}> : () -> ()
    %cst_30 = arith.constant dense<0.000000e+00> : vector<4x8x32xf32>
    %66 = tpu.matmul %65, %54, %cst_30 {dimension_numbers = #tpu.dot_dimension_numbers<[2], [1], [1], [2], [0, 0, 0, 1, 1, 2], [0], [0]>} : vector<4x8x8xf32>, vector<4x8x32xf32>, vector<4x8x32xf32> -> vector<4x8x32xf32>
    "tpu.trace_stop"() : () -> ()
    %67 = vector.extract_strided_slice %66 {offsets = [0, 0, 0], sizes = [1, 8, 32], strides = [1, 1, 1]} : vector<4x8x32xf32> to vector<1x8x32xf32>
    %68 = vector.shape_cast %67 : vector<1x8x32xf32> to vector<8x32xf32>
    %69 = vector.extract_strided_slice %66 {offsets = [1, 0, 0], sizes = [1, 8, 32], strides = [1, 1, 1]} : vector<4x8x32xf32> to vector<1x8x32xf32>
    %70 = vector.shape_cast %69 : vector<1x8x32xf32> to vector<8x32xf32>
    %71 = vector.extract_strided_slice %66 {offsets = [2, 0, 0], sizes = [1, 8, 32], strides = [1, 1, 1]} : vector<4x8x32xf32> to vector<1x8x32xf32>
    %72 = vector.shape_cast %71 : vector<1x8x32xf32> to vector<8x32xf32>
    %73 = vector.extract_strided_slice %66 {offsets = [3, 0, 0], sizes = [1, 8, 32], strides = [1, 1, 1]} : vector<4x8x32xf32> to vector<1x8x32xf32>
    %74 = vector.shape_cast %73 : vector<1x8x32xf32> to vector<8x32xf32>
    %75 = tpu.concatenate %68, %70, %72, %74 in 1 : vector<8x32xf32>, vector<8x32xf32>, vector<8x32xf32>, vector<8x32xf32> -> vector<8x128xf32>
    %cst_31 = arith.constant dense<0.000000e+00> : vector<8x128xf32>
    %76 = tpu.matmul %75, %13, %cst_31 {dimension_numbers = #tpu.dot_dimension_numbers<[1], [0], [0], [1], [0, 0, 1, 1], [], []>} : vector<8x128xf32>, vector<128x128xf32>, vector<8x128xf32> -> vector<8x128xf32>
    %77 = vector.broadcast %15 : vector<1x128xf32> to vector<8x128xf32>
    %78 = arith.addf %76, %77 : vector<8x128xf32>
    %79 = arith.addf %9, %78 : vector<8x128xf32>
    %80 = vector.extract_strided_slice %8 {offsets = [0, 0], sizes = [1, 128], strides = [1, 1]} : vector<8x128xf32> to vector<1x128xf32>
    %81 = vector.extract_strided_slice %8 {offsets = [1, 0], sizes = [1, 128], strides = [1, 1]} : vector<8x128xf32> to vector<1x128xf32>
    %cst_32 = arith.constant dense<0.000000e+00> : vector<8xf32>
    %82 = vector.multi_reduction <add>, %79, %cst_32 [1] : vector<8x128xf32> to vector<8xf32>
    %83 = vector.shape_cast %82 : vector<8xf32> to vector<8x1xf32>
    %cst_33 = arith.constant 1.280000e+02 : f32
    %84 = vector.broadcast %cst_33 : f32 to vector<8x1xf32>
    %85 = arith.divf %83, %84 : vector<8x1xf32>
    %86 = vector.broadcast %85 : vector<8x1xf32> to vector<8x128xf32>
    %87 = arith.subf %79, %86 : vector<8x128xf32>
    %88 = arith.mulf %87, %87 : vector<8x128xf32>
    %cst_34 = arith.constant dense<0.000000e+00> : vector<8xf32>
    %89 = vector.multi_reduction <add>, %88, %cst_34 [1] : vector<8x128xf32> to vector<8xf32>
    %90 = vector.shape_cast %89 : vector<8xf32> to vector<8x1xf32>
    %cst_35 = arith.constant 1.280000e+02 : f32
    %91 = vector.broadcast %cst_35 : f32 to vector<8x1xf32>
    %92 = arith.divf %90, %91 : vector<8x1xf32>
    %cst_36 = arith.constant 9.99999974E-6 : f32
    %93 = vector.broadcast %cst_36 : f32 to vector<8x1xf32>
    %94 = arith.addf %92, %93 : vector<8x1xf32>
    %95 = math.rsqrt %94 : vector<8x1xf32>
    %96 = vector.broadcast %95 : vector<8x1xf32> to vector<8x128xf32>
    %97 = arith.mulf %87, %96 : vector<8x128xf32>
    %98 = vector.broadcast %80 : vector<1x128xf32> to vector<8x128xf32>
    %99 = arith.mulf %97, %98 : vector<8x128xf32>
    %100 = vector.broadcast %81 : vector<1x128xf32> to vector<8x128xf32>
    %101 = arith.addf %99, %100 : vector<8x128xf32>
    %102 = arith.addf %101, %5 : vector<8x128xf32>
    %103 = arith.addf %3, %7 : vector<64x128xf32>
    %c0_37 = arith.constant 0 : index
    %c0_38 = arith.constant 0 : index
    %104 = vector.load %arg11[%c0_37, %c0_38] : memref<128x64xf32, #tpu.memory_space<vmem>>, vector<128x64xf32>
    %c0_39 = arith.constant 0 : index
    %c0_40 = arith.constant 0 : index
    %105 = vector.load %arg12[%c0_39, %c0_40] : memref<128x64xf32, #tpu.memory_space<vmem>>, vector<128x64xf32>
    %c0_41 = arith.constant 0 : index
    %c0_42 = arith.constant 0 : index
    %106 = vector.load %arg13[%c0_41, %c0_42] : memref<128x64xf32, #tpu.memory_space<vmem>>, vector<128x64xf32>
    %c0_43 = arith.constant 0 : index
    %c0_44 = arith.constant 0 : index
    %107 = vector.load %arg14[%c0_43, %c0_44] : memref<64x128xf32, #tpu.memory_space<vmem>>, vector<64x128xf32>
    %c0_45 = arith.constant 0 : index
    %c0_46 = arith.constant 0 : index
    %108 = vector.load %arg15[%c0_45, %c0_46] : memref<3x64xf32, #tpu.memory_space<vmem>>, vector<3x64xf32>
    %c0_47 = arith.constant 0 : index
    %c0_48 = arith.constant 0 : index
    %109 = vector.load %arg16[%c0_47, %c0_48] : memref<1x128xf32, #tpu.memory_space<vmem>>, vector<1x128xf32>
    %cst_49 = arith.constant dense<0.000000e+00> : vector<8x64xf32>
    %110 = tpu.matmul %102, %104, %cst_49 {dimension_numbers = #tpu.dot_dimension_numbers<[1], [0], [0], [1], [0, 0, 1, 1], [], []>} : vector<8x128xf32>, vector<128x64xf32>, vector<8x64xf32> -> vector<8x64xf32>
    %111 = vector.extract_strided_slice %108 {offsets = [0, 0], sizes = [1, 64], strides = [1, 1]} : vector<3x64xf32> to vector<1x64xf32>
    %112 = vector.broadcast %111 : vector<1x64xf32> to vector<8x64xf32>
    %113 = arith.addf %110, %112 : vector<8x64xf32>
    %cst_50 = arith.constant dense<0.000000e+00> : vector<64x64xf32>
    %114 = tpu.matmul %103, %105, %cst_50 {dimension_numbers = #tpu.dot_dimension_numbers<[1], [0], [0], [1], [0, 0, 1, 1], [], []>} : vector<64x128xf32>, vector<128x64xf32>, vector<64x64xf32> -> vector<64x64xf32>
    %115 = vector.extract_strided_slice %108 {offsets = [1, 0], sizes = [1, 64], strides = [1, 1]} : vector<3x64xf32> to vector<1x64xf32>
    %116 = vector.broadcast %115 : vector<1x64xf32> to vector<64x64xf32>
    %117 = arith.addf %114, %116 : vector<64x64xf32>
    %cst_51 = arith.constant dense<0.000000e+00> : vector<64x64xf32>
    %118 = tpu.matmul %3, %106, %cst_51 {dimension_numbers = #tpu.dot_dimension_numbers<[1], [0], [0], [1], [0, 0, 1, 1], [], []>} : vector<64x128xf32>, vector<128x64xf32>, vector<64x64xf32> -> vector<64x64xf32>
    %119 = vector.extract_strided_slice %108 {offsets = [2, 0], sizes = [1, 64], strides = [1, 1]} : vector<3x64xf32> to vector<1x64xf32>
    %120 = vector.broadcast %119 : vector<1x64xf32> to vector<64x64xf32>
    %121 = arith.addf %118, %120 : vector<64x64xf32>
    %122 = vector.extract_strided_slice %113 {offsets = [0, 0], sizes = [8, 16], strides = [1, 1]} : vector<8x64xf32> to vector<8x16xf32>
    %123 = vector.shape_cast %122 : vector<8x16xf32> to vector<1x8x16xf32>
    %124 = vector.extract_strided_slice %113 {offsets = [0, 16], sizes = [8, 16], strides = [1, 1]} : vector<8x64xf32> to vector<8x16xf32>
    %125 = vector.shape_cast %124 : vector<8x16xf32> to vector<1x8x16xf32>
    %126 = vector.extract_strided_slice %113 {offsets = [0, 32], sizes = [8, 16], strides = [1, 1]} : vector<8x64xf32> to vector<8x16xf32>
    %127 = vector.shape_cast %126 : vector<8x16xf32> to vector<1x8x16xf32>
    %128 = vector.extract_strided_slice %113 {offsets = [0, 48], sizes = [8, 16], strides = [1, 1]} : vector<8x64xf32> to vector<8x16xf32>
    %129 = vector.shape_cast %128 : vector<8x16xf32> to vector<1x8x16xf32>
    %130 = tpu.concatenate %123, %125, %127, %129 in 0 : vector<1x8x16xf32>, vector<1x8x16xf32>, vector<1x8x16xf32>, vector<1x8x16xf32> -> vector<4x8x16xf32>
    %131 = vector.extract_strided_slice %117 {offsets = [0, 0], sizes = [64, 16], strides = [1, 1]} : vector<64x64xf32> to vector<64x16xf32>
    %132 = vector.shape_cast %131 : vector<64x16xf32> to vector<1x64x16xf32>
    %133 = vector.extract_strided_slice %117 {offsets = [0, 16], sizes = [64, 16], strides = [1, 1]} : vector<64x64xf32> to vector<64x16xf32>
    %134 = vector.shape_cast %133 : vector<64x16xf32> to vector<1x64x16xf32>
    %135 = vector.extract_strided_slice %117 {offsets = [0, 32], sizes = [64, 16], strides = [1, 1]} : vector<64x64xf32> to vector<64x16xf32>
    %136 = vector.shape_cast %135 : vector<64x16xf32> to vector<1x64x16xf32>
    %137 = vector.extract_strided_slice %117 {offsets = [0, 48], sizes = [64, 16], strides = [1, 1]} : vector<64x64xf32> to vector<64x16xf32>
    %138 = vector.shape_cast %137 : vector<64x16xf32> to vector<1x64x16xf32>
    %139 = tpu.concatenate %132, %134, %136, %138 in 0 : vector<1x64x16xf32>, vector<1x64x16xf32>, vector<1x64x16xf32>, vector<1x64x16xf32> -> vector<4x64x16xf32>
    %140 = vector.extract_strided_slice %121 {offsets = [0, 0], sizes = [64, 16], strides = [1, 1]} : vector<64x64xf32> to vector<64x16xf32>
    %141 = vector.shape_cast %140 : vector<64x16xf32> to vector<1x64x16xf32>
    %142 = vector.extract_strided_slice %121 {offsets = [0, 16], sizes = [64, 16], strides = [1, 1]} : vector<64x64xf32> to vector<64x16xf32>
    %143 = vector.shape_cast %142 : vector<64x16xf32> to vector<1x64x16xf32>
    %144 = vector.extract_strided_slice %121 {offsets = [0, 32], sizes = [64, 16], strides = [1, 1]} : vector<64x64xf32> to vector<64x16xf32>
    %145 = vector.shape_cast %144 : vector<64x16xf32> to vector<1x64x16xf32>
    %146 = vector.extract_strided_slice %121 {offsets = [0, 48], sizes = [64, 16], strides = [1, 1]} : vector<64x64xf32> to vector<64x16xf32>
    %147 = vector.shape_cast %146 : vector<64x16xf32> to vector<1x64x16xf32>
    %148 = tpu.concatenate %141, %143, %145, %147 in 0 : vector<1x64x16xf32>, vector<1x64x16xf32>, vector<1x64x16xf32>, vector<1x64x16xf32> -> vector<4x64x16xf32>
    "tpu.trace_start"() <{level = 10 : i32, message = "hqd,hkd->hqk"}> : () -> ()
    %cst_52 = arith.constant dense<0.000000e+00> : vector<4x8x64xf32>
    %149 = tpu.matmul %130, %139, %cst_52 {dimension_numbers = #tpu.dot_dimension_numbers<[2], [2], [1], [1], [0, 0, 0, 1, 1, 1], [0], [0]>} : vector<4x8x16xf32>, vector<4x64x16xf32>, vector<4x8x64xf32> -> vector<4x8x64xf32>
    "tpu.trace_stop"() : () -> ()
    %cst_53 = arith.constant dense<0xFF800000> : vector<4x8xf32>
    %150 = vector.multi_reduction <maximumf>, %149, %cst_53 [2] : vector<4x8x64xf32> to vector<4x8xf32>
    %151 = vector.shape_cast %150 : vector<4x8xf32> to vector<4x8x1xf32>
    %152 = vector.broadcast %151 : vector<4x8x1xf32> to vector<4x8x64xf32>
    %153 = arith.subf %149, %152 : vector<4x8x64xf32>
    %154 = math.exp %153 : vector<4x8x64xf32>
    %cst_54 = arith.constant dense<0.000000e+00> : vector<4x8xf32>
    %155 = vector.multi_reduction <add>, %154, %cst_54 [2] : vector<4x8x64xf32> to vector<4x8xf32>
    %156 = vector.shape_cast %155 : vector<4x8xf32> to vector<4x8x1xf32>
    %157 = tpu.reciprocal %156 {approx = true} : vector<4x8x1xf32> -> vector<4x8x1xf32>
    %158 = vector.broadcast %157 : vector<4x8x1xf32> to vector<4x8x64xf32>
    %159 = arith.mulf %154, %158 : vector<4x8x64xf32>
    "tpu.trace_start"() <{level = 10 : i32, message = "hqk,hkd->hqd"}> : () -> ()
    %cst_55 = arith.constant dense<0.000000e+00> : vector<4x8x16xf32>
    %160 = tpu.matmul %159, %148, %cst_55 {dimension_numbers = #tpu.dot_dimension_numbers<[2], [1], [1], [2], [0, 0, 0, 1, 1, 2], [0], [0]>} : vector<4x8x64xf32>, vector<4x64x16xf32>, vector<4x8x16xf32> -> vector<4x8x16xf32>
    "tpu.trace_stop"() : () -> ()
    %161 = vector.extract_strided_slice %160 {offsets = [0, 0, 0], sizes = [1, 8, 16], strides = [1, 1, 1]} : vector<4x8x16xf32> to vector<1x8x16xf32>
    %162 = vector.shape_cast %161 : vector<1x8x16xf32> to vector<8x16xf32>
    %163 = vector.extract_strided_slice %160 {offsets = [1, 0, 0], sizes = [1, 8, 16], strides = [1, 1, 1]} : vector<4x8x16xf32> to vector<1x8x16xf32>
    %164 = vector.shape_cast %163 : vector<1x8x16xf32> to vector<8x16xf32>
    %165 = vector.extract_strided_slice %160 {offsets = [2, 0, 0], sizes = [1, 8, 16], strides = [1, 1, 1]} : vector<4x8x16xf32> to vector<1x8x16xf32>
    %166 = vector.shape_cast %165 : vector<1x8x16xf32> to vector<8x16xf32>
    %167 = vector.extract_strided_slice %160 {offsets = [3, 0, 0], sizes = [1, 8, 16], strides = [1, 1, 1]} : vector<4x8x16xf32> to vector<1x8x16xf32>
    %168 = vector.shape_cast %167 : vector<1x8x16xf32> to vector<8x16xf32>
    %169 = tpu.concatenate %162, %164, %166, %168 in 1 : vector<8x16xf32>, vector<8x16xf32>, vector<8x16xf32>, vector<8x16xf32> -> vector<8x64xf32>
    %cst_56 = arith.constant dense<0.000000e+00> : vector<8x128xf32>
    %170 = tpu.matmul %169, %107, %cst_56 {dimension_numbers = #tpu.dot_dimension_numbers<[1], [0], [0], [1], [0, 0, 1, 1], [], []>} : vector<8x64xf32>, vector<64x128xf32>, vector<8x128xf32> -> vector<8x128xf32>
    %171 = vector.broadcast %109 : vector<1x128xf32> to vector<8x128xf32>
    %172 = arith.addf %170, %171 : vector<8x128xf32>
    %173 = arith.addf %101, %172 : vector<8x128xf32>
    %174 = vector.extract_strided_slice %8 {offsets = [2, 0], sizes = [1, 128], strides = [1, 1]} : vector<8x128xf32> to vector<1x128xf32>
    %175 = vector.extract_strided_slice %8 {offsets = [3, 0], sizes = [1, 128], strides = [1, 1]} : vector<8x128xf32> to vector<1x128xf32>
    %cst_57 = arith.constant dense<0.000000e+00> : vector<8xf32>
    %176 = vector.multi_reduction <add>, %173, %cst_57 [1] : vector<8x128xf32> to vector<8xf32>
    %177 = vector.shape_cast %176 : vector<8xf32> to vector<8x1xf32>
    %cst_58 = arith.constant 1.280000e+02 : f32
    %178 = vector.broadcast %cst_58 : f32 to vector<8x1xf32>
    %179 = arith.divf %177, %178 : vector<8x1xf32>
    %180 = vector.broadcast %179 : vector<8x1xf32> to vector<8x128xf32>
    %181 = arith.subf %173, %180 : vector<8x128xf32>
    %182 = arith.mulf %181, %181 : vector<8x128xf32>
    %cst_59 = arith.constant dense<0.000000e+00> : vector<8xf32>
    %183 = vector.multi_reduction <add>, %182, %cst_59 [1] : vector<8x128xf32> to vector<8xf32>
    %184 = vector.shape_cast %183 : vector<8xf32> to vector<8x1xf32>
    %cst_60 = arith.constant 1.280000e+02 : f32
    %185 = vector.broadcast %cst_60 : f32 to vector<8x1xf32>
    %186 = arith.divf %184, %185 : vector<8x1xf32>
    %cst_61 = arith.constant 9.99999974E-6 : f32
    %187 = vector.broadcast %cst_61 : f32 to vector<8x1xf32>
    %188 = arith.addf %186, %187 : vector<8x1xf32>
    %189 = math.rsqrt %188 : vector<8x1xf32>
    %190 = vector.broadcast %189 : vector<8x1xf32> to vector<8x128xf32>
    %191 = arith.mulf %181, %190 : vector<8x128xf32>
    %192 = vector.broadcast %174 : vector<1x128xf32> to vector<8x128xf32>
    %193 = arith.mulf %191, %192 : vector<8x128xf32>
    %194 = vector.broadcast %175 : vector<1x128xf32> to vector<8x128xf32>
    %195 = arith.addf %193, %194 : vector<8x128xf32>
    %c0_62 = arith.constant 0 : index
    %c0_63 = arith.constant 0 : index
    %196 = vector.load %arg17[%c0_62, %c0_63] : memref<128x256xf32, #tpu.memory_space<vmem>>, vector<128x256xf32>
    %cst_64 = arith.constant dense<0.000000e+00> : vector<8x256xf32>
    %197 = tpu.matmul %195, %196, %cst_64 {dimension_numbers = #tpu.dot_dimension_numbers<[1], [0], [0], [1], [0, 0, 1, 1], [], []>} : vector<8x128xf32>, vector<128x256xf32>, vector<8x256xf32> -> vector<8x256xf32>
    %c0_65 = arith.constant 0 : index
    %c0_66 = arith.constant 0 : index
    %198 = vector.load %arg18[%c0_65, %c0_66] : memref<1x256xf32, #tpu.memory_space<vmem>>, vector<1x256xf32>
    %199 = vector.broadcast %198 : vector<1x256xf32> to vector<8x256xf32>
    %200 = arith.addf %197, %199 : vector<8x256xf32>
    %cst_67 = arith.constant 0.000000e+00 : f32
    %201 = vector.broadcast %cst_67 : f32 to vector<8x256xf32>
    %202 = arith.maximumf %200, %201 : vector<8x256xf32>
    %c0_68 = arith.constant 0 : index
    %c0_69 = arith.constant 0 : index
    %203 = vector.load %arg19[%c0_68, %c0_69] : memref<256x128xf32, #tpu.memory_space<vmem>>, vector<256x128xf32>
    %cst_70 = arith.constant dense<0.000000e+00> : vector<8x128xf32>
    %204 = tpu.matmul %202, %203, %cst_70 {dimension_numbers = #tpu.dot_dimension_numbers<[1], [0], [0], [1], [0, 0, 1, 1], [], []>} : vector<8x256xf32>, vector<256x128xf32>, vector<8x128xf32> -> vector<8x128xf32>
    %c0_71 = arith.constant 0 : index
    %c0_72 = arith.constant 0 : index
    %205 = vector.load %arg20[%c0_71, %c0_72] : memref<1x128xf32, #tpu.memory_space<vmem>>, vector<1x128xf32>
    %206 = vector.broadcast %205 : vector<1x128xf32> to vector<8x128xf32>
    %207 = arith.addf %204, %206 : vector<8x128xf32>
    %208 = arith.addf %195, %207 : vector<8x128xf32>
    %209 = vector.extract_strided_slice %8 {offsets = [4, 0], sizes = [1, 128], strides = [1, 1]} : vector<8x128xf32> to vector<1x128xf32>
    %210 = vector.extract_strided_slice %8 {offsets = [5, 0], sizes = [1, 128], strides = [1, 1]} : vector<8x128xf32> to vector<1x128xf32>
    %cst_73 = arith.constant dense<0.000000e+00> : vector<8xf32>
    %211 = vector.multi_reduction <add>, %208, %cst_73 [1] : vector<8x128xf32> to vector<8xf32>
    %212 = vector.shape_cast %211 : vector<8xf32> to vector<8x1xf32>
    %cst_74 = arith.constant 1.280000e+02 : f32
    %213 = vector.broadcast %cst_74 : f32 to vector<8x1xf32>
    %214 = arith.divf %212, %213 : vector<8x1xf32>
    %215 = vector.broadcast %214 : vector<8x1xf32> to vector<8x128xf32>
    %216 = arith.subf %208, %215 : vector<8x128xf32>
    %217 = arith.mulf %216, %216 : vector<8x128xf32>
    %cst_75 = arith.constant dense<0.000000e+00> : vector<8xf32>
    %218 = vector.multi_reduction <add>, %217, %cst_75 [1] : vector<8x128xf32> to vector<8xf32>
    %219 = vector.shape_cast %218 : vector<8xf32> to vector<8x1xf32>
    %cst_76 = arith.constant 1.280000e+02 : f32
    %220 = vector.broadcast %cst_76 : f32 to vector<8x1xf32>
    %221 = arith.divf %219, %220 : vector<8x1xf32>
    %cst_77 = arith.constant 9.99999974E-6 : f32
    %222 = vector.broadcast %cst_77 : f32 to vector<8x1xf32>
    %223 = arith.addf %221, %222 : vector<8x1xf32>
    %224 = math.rsqrt %223 : vector<8x1xf32>
    %225 = vector.broadcast %224 : vector<8x1xf32> to vector<8x128xf32>
    %226 = arith.mulf %216, %225 : vector<8x128xf32>
    %227 = vector.broadcast %209 : vector<1x128xf32> to vector<8x128xf32>
    %228 = arith.mulf %226, %227 : vector<8x128xf32>
    %229 = vector.broadcast %210 : vector<1x128xf32> to vector<8x128xf32>
    %230 = arith.addf %228, %229 : vector<8x128xf32>
    %231 = arith.addf %230, %5 : vector<8x128xf32>
    %232 = arith.addf %3, %7 : vector<64x128xf32>
    %c0_78 = arith.constant 0 : index
    %c0_79 = arith.constant 0 : index
    %233 = vector.load %arg21[%c0_78, %c0_79] : memref<128x64xf32, #tpu.memory_space<vmem>>, vector<128x64xf32>
    %c0_80 = arith.constant 0 : index
    %c0_81 = arith.constant 0 : index
    %234 = vector.load %arg22[%c0_80, %c0_81] : memref<128x64xf32, #tpu.memory_space<vmem>>, vector<128x64xf32>
    %c0_82 = arith.constant 0 : index
    %c0_83 = arith.constant 0 : index
    %235 = vector.load %arg23[%c0_82, %c0_83] : memref<128x64xf32, #tpu.memory_space<vmem>>, vector<128x64xf32>
    %c0_84 = arith.constant 0 : index
    %c0_85 = arith.constant 0 : index
    %236 = vector.load %arg24[%c0_84, %c0_85] : memref<64x128xf32, #tpu.memory_space<vmem>>, vector<64x128xf32>
    %c0_86 = arith.constant 0 : index
    %c0_87 = arith.constant 0 : index
    %237 = vector.load %arg25[%c0_86, %c0_87] : memref<3x64xf32, #tpu.memory_space<vmem>>, vector<3x64xf32>
    %c0_88 = arith.constant 0 : index
    %c0_89 = arith.constant 0 : index
    %238 = vector.load %arg26[%c0_88, %c0_89] : memref<1x128xf32, #tpu.memory_space<vmem>>, vector<1x128xf32>
    %cst_90 = arith.constant dense<0.000000e+00> : vector<64x64xf32>
    %239 = tpu.matmul %232, %233, %cst_90 {dimension_numbers = #tpu.dot_dimension_numbers<[1], [0], [0], [1], [0, 0, 1, 1], [], []>} : vector<64x128xf32>, vector<128x64xf32>, vector<64x64xf32> -> vector<64x64xf32>
    %240 = vector.extract_strided_slice %237 {offsets = [0, 0], sizes = [1, 64], strides = [1, 1]} : vector<3x64xf32> to vector<1x64xf32>
    %241 = vector.broadcast %240 : vector<1x64xf32> to vector<64x64xf32>
    %242 = arith.addf %239, %241 : vector<64x64xf32>
    %cst_91 = arith.constant dense<0.000000e+00> : vector<8x64xf32>
    %243 = tpu.matmul %231, %234, %cst_91 {dimension_numbers = #tpu.dot_dimension_numbers<[1], [0], [0], [1], [0, 0, 1, 1], [], []>} : vector<8x128xf32>, vector<128x64xf32>, vector<8x64xf32> -> vector<8x64xf32>
    %244 = vector.extract_strided_slice %237 {offsets = [1, 0], sizes = [1, 64], strides = [1, 1]} : vector<3x64xf32> to vector<1x64xf32>
    %245 = vector.broadcast %244 : vector<1x64xf32> to vector<8x64xf32>
    %246 = arith.addf %243, %245 : vector<8x64xf32>
    %cst_92 = arith.constant dense<0.000000e+00> : vector<8x64xf32>
    %247 = tpu.matmul %230, %235, %cst_92 {dimension_numbers = #tpu.dot_dimension_numbers<[1], [0], [0], [1], [0, 0, 1, 1], [], []>} : vector<8x128xf32>, vector<128x64xf32>, vector<8x64xf32> -> vector<8x64xf32>
    %248 = vector.extract_strided_slice %237 {offsets = [2, 0], sizes = [1, 64], strides = [1, 1]} : vector<3x64xf32> to vector<1x64xf32>
    %249 = vector.broadcast %248 : vector<1x64xf32> to vector<8x64xf32>
    %250 = arith.addf %247, %249 : vector<8x64xf32>
    %251 = vector.extract_strided_slice %242 {offsets = [0, 0], sizes = [64, 16], strides = [1, 1]} : vector<64x64xf32> to vector<64x16xf32>
    %252 = vector.shape_cast %251 : vector<64x16xf32> to vector<1x64x16xf32>
    %253 = vector.extract_strided_slice %242 {offsets = [0, 16], sizes = [64, 16], strides = [1, 1]} : vector<64x64xf32> to vector<64x16xf32>
    %254 = vector.shape_cast %253 : vector<64x16xf32> to vector<1x64x16xf32>
    %255 = vector.extract_strided_slice %242 {offsets = [0, 32], sizes = [64, 16], strides = [1, 1]} : vector<64x64xf32> to vector<64x16xf32>
    %256 = vector.shape_cast %255 : vector<64x16xf32> to vector<1x64x16xf32>
    %257 = vector.extract_strided_slice %242 {offsets = [0, 48], sizes = [64, 16], strides = [1, 1]} : vector<64x64xf32> to vector<64x16xf32>
    %258 = vector.shape_cast %257 : vector<64x16xf32> to vector<1x64x16xf32>
    %259 = tpu.concatenate %252, %254, %256, %258 in 0 : vector<1x64x16xf32>, vector<1x64x16xf32>, vector<1x64x16xf32>, vector<1x64x16xf32> -> vector<4x64x16xf32>
    %260 = vector.extract_strided_slice %246 {offsets = [0, 0], sizes = [8, 16], strides = [1, 1]} : vector<8x64xf32> to vector<8x16xf32>
    %261 = vector.shape_cast %260 : vector<8x16xf32> to vector<1x8x16xf32>
    %262 = vector.extract_strided_slice %246 {offsets = [0, 16], sizes = [8, 16], strides = [1, 1]} : vector<8x64xf32> to vector<8x16xf32>
    %263 = vector.shape_cast %262 : vector<8x16xf32> to vector<1x8x16xf32>
    %264 = vector.extract_strided_slice %246 {offsets = [0, 32], sizes = [8, 16], strides = [1, 1]} : vector<8x64xf32> to vector<8x16xf32>
    %265 = vector.shape_cast %264 : vector<8x16xf32> to vector<1x8x16xf32>
    %266 = vector.extract_strided_slice %246 {offsets = [0, 48], sizes = [8, 16], strides = [1, 1]} : vector<8x64xf32> to vector<8x16xf32>
    %267 = vector.shape_cast %266 : vector<8x16xf32> to vector<1x8x16xf32>
    %268 = tpu.concatenate %261, %263, %265, %267 in 0 : vector<1x8x16xf32>, vector<1x8x16xf32>, vector<1x8x16xf32>, vector<1x8x16xf32> -> vector<4x8x16xf32>
    %269 = vector.extract_strided_slice %250 {offsets = [0, 0], sizes = [8, 16], strides = [1, 1]} : vector<8x64xf32> to vector<8x16xf32>
    %270 = vector.shape_cast %269 : vector<8x16xf32> to vector<1x8x16xf32>
    %271 = vector.extract_strided_slice %250 {offsets = [0, 16], sizes = [8, 16], strides = [1, 1]} : vector<8x64xf32> to vector<8x16xf32>
    %272 = vector.shape_cast %271 : vector<8x16xf32> to vector<1x8x16xf32>
    %273 = vector.extract_strided_slice %250 {offsets = [0, 32], sizes = [8, 16], strides = [1, 1]} : vector<8x64xf32> to vector<8x16xf32>
    %274 = vector.shape_cast %273 : vector<8x16xf32> to vector<1x8x16xf32>
    %275 = vector.extract_strided_slice %250 {offsets = [0, 48], sizes = [8, 16], strides = [1, 1]} : vector<8x64xf32> to vector<8x16xf32>
    %276 = vector.shape_cast %275 : vector<8x16xf32> to vector<1x8x16xf32>
    %277 = tpu.concatenate %270, %272, %274, %276 in 0 : vector<1x8x16xf32>, vector<1x8x16xf32>, vector<1x8x16xf32>, vector<1x8x16xf32> -> vector<4x8x16xf32>
    "tpu.trace_start"() <{level = 10 : i32, message = "hkd,hqd->hkq"}> : () -> ()
    %cst_93 = arith.constant dense<0.000000e+00> : vector<4x8x64xf32>
    %278 = tpu.matmul %268, %259, %cst_93 {dimension_numbers = #tpu.dot_dimension_numbers<[2], [2], [1], [1], [0, 0, 0, 1, 1, 1], [0], [0]>} : vector<4x8x16xf32>, vector<4x64x16xf32>, vector<4x8x64xf32> -> vector<4x8x64xf32>
    "tpu.trace_stop"() : () -> ()
    %cst_94 = arith.constant dense<0xFF800000> : vector<4x64xf32>
    %279 = vector.multi_reduction <maximumf>, %278, %cst_94 [1] : vector<4x8x64xf32> to vector<4x64xf32>
    %280 = vector.shape_cast %279 : vector<4x64xf32> to vector<4x1x64xf32>
    %281 = vector.broadcast %280 : vector<4x1x64xf32> to vector<4x8x64xf32>
    %282 = arith.subf %278, %281 : vector<4x8x64xf32>
    %283 = math.exp %282 : vector<4x8x64xf32>
    %cst_95 = arith.constant dense<0.000000e+00> : vector<4x64xf32>
    %284 = vector.multi_reduction <add>, %283, %cst_95 [1] : vector<4x8x64xf32> to vector<4x64xf32>
    %285 = vector.shape_cast %284 : vector<4x64xf32> to vector<4x1x64xf32>
    %286 = tpu.reciprocal %285 {approx = true} : vector<4x1x64xf32> -> vector<4x1x64xf32>
    %287 = vector.broadcast %286 : vector<4x1x64xf32> to vector<4x8x64xf32>
    %288 = arith.mulf %283, %287 : vector<4x8x64xf32>
    "tpu.trace_start"() <{level = 10 : i32, message = "hkq,hkd->hqd"}> : () -> ()
    %cst_96 = arith.constant dense<0.000000e+00> : vector<4x64x16xf32>
    %289 = tpu.matmul %288, %277, %cst_96 {dimension_numbers = #tpu.dot_dimension_numbers<[1], [1], [2], [2], [0, 0, 0, 2, 1, 2], [0], [0]>} : vector<4x8x64xf32>, vector<4x8x16xf32>, vector<4x64x16xf32> -> vector<4x64x16xf32>
    "tpu.trace_stop"() : () -> ()
    %290 = vector.extract_strided_slice %289 {offsets = [0, 0, 0], sizes = [1, 64, 16], strides = [1, 1, 1]} : vector<4x64x16xf32> to vector<1x64x16xf32>
    %291 = vector.shape_cast %290 : vector<1x64x16xf32> to vector<64x16xf32>
    %292 = vector.extract_strided_slice %289 {offsets = [1, 0, 0], sizes = [1, 64, 16], strides = [1, 1, 1]} : vector<4x64x16xf32> to vector<1x64x16xf32>
    %293 = vector.shape_cast %292 : vector<1x64x16xf32> to vector<64x16xf32>
    %294 = vector.extract_strided_slice %289 {offsets = [2, 0, 0], sizes = [1, 64, 16], strides = [1, 1, 1]} : vector<4x64x16xf32> to vector<1x64x16xf32>
    %295 = vector.shape_cast %294 : vector<1x64x16xf32> to vector<64x16xf32>
    %296 = vector.extract_strided_slice %289 {offsets = [3, 0, 0], sizes = [1, 64, 16], strides = [1, 1, 1]} : vector<4x64x16xf32> to vector<1x64x16xf32>
    %297 = vector.shape_cast %296 : vector<1x64x16xf32> to vector<64x16xf32>
    %298 = tpu.concatenate %291, %293, %295, %297 in 1 : vector<64x16xf32>, vector<64x16xf32>, vector<64x16xf32>, vector<64x16xf32> -> vector<64x64xf32>
    %cst_97 = arith.constant dense<0.000000e+00> : vector<64x128xf32>
    %299 = tpu.matmul %298, %236, %cst_97 {dimension_numbers = #tpu.dot_dimension_numbers<[1], [0], [0], [1], [0, 0, 1, 1], [], []>} : vector<64x64xf32>, vector<64x128xf32>, vector<64x128xf32> -> vector<64x128xf32>
    %300 = vector.broadcast %238 : vector<1x128xf32> to vector<64x128xf32>
    %301 = arith.addf %299, %300 : vector<64x128xf32>
    %302 = arith.addf %3, %301 : vector<64x128xf32>
    %303 = vector.extract_strided_slice %8 {offsets = [6, 0], sizes = [1, 128], strides = [1, 1]} : vector<8x128xf32> to vector<1x128xf32>
    %304 = vector.extract_strided_slice %8 {offsets = [7, 0], sizes = [1, 128], strides = [1, 1]} : vector<8x128xf32> to vector<1x128xf32>
    %cst_98 = arith.constant dense<0.000000e+00> : vector<64xf32>
    %305 = vector.multi_reduction <add>, %302, %cst_98 [1] : vector<64x128xf32> to vector<64xf32>
    %306 = vector.shape_cast %305 : vector<64xf32> to vector<64x1xf32>
    %cst_99 = arith.constant 1.280000e+02 : f32
    %307 = vector.broadcast %cst_99 : f32 to vector<64x1xf32>
    %308 = arith.divf %306, %307 : vector<64x1xf32>
    %309 = vector.broadcast %308 : vector<64x1xf32> to vector<64x128xf32>
    %310 = arith.subf %302, %309 : vector<64x128xf32>
    %311 = arith.mulf %310, %310 : vector<64x128xf32>
    %cst_100 = arith.constant dense<0.000000e+00> : vector<64xf32>
    %312 = vector.multi_reduction <add>, %311, %cst_100 [1] : vector<64x128xf32> to vector<64xf32>
    %313 = vector.shape_cast %312 : vector<64xf32> to vector<64x1xf32>
    %cst_101 = arith.constant 1.280000e+02 : f32
    %314 = vector.broadcast %cst_101 : f32 to vector<64x1xf32>
    %315 = arith.divf %313, %314 : vector<64x1xf32>
    %cst_102 = arith.constant 9.99999974E-6 : f32
    %316 = vector.broadcast %cst_102 : f32 to vector<64x1xf32>
    %317 = arith.addf %315, %316 : vector<64x1xf32>
    %318 = math.rsqrt %317 : vector<64x1xf32>
    %319 = vector.broadcast %318 : vector<64x1xf32> to vector<64x128xf32>
    %320 = arith.mulf %310, %319 : vector<64x128xf32>
    %321 = vector.broadcast %303 : vector<1x128xf32> to vector<64x128xf32>
    %322 = arith.mulf %320, %321 : vector<64x128xf32>
    %323 = vector.broadcast %304 : vector<1x128xf32> to vector<64x128xf32>
    %324 = arith.addf %322, %323 : vector<64x128xf32>
    %c0_103 = arith.constant 0 : index
    %c0_104 = arith.constant 0 : index
    %c0_105 = arith.constant 0 : index
    %325 = vector.load %arg28[%c0_103, %c0_104, %c0_105] : memref<1x8x128xf32, #tpu.memory_space<vmem>>, vector<1x8x128xf32>
    %326 = vector.shape_cast %325 : vector<1x8x128xf32> to vector<8x128xf32>
    %327 = vector.shape_cast %230 : vector<8x128xf32> to vector<1x8x128xf32>
    tpu.vector_store %arg28[%c0_103, %c0_104, %c0_105], %327 {strides = array<i32>} : memref<1x8x128xf32, #tpu.memory_space<vmem>>, vector<1x8x128xf32>,
    %c0_106 = arith.constant 0 : index
    %c0_107 = arith.constant 0 : index
    %c0_108 = arith.constant 0 : index
    %328 = vector.load %arg29[%c0_106, %c0_107, %c0_108] : memref<1x64x128xf32, #tpu.memory_space<vmem>>, vector<1x64x128xf32>
    %329 = vector.shape_cast %328 : vector<1x64x128xf32> to vector<64x128xf32>
    %330 = vector.shape_cast %324 : vector<64x128xf32> to vector<1x64x128xf32>
    tpu.vector_store %arg29[%c0_106, %c0_107, %c0_108], %330 {strides = array<i32>} : memref<1x64x128xf32, #tpu.memory_space<vmem>>, vector<1x64x128xf32>,
    return
  }
  func.func @transform_0(%arg0: i32) -> (i32, i32, i32) {
    %c0_i32 = arith.constant 0 : i32
    %c0_i32_0 = arith.constant 0 : i32
    %c0_i32_1 = arith.constant 0 : i32
    return %arg0, %c0_i32, %c0_i32_0 : i32, i32, i32
  }
  func.func @transform_1(%arg0: i32) -> (i32, i32, i32) {
    %c0_i32 = arith.constant 0 : i32
    %c0_i32_0 = arith.constant 0 : i32
    %c0_i32_1 = arith.constant 0 : i32
    return %arg0, %c0_i32, %c0_i32_0 : i32, i32, i32
  }
  func.func @transform_2(%arg0: i32) -> (i32, i32, i32) {
    %c0_i32 = arith.constant 0 : i32
    %c0_i32_0 = arith.constant 0 : i32
    %c0_i32_1 = arith.constant 0 : i32
    return %arg0, %c0_i32, %c0_i32_0 : i32, i32, i32
  }
  func.func @transform_3(%arg0: i32) -> (i32, i32, i32) {
    %c0_i32 = arith.constant 0 : i32
    %c0_i32_0 = arith.constant 0 : i32
    %c0_i32_1 = arith.constant 0 : i32
    return %arg0, %c0_i32, %c0_i32_0 : i32, i32, i32
  }
  func.func @transform_4(%arg0: i32) -> (i32, i32) {
    %c0_i32 = arith.constant 0 : i32
    %c0_i32_0 = arith.constant 0 : i32
    %c0_i32_1 = arith.constant 0 : i32
    return %c0_i32, %c0_i32_0 : i32, i32
  }
  func.func @transform_5(%arg0: i32) -> (i32, i32) {
    %c0_i32 = arith.constant 0 : i32
    %c0_i32_0 = arith.constant 0 : i32
    %c0_i32_1 = arith.constant 0 : i32
    return %c0_i32, %c0_i32_0 : i32, i32
  }
  func.func @transform_6(%arg0: i32) -> (i32, i32) {
    %c0_i32 = arith.constant 0 : i32
    %c0_i32_0 = arith.constant 0 : i32
    %c0_i32_1 = arith.constant 0 : i32
    return %c0_i32, %c0_i32_0 : i32, i32
  }
  func.func @transform_7(%arg0: i32) -> (i32, i32) {
    %c0_i32 = arith.constant 0 : i32
    %c0_i32_0 = arith.constant 0 : i32
    %c0_i32_1 = arith.constant 0 : i32
    return %c0_i32, %c0_i32_0 : i32, i32
  }
  func.func @transform_8(%arg0: i32) -> (i32, i32) {
    %c0_i32 = arith.constant 0 : i32
    %c0_i32_0 = arith.constant 0 : i32
    %c0_i32_1 = arith.constant 0 : i32
    return %c0_i32, %c0_i32_0 : i32, i32
  }
  func.func @transform_9(%arg0: i32) -> (i32, i32) {
    %c0_i32 = arith.constant 0 : i32
    %c0_i32_0 = arith.constant 0 : i32
    %c0_i32_1 = arith.constant 0 : i32
    return %c0_i32, %c0_i32_0 : i32, i32
  }
  func.func @transform_10(%arg0: i32) -> (i32, i32) {
    %c0_i32 = arith.constant 0 : i32
    %c0_i32_0 = arith.constant 0 : i32
    %c0_i32_1 = arith.constant 0 : i32
    return %c0_i32, %c0_i32_0 : i32, i32
  }
  func.func @transform_11(%arg0: i32) -> (i32, i32) {
    %c0_i32 = arith.constant 0 : i32
    %c0_i32_0 = arith.constant 0 : i32
    %c0_i32_1 = arith.constant 0 : i32
    return %c0_i32, %c0_i32_0 : i32, i32
  }
  func.func @transform_12(%arg0: i32) -> (i32, i32) {
    %c0_i32 = arith.constant 0 : i32
    %c0_i32_0 = arith.constant 0 : i32
    %c0_i32_1 = arith.constant 0 : i32
    return %c0_i32, %c0_i32_0 : i32, i32
  }
  func.func @transform_13(%arg0: i32) -> (i32, i32) {
    %c0_i32 = arith.constant 0 : i32
    %c0_i32_0 = arith.constant 0 : i32
    %c0_i32_1 = arith.constant 0 : i32
    return %c0_i32, %c0_i32_0 : i32, i32
  }
  func.func @transform_14(%arg0: i32) -> (i32, i32) {
    %c0_i32 = arith.constant 0 : i32
    %c0_i32_0 = arith.constant 0 : i32
    %c0_i32_1 = arith.constant 0 : i32
    return %c0_i32, %c0_i32_0 : i32, i32
  }
  func.func @transform_15(%arg0: i32) -> (i32, i32) {
    %c0_i32 = arith.constant 0 : i32
    %c0_i32_0 = arith.constant 0 : i32
    %c0_i32_1 = arith.constant 0 : i32
    return %c0_i32, %c0_i32_0 : i32, i32
  }
  func.func @transform_16(%arg0: i32) -> (i32, i32) {
    %c0_i32 = arith.constant 0 : i32
    %c0_i32_0 = arith.constant 0 : i32
    %c0_i32_1 = arith.constant 0 : i32
    return %c0_i32, %c0_i32_0 : i32, i32
  }
  func.func @transform_17(%arg0: i32) -> (i32, i32) {
    %c0_i32 = arith.constant 0 : i32
    %c0_i32_0 = arith.constant 0 : i32
    %c0_i32_1 = arith.constant 0 : i32
    return %c0_i32, %c0_i32_0 : i32, i32
  }
  func.func @transform_18(%arg0: i32) -> (i32, i32) {
    %c0_i32 = arith.constant 0 : i32
    %c0_i32_0 = arith.constant 0 : i32
    %c0_i32_1 = arith.constant 0 : i32
    return %c0_i32, %c0_i32_0 : i32, i32
  }
  func.func @transform_19(%arg0: i32) -> (i32, i32) {
    %c0_i32 = arith.constant 0 : i32
    %c0_i32_0 = arith.constant 0 : i32
    %c0_i32_1 = arith.constant 0 : i32
    return %c0_i32, %c0_i32_0 : i32, i32
  }
  func.func @transform_20(%arg0: i32) -> (i32, i32) {
    %c0_i32 = arith.constant 0 : i32
    %c0_i32_0 = arith.constant 0 : i32
    %c0_i32_1 = arith.constant 0 : i32
    return %c0_i32, %c0_i32_0 : i32, i32
  }
  func.func @transform_21(%arg0: i32) -> (i32, i32) {
    %c0_i32 = arith.constant 0 : i32
    %c0_i32_0 = arith.constant 0 : i32
    %c0_i32_1 = arith.constant 0 : i32
    return %c0_i32, %c0_i32_0 : i32, i32
  }
  func.func @transform_22(%arg0: i32) -> (i32, i32) {
    %c0_i32 = arith.constant 0 : i32
    %c0_i32_0 = arith.constant 0 : i32
    %c0_i32_1 = arith.constant 0 : i32
    return %c0_i32, %c0_i32_0 : i32, i32
  }
  func.func @transform_23(%arg0: i32) -> (i32, i32) {
    %c0_i32 = arith.constant 0 : i32
    %c0_i32_0 = arith.constant 0 : i32
    %c0_i32_1 = arith.constant 0 : i32
    return %c0_i32, %c0_i32_0 : i32, i32
  }
  func.func @transform_24(%arg0: i32) -> (i32, i32) {
    %c0_i32 = arith.constant 0 : i32
    %c0_i32_0 = arith.constant 0 : i32
    %c0_i32_1 = arith.constant 0 : i32
    return %c0_i32, %c0_i32_0 : i32, i32
  }
  func.func @transform_25(%arg0: i32) -> (i32, i32) {
    %c0_i32 = arith.constant 0 : i32
    %c0_i32_0 = arith.constant 0 : i32
    %c0_i32_1 = arith.constant 0 : i32
    return %c0_i32, %c0_i32_0 : i32, i32
  }
  func.func @transform_26(%arg0: i32) -> (i32, i32) {
    %c0_i32 = arith.constant 0 : i32
    %c0_i32_0 = arith.constant 0 : i32
    %c0_i32_1 = arith.constant 0 : i32
    return %c0_i32, %c0_i32_0 : i32, i32
  }
  func.func @transform_27(%arg0: i32) -> (i32, i32, i32) {
    %c0_i32 = arith.constant 0 : i32
    %c0_i32_0 = arith.constant 0 : i32
    %c0_i32_1 = arith.constant 0 : i32
    return %arg0, %c0_i32, %c0_i32_0 : i32, i32, i32
  }
  func.func @transform_28(%arg0: i32) -> (i32, i32, i32) {
    %c0_i32 = arith.constant 0 : i32
    %c0_i32_0 = arith.constant 0 : i32
    %c0_i32_1 = arith.constant 0 : i32
    return %arg0, %c0_i32, %c0_i32_0 : i32, i32, i32
  }
}

module attributes {stable_mosaic.version = 11 : i64} {
  func.func @two_way_block_kernel(%arg0: i32, %arg1: memref<1x8x128xf32, #tpu.memory_space<vmem>>, %arg2: memref<1x64x128xf32, #tpu.memory_space<vmem>>, %arg3: memref<1x8x128xf32, #tpu.memory_space<vmem>>, %arg4: memref<1x64x128xf32, #tpu.memory_space<vmem>>, %arg5: memref<128x128xf32, #tpu.memory_space<vmem>>, %arg6: memref<128x128xf32, #tpu.memory_space<vmem>>, %arg7: memref<128x128xf32, #tpu.memory_space<vmem>>, %arg8: memref<128x128xf32, #tpu.memory_space<vmem>>, %arg9: memref<3x128xf32, #tpu.memory_space<vmem>>, %arg10: memref<1x128xf32, #tpu.memory_space<vmem>>, %arg11: memref<128x64xf32, #tpu.memory_space<vmem>>, %arg12: memref<128x64xf32, #tpu.memory_space<vmem>>, %arg13: memref<128x64xf32, #tpu.memory_space<vmem>>, %arg14: memref<64x128xf32, #tpu.memory_space<vmem>>, %arg15: memref<3x64xf32, #tpu.memory_space<vmem>>, %arg16: memref<1x128xf32, #tpu.memory_space<vmem>>, %arg17: memref<128x256xf32, #tpu.memory_space<vmem>>, %arg18: memref<1x256xf32, #tpu.memory_space<vmem>>, %arg19: memref<256x128xf32, #tpu.memory_space<vmem>>, %arg20: memref<1x128xf32, #tpu.memory_space<vmem>>, %arg21: memref<128x64xf32, #tpu.memory_space<vmem>>, %arg22: memref<128x64xf32, #tpu.memory_space<vmem>>, %arg23: memref<128x64xf32, #tpu.memory_space<vmem>>, %arg24: memref<64x128xf32, #tpu.memory_space<vmem>>, %arg25: memref<3x64xf32, #tpu.memory_space<vmem>>, %arg26: memref<1x128xf32, #tpu.memory_space<vmem>>, %arg27: memref<8x128xf32, #tpu.memory_space<vmem>>, %arg28: memref<1x8x128xf32, #tpu.memory_space<vmem>>, %arg29: memref<1x64x128xf32, #tpu.memory_space<vmem>>) attributes {dimension_semantics = [#tpu.dimension_semantics<parallel>], iteration_bounds = array<i64: 2>, scalar_prefetch = 0 : i64, scratch_operands = 0 : i64, tpu.core_type = #tpu.core_type<tc>, window_params = [{transform_indices = @transform_0, window_bounds = array<i64: 1, 8, 128>}, {transform_indices = @transform_1, window_bounds = array<i64: 1, 64, 128>}, {transform_indices = @transform_2, window_bounds = array<i64: 1, 8, 128>}, {transform_indices = @transform_3, window_bounds = array<i64: 1, 64, 128>}, {pipeline_mode = #tpu.pipeline_mode<synchronous>, transform_indices = @transform_4, window_bounds = array<i64: 128, 128>}, {pipeline_mode = #tpu.pipeline_mode<synchronous>, transform_indices = @transform_5, window_bounds = array<i64: 128, 128>}, {pipeline_mode = #tpu.pipeline_mode<synchronous>, transform_indices = @transform_6, window_bounds = array<i64: 128, 128>}, {pipeline_mode = #tpu.pipeline_mode<synchronous>, transform_indices = @transform_7, window_bounds = array<i64: 128, 128>}, {pipeline_mode = #tpu.pipeline_mode<synchronous>, transform_indices = @transform_8, window_bounds = array<i64: 3, 128>}, {pipeline_mode = #tpu.pipeline_mode<synchronous>, transform_indices = @transform_9, window_bounds = array<i64: 1, 128>}, {pipeline_mode = #tpu.pipeline_mode<synchronous>, transform_indices = @transform_10, window_bounds = array<i64: 128, 64>}, {pipeline_mode = #tpu.pipeline_mode<synchronous>, transform_indices = @transform_11, window_bounds = array<i64: 128, 64>}, {pipeline_mode = #tpu.pipeline_mode<synchronous>, transform_indices = @transform_12, window_bounds = array<i64: 128, 64>}, {pipeline_mode = #tpu.pipeline_mode<synchronous>, transform_indices = @transform_13, window_bounds = array<i64: 64, 128>}, {pipeline_mode = #tpu.pipeline_mode<synchronous>, transform_indices = @transform_14, window_bounds = array<i64: 3, 64>}, {pipeline_mode = #tpu.pipeline_mode<synchronous>, transform_indices = @transform_15, window_bounds = array<i64: 1, 128>}, {pipeline_mode = #tpu.pipeline_mode<synchronous>, transform_indices = @transform_16, window_bounds = array<i64: 128, 256>}, {pipeline_mode = #tpu.pipeline_mode<synchronous>, transform_indices = @transform_17, window_bounds = array<i64: 1, 256>}, {pipeline_mode = #tpu.pipeline_mode<synchronous>, transform_indices = @transform_18, window_bounds = array<i64: 256, 128>}, {pipeline_mode = #tpu.pipeline_mode<synchronous>, transform_indices = @transform_19, window_bounds = array<i64: 1, 128>}, {pipeline_mode = #tpu.pipeline_mode<synchronous>, transform_indices = @transform_20, window_bounds = array<i64: 128, 64>}, {pipeline_mode = #tpu.pipeline_mode<synchronous>, transform_indices = @transform_21, window_bounds = array<i64: 128, 64>}, {pipeline_mode = #tpu.pipeline_mode<synchronous>, transform_indices = @transform_22, window_bounds = array<i64: 128, 64>}, {pipeline_mode = #tpu.pipeline_mode<synchronous>, transform_indices = @transform_23, window_bounds = array<i64: 64, 128>}, {pipeline_mode = #tpu.pipeline_mode<synchronous>, transform_indices = @transform_24, window_bounds = array<i64: 3, 64>}, {pipeline_mode = #tpu.pipeline_mode<synchronous>, transform_indices = @transform_25, window_bounds = array<i64: 1, 128>}, {pipeline_mode = #tpu.pipeline_mode<synchronous>, transform_indices = @transform_26, window_bounds = array<i64: 8, 128>}, {transform_indices = @transform_27, window_bounds = array<i64: 1, 8, 128>}, {transform_indices = @transform_28, window_bounds = array<i64: 1, 64, 128>}]} {
    %c0 = arith.constant 0 : index
    %c0_0 = arith.constant 0 : index
    %c0_1 = arith.constant 0 : index
    %0 = vector.load %arg1[%c0, %c0_0, %c0_1] : memref<1x8x128xf32, #tpu.memory_space<vmem>>, vector<1x8x128xf32>
    %1 = vector.shape_cast %0 : vector<1x8x128xf32> to vector<8x128xf32>
    %c0_2 = arith.constant 0 : index
    %c0_3 = arith.constant 0 : index
    %c0_4 = arith.constant 0 : index
    %2 = vector.load %arg2[%c0_2, %c0_3, %c0_4] : memref<1x64x128xf32, #tpu.memory_space<vmem>>, vector<1x64x128xf32>
    %3 = vector.shape_cast %2 : vector<1x64x128xf32> to vector<64x128xf32>
    %c0_5 = arith.constant 0 : index
    %c0_6 = arith.constant 0 : index
    %c0_7 = arith.constant 0 : index
    %4 = vector.load %arg3[%c0_5, %c0_6, %c0_7] : memref<1x8x128xf32, #tpu.memory_space<vmem>>, vector<1x8x128xf32>
    %5 = vector.shape_cast %4 : vector<1x8x128xf32> to vector<8x128xf32>
    %c0_8 = arith.constant 0 : index
    %c0_9 = arith.constant 0 : index
    %c0_10 = arith.constant 0 : index
    %6 = vector.load %arg4[%c0_8, %c0_9, %c0_10] : memref<1x64x128xf32, #tpu.memory_space<vmem>>, vector<1x64x128xf32>
    %7 = vector.shape_cast %6 : vector<1x64x128xf32> to vector<64x128xf32>
    %c0_11 = arith.constant 0 : index
    %c0_12 = arith.constant 0 : index
    %8 = vector.load %arg27[%c0_11, %c0_12] : memref<8x128xf32, #tpu.memory_space<vmem>>, vector<8x128xf32>
    %9 = arith.addf %1, %5 : vector<8x128xf32>
    %c0_13 = arith.constant 0 : index
    %c0_14 = arith.constant 0 : index
    %10 = vector.load %arg5[%c0_13, %c0_14] : memref<128x128xf32, #tpu.memory_space<vmem>>, vector<128x128xf32>
    %c0_15 = arith.constant 0 : index
    %c0_16 = arith.constant 0 : index
    %11 = vector.load %arg6[%c0_15, %c0_16] : memref<128x128xf32, #tpu.memory_space<vmem>>, vector<128x128xf32>
    %c0_17 = arith.constant 0 : index
    %c0_18 = arith.constant 0 : index
    %12 = vector.load %arg7[%c0_17, %c0_18] : memref<128x128xf32, #tpu.memory_space<vmem>>, vector<128x128xf32>
    %c0_19 = arith.constant 0 : index
    %c0_20 = arith.constant 0 : index
    %13 = vector.load %arg8[%c0_19, %c0_20] : memref<128x128xf32, #tpu.memory_space<vmem>>, vector<128x128xf32>
    %c0_21 = arith.constant 0 : index
    %c0_22 = arith.constant 0 : index
    %14 = vector.load %arg9[%c0_21, %c0_22] : memref<3x128xf32, #tpu.memory_space<vmem>>, vector<3x128xf32>
    %c0_23 = arith.constant 0 : index
    %c0_24 = arith.constant 0 : index
    %15 = vector.load %arg10[%c0_23, %c0_24] : memref<1x128xf32, #tpu.memory_space<vmem>>, vector<1x128xf32>
    %cst = arith.constant dense<0.000000e+00> : vector<8x128xf32>
    %16 = tpu.matmul %9, %10, %cst {dimension_numbers = #tpu.dot_dimension_numbers<[1], [0], [0], [1], [0, 0, 1, 1], [], []>} : vector<8x128xf32>, vector<128x128xf32>, vector<8x128xf32> -> vector<8x128xf32>
    %17 = vector.extract_strided_slice %14 {offsets = [0, 0], sizes = [1, 128], strides = [1, 1]} : vector<3x128xf32> to vector<1x128xf32>
    %18 = vector.broadcast %17 : vector<1x128xf32> to vector<8x128xf32>
    %19 = arith.addf %16, %18 : vector<8x128xf32>
    %cst_25 = arith.constant dense<0.000000e+00> : vector<8x128xf32>
    %20 = tpu.matmul %9, %11, %cst_25 {dimension_numbers = #tpu.dot_dimension_numbers<[1], [0], [0], [1], [0, 0, 1, 1], [], []>} : vector<8x128xf32>, vector<128x128xf32>, vector<8x128xf32> -> vector<8x128xf32>
    %21 = vector.extract_strided_slice %14 {offsets = [1, 0], sizes = [1, 128], strides = [1, 1]} : vector<3x128xf32> to vector<1x128xf32>
    %22 = vector.broadcast %21 : vector<1x128xf32> to vector<8x128xf32>
    %23 = arith.addf %20, %22 : vector<8x128xf32>
    %cst_26 = arith.constant dense<0.000000e+00> : vector<8x128xf32>
    %24 = tpu.matmul %9, %12, %cst_26 {dimension_numbers = #tpu.dot_dimension_numbers<[1], [0], [0], [1], [0, 0, 1, 1], [], []>} : vector<8x128xf32>, vector<128x128xf32>, vector<8x128xf32> -> vector<8x128xf32>
    %25 = vector.extract_strided_slice %14 {offsets = [2, 0], sizes = [1, 128], strides = [1, 1]} : vector<3x128xf32> to vector<1x128xf32>
    %26 = vector.broadcast %25 : vector<1x128xf32> to vector<8x128xf32>
    %27 = arith.addf %24, %26 : vector<8x128xf32>
    %28 = vector.extract_strided_slice %19 {offsets = [0, 0], sizes = [8, 32], strides = [1, 1]} : vector<8x128xf32> to vector<8x32xf32>
    %29 = vector.shape_cast %28 : vector<8x32xf32> to vector<1x8x32xf32>
    %30 = vector.extract_strided_slice %19 {offsets = [0, 32], sizes = [8, 32], strides = [1, 1]} : vector<8x128xf32> to vector<8x32xf32>
    %31 = vector.shape_cast %30 : vector<8x32xf32> to vector<1x8x32xf32>
    %32 = vector.extract_strided_slice %19 {offsets = [0, 64], sizes = [8, 32], strides = [1, 1]} : vector<8x128xf32> to vector<8x32xf32>
    %33 = vector.shape_cast %32 : vector<8x32xf32> to vector<1x8x32xf32>
    %34 = vector.extract_strided_slice %19 {offsets = [0, 96], sizes = [8, 32], strides = [1, 1]} : vector<8x128xf32> to vector<8x32xf32>
    %35 = vector.shape_cast %34 : vector<8x32xf32> to vector<1x8x32xf32>
    %36 = tpu.concatenate %29, %31, %33, %35 in 0 : vector<1x8x32xf32>, vector<1x8x32xf32>, vector<1x8x32xf32>, vector<1x8x32xf32> -> vector<4x8x32xf32>
    %37 = vector.extract_strided_slice %23 {offsets = [0, 0], sizes = [8, 32], strides = [1, 1]} : vector<8x128xf32> to vector<8x32xf32>
    %38 = vector.shape_cast %37 : vector<8x32xf32> to vector<1x8x32xf32>
    %39 = vector.extract_strided_slice %23 {offsets = [0, 32], sizes = [8, 32], strides = [1, 1]} : vector<8x128xf32> to vector<8x32xf32>
    %40 = vector.shape_cast %39 : vector<8x32xf32> to vector<1x8x32xf32>
    %41 = vector.extract_strided_slice %23 {offsets = [0, 64], sizes = [8, 32], strides = [1, 1]} : vector<8x128xf32> to vector<8x32xf32>
    %42 = vector.shape_cast %41 : vector<8x32xf32> to vector<1x8x32xf32>
    %43 = vector.extract_strided_slice %23 {offsets = [0, 96], sizes = [8, 32], strides = [1, 1]} : vector<8x128xf32> to vector<8x32xf32>
    %44 = vector.shape_cast %43 : vector<8x32xf32> to vector<1x8x32xf32>
    %45 = tpu.concatenate %38, %40, %42, %44 in 0 : vector<1x8x32xf32>, vector<1x8x32xf32>, vector<1x8x32xf32>, vector<1x8x32xf32> -> vector<4x8x32xf32>
    %46 = vector.extract_strided_slice %27 {offsets = [0, 0], sizes = [8, 32], strides = [1, 1]} : vector<8x128xf32> to vector<8x32xf32>
    %47 = vector.shape_cast %46 : vector<8x32xf32> to vector<1x8x32xf32>
    %48 = vector.extract_strided_slice %27 {offsets = [0, 32], sizes = [8, 32], strides = [1, 1]} : vector<8x128xf32> to vector<8x32xf32>
    %49 = vector.shape_cast %48 : vector<8x32xf32> to vector<1x8x32xf32>
    %50 = vector.extract_strided_slice %27 {offsets = [0, 64], sizes = [8, 32], strides = [1, 1]} : vector<8x128xf32> to vector<8x32xf32>
    %51 = vector.shape_cast %50 : vector<8x32xf32> to vector<1x8x32xf32>
    %52 = vector.extract_strided_slice %27 {offsets = [0, 96], sizes = [8, 32], strides = [1, 1]} : vector<8x128xf32> to vector<8x32xf32>
    %53 = vector.shape_cast %52 : vector<8x32xf32> to vector<1x8x32xf32>
    %54 = tpu.concatenate %47, %49, %51, %53 in 0 : vector<1x8x32xf32>, vector<1x8x32xf32>, vector<1x8x32xf32>, vector<1x8x32xf32> -> vector<4x8x32xf32>
    "tpu.trace_start"() <{level = 10 : i32, message = "hqd,hkd->hqk"}> : () -> ()
    %cst_27 = arith.constant dense<0.000000e+00> : vector<4x8x8xf32>
    %55 = tpu.matmul %36, %45, %cst_27 {dimension_numbers = #tpu.dot_dimension_numbers<[2], [2], [1], [1], [0, 0, 0, 1, 1, 1], [0], [0]>} : vector<4x8x32xf32>, vector<4x8x32xf32>, vector<4x8x8xf32> -> vector<4x8x8xf32>
    "tpu.trace_stop"() : () -> ()
    %cst_28 = arith.constant dense<0xFF800000> : vector<4x8xf32>
    %56 = vector.multi_reduction <maximumf>, %55, %cst_28 [2] : vector<4x8x8xf32> to vector<4x8xf32>
    %57 = vector.shape_cast %56 : vector<4x8xf32> to vector<4x8x1xf32>
    %58 = vector.broadcast %57 : vector<4x8x1xf32> to vector<4x8x8xf32>
    %59 = arith.subf %55, %58 : vector<4x8x8xf32>
    %60 = math.exp %59 : vector<4x8x8xf32>
    %cst_29 = arith.constant dense<0.000000e+00> : vector<4x8xf32>
    %61 = vector.multi_reduction <add>, %60, %cst_29 [2] : vector<4x8x8xf32> to vector<4x8xf32>
    %62 = vector.shape_cast %61 : vector<4x8xf32> to vector<4x8x1xf32>
    %63 = tpu.reciprocal %62 {approx = true} : vector<4x8x1xf32> -> vector<4x8x1xf32>
    %64 = vector.broadcast %63 : vector<4x8x1xf32> to vector<4x8x8xf32>
    %65 = arith.mulf %60, %64 : vector<4x8x8xf32>
    "tpu.trace_start"() <{level = 10 : i32, message = "hqk,hkd->hqd"}> : () -> ()
    %cst_30 = arith.constant dense<0.000000e+00> : vector<4x8x32xf32>
    %66 = tpu.matmul %65, %54, %cst_30 {dimension_numbers = #tpu.dot_dimension_numbers<[2], [1], [1], [2], [0, 0, 0, 1, 1, 2], [0], [0]>} : vector<4x8x8xf32>, vector<4x8x32xf32>, vector<4x8x32xf32> -> vector<4x8x32xf32>
    "tpu.trace_stop"() : () -> ()
    %67 = vector.extract_strided_slice %66 {offsets = [0, 0, 0], sizes = [1, 8, 32], strides = [1, 1, 1]} : vector<4x8x32xf32> to vector<1x8x32xf32>
    %68 = vector.shape_cast %67 : vector<1x8x32xf32> to vector<8x32xf32>
    %69 = vector.extract_strided_slice %66 {offsets = [1, 0, 0], sizes = [1, 8, 32], strides = [1, 1, 1]} : vector<4x8x32xf32> to vector<1x8x32xf32>
    %70 = vector.shape_cast %69 : vector<1x8x32xf32> to vector<8x32xf32>
    %71 = vector.extract_strided_slice %66 {offsets = [2, 0, 0], sizes = [1, 8, 32], strides = [1, 1, 1]} : vector<4x8x32xf32> to vector<1x8x32xf32>
    %72 = vector.shape_cast %71 : vector<1x8x32xf32> to vector<8x32xf32>
    %73 = vector.extract_strided_slice %66 {offsets = [3, 0, 0], sizes = [1, 8, 32], strides = [1, 1, 1]} : vector<4x8x32xf32> to vector<1x8x32xf32>
    %74 = vector.shape_cast %73 : vector<1x8x32xf32> to vector<8x32xf32>
    %75 = tpu.concatenate %68, %70, %72, %74 in 1 : vector<8x32xf32>, vector<8x32xf32>, vector<8x32xf32>, vector<8x32xf32> -> vector<8x128xf32>
    %cst_31 = arith.constant dense<0.000000e+00> : vector<8x128xf32>
    %76 = tpu.matmul %75, %13, %cst_31 {dimension_numbers = #tpu.dot_dimension_numbers<[1], [0], [0], [1], [0, 0, 1, 1], [], []>} : vector<8x128xf32>, vector<128x128xf32>, vector<8x128xf32> -> vector<8x128xf32>
    %77 = vector.broadcast %15 : vector<1x128xf32> to vector<8x128xf32>
    %78 = arith.addf %76, %77 : vector<8x128xf32>
    %79 = arith.addf %9, %78 : vector<8x128xf32>
    %80 = vector.extract_strided_slice %8 {offsets = [0, 0], sizes = [1, 128], strides = [1, 1]} : vector<8x128xf32> to vector<1x128xf32>
    %81 = vector.extract_strided_slice %8 {offsets = [1, 0], sizes = [1, 128], strides = [1, 1]} : vector<8x128xf32> to vector<1x128xf32>
    %cst_32 = arith.constant dense<0.000000e+00> : vector<8xf32>
    %82 = vector.multi_reduction <add>, %79, %cst_32 [1] : vector<8x128xf32> to vector<8xf32>
    %83 = vector.shape_cast %82 : vector<8xf32> to vector<8x1xf32>
    %cst_33 = arith.constant 1.280000e+02 : f32
    %84 = vector.broadcast %cst_33 : f32 to vector<8x1xf32>
    %85 = arith.divf %83, %84 : vector<8x1xf32>
    %86 = vector.broadcast %85 : vector<8x1xf32> to vector<8x128xf32>
    %87 = arith.subf %79, %86 : vector<8x128xf32>
    %88 = arith.mulf %87, %87 : vector<8x128xf32>
    %cst_34 = arith.constant dense<0.000000e+00> : vector<8xf32>
    %89 = vector.multi_reduction <add>, %88, %cst_34 [1] : vector<8x128xf32> to vector<8xf32>
    %90 = vector.shape_cast %89 : vector<8xf32> to vector<8x1xf32>
    %cst_35 = arith.constant 1.280000e+02 : f32
    %91 = vector.broadcast %cst_35 : f32 to vector<8x1xf32>
    %92 = arith.divf %90, %91 : vector<8x1xf32>
    %cst_36 = arith.constant 9.99999974E-6 : f32
    %93 = vector.broadcast %cst_36 : f32 to vector<8x1xf32>
    %94 = arith.addf %92, %93 : vector<8x1xf32>
    %95 = math.rsqrt %94 : vector<8x1xf32>
    %96 = vector.broadcast %95 : vector<8x1xf32> to vector<8x128xf32>
    %97 = arith.mulf %87, %96 : vector<8x128xf32>
    %98 = vector.broadcast %80 : vector<1x128xf32> to vector<8x128xf32>
    %99 = arith.mulf %97, %98 : vector<8x128xf32>
    %100 = vector.broadcast %81 : vector<1x128xf32> to vector<8x128xf32>
    %101 = arith.addf %99, %100 : vector<8x128xf32>
    %102 = arith.addf %101, %5 : vector<8x128xf32>
    %103 = arith.addf %3, %7 : vector<64x128xf32>
    %c0_37 = arith.constant 0 : index
    %c0_38 = arith.constant 0 : index
    %104 = vector.load %arg11[%c0_37, %c0_38] : memref<128x64xf32, #tpu.memory_space<vmem>>, vector<128x64xf32>
    %c0_39 = arith.constant 0 : index
    %c0_40 = arith.constant 0 : index
    %105 = vector.load %arg12[%c0_39, %c0_40] : memref<128x64xf32, #tpu.memory_space<vmem>>, vector<128x64xf32>
    %c0_41 = arith.constant 0 : index
    %c0_42 = arith.constant 0 : index
    %106 = vector.load %arg13[%c0_41, %c0_42] : memref<128x64xf32, #tpu.memory_space<vmem>>, vector<128x64xf32>
    %c0_43 = arith.constant 0 : index
    %c0_44 = arith.constant 0 : index
    %107 = vector.load %arg14[%c0_43, %c0_44] : memref<64x128xf32, #tpu.memory_space<vmem>>, vector<64x128xf32>
    %c0_45 = arith.constant 0 : index
    %c0_46 = arith.constant 0 : index
    %108 = vector.load %arg15[%c0_45, %c0_46] : memref<3x64xf32, #tpu.memory_space<vmem>>, vector<3x64xf32>
    %c0_47 = arith.constant 0 : index
    %c0_48 = arith.constant 0 : index
    %109 = vector.load %arg16[%c0_47, %c0_48] : memref<1x128xf32, #tpu.memory_space<vmem>>, vector<1x128xf32>
    %cst_49 = arith.constant dense<0.000000e+00> : vector<8x64xf32>
    %110 = tpu.matmul %102, %104, %cst_49 {dimension_numbers = #tpu.dot_dimension_numbers<[1], [0], [0], [1], [0, 0, 1, 1], [], []>} : vector<8x128xf32>, vector<128x64xf32>, vector<8x64xf32> -> vector<8x64xf32>
    %111 = vector.extract_strided_slice %108 {offsets = [0, 0], sizes = [1, 64], strides = [1, 1]} : vector<3x64xf32> to vector<1x64xf32>
    %112 = vector.broadcast %111 : vector<1x64xf32> to vector<8x64xf32>
    %113 = arith.addf %110, %112 : vector<8x64xf32>
    %cst_50 = arith.constant dense<0.000000e+00> : vector<64x64xf32>
    %114 = tpu.matmul %103, %105, %cst_50 {dimension_numbers = #tpu.dot_dimension_numbers<[1], [0], [0], [1], [0, 0, 1, 1], [], []>} : vector<64x128xf32>, vector<128x64xf32>, vector<64x64xf32> -> vector<64x64xf32>
    %115 = vector.extract_strided_slice %108 {offsets = [1, 0], sizes = [1, 64], strides = [1, 1]} : vector<3x64xf32> to vector<1x64xf32>
    %116 = vector.broadcast %115 : vector<1x64xf32> to vector<64x64xf32>
    %117 = arith.addf %114, %116 : vector<64x64xf32>
    %cst_51 = arith.constant dense<0.000000e+00> : vector<64x64xf32>
    %118 = tpu.matmul %3, %106, %cst_51 {dimension_numbers = #tpu.dot_dimension_numbers<[1], [0], [0], [1], [0, 0, 1, 1], [], []>} : vector<64x128xf32>, vector<128x64xf32>, vector<64x64xf32> -> vector<64x64xf32>
    %119 = vector.extract_strided_slice %108 {offsets = [2, 0], sizes = [1, 64], strides = [1, 1]} : vector<3x64xf32> to vector<1x64xf32>
    %120 = vector.broadcast %119 : vector<1x64xf32> to vector<64x64xf32>
    %121 = arith.addf %118, %120 : vector<64x64xf32>
    %122 = vector.extract_strided_slice %113 {offsets = [0, 0], sizes = [8, 16], strides = [1, 1]} : vector<8x64xf32> to vector<8x16xf32>
    %123 = vector.shape_cast %122 : vector<8x16xf32> to vector<1x8x16xf32>
    %124 = vector.extract_strided_slice %113 {offsets = [0, 16], sizes = [8, 16], strides = [1, 1]} : vector<8x64xf32> to vector<8x16xf32>
    %125 = vector.shape_cast %124 : vector<8x16xf32> to vector<1x8x16xf32>
    %126 = vector.extract_strided_slice %113 {offsets = [0, 32], sizes = [8, 16], strides = [1, 1]} : vector<8x64xf32> to vector<8x16xf32>
    %127 = vector.shape_cast %126 : vector<8x16xf32> to vector<1x8x16xf32>
    %128 = vector.extract_strided_slice %113 {offsets = [0, 48], sizes = [8, 16], strides = [1, 1]} : vector<8x64xf32> to vector<8x16xf32>
    %129 = vector.shape_cast %128 : vector<8x16xf32> to vector<1x8x16xf32>
    %130 = tpu.concatenate %123, %125, %127, %129 in 0 : vector<1x8x16xf32>, vector<1x8x16xf32>, vector<1x8x16xf32>, vector<1x8x16xf32> -> vector<4x8x16xf32>
    %131 = vector.extract_strided_slice %117 {offsets = [0, 0], sizes = [64, 16], strides = [1, 1]} : vector<64x64xf32> to vector<64x16xf32>
    %132 = vector.shape_cast %131 : vector<64x16xf32> to vector<1x64x16xf32>
    %133 = vector.extract_strided_slice %117 {offsets = [0, 16], sizes = [64, 16], strides = [1, 1]} : vector<64x64xf32> to vector<64x16xf32>
    %134 = vector.shape_cast %133 : vector<64x16xf32> to vector<1x64x16xf32>
    %135 = vector.extract_strided_slice %117 {offsets = [0, 32], sizes = [64, 16], strides = [1, 1]} : vector<64x64xf32> to vector<64x16xf32>
    %136 = vector.shape_cast %135 : vector<64x16xf32> to vector<1x64x16xf32>
    %137 = vector.extract_strided_slice %117 {offsets = [0, 48], sizes = [64, 16], strides = [1, 1]} : vector<64x64xf32> to vector<64x16xf32>
    %138 = vector.shape_cast %137 : vector<64x16xf32> to vector<1x64x16xf32>
    %139 = tpu.concatenate %132, %134, %136, %138 in 0 : vector<1x64x16xf32>, vector<1x64x16xf32>, vector<1x64x16xf32>, vector<1x64x16xf32> -> vector<4x64x16xf32>
    %140 = vector.extract_strided_slice %121 {offsets = [0, 0], sizes = [64, 16], strides = [1, 1]} : vector<64x64xf32> to vector<64x16xf32>
    %141 = vector.shape_cast %140 : vector<64x16xf32> to vector<1x64x16xf32>
    %142 = vector.extract_strided_slice %121 {offsets = [0, 16], sizes = [64, 16], strides = [1, 1]} : vector<64x64xf32> to vector<64x16xf32>
    %143 = vector.shape_cast %142 : vector<64x16xf32> to vector<1x64x16xf32>
    %144 = vector.extract_strided_slice %121 {offsets = [0, 32], sizes = [64, 16], strides = [1, 1]} : vector<64x64xf32> to vector<64x16xf32>
    %145 = vector.shape_cast %144 : vector<64x16xf32> to vector<1x64x16xf32>
    %146 = vector.extract_strided_slice %121 {offsets = [0, 48], sizes = [64, 16], strides = [1, 1]} : vector<64x64xf32> to vector<64x16xf32>
    %147 = vector.shape_cast %146 : vector<64x16xf32> to vector<1x64x16xf32>
    %148 = tpu.concatenate %141, %143, %145, %147 in 0 : vector<1x64x16xf32>, vector<1x64x16xf32>, vector<1x64x16xf32>, vector<1x64x16xf32> -> vector<4x64x16xf32>
    "tpu.trace_start"() <{level = 10 : i32, message = "hqd,hkd->hqk"}> : () -> ()
    %cst_52 = arith.constant dense<0.000000e+00> : vector<4x8x64xf32>
    %149 = tpu.matmul %130, %139, %cst_52 {dimension_numbers = #tpu.dot_dimension_numbers<[2], [2], [1], [1], [0, 0, 0, 1, 1, 1], [0], [0]>} : vector<4x8x16xf32>, vector<4x64x16xf32>, vector<4x8x64xf32> -> vector<4x8x64xf32>
    "tpu.trace_stop"() : () -> ()
    %cst_53 = arith.constant dense<0xFF800000> : vector<4x8xf32>
    %150 = vector.multi_reduction <maximumf>, %149, %cst_53 [2] : vector<4x8x64xf32> to vector<4x8xf32>
    %151 = vector.shape_cast %150 : vector<4x8xf32> to vector<4x8x1xf32>
    %152 = vector.broadcast %151 : vector<4x8x1xf32> to vector<4x8x64xf32>
    %153 = arith.subf %149, %152 : vector<4x8x64xf32>
    %154 = math.exp %153 : vector<4x8x64xf32>
    %cst_54 = arith.constant dense<0.000000e+00> : vector<4x8xf32>
    %155 = vector.multi_reduction <add>, %154, %cst_54 [2] : vector<4x8x64xf32> to vector<4x8xf32>
    %156 = vector.shape_cast %155 : vector<4x8xf32> to vector<4x8x1xf32>
    %157 = tpu.reciprocal %156 {approx = true} : vector<4x8x1xf32> -> vector<4x8x1xf32>
    %158 = vector.broadcast %157 : vector<4x8x1xf32> to vector<4x8x64xf32>
    %159 = arith.mulf %154, %158 : vector<4x8x64xf32>
    "tpu.trace_start"() <{level = 10 : i32, message = "hqk,hkd->hqd"}> : () -> ()
    %cst_55 = arith.constant dense<0.000000e+00> : vector<4x8x16xf32>
    %160 = tpu.matmul %159, %148, %cst_55 {dimension_numbers = #tpu.dot_dimension_numbers<[2], [1], [1], [2], [0, 0, 0, 1, 1, 2], [0], [0]>} : vector<4x8x64xf32>, vector<4x64x16xf32>, vector<4x8x16xf32> -> vector<4x8x16xf32>
    "tpu.trace_stop"() : () -> ()
    %161 = vector.extract_strided_slice %160 {offsets = [0, 0, 0], sizes = [1, 8, 16], strides = [1, 1, 1]} : vector<4x8x16xf32> to vector<1x8x16xf32>
    %162 = vector.shape_cast %161 : vector<1x8x16xf32> to vector<8x16xf32>
    %163 = vector.extract_strided_slice %160 {offsets = [1, 0, 0], sizes = [1, 8, 16], strides = [1, 1, 1]} : vector<4x8x16xf32> to vector<1x8x16xf32>
    %164 = vector.shape_cast %163 : vector<1x8x16xf32> to vector<8x16xf32>
    %165 = vector.extract_strided_slice %160 {offsets = [2, 0, 0], sizes = [1, 8, 16], strides = [1, 1, 1]} : vector<4x8x16xf32> to vector<1x8x16xf32>
    %166 = vector.shape_cast %165 : vector<1x8x16xf32> to vector<8x16xf32>
    %167 = vector.extract_strided_slice %160 {offsets = [3, 0, 0], sizes = [1, 8, 16], strides = [1, 1, 1]} : vector<4x8x16xf32> to vector<1x8x16xf32>
    %168 = vector.shape_cast %167 : vector<1x8x16xf32> to vector<8x16xf32>
    %169 = tpu.concatenate %162, %164, %166, %168 in 1 : vector<8x16xf32>, vector<8x16xf32>, vector<8x16xf32>, vector<8x16xf32> -> vector<8x64xf32>
    %cst_56 = arith.constant dense<0.000000e+00> : vector<8x128xf32>
    %170 = tpu.matmul %169, %107, %cst_56 {dimension_numbers = #tpu.dot_dimension_numbers<[1], [0], [0], [1], [0, 0, 1, 1], [], []>} : vector<8x64xf32>, vector<64x128xf32>, vector<8x128xf32> -> vector<8x128xf32>
    %171 = vector.broadcast %109 : vector<1x128xf32> to vector<8x128xf32>
    %172 = arith.addf %170, %171 : vector<8x128xf32>
    %173 = arith.addf %101, %172 : vector<8x128xf32>
    %174 = vector.extract_strided_slice %8 {offsets = [2, 0], sizes = [1, 128], strides = [1, 1]} : vector<8x128xf32> to vector<1x128xf32>
    %175 = vector.extract_strided_slice %8 {offsets = [3, 0], sizes = [1, 128], strides = [1, 1]} : vector<8x128xf32> to vector<1x128xf32>
    %cst_57 = arith.constant dense<0.000000e+00> : vector<8xf32>
    %176 = vector.multi_reduction <add>, %173, %cst_57 [1] : vector<8x128xf32> to vector<8xf32>
    %177 = vector.shape_cast %176 : vector<8xf32> to vector<8x1xf32>
    %cst_58 = arith.constant 1.280000e+02 : f32
    %178 = vector.broadcast %cst_58 : f32 to vector<8x1xf32>
    %179 = arith.divf %177, %178 : vector<8x1xf32>
    %180 = vector.broadcast %179 : vector<8x1xf32> to vector<8x128xf32>
    %181 = arith.subf %173, %180 : vector<8x128xf32>
    %182 = arith.mulf %181, %181 : vector<8x128xf32>
    %cst_59 = arith.constant dense<0.000000e+00> : vector<8xf32>
    %183 = vector.multi_reduction <add>, %182, %cst_59 [1] : vector<8x128xf32> to vector<8xf32>
    %184 = vector.shape_cast %183 : vector<8xf32> to vector<8x1xf32>
    %cst_60 = arith.constant 1.280000e+02 : f32
    %185 = vector.broadcast %cst_60 : f32 to vector<8x1xf32>
    %186 = arith.divf %184, %185 : vector<8x1xf32>
    %cst_61 = arith.constant 9.99999974E-6 : f32
    %187 = vector.broadcast %cst_61 : f32 to vector<8x1xf32>
    %188 = arith.addf %186, %187 : vector<8x1xf32>
    %189 = math.rsqrt %188 : vector<8x1xf32>
    %190 = vector.broadcast %189 : vector<8x1xf32> to vector<8x128xf32>
    %191 = arith.mulf %181, %190 : vector<8x128xf32>
    %192 = vector.broadcast %174 : vector<1x128xf32> to vector<8x128xf32>
    %193 = arith.mulf %191, %192 : vector<8x128xf32>
    %194 = vector.broadcast %175 : vector<1x128xf32> to vector<8x128xf32>
    %195 = arith.addf %193, %194 : vector<8x128xf32>
    %c0_62 = arith.constant 0 : index
    %c0_63 = arith.constant 0 : index
    %196 = vector.load %arg17[%c0_62, %c0_63] : memref<128x256xf32, #tpu.memory_space<vmem>>, vector<128x256xf32>
    %cst_64 = arith.constant dense<0.000000e+00> : vector<8x256xf32>
    %197 = tpu.matmul %195, %196, %cst_64 {dimension_numbers = #tpu.dot_dimension_numbers<[1], [0], [0], [1], [0, 0, 1, 1], [], []>} : vector<8x128xf32>, vector<128x256xf32>, vector<8x256xf32> -> vector<8x256xf32>
    %c0_65 = arith.constant 0 : index
    %c0_66 = arith.constant 0 : index
    %198 = vector.load %arg18[%c0_65, %c0_66] : memref<1x256xf32, #tpu.memory_space<vmem>>, vector<1x256xf32>
    %199 = vector.broadcast %198 : vector<1x256xf32> to vector<8x256xf32>
    %200 = arith.addf %197, %199 : vector<8x256xf32>
    %cst_67 = arith.constant 0.000000e+00 : f32
    %201 = vector.broadcast %cst_67 : f32 to vector<8x256xf32>
    %202 = arith.maximumf %200, %201 : vector<8x256xf32>
    %c0_68 = arith.constant 0 : index
    %c0_69 = arith.constant 0 : index
    %203 = vector.load %arg19[%c0_68, %c0_69] : memref<256x128xf32, #tpu.memory_space<vmem>>, vector<256x128xf32>
    %cst_70 = arith.constant dense<0.000000e+00> : vector<8x128xf32>
    %204 = tpu.matmul %202, %203, %cst_70 {dimension_numbers = #tpu.dot_dimension_numbers<[1], [0], [0], [1], [0, 0, 1, 1], [], []>} : vector<8x256xf32>, vector<256x128xf32>, vector<8x128xf32> -> vector<8x128xf32>
    %c0_71 = arith.constant 0 : index
    %c0_72 = arith.constant 0 : index
    %205 = vector.load %arg20[%c0_71, %c0_72] : memref<1x128xf32, #tpu.memory_space<vmem>>, vector<1x128xf32>
    %206 = vector.broadcast %205 : vector<1x128xf32> to vector<8x128xf32>
    %207 = arith.addf %204, %206 : vector<8x128xf32>
    %208 = arith.addf %195, %207 : vector<8x128xf32>
    %209 = vector.extract_strided_slice %8 {offsets = [4, 0], sizes = [1, 128], strides = [1, 1]} : vector<8x128xf32> to vector<1x128xf32>
    %210 = vector.extract_strided_slice %8 {offsets = [5, 0], sizes = [1, 128], strides = [1, 1]} : vector<8x128xf32> to vector<1x128xf32>
    %cst_73 = arith.constant dense<0.000000e+00> : vector<8xf32>
    %211 = vector.multi_reduction <add>, %208, %cst_73 [1] : vector<8x128xf32> to vector<8xf32>
    %212 = vector.shape_cast %211 : vector<8xf32> to vector<8x1xf32>
    %cst_74 = arith.constant 1.280000e+02 : f32
    %213 = vector.broadcast %cst_74 : f32 to vector<8x1xf32>
    %214 = arith.divf %212, %213 : vector<8x1xf32>
    %215 = vector.broadcast %214 : vector<8x1xf32> to vector<8x128xf32>
    %216 = arith.subf %208, %215 : vector<8x128xf32>
    %217 = arith.mulf %216, %216 : vector<8x128xf32>
    %cst_75 = arith.constant dense<0.000000e+00> : vector<8xf32>
    %218 = vector.multi_reduction <add>, %217, %cst_75 [1] : vector<8x128xf32> to vector<8xf32>
    %219 = vector.shape_cast %218 : vector<8xf32> to vector<8x1xf32>
    %cst_76 = arith.constant 1.280000e+02 : f32
    %220 = vector.broadcast %cst_76 : f32 to vector<8x1xf32>
    %221 = arith.divf %219, %220 : vector<8x1xf32>
    %cst_77 = arith.constant 9.99999974E-6 : f32
    %222 = vector.broadcast %cst_77 : f32 to vector<8x1xf32>
    %223 = arith.addf %221, %222 : vector<8x1xf32>
    %224 = math.rsqrt %223 : vector<8x1xf32>
    %225 = vector.broadcast %224 : vector<8x1xf32> to vector<8x128xf32>
    %226 = arith.mulf %216, %225 : vector<8x128xf32>
    %227 = vector.broadcast %209 : vector<1x128xf32> to vector<8x128xf32>
    %228 = arith.mulf %226, %227 : vector<8x128xf32>
    %229 = vector.broadcast %210 : vector<1x128xf32> to vector<8x128xf32>
    %230 = arith.addf %228, %229 : vector<8x128xf32>
    %231 = arith.addf %230, %5 : vector<8x128xf32>
    %232 = arith.addf %3, %7 : vector<64x128xf32>
    %c0_78 = arith.constant 0 : index
    %c0_79 = arith.constant 0 : index
    %233 = vector.load %arg21[%c0_78, %c0_79] : memref<128x64xf32, #tpu.memory_space<vmem>>, vector<128x64xf32>
    %c0_80 = arith.constant 0 : index
    %c0_81 = arith.constant 0 : index
    %234 = vector.load %arg22[%c0_80, %c0_81] : memref<128x64xf32, #tpu.memory_space<vmem>>, vector<128x64xf32>
    %c0_82 = arith.constant 0 : index
    %c0_83 = arith.constant 0 : index
    %235 = vector.load %arg23[%c0_82, %c0_83] : memref<128x64xf32, #tpu.memory_space<vmem>>, vector<128x64xf32>
    %c0_84 = arith.constant 0 : index
    %c0_85 = arith.constant 0 : index
    %236 = vector.load %arg24[%c0_84, %c0_85] : memref<64x128xf32, #tpu.memory_space<vmem>>, vector<64x128xf32>
    %c0_86 = arith.constant 0 : index
    %c0_87 = arith.constant 0 : index
    %237 = vector.load %arg25[%c0_86, %c0_87] : memref<3x64xf32, #tpu.memory_space<vmem>>, vector<3x64xf32>
    %c0_88 = arith.constant 0 : index
    %c0_89 = arith.constant 0 : index
    %238 = vector.load %arg26[%c0_88, %c0_89] : memref<1x128xf32, #tpu.memory_space<vmem>>, vector<1x128xf32>
    %cst_90 = arith.constant dense<0.000000e+00> : vector<64x64xf32>
    %239 = tpu.matmul %232, %233, %cst_90 {dimension_numbers = #tpu.dot_dimension_numbers<[1], [0], [0], [1], [0, 0, 1, 1], [], []>} : vector<64x128xf32>, vector<128x64xf32>, vector<64x64xf32> -> vector<64x64xf32>
    %240 = vector.extract_strided_slice %237 {offsets = [0, 0], sizes = [1, 64], strides = [1, 1]} : vector<3x64xf32> to vector<1x64xf32>
    %241 = vector.broadcast %240 : vector<1x64xf32> to vector<64x64xf32>
    %242 = arith.addf %239, %241 : vector<64x64xf32>
    %cst_91 = arith.constant dense<0.000000e+00> : vector<8x64xf32>
    %243 = tpu.matmul %231, %234, %cst_91 {dimension_numbers = #tpu.dot_dimension_numbers<[1], [0], [0], [1], [0, 0, 1, 1], [], []>} : vector<8x128xf32>, vector<128x64xf32>, vector<8x64xf32> -> vector<8x64xf32>
    %244 = vector.extract_strided_slice %237 {offsets = [1, 0], sizes = [1, 64], strides = [1, 1]} : vector<3x64xf32> to vector<1x64xf32>
    %245 = vector.broadcast %244 : vector<1x64xf32> to vector<8x64xf32>
    %246 = arith.addf %243, %245 : vector<8x64xf32>
    %cst_92 = arith.constant dense<0.000000e+00> : vector<8x64xf32>
    %247 = tpu.matmul %230, %235, %cst_92 {dimension_numbers = #tpu.dot_dimension_numbers<[1], [0], [0], [1], [0, 0, 1, 1], [], []>} : vector<8x128xf32>, vector<128x64xf32>, vector<8x64xf32> -> vector<8x64xf32>
    %248 = vector.extract_strided_slice %237 {offsets = [2, 0], sizes = [1, 64], strides = [1, 1]} : vector<3x64xf32> to vector<1x64xf32>
    %249 = vector.broadcast %248 : vector<1x64xf32> to vector<8x64xf32>
    %250 = arith.addf %247, %249 : vector<8x64xf32>
    %251 = vector.extract_strided_slice %242 {offsets = [0, 0], sizes = [64, 16], strides = [1, 1]} : vector<64x64xf32> to vector<64x16xf32>
    %252 = vector.shape_cast %251 : vector<64x16xf32> to vector<1x64x16xf32>
    %253 = vector.extract_strided_slice %242 {offsets = [0, 16], sizes = [64, 16], strides = [1, 1]} : vector<64x64xf32> to vector<64x16xf32>
    %254 = vector.shape_cast %253 : vector<64x16xf32> to vector<1x64x16xf32>
    %255 = vector.extract_strided_slice %242 {offsets = [0, 32], sizes = [64, 16], strides = [1, 1]} : vector<64x64xf32> to vector<64x16xf32>
    %256 = vector.shape_cast %255 : vector<64x16xf32> to vector<1x64x16xf32>
    %257 = vector.extract_strided_slice %242 {offsets = [0, 48], sizes = [64, 16], strides = [1, 1]} : vector<64x64xf32> to vector<64x16xf32>
    %258 = vector.shape_cast %257 : vector<64x16xf32> to vector<1x64x16xf32>
    %259 = tpu.concatenate %252, %254, %256, %258 in 0 : vector<1x64x16xf32>, vector<1x64x16xf32>, vector<1x64x16xf32>, vector<1x64x16xf32> -> vector<4x64x16xf32>
    %260 = vector.extract_strided_slice %246 {offsets = [0, 0], sizes = [8, 16], strides = [1, 1]} : vector<8x64xf32> to vector<8x16xf32>
    %261 = vector.shape_cast %260 : vector<8x16xf32> to vector<1x8x16xf32>
    %262 = vector.extract_strided_slice %246 {offsets = [0, 16], sizes = [8, 16], strides = [1, 1]} : vector<8x64xf32> to vector<8x16xf32>
    %263 = vector.shape_cast %262 : vector<8x16xf32> to vector<1x8x16xf32>
    %264 = vector.extract_strided_slice %246 {offsets = [0, 32], sizes = [8, 16], strides = [1, 1]} : vector<8x64xf32> to vector<8x16xf32>
    %265 = vector.shape_cast %264 : vector<8x16xf32> to vector<1x8x16xf32>
    %266 = vector.extract_strided_slice %246 {offsets = [0, 48], sizes = [8, 16], strides = [1, 1]} : vector<8x64xf32> to vector<8x16xf32>
    %267 = vector.shape_cast %266 : vector<8x16xf32> to vector<1x8x16xf32>
    %268 = tpu.concatenate %261, %263, %265, %267 in 0 : vector<1x8x16xf32>, vector<1x8x16xf32>, vector<1x8x16xf32>, vector<1x8x16xf32> -> vector<4x8x16xf32>
    %269 = vector.extract_strided_slice %250 {offsets = [0, 0], sizes = [8, 16], strides = [1, 1]} : vector<8x64xf32> to vector<8x16xf32>
    %270 = vector.shape_cast %269 : vector<8x16xf32> to vector<1x8x16xf32>
    %271 = vector.extract_strided_slice %250 {offsets = [0, 16], sizes = [8, 16], strides = [1, 1]} : vector<8x64xf32> to vector<8x16xf32>
    %272 = vector.shape_cast %271 : vector<8x16xf32> to vector<1x8x16xf32>
    %273 = vector.extract_strided_slice %250 {offsets = [0, 32], sizes = [8, 16], strides = [1, 1]} : vector<8x64xf32> to vector<8x16xf32>
    %274 = vector.shape_cast %273 : vector<8x16xf32> to vector<1x8x16xf32>
    %275 = vector.extract_strided_slice %250 {offsets = [0, 48], sizes = [8, 16], strides = [1, 1]} : vector<8x64xf32> to vector<8x16xf32>
    %276 = vector.shape_cast %275 : vector<8x16xf32> to vector<1x8x16xf32>
    %277 = tpu.concatenate %270, %272, %274, %276 in 0 : vector<1x8x16xf32>, vector<1x8x16xf32>, vector<1x8x16xf32>, vector<1x8x16xf32> -> vector<4x8x16xf32>
    "tpu.trace_start"() <{level = 10 : i32, message = "hkd,hqd->hkq"}> : () -> ()
    %cst_93 = arith.constant dense<0.000000e+00> : vector<4x8x64xf32>
    %278 = tpu.matmul %268, %259, %cst_93 {dimension_numbers = #tpu.dot_dimension_numbers<[2], [2], [1], [1], [0, 0, 0, 1, 1, 1], [0], [0]>} : vector<4x8x16xf32>, vector<4x64x16xf32>, vector<4x8x64xf32> -> vector<4x8x64xf32>
    "tpu.trace_stop"() : () -> ()
    %cst_94 = arith.constant dense<0xFF800000> : vector<4x64xf32>
    %279 = vector.multi_reduction <maximumf>, %278, %cst_94 [1] : vector<4x8x64xf32> to vector<4x64xf32>
    %280 = vector.shape_cast %279 : vector<4x64xf32> to vector<4x1x64xf32>
    %281 = vector.broadcast %280 : vector<4x1x64xf32> to vector<4x8x64xf32>
    %282 = arith.subf %278, %281 : vector<4x8x64xf32>
    %283 = math.exp %282 : vector<4x8x64xf32>
    %cst_95 = arith.constant dense<0.000000e+00> : vector<4x64xf32>
    %284 = vector.multi_reduction <add>, %283, %cst_95 [1] : vector<4x8x64xf32> to vector<4x64xf32>
    %285 = vector.shape_cast %284 : vector<4x64xf32> to vector<4x1x64xf32>
    %286 = tpu.reciprocal %285 {approx = true} : vector<4x1x64xf32> -> vector<4x1x64xf32>
    %287 = vector.broadcast %286 : vector<4x1x64xf32> to vector<4x8x64xf32>
    %288 = arith.mulf %283, %287 : vector<4x8x64xf32>
    "tpu.trace_start"() <{level = 10 : i32, message = "hkq,hkd->hqd"}> : () -> ()
    %cst_96 = arith.constant dense<0.000000e+00> : vector<4x64x16xf32>
    %289 = tpu.matmul %288, %277, %cst_96 {dimension_numbers = #tpu.dot_dimension_numbers<[1], [1], [2], [2], [0, 0, 0, 2, 1, 2], [0], [0]>} : vector<4x8x64xf32>, vector<4x8x16xf32>, vector<4x64x16xf32> -> vector<4x64x16xf32>
    "tpu.trace_stop"() : () -> ()
    %290 = vector.extract_strided_slice %289 {offsets = [0, 0, 0], sizes = [1, 64, 16], strides = [1, 1, 1]} : vector<4x64x16xf32> to vector<1x64x16xf32>
    %291 = vector.shape_cast %290 : vector<1x64x16xf32> to vector<64x16xf32>
    %292 = vector.extract_strided_slice %289 {offsets = [1, 0, 0], sizes = [1, 64, 16], strides = [1, 1, 1]} : vector<4x64x16xf32> to vector<1x64x16xf32>
    %293 = vector.shape_cast %292 : vector<1x64x16xf32> to vector<64x16xf32>
    %294 = vector.extract_strided_slice %289 {offsets = [2, 0, 0], sizes = [1, 64, 16], strides = [1, 1, 1]} : vector<4x64x16xf32> to vector<1x64x16xf32>
    %295 = vector.shape_cast %294 : vector<1x64x16xf32> to vector<64x16xf32>
    %296 = vector.extract_strided_slice %289 {offsets = [3, 0, 0], sizes = [1, 64, 16], strides = [1, 1, 1]} : vector<4x64x16xf32> to vector<1x64x16xf32>
    %297 = vector.shape_cast %296 : vector<1x64x16xf32> to vector<64x16xf32>
    %298 = tpu.concatenate %291, %293, %295, %297 in 1 : vector<64x16xf32>, vector<64x16xf32>, vector<64x16xf32>, vector<64x16xf32> -> vector<64x64xf32>
    %cst_97 = arith.constant dense<0.000000e+00> : vector<64x128xf32>
    %299 = tpu.matmul %298, %236, %cst_97 {dimension_numbers = #tpu.dot_dimension_numbers<[1], [0], [0], [1], [0, 0, 1, 1], [], []>} : vector<64x64xf32>, vector<64x128xf32>, vector<64x128xf32> -> vector<64x128xf32>
    %300 = vector.broadcast %238 : vector<1x128xf32> to vector<64x128xf32>
    %301 = arith.addf %299, %300 : vector<64x128xf32>
    %302 = arith.addf %3, %301 : vector<64x128xf32>
    %303 = vector.extract_strided_slice %8 {offsets = [6, 0], sizes = [1, 128], strides = [1, 1]} : vector<8x128xf32> to vector<1x128xf32>
    %304 = vector.extract_strided_slice %8 {offsets = [7, 0], sizes = [1, 128], strides = [1, 1]} : vector<8x128xf32> to vector<1x128xf32>
    %cst_98 = arith.constant dense<0.000000e+00> : vector<64xf32>
    %305 = vector.multi_reduction <add>, %302, %cst_98 [1] : vector<64x128xf32> to vector<64xf32>
    %306 = vector.shape_cast %305 : vector<64xf32> to vector<64x1xf32>
    %cst_99 = arith.constant 1.280000e+02 : f32
    %307 = vector.broadcast %cst_99 : f32 to vector<64x1xf32>
    %308 = arith.divf %306, %307 : vector<64x1xf32>
    %309 = vector.broadcast %308 : vector<64x1xf32> to vector<64x128xf32>
    %310 = arith.subf %302, %309 : vector<64x128xf32>
    %311 = arith.mulf %310, %310 : vector<64x128xf32>
    %cst_100 = arith.constant dense<0.000000e+00> : vector<64xf32>
    %312 = vector.multi_reduction <add>, %311, %cst_100 [1] : vector<64x128xf32> to vector<64xf32>
    %313 = vector.shape_cast %312 : vector<64xf32> to vector<64x1xf32>
    %cst_101 = arith.constant 1.280000e+02 : f32
    %314 = vector.broadcast %cst_101 : f32 to vector<64x1xf32>
    %315 = arith.divf %313, %314 : vector<64x1xf32>
    %cst_102 = arith.constant 9.99999974E-6 : f32
    %316 = vector.broadcast %cst_102 : f32 to vector<64x1xf32>
    %317 = arith.addf %315, %316 : vector<64x1xf32>
    %318 = math.rsqrt %317 : vector<64x1xf32>
    %319 = vector.broadcast %318 : vector<64x1xf32> to vector<64x128xf32>
    %320 = arith.mulf %310, %319 : vector<64x128xf32>
    %321 = vector.broadcast %303 : vector<1x128xf32> to vector<64x128xf32>
    %322 = arith.mulf %320, %321 : vector<64x128xf32>
    %323 = vector.broadcast %304 : vector<1x128xf32> to vector<64x128xf32>
    %324 = arith.addf %322, %323 : vector<64x128xf32>
    %c0_103 = arith.constant 0 : index
    %c0_104 = arith.constant 0 : index
    %c0_105 = arith.constant 0 : index
    %325 = vector.load %arg28[%c0_103, %c0_104, %c0_105] : memref<1x8x128xf32, #tpu.memory_space<vmem>>, vector<1x8x128xf32>
    %326 = vector.shape_cast %325 : vector<1x8x128xf32> to vector<8x128xf32>
    %327 = vector.shape_cast %230 : vector<8x128xf32> to vector<1x8x128xf32>
    tpu.vector_store %arg28[%c0_103, %c0_104, %c0_105], %327 {strides = array<i32>} : memref<1x8x128xf32, #tpu.memory_space<vmem>>, vector<1x8x128xf32>,
    %c0_106 = arith.constant 0 : index
    %c0_107 = arith.constant 0 : index
    %c0_108 = arith.constant 0 : index
    %328 = vector.load %arg29[%c0_106, %c0_107, %c0_108] : memref<1x64x128xf32, #tpu.memory_space<vmem>>, vector<1x64x128xf32>
    %329 = vector.shape_cast %328 : vector<1x64x128xf32> to vector<64x128xf32>
    %330 = vector.shape_cast %324 : vector<64x128xf32> to vector<1x64x128xf32>
    tpu.vector_store %arg29[%c0_106, %c0_107, %c0_108], %330 {strides = array<i32>} : memref<1x64x128xf32, #tpu.memory_space<vmem>>, vector<1x64x128xf32>,
    return
  }
  func.func @transform_0(%arg0: i32) -> (i32, i32, i32) {
    %c0_i32 = arith.constant 0 : i32
    %c0_i32_0 = arith.constant 0 : i32
    %c0_i32_1 = arith.constant 0 : i32
    return %arg0, %c0_i32, %c0_i32_0 : i32, i32, i32
  }
  func.func @transform_1(%arg0: i32) -> (i32, i32, i32) {
    %c0_i32 = arith.constant 0 : i32
    %c0_i32_0 = arith.constant 0 : i32
    %c0_i32_1 = arith.constant 0 : i32
    return %arg0, %c0_i32, %c0_i32_0 : i32, i32, i32
  }
  func.func @transform_2(%arg0: i32) -> (i32, i32, i32) {
    %c0_i32 = arith.constant 0 : i32
    %c0_i32_0 = arith.constant 0 : i32
    %c0_i32_1 = arith.constant 0 : i32
    return %arg0, %c0_i32, %c0_i32_0 : i32, i32, i32
  }
  func.func @transform_3(%arg0: i32) -> (i32, i32, i32) {
    %c0_i32 = arith.constant 0 : i32
    %c0_i32_0 = arith.constant 0 : i32
    %c0_i32_1 = arith.constant 0 : i32
    return %arg0, %c0_i32, %c0_i32_0 : i32, i32, i32
  }
  func.func @transform_4(%arg0: i32) -> (i32, i32) {
    %c0_i32 = arith.constant 0 : i32
    %c0_i32_0 = arith.constant 0 : i32
    %c0_i32_1 = arith.constant 0 : i32
    return %c0_i32, %c0_i32_0 : i32, i32
  }
  func.func @transform_5(%arg0: i32) -> (i32, i32) {
    %c0_i32 = arith.constant 0 : i32
    %c0_i32_0 = arith.constant 0 : i32
    %c0_i32_1 = arith.constant 0 : i32
    return %c0_i32, %c0_i32_0 : i32, i32
  }
  func.func @transform_6(%arg0: i32) -> (i32, i32) {
    %c0_i32 = arith.constant 0 : i32
    %c0_i32_0 = arith.constant 0 : i32
    %c0_i32_1 = arith.constant 0 : i32
    return %c0_i32, %c0_i32_0 : i32, i32
  }
  func.func @transform_7(%arg0: i32) -> (i32, i32) {
    %c0_i32 = arith.constant 0 : i32
    %c0_i32_0 = arith.constant 0 : i32
    %c0_i32_1 = arith.constant 0 : i32
    return %c0_i32, %c0_i32_0 : i32, i32
  }
  func.func @transform_8(%arg0: i32) -> (i32, i32) {
    %c0_i32 = arith.constant 0 : i32
    %c0_i32_0 = arith.constant 0 : i32
    %c0_i32_1 = arith.constant 0 : i32
    return %c0_i32, %c0_i32_0 : i32, i32
  }
  func.func @transform_9(%arg0: i32) -> (i32, i32) {
    %c0_i32 = arith.constant 0 : i32
    %c0_i32_0 = arith.constant 0 : i32
    %c0_i32_1 = arith.constant 0 : i32
    return %c0_i32, %c0_i32_0 : i32, i32
  }
  func.func @transform_10(%arg0: i32) -> (i32, i32) {
    %c0_i32 = arith.constant 0 : i32
    %c0_i32_0 = arith.constant 0 : i32
    %c0_i32_1 = arith.constant 0 : i32
    return %c0_i32, %c0_i32_0 : i32, i32
  }
  func.func @transform_11(%arg0: i32) -> (i32, i32) {
    %c0_i32 = arith.constant 0 : i32
    %c0_i32_0 = arith.constant 0 : i32
    %c0_i32_1 = arith.constant 0 : i32
    return %c0_i32, %c0_i32_0 : i32, i32
  }
  func.func @transform_12(%arg0: i32) -> (i32, i32) {
    %c0_i32 = arith.constant 0 : i32
    %c0_i32_0 = arith.constant 0 : i32
    %c0_i32_1 = arith.constant 0 : i32
    return %c0_i32, %c0_i32_0 : i32, i32
  }
  func.func @transform_13(%arg0: i32) -> (i32, i32) {
    %c0_i32 = arith.constant 0 : i32
    %c0_i32_0 = arith.constant 0 : i32
    %c0_i32_1 = arith.constant 0 : i32
    return %c0_i32, %c0_i32_0 : i32, i32
  }
  func.func @transform_14(%arg0: i32) -> (i32, i32) {
    %c0_i32 = arith.constant 0 : i32
    %c0_i32_0 = arith.constant 0 : i32
    %c0_i32_1 = arith.constant 0 : i32
    return %c0_i32, %c0_i32_0 : i32, i32
  }
  func.func @transform_15(%arg0: i32) -> (i32, i32) {
    %c0_i32 = arith.constant 0 : i32
    %c0_i32_0 = arith.constant 0 : i32
    %c0_i32_1 = arith.constant 0 : i32
    return %c0_i32, %c0_i32_0 : i32, i32
  }
  func.func @transform_16(%arg0: i32) -> (i32, i32) {
    %c0_i32 = arith.constant 0 : i32
    %c0_i32_0 = arith.constant 0 : i32
    %c0_i32_1 = arith.constant 0 : i32
    return %c0_i32, %c0_i32_0 : i32, i32
  }
  func.func @transform_17(%arg0: i32) -> (i32, i32) {
    %c0_i32 = arith.constant 0 : i32
    %c0_i32_0 = arith.constant 0 : i32
    %c0_i32_1 = arith.constant 0 : i32
    return %c0_i32, %c0_i32_0 : i32, i32
  }
  func.func @transform_18(%arg0: i32) -> (i32, i32) {
    %c0_i32 = arith.constant 0 : i32
    %c0_i32_0 = arith.constant 0 : i32
    %c0_i32_1 = arith.constant 0 : i32
    return %c0_i32, %c0_i32_0 : i32, i32
  }
  func.func @transform_19(%arg0: i32) -> (i32, i32) {
    %c0_i32 = arith.constant 0 : i32
    %c0_i32_0 = arith.constant 0 : i32
    %c0_i32_1 = arith.constant 0 : i32
    return %c0_i32, %c0_i32_0 : i32, i32
  }
  func.func @transform_20(%arg0: i32) -> (i32, i32) {
    %c0_i32 = arith.constant 0 : i32
    %c0_i32_0 = arith.constant 0 : i32
    %c0_i32_1 = arith.constant 0 : i32
    return %c0_i32, %c0_i32_0 : i32, i32
  }
  func.func @transform_21(%arg0: i32) -> (i32, i32) {
    %c0_i32 = arith.constant 0 : i32
    %c0_i32_0 = arith.constant 0 : i32
    %c0_i32_1 = arith.constant 0 : i32
    return %c0_i32, %c0_i32_0 : i32, i32
  }
  func.func @transform_22(%arg0: i32) -> (i32, i32) {
    %c0_i32 = arith.constant 0 : i32
    %c0_i32_0 = arith.constant 0 : i32
    %c0_i32_1 = arith.constant 0 : i32
    return %c0_i32, %c0_i32_0 : i32, i32
  }
  func.func @transform_23(%arg0: i32) -> (i32, i32) {
    %c0_i32 = arith.constant 0 : i32
    %c0_i32_0 = arith.constant 0 : i32
    %c0_i32_1 = arith.constant 0 : i32
    return %c0_i32, %c0_i32_0 : i32, i32
  }
  func.func @transform_24(%arg0: i32) -> (i32, i32) {
    %c0_i32 = arith.constant 0 : i32
    %c0_i32_0 = arith.constant 0 : i32
    %c0_i32_1 = arith.constant 0 : i32
    return %c0_i32, %c0_i32_0 : i32, i32
  }
  func.func @transform_25(%arg0: i32) -> (i32, i32) {
    %c0_i32 = arith.constant 0 : i32
    %c0_i32_0 = arith.constant 0 : i32
    %c0_i32_1 = arith.constant 0 : i32
    return %c0_i32, %c0_i32_0 : i32, i32
  }
  func.func @transform_26(%arg0: i32) -> (i32, i32) {
    %c0_i32 = arith.constant 0 : i32
    %c0_i32_0 = arith.constant 0 : i32
    %c0_i32_1 = arith.constant 0 : i32
    return %c0_i32, %c0_i32_0 : i32, i32
  }
  func.func @transform_27(%arg0: i32) -> (i32, i32, i32) {
    %c0_i32 = arith.constant 0 : i32
    %c0_i32_0 = arith.constant 0 : i32
    %c0_i32_1 = arith.constant 0 : i32
    return %arg0, %c0_i32, %c0_i32_0 : i32, i32, i32
  }
  func.func @transform_28(%arg0: i32) -> (i32, i32, i32) {
    %c0_i32 = arith.constant 0 : i32
    %c0_i32_0 = arith.constant 0 : i32
    %c0_i32_1 = arith.constant 0 : i32
    return %arg0, %c0_i32, %c0_i32_0 : i32, i32, i32
  }
}

</mosaic_0001>

<bundles_post_ra>
// kernel: tpu_custom_call.1
= control target key start
LH: loop header
LB: loop body
LE: loop exit
PB: predicated region body
PF: predicated region fallthrough
CT: control target
= control target key end

     0   :  { %s10417_s0 = inlined_call_operand.hbm [shape: f32[2,8,128], index: 0, kind: input, shape index: {}]   ;;  %s10418_s1 = inlined_call_operand.vmem [shape: f32[2,64,128], index: 1, kind: input, shape index: {}]   ;;  %s10419_s2 = inlined_call_operand.hbm [shape: f32[2,8,128], index: 2, kind: input, shape index: {}]   ;;  %s10420_s3 = inlined_call_operand.vmem [shape: f32[2,64,128], index: 3, kind: input, shape index: {}]   ;;  %s10421_s4 = inlined_call_operand.vmem [shape: f32[128,128], index: 4, kind: input, shape index: {}]   ;;  %s10422_s5 = inlined_call_operand.vmem [shape: f32[128,128], index: 5, kind: input, shape index: {}]   ;;  %s10423_s6 = inlined_call_operand.vmem [shape: f32[128,128], index: 6, kind: input, shape index: {}]   ;;  %s10424_s7 = inlined_call_operand.hbm [shape: f32[128,128], index: 7, kind: input, shape index: {}]   ;;  %s10425_s8 = inlined_call_operand.hbm [shape: f32[3,128], index: 8, kind: input, shape index: {}]   ;;  %s10426_s9 = inlined_call_operand.vmem [shape: f32[1,128], index: 9, kind: input, shape index: {}]   ;;  %s10427_s10 = inlined_call_operand.vmem [shape: f32[128,64], index: 10, kind: input, shape index: {}]   ;;  %s10428_s11 = inlined_call_operand.vmem [shape: f32[128,64], index: 11, kind: input, shape index: {}]   ;;  %s10429_s12 = inlined_call_operand.vmem [shape: f32[128,64], index: 12, kind: input, shape index: {}]   ;;  %s10430_s13 = inlined_call_operand.hbm [shape: f32[64,128], index: 13, kind: input, shape index: {}]   ;;  %s10431_s14 = inlined_call_operand.hbm [shape: f32[3,64], index: 14, kind: input, shape index: {}]   ;;  %s10432_s15 = inlined_call_operand.hbm [shape: f32[1,128], index: 15, kind: input, shape index: {}]   ;;  %s10433_s16 = inlined_call_operand.vmem [shape: f32[128,256], index: 16, kind: input, shape index: {}]   ;;  %s10434_s17 = inlined_call_operand.vmem [shape: f32[1,256], index: 17, kind: input, shape index: {}]   ;;  %s10435_s18 = inlined_call_operand.vmem [shape: f32[256,128], index: 18, kind: input, shape index: {}]   ;;  %s10436_s19 = inlined_call_operand.hbm [shape: f32[1,128], index: 19, kind: input, shape index: {}]   ;;  %s10437_s20 = inlined_call_operand.vmem [shape: f32[128,64], index: 20, kind: input, shape index: {}]   ;;  %s10438_s21 = inlined_call_operand.vmem [shape: f32[128,64], index: 21, kind: input, shape index: {}]   ;;  %s10439_s22 = inlined_call_operand.vmem [shape: f32[128,64], index: 22, kind: input, shape index: {}]   ;;  %s10440_s23 = inlined_call_operand.hbm [shape: f32[64,128], index: 23, kind: input, shape index: {}]   ;;  %s10441_s24 = inlined_call_operand.vmem [shape: f32[3,64], index: 24, kind: input, shape index: {}]   ;;  %s10442_s25 = inlined_call_operand.vmem [shape: f32[1,128], index: 25, kind: input, shape index: {}]   ;;  %s10443_s26 = inlined_call_operand.vmem [shape: f32[8,128], index: 26, kind: input, shape index: {}]   ;;  %s10444_s27 = inlined_call_operand.hbm [shape: f32[2,8,128], index: 27, kind: output, shape index: {0}]   ;;  %s10445_s28 = inlined_call_operand.hbm [shape: f32[2,64,128], index: 28, kind: output, shape index: {1}]  }
   0x1   :  { %10490 = sst [smem:[#allocation28_spill]] %s10417_s0 }
   0x2   :  { %10491 = sst [smem:[#allocation29_spill]] %s10418_s1 }
   0x3   :  { %10492 = sst [smem:[#allocation30_spill]] %s10419_s2 }
   0x4   :  { %10493 = sst [smem:[#allocation31_spill]] %s10420_s3 }
   0x5   :  { %10494 = sst [smem:[#allocation32_spill]] %s10421_s4 }
   0x6   :  { %10495 = sst [smem:[#allocation33_spill]] %s10422_s5 }
   0x7   :  { %10496 = sst [smem:[#allocation34_spill]] %s10423_s6 }
   0x8   :  { %10497 = sst [smem:[#allocation35_spill]] %s10424_s7 }
   0x9   :  { %10498 = sst [smem:[#allocation36_spill]] %s10425_s8 }
   0xa   :  { %10499 = sst [smem:[#allocation37_spill]] %s10426_s9 }
   0xb   :  { %10500 = sst [smem:[#allocation38_spill]] %s10427_s10 }
   0xc   :  { %10501 = sst [smem:[#allocation39_spill]] %s10428_s11 }
   0xd   :  { %10502 = sst [smem:[#allocation40_spill]] %s10429_s12 }
   0xe   :  { %10503 = sst [smem:[#allocation41_spill]] %s10430_s13 }
   0xf   :  { %10504 = sst [smem:[#allocation42_spill]] %s10431_s14 }
  0x10   :  { %10505 = sst [smem:[#allocation43_spill]] %s10432_s15 }
  0x11   :  { %10506 = sst [smem:[#allocation44_spill]] %s10434_s17 }
  0x12   :  { %10507 = sst [smem:[#allocation45_spill]] %s10435_s18 }
  0x13   :  { %10508 = sst [smem:[#allocation46_spill]] %s10436_s19 }
  0x14   :  { %10509 = sst [smem:[#allocation47_spill]] %s10437_s20 }
  0x15   :  { %10510 = sst [smem:[#allocation48_spill]] %s10438_s21 }
  0x16   :  { %10511 = sst [smem:[#allocation49_spill]] %s10439_s22 }
  0x17   :  { %10512 = sst [smem:[#allocation50_spill]] %s10440_s23 }
  0x18   :  { %10513 = sst [smem:[#allocation51_spill]] %s10441_s24 }
  0x19   :  { %10514 = sst [smem:[#allocation52_spill]] %s10442_s25 }
  0x1a   :  { %10515 = sst [smem:[#allocation53_spill]] %s10444_s27 }
  0x1b   :  { %10516 = sst [smem:[#allocation54_spill]] %s10445_s28 }
  0x1c   :  { %34 = vsyncpa [#allocation3], 0 }
  0x1d   :  { %36 = vsyncpa [#allocation3 + $0x1], 0 }
  0x1e   :  { %37 = vsyncpa [#allocation6], 0 }
  0x1f   :  { %39 = vsyncpa [#allocation6 + $0x1], 0 }
  0x20   :  { %40 = vsyncpa [#allocation9], 0 }
  0x21   :  { %41 = vsyncpa [#allocation12], 0 }
  0x22   :  { %42 = vsyncpa [#allocation15], 0 }
  0x23   :  { %43 = vsyncpa [#allocation4], 0 }
  0x24   :  { %45 = vsyncpa [#allocation4 + $0x1], 0 }
  0x25   :  { %46 = vsyncpa [#allocation19], 0 }
  0x26   :  { %48 = vsyncpa [#allocation19 + $0x1], 0  ;;  %s8587_s8 = smov 0   ;;  %s8589_s5 = smov 0  }
  0x27   :  { %s8591_s9 = smov 0   ;;  %s8593_s30 = smov 0  }
  0x28 LB: > { %s8417_s3 = smov [#allocation7]   ;;  %s8608_s10 = sadd.s32 4294967295, %s8415_s30   ;;  %s8415_s30 = sphi %s8593_s30, %s10578_s30   ;;  %s8411_s9 = sphi %s8591_s9, %s10577_s9   ;;  %s8407_s5 = sphi %s8589_s5, %s10576_s5   ;;  %s8403_s8 = sphi %s8587_s8, %s10575_s8  }
  0x29   : > { %s719_s6 = sshll.u32 %s8417_s3, 4  ;;  %p5776_p0 = scmp.ge.s32.totalorder %s8415_s30, 1  ;;  %s8613_s6 = int_to_ptr.vmem [resolvable:$true] %s719_s6 }
  0x2a   : > { %p10464_p1 = scmp.eq.s32.totalorder %s8608_s10, 0  ;;  %p698_p2 = scmp.lt.s32.totalorder %s8415_s30, 3 }
  0x2b   : > { %s8418_s11 = smov [#allocation8]   ;;  %s8419_s7 = smov [#allocation11]  }
  0x2c   : > { %p8615_p3 = pnand %p5776_p0, %p698_p2  ;;  %s733_s29 = sshll.u32 %s8418_s11, 4  ;;  %s8628_s29 = int_to_ptr.vmem [resolvable:$true] %s733_s29 }
  0x2d   : > { %s769_s12 = sshll.u32 %s8419_s7, 4  ;;  %s10519_s3 = sld [smem:[#allocation35_spill]]  ;;  %s8630_s12 = int_to_ptr.vmem [resolvable:$true] %s769_s12 }
  0x2e   : > { %s10517_s0 = scalar_select %p8615_p3, 1, 0 }
  0x2f   : > { %p7675_p5 = pneg %p8615_p3 }
  0x31   : > { %p8624_p6 = pnand %p7675_p5, %p10464_p1 }
  0x33   : > { %s8041_s28 = scalar_lea.hbm %s10519_s3, 2048  ;;  %p8640_p8 = pneg %p8624_p6 }
  0x34   : > { %p8042_p7 = scmp.ne.s32.totalorder %s10519_s3, %s8041_s28  ;;  %p8048_p11 = scmp.lt.u32.totalorder %s8041_s28, %s10519_s3 }
  0x36   : > { %p8044_p9 = pnand %p8640_p8, %p8042_p7 }
  0x38   : > { %p8045_p10 = pneg %p8044_p9 }
  0x3a   : > { %p8050_p12 = pnand %p8048_p11, %p8045_p10 }
  0x3c   : > { %8053 = shalt.err (!%p8050_p12)
}
  0x3d   : > { %s8054_s25 = scalar_lea.vmem %s8613_s6, 2048  ;;  %p8062_p5 = scmp.lt.s32.totalorder %s8613_s6, %s8613_s6 }
  0x3e   : > { %p8055_p13 = scmp.ne.s32.totalorder %s8613_s6, %s8054_s25  ;;  %p8063_p4 = scmp.lt.s32.totalorder %s8054_s25, %s8054_s25 }
  0x40   : > { %p8057_p0 = pnand %p8055_p13, %p8640_p8  ;;  %p8064_p7 = por %p8063_p4, %p8062_p5 }
  0x42   : > { %p8058_p2 = pneg %p8057_p0 }
  0x44   : > { %p8065_p9 = pnand %p8064_p7, %p8058_p2 }
  0x46   : > { %8068 = shalt.err (!%p8065_p9)
}
  0x47   : > { %s10462_s27 = smov 128   ;;  %s8421_s24 = smov 8  }
  0x48   : > { %7678 = dma.hbm_to_vmem [thread:$0]  (!%p8624_p6), %s10519_s3, 2048, %s8613_s6, [#allocation6], %s10462_s27, %s10462_s27, %s8421_s24  }
  0x49   : > { %s10521_s22 = sld [smem:[#allocation36_spill]] }
  0x4f   : > { %s8069_s25 = scalar_lea.hbm %s10521_s22, 64 }
  0x50   : > { %p8070_p4 = scmp.ne.s32.totalorder %s10521_s22, %s8069_s25  ;;  %p8076_p12 = scmp.lt.u32.totalorder %s8069_s25, %s10521_s22 }
  0x52   : > { %p8072_p10 = pnand %p8070_p4, %p8640_p8 }
  0x54   : > { %p8073_p11 = pneg %p8072_p10 }
  0x56   : > { %p8078_p13 = pnand %p8076_p12, %p8073_p11 }
  0x58   : > { %8081 = shalt.err (!%p8078_p13)
}
  0x59   : > { %s8082_s6 = scalar_lea.vmem %s8628_s29, 64  ;;  %p8090_p7 = scmp.lt.s32.totalorder %s8628_s29, %s8628_s29 }
  0x5a   : > { %p8083_p0 = scmp.ne.s32.totalorder %s8628_s29, %s8082_s6  ;;  %p8091_p9 = scmp.lt.s32.totalorder %s8082_s6, %s8082_s6 }
  0x5c   : > { %p8085_p2 = pnand %p8083_p0, %p8640_p8  ;;  %p8092_p4 = por %p8091_p9, %p8090_p7 }
  0x5e   : > { %p8086_p5 = pneg %p8085_p2 }
  0x60   : > { %p8093_p10 = pnand %p8092_p4, %p8086_p5 }
  0x62   : > { %8096 = shalt.err (!%p8093_p10)
}
  0x63   : > { %7681 = dma.hbm_to_vmem [thread:$0]  (!%p8624_p6), %s10521_s22, 64, %s8628_s29, [#allocation9]  }
  0x64   : > { %s10522_s14 = sld [smem:[#allocation42_spill]] }
  0x6a   : > { %s8097_s28 = scalar_lea.hbm %s10522_s14, 64 }
  0x6b   : > { %p8098_p11 = scmp.ne.s32.totalorder %s10522_s14, %s8097_s28  ;;  %p8104_p0 = scmp.lt.u32.totalorder %s8097_s28, %s10522_s14 }
  0x6d   : > { %p8100_p12 = pnand %p8098_p11, %p8640_p8 }
  0x6f   : > { %p8101_p13 = pneg %p8100_p12 }
  0x71   : > { %p8106_p2 = pnand %p8104_p0, %p8101_p13 }
  0x73   : > { %8109 = shalt.err (!%p8106_p2)
}
  0x74   : > { %s8110_s29 = scalar_lea.vmem %s8630_s12, 64  ;;  %p8118_p4 = scmp.lt.s32.totalorder %s8630_s12, %s8630_s12 }
  0x75   : > { %p8111_p5 = scmp.ne.s32.totalorder %s8630_s12, %s8110_s29  ;;  %p8119_p10 = scmp.lt.s32.totalorder %s8110_s29, %s8110_s29 }
  0x77   : > { %p8113_p7 = pnand %p8111_p5, %p8640_p8  ;;  %p8120_p11 = por %p8119_p10, %p8118_p4 }
  0x79   : > { %p8114_p9 = pneg %p8113_p7 }
  0x7b   : > { %p8121_p12 = pnand %p8120_p11, %p8114_p9 }
  0x7d   : > { %8124 = shalt.err (!%p8121_p12)
}
  0x7e   : > { %7687 = dma.hbm_to_vmem [thread:$0]  (!%p8624_p6), %s10522_s14, 64, %s8630_s12, [#allocation12]  }
  0x7f   : > { %s8422_s18 = smov [#allocation14]   ;;  %s8423_s21 = smov [#allocation10]  }
  0x80   : > { %s800_s20 = sshll.u32 %s8422_s18, 4  ;;  %s755_s28 = sshll.u32 %s8423_s21, 4  ;;  %s801_s20 = int_to_ptr.vmem [resolvable:$true] %s800_s20  ;;  %s756_s28 = int_to_ptr.vmem [resolvable:$true] %s755_s28 }
  0x81   : > { %s10523_s19 = sld [smem:[#allocation46_spill]] }
  0x87   : > { %s8125_s7 = scalar_lea.hbm %s10523_s19, 16 }
  0x88   : > { %p8126_p13 = scmp.ne.s32.totalorder %s10523_s19, %s8125_s7  ;;  %p8132_p5 = scmp.lt.u32.totalorder %s8125_s7, %s10523_s19 }
  0x8a   : > { %p8128_p0 = pnand %p8126_p13, %p8640_p8 }
  0x8c   : > { %p8129_p2 = pneg %p8128_p0 }
  0x8e   : > { %p8134_p7 = pnand %p8132_p5, %p8129_p2 }
  0x90   : > { %8137 = shalt.err (!%p8134_p7)
}
  0x91   : > { %s8138_s12 = scalar_lea.vmem %s801_s20, 16  ;;  %s8145_s17 = scalar_lea.vmem %s801_s20, 32 }
  0x92   : > { %p8139_p9 = scmp.ne.s32.totalorder %s801_s20, %s8138_s12  ;;  %p8146_p11 = scmp.lt.s32.totalorder %s801_s20, %s801_s20 }
  0x93   : > { %p8147_p12 = scmp.lt.s32.totalorder %s8145_s17, %s8138_s12 }
  0x94   : > { %p8141_p4 = pnand %p8139_p9, %p8640_p8 }
  0x95   : > { %p8148_p1 = por %p8147_p12, %p8146_p11 }
  0x96   : > { %p8142_p10 = pneg %p8141_p4 }
  0x98   : > { %p8149_p3 = pnand %p8148_p1, %p8142_p10 }
  0x9a   : > { %8152 = shalt.err (!%p8149_p3)
}
  0x9b   : > { %7693 = dma.hbm_to_vmem [thread:$0]  (!%p8624_p6), %s10523_s19, 16, %s801_s20, [#allocation15]  }
  0x9c   : > { %s10524_s13 = sld [smem:[#allocation41_spill]] }
  0xa2   : > { %s8153_s4 = scalar_lea.hbm %s10524_s13, 1024 }
  0xa3   : > { %p8154_p13 = scmp.ne.s32.totalorder %s10524_s13, %s8153_s4  ;;  %p8160_p3 = scmp.lt.u32.totalorder %s8153_s4, %s10524_s13 }
  0xa5   : > { %p8156_p0 = pnand %p8154_p13, %p8640_p8 }
  0xa7   : > { %p8157_p1 = pneg %p8156_p0 }
  0xa9   : > { %p8162_p2 = pnand %p8160_p3, %p8157_p1 }
  0xab   : > { %8165 = shalt.err (!%p8162_p2)
}
  0xac   : > { %s8166_s12 = scalar_lea.vmem %s756_s28, 1024  ;;  %p8174_p4 = scmp.lt.s32.totalorder %s756_s28, %s756_s28 }
  0xad   : > { %p8167_p5 = scmp.ne.s32.totalorder %s756_s28, %s8166_s12  ;;  %p8175_p10 = scmp.lt.s32.totalorder %s8166_s12, %s8166_s12 }
  0xaf   : > { %p8169_p7 = pnand %p8167_p5, %p8640_p8  ;;  %p8176_p11 = por %p8175_p10, %p8174_p4 }
  0xb1   : > { %p8170_p9 = pneg %p8169_p7 }
  0xb3   : > { %p8177_p12 = pnand %p8176_p11, %p8170_p9 }
  0xb5   : > { %8180 = shalt.err (!%p8177_p12)
}
  0xb6   : > { %s10525_s20 = smov 128   ;;  %s8424_s21 = smov [#allocation13]  }
  0xb7   : > { %7684 = dma.hbm_to_vmem [thread:$0]  (!%p8624_p6), %s10524_s13, 1024, %s756_s28, [#allocation9], %s10525_s20, %s10525_s20, %s8421_s24  }
  0xb8   : > { %s780_s27 = sshll.u32 %s8424_s21, 4  ;;  %s8425_s1 = smov [#allocation16]   ;;  %s781_s27 = int_to_ptr.vmem [resolvable:$true] %s780_s27 }
  0xb9   : > { %s819_s4 = sshll.u32 %s8425_s1, 4  ;;  %s10526_s15 = sld [smem:[#allocation43_spill]]  ;;  %s820_s4 = int_to_ptr.vmem [resolvable:$true] %s819_s4 }
  0xbf   : > { %s8181_s29 = scalar_lea.hbm %s10526_s15, 16 }
  0xc0   : > { %p8182_p13 = scmp.ne.s32.totalorder %s10526_s15, %s8181_s29  ;;  %p8188_p3 = scmp.lt.u32.totalorder %s8181_s29, %s10526_s15 }
  0xc2   : > { %p8184_p0 = pnand %p8182_p13, %p8640_p8 }
  0xc4   : > { %p8185_p1 = pneg %p8184_p0 }
  0xc6   : > { %p8190_p2 = pnand %p8188_p3, %p8185_p1 }
  0xc8   : > { %8193 = shalt.err (!%p8190_p2)
}
  0xc9   : > { %s8194_s28 = scalar_lea.vmem %s781_s27, 16  ;;  %s8201_s18 = scalar_lea.vmem %s781_s27, 32 }
  0xca   : > { %p8195_p5 = scmp.ne.s32.totalorder %s781_s27, %s8194_s28  ;;  %p8202_p4 = scmp.lt.s32.totalorder %s781_s27, %s781_s27 }
  0xcb   : > { %p8203_p10 = scmp.lt.s32.totalorder %s8201_s18, %s8194_s28 }
  0xcc   : > { %p8197_p7 = pnand %p8195_p5, %p8640_p8 }
  0xcd   : > { %p8204_p11 = por %p8203_p10, %p8202_p4 }
  0xce   : > { %p8198_p9 = pneg %p8197_p7 }
  0xd0   : > { %p8205_p12 = pnand %p8204_p11, %p8198_p9 }
  0xd2   : > { %8208 = shalt.err (!%p8205_p12)
}
  0xd3   : > { %7690 = dma.hbm_to_vmem [thread:$0]  (!%p8624_p6), %s10526_s15, 16, %s781_s27, [#allocation12]  }
  0xd4   : > { %s10527_s23 = sld [smem:[#allocation50_spill]] }
  0xda   : > { %s8209_s25 = scalar_lea.hbm %s10527_s23, 1024 }
  0xdb   : > { %p8210_p13 = scmp.ne.s32.totalorder %s10527_s23, %s8209_s25  ;;  %p8216_p3 = scmp.lt.u32.totalorder %s8209_s25, %s10527_s23 }
  0xdd   : > { %p8212_p0 = pnand %p8210_p13, %p8640_p8 }
  0xdf   : > { %p8213_p1 = pneg %p8212_p0 }
  0xe1   : > { %p8218_p2 = pnand %p8216_p3, %p8213_p1 }
  0xe3   : > { %8221 = shalt.err (!%p8218_p2)
}
  0xe4   : > { %s8222_s28 = scalar_lea.vmem %s820_s4, 1024  ;;  %p8230_p4 = scmp.lt.s32.totalorder %s820_s4, %s820_s4 }
  0xe5   : > { %p8223_p5 = scmp.ne.s32.totalorder %s820_s4, %s8222_s28  ;;  %p8231_p10 = scmp.lt.s32.totalorder %s8222_s28, %s8222_s28 }
  0xe7   : > { %p8225_p7 = pnand %p8223_p5, %p8640_p8  ;;  %p8232_p11 = por %p8231_p10, %p8230_p4 }
  0xe9   : > { %p8226_p9 = pneg %p8225_p7 }
  0xeb   : > { %p8233_p12 = pnand %p8232_p11, %p8226_p9 }
  0xed   : > { %8236 = shalt.err (!%p8233_p12)
}
  0xee   : > { %7696 = dma.hbm_to_vmem [thread:$0]  (!%p8624_p6), %s10527_s23, 1024, %s820_s4, [#allocation15], %s10525_s20, %s10525_s20, %s8421_s24  }
  0xef   : > { %s5775_s2 = sadd.s32 4294967294, %s8415_s30   ;;  %s8790_s11 = sadd.s32 1, %s8415_s30  }
  0xf0   : > { %s61_s21 = sadd.s32 1, %s8411_s9  ;;  %s58_s1 = ssub.s32 %s8415_s30, %s8790_s11 }
  0xf1   : > { %p68_p8 = scmp.ne.s32.totalorder %s8411_s9, %s8407_s5  ;;  %p59_p13 = scmp.eq.s32.totalorder %s58_s1, 0 }
  0xf2   : > { %p69_p0 = scmp.eq.s32.totalorder %s8415_s30, 0  ;;  %p74_p1 = scmp.ne.s32.totalorder %s8407_s5, %s8403_s8 }
  0xf3   : > { %p659_p3 = scmp.eq.s32.totalorder %s8608_s10, 1  ;;  %p10528_p5 = scmp.eq.s32.totalorder %s8608_s10, 0 }
  0xf4   : > { %s8802_s3 = scalar_select %p59_p13, %s8411_s9, %s61_s21  }
  0xf5   : > { %p70_p2 = por %p69_p0, %p68_p8  ;;  %p8806_p7 = por %p10528_p5, %p74_p1 }
  0xf6   : > { %p8810_p6 = por %p659_p3, %p68_p8  ;;  %p665_p9 = scmp.eq.s32.totalorder %s5775_s2, 1 }
  0xf7   : > { %s10529_s7 = scalar_select %p8806_p7, 1, 0 }
  0xf8   : > { %s10530_s24 = scalar_select %p8810_p6, 1, 0 }
  0xf9   : > { %p7718_p4 = scmp.lt.s32.totalorder %s8415_s30, 2  ;;  %s842_s20 = sand.u32 1, %s8411_s9  }
  0xfa   : > { %p8816_p10 = por %p665_p9, %p74_p1  ;;  %s8820_s25 = sshll.u32 %s842_s20, 3 }
  0xfb   : > { %s5786_s29 = sshll.u32 %s8415_s30, 7  ;;  %s10532_s17 = sld [smem:[#allocation28_spill]] }
  0xfc   : > { %s10531_s4 = scalar_select %p8816_p10, 1, 0 }
  0xfd   : > { %s846_s27 = scalar_lea.vmem [#allocation2], %s8820_s25  ;;  %p8829_p11 = pnand %p7718_p4, %p70_p2 }
  0xfe   : > { %s853_s18 = sshll.u32 %s846_s27, 4  ;;  %s10534_s13 = sld [smem:[#allocation30_spill]]  ;;  %s8833_s18 = int_to_ptr.vmem [resolvable:$true] %s853_s18 }
  0xff   : > { %s843_s12 = scalar_lea.sflag [#allocation3], %s842_s20  ;;  %p8239_p8 = pneg %p8829_p11 }
 0x101   : > { %s8826_s28 = scalar_lea.hbm %s10532_s17, %s5786_s29  ;;  %s8242_s19 = scalar_lea.hbm %s10532_s17, 256 }
 0x102   : > { %s8237_s14 = scalar_lea.hbm %s8826_s28, 128  ;;  %p8243_p1 = scmp.lt.u32.totalorder %s8826_s28, %s10532_s17 }
 0x103   : > { %p8238_p12 = scmp.ne.s32.totalorder %s8826_s28, %s8237_s14  ;;  %p8244_p3 = scmp.lt.u32.totalorder %s8242_s19, %s8237_s14 }
 0x104   : > { %s8838_s6 = scalar_lea.hbm %s10534_s13, %s5786_s29  ;;  %p8246_p5 = scmp.lt.u32.totalorder %s8237_s14, %s8826_s28 }
 0x105   : > { %p8240_p13 = pnand %p8239_p8, %p8238_p12  ;;  %p8245_p2 = por %p8244_p3, %p8243_p1 }
 0x107   : > { %p8241_p0 = pneg %p8240_p13  ;;  %p8247_p9 = por %p8246_p5, %p8245_p2 }
 0x109   : > { %p8248_p4 = pnand %p8247_p9, %p8241_p0 }
 0x10b   : > { %8251 = shalt.err (!%p8248_p4)
}
 0x10c   : > { %s8252_s20 = scalar_lea.vmem %s8833_s18, 128  ;;  %s8426_s15 = smov [#allocation2]  }
 0x10d   : > { %p8253_p12 = scmp.ne.s32.totalorder %s8833_s18, %s8252_s20  ;;  %s8257_s29 = sshll.u32 %s8426_s15, 4  ;;  %s8258_s29 = int_to_ptr.vmem [resolvable:$false] %s8257_s29 }
 0x10e   : > { %s8259_s22 = scalar_lea.vmem %s8258_s29, 256  ;;  %p8260_p6 = scmp.lt.s32.totalorder %s8833_s18, %s8258_s29 }
 0x10f   : > { %p8255_p13 = pnand %p8253_p12, %p8239_p8  ;;  %p8261_p1 = scmp.lt.s32.totalorder %s8259_s22, %s8252_s20 }
 0x111   : > { %p8256_p10 = pneg %p8255_p13  ;;  %p8262_p3 = por %p8261_p1, %p8260_p6 }
 0x113   : > { %p8263_p2 = pnand %p8262_p3, %p8256_p10 }
 0x115   : > { %8266 = shalt.err (!%p8263_p2)
}
 0x116   : > { %7700 = dma.hbm_to_vmem [thread:$0]  (!%p8829_p11), %s8826_s28, 128, %s8833_s18, %s843_s12  }
 0x117   : > { %s868_s14 = sand.u32 1, %s8415_s30   ;;  %s872_s19 = scalar_lea.vmem [#allocation5], %s8820_s25 }
 0x118   : > { %s879_s23 = sshll.u32 %s872_s19, 4  ;;  %s869_s21 = scalar_lea.sflag [#allocation6], %s868_s14  ;;  %s880_s23 = int_to_ptr.vmem [resolvable:$true] %s879_s23 }
 0x119   : > { %s8267_s1 = scalar_lea.hbm %s8838_s6, 128  ;;  %s8272_s15 = scalar_lea.hbm %s10534_s13, 256 }
 0x11a   : > { %p8268_p6 = scmp.ne.s32.totalorder %s8838_s6, %s8267_s1  ;;  %p8273_p5 = scmp.lt.u32.totalorder %s8838_s6, %s10534_s13 }
 0x11b   : > { %p8274_p9 = scmp.lt.u32.totalorder %s8272_s15, %s8267_s1  ;;  %p8276_p12 = scmp.lt.u32.totalorder %s8267_s1, %s8838_s6 }
 0x11c   : > { %p8270_p10 = pnand %p8268_p6, %p8239_p8 }
 0x11d   : > { %p8275_p4 = por %p8274_p9, %p8273_p5 }
 0x11e   : > { %p8271_p0 = pneg %p8270_p10 }
 0x11f   : > { %p8277_p13 = por %p8276_p12, %p8275_p4 }
 0x121   : > { %p8278_p1 = pnand %p8277_p13, %p8271_p0 }
 0x123   : > { %8281 = shalt.err (!%p8278_p1)
}
 0x124   : > { %s8282_s25 = scalar_lea.vmem %s880_s23, 128  ;;  %s8427_s28 = smov [#allocation5]  }
 0x125   : > { %p8283_p3 = scmp.ne.s32.totalorder %s880_s23, %s8282_s25  ;;  %s8287_s18 = sshll.u32 %s8427_s28, 4  ;;  %s8288_s18 = int_to_ptr.vmem [resolvable:$false] %s8287_s18 }
 0x126   : > { %s8289_s12 = scalar_lea.vmem %s8288_s18, 256  ;;  %p8290_p10 = scmp.lt.s32.totalorder %s880_s23, %s8288_s18 }
 0x127   : > { %p8285_p2 = pnand %p8283_p3, %p8239_p8  ;;  %p8291_p7 = scmp.lt.s32.totalorder %s8289_s12, %s8282_s25 }
 0x129   : > { %p8286_p6 = pneg %p8285_p2  ;;  %p8292_p5 = por %p8291_p7, %p8290_p10 }
 0x12b   : > { %p8293_p9 = pnand %p8292_p5, %p8286_p6 }
 0x12d   : > { %8296 = shalt.err (!%p8293_p9)
}
 0x12e   : > { %7703 = dma.hbm_to_vmem [thread:$0]  (!%p8829_p11), %s8838_s6, 128, %s880_s23, %s869_s21  }
 0x12f   : > { %p10535_p0 = scmp.ne.s32.totalorder %s10517_s0, 0 }
 0x130   : > { %s8889_s14 = sand.u32 (!%p10535_p0), 1, %s8407_s5   ;;  %p10536_p7 = scmp.ne.s32.totalorder (!%p10535_p0), %s10529_s7, 0 }
 0x131   : > { %896 = sbr.rel (%p10535_p0) target bundleno = 6244 (0x1864), region = 128  ;;  %s8892_s19 = sshll.u32 (!%p10535_p0), %s8889_s14, 3 }
 0x132   : > { %s899_s1 = scalar_lea.sflag (!%p10535_p0), [#allocation3], %s8889_s14  ;;  %s902_s27 = scalar_lea.vmem (!%p10535_p0), [#allocation2], %s8892_s19 }
 0x138   : > { %8370 = dma.done.wait (%p10536_p7), %s899_s1, 128  }
 0x139   : > { %8372 = vsyncadd (%p10536_p7), %s899_s1, 4294967168  ;;  %s907_s0 = sand.u32 1, %s8608_s10   ;;  %s10470_s6 = scalar_lea.vmem [#allocation5], %s8892_s19 }
 0x13a   : > { %s908_s2 = scalar_lea.sflag [#allocation6], %s907_s0 }
 0x13b   : > { %8374 = dma.done.wait (%p10536_p7), %s908_s2, 128  }
 0x13c   : > { %8376 = vsyncadd (%p10536_p7), %s908_s2, 4294967168  ;;  %p10537_p11 = scmp.eq.s32.totalorder %s8608_s10, 0 }
 0x13e   : > { %8378 = dma.done.wait (%p10537_p11), [#allocation6], 2048   ;;  %p10538_p8 = pmov %p10537_p11 }
 0x140   : > { %8380 = vsyncadd (%p10538_p8), [#allocation6], 4294965248  ;;  %p10539_p4 = pmov %p10538_p8 }
 0x142   : > { %8382 = dma.done.wait (%p10539_p4), [#allocation9], 1088   ;;  %p10540_p12 = pmov %p10539_p4 }
 0x143   : > { %p10541_p13 = pmov %p10539_p4 }
 0x144   : > { %8384 = vsyncadd (%p10540_p12), [#allocation9], 4294966208 }
 0x145   : > { %8386 = dma.done.wait (%p10541_p13), [#allocation12], 80   ;;  %p10542_p1 = pmov %p10539_p4 }
 0x147   : > { %8388 = vsyncadd (%p10542_p1), [#allocation12], 4294967216  ;;  %p10543_p3 = pmov %p10542_p1 }
 0x148   : > { %p10544_p2 = pmov %p10542_p1 }
 0x149   : > { %8390 = dma.done.wait (%p10543_p3), [#allocation15], 1040  }
 0x14a   : > { %8392 = vsyncadd (%p10544_p2), [#allocation15], 4294966256  ;;  %v8428_v0 = vmov 0.0|0.0   ;;  %vm8429_vm0 = vmmov 0   ;;  %v8430_v1 = vmov 0.0   ;;  %s10545_s21 = sld [smem:[#allocation33_spill]]  ;;  %v1128_v62 = vlaneseq }
 0x14b   : > { %7131 = vmatprep.subr.bf16.mxu1 %v8428_v0  ;;  %7107 = vmatprep.subr.bf16.mxu0 %v8428_v0  ;;  %s10546_s25 = sld [smem:[#allocation32_spill]]  ;;  %v1042_v49 = vld [vmem:[%s902_s27] sm:$0xff]  ;;  %v9040_v50 = vld [vmem:[%s10470_s6] sm:$0xff]  ;;  %s10547_s22 = sld [smem:[#allocation34_spill]]  ;;  %vm1374_vm1 = vcmask 261120   ;;  %vm1671_vm2 = vcmask 64512  }
 0x14c   : > { %6426 = vmatprep.mubr.msk.f32.mxu1 %vm8429_vm0, %v8430_v1  ;;  %6391 = vmatprep.mubr.msk.f32.mxu0 %vm8429_vm0, %v8430_v1  ;;  %v9045_v52 = vadd.f32 %v9040_v50, %v1042_v49  ;;  %v9076_v63 = vshrl.u32 %v1128_v62, 7  ;;  %s8431_s12 = smov 64   ;;  %s10473_s1 = smov 96   ;;  %vm2021_vm3 = vcmask 523264   ;;  %vm2023_vm4 = vcmask 785408  }
 0x14d   : > { %s10471_s20 = smov 32   ;;  %s10548_s29 = sld [smem:[#allocation37_spill]]  ;;  %vm2626_vm5 = vcmask 130048   ;;  %vm3329_vm7 = vcmask 392192  }
 0x14e   : > { %p1032_p6 = scmp.lt.s32.totalorder %s8608_s10, 1  ;;  %s10551_s13 = sld [smem:[#allocation31_spill]]  ;;  %vm9398_vm6 = vmpackc.low %vm2626_vm5, %vm2626_vm5 }
 0x14f   : > { %s10481_s18 = smov 16   ;;  %s10557_s7 = smov 32  }
 0x150   : > { %v1078_v2 = vld [vmem:[%s10545_s21] sm:$0xff]  ;;  %v1079_v3 = vld [vmem:[%s10545_s21 + $0x8] sm:$0xff]  ;;  %v1080_v7 = vld [vmem:[%s10545_s21 + $0x10] sm:$0xff]  ;;  %s1033_s0 = scalar_select %p1032_p6, %s8608_s10, 1 }
 0x151   : > { %v1062_v4 = vld [vmem:[%s10546_s25] sm:$0xff]  ;;  %v7132_v5 = vpack.c.bf16 %v1079_v3, %v1078_v2  ;;  %v1063_v6 = vld [vmem:[%s10546_s25 + $0x8] sm:$0xff]  ;;  %v1081_v8 = vld [vmem:[%s10545_s21 + $0x18] sm:$0xff]  ;;  %s10479_s23 = smov 48   ;;  %s10559_s17 = sld [smem:[#allocation44_spill]] }
 0x152   : > { %v7108_v9 = vpack.c.bf16 %v1063_v6, %v1062_v4  ;;  %v1064_v10 = vld [vmem:[%s10546_s25 + $0x10] sm:$0xff]  ;;  %v1065_v11 = vld [vmem:[%s10546_s25 + $0x18] sm:$0xff]  ;;  %v7135_v12 = vpack.c.bf16 %v1081_v8, %v1080_v7  ;;  %v1082_v14 = vld [vmem:[%s10545_s21 + $0x20] sm:$0xff]  ;;  %s5945_s2 = sshll.u32 %s1033_s0, 6  ;;  %s10552_s0 = sld [smem:[#allocation38_spill]] }
 0x153   : > { %7133 = vmatpush3.bf16.msra.mxu1 %v7132_v5  ;;  %v7111_v13 = vpack.c.bf16 %v1065_v11, %v1064_v10  ;;  %v1083_v15 = vld [vmem:[%s10545_s21 + $0x28] sm:$0xff]  ;;  %v1066_v16 = vld [vmem:[%s10546_s25 + $0x20] sm:$0xff]  ;;  %v1084_v20 = vld [vmem:[%s10545_s21 + $0x30] sm:$0xff]  ;;  %v9085_v5 = vsub.s32 1, %v9076_v63  ;;  %s10561_s6 = sld [smem:[#allocation48_spill]]  ;;  %s10568_s15 = smov 48  }
 0x154   : > { %7109 = vmatpush3.bf16.msra.mxu0 %v7108_v9  ;;  %7134 = vmatprep.subr.bf16.mxu1 %v8428_v0  ;;  %v1067_v17 = vld [vmem:[%s10546_s25 + $0x28] sm:$0xff]  ;;  %v7138_v18 = vpack.c.bf16 %v1083_v15, %v1082_v14  ;;  %v1085_v21 = vld [vmem:[%s10545_s21 + $0x38] sm:$0xff]  ;;  %v1068_v22 = vld [vmem:[%s10546_s25 + $0x30] sm:$0xff]  ;;  %v9097_v9 = vsub.s32 0, %v9076_v63  ;;  %s9236_s28 = scalar_lea.vmem %s10551_s13, %s5945_s2  ;;  %s10558_s13 = sld [smem:[#allocation45_spill]] }
 0x155   : > { %7110 = vmatprep.subr.bf16.mxu0 %v8428_v0  ;;  %v7114_v19 = vpack.c.bf16 %v1067_v17, %v1066_v16  ;;  %v1069_v23 = vld [vmem:[%s10546_s25 + $0x38] sm:$0xff]  ;;  %v7141_v24 = vpack.c.bf16 %v1085_v21, %v1084_v20  ;;  %v1086_v26 = vld [vmem:[%s10545_s21 + $0x40] sm:$0xff]  ;;  %v1087_v27 = vld [vmem:[%s10545_s21 + $0x48] sm:$0xff]  ;;  %s10569_s27 = sld [smem:[#allocation52_spill]]  ;;  %p10571_p5 = scmp.ne.s32.totalorder %s10530_s24, 0 }
 0x156   : > { %v7117_v25 = vpack.c.bf16 %v1069_v23, %v1068_v22  ;;  %v1070_v28 = vld [vmem:[%s10546_s25 + $0x40] sm:$0xff]  ;;  %v1071_v29 = vld [vmem:[%s10546_s25 + $0x48] sm:$0xff]  ;;  %v7144_v30 = vpack.c.bf16 %v1087_v27, %v1086_v26  ;;  %v1088_v32 = vld [vmem:[%s10545_s21 + $0x50] sm:$0xff] }
 0x157   : > { %7136 = vmatpush3.bf16.msra.mxu1 %v7135_v12  ;;  %v7120_v31 = vpack.c.bf16 %v1071_v29, %v1070_v28  ;;  %v1089_v33 = vld [vmem:[%s10545_s21 + $0x58] sm:$0xff]  ;;  %v1072_v34 = vld [vmem:[%s10546_s25 + $0x50] sm:$0xff]  ;;  %v1090_v38 = vld [vmem:[%s10545_s21 + $0x60] sm:$0xff] }
 0x158   : > { %7112 = vmatpush3.bf16.msra.mxu0 %v7111_v13  ;;  %7137 = vmatprep.subr.bf16.mxu1 %v8428_v0  ;;  %v1073_v35 = vld [vmem:[%s10546_s25 + $0x58] sm:$0xff]  ;;  %v7147_v36 = vpack.c.bf16 %v1089_v33, %v1088_v32  ;;  %v1091_v39 = vld [vmem:[%s10545_s21 + $0x68] sm:$0xff]  ;;  %v1074_v40 = vld [vmem:[%s10546_s25 + $0x60] sm:$0xff] }
 0x159   : > { %7113 = vmatprep.subr.bf16.mxu0 %v8428_v0  ;;  %v7123_v37 = vpack.c.bf16 %v1073_v35, %v1072_v34  ;;  %v1075_v41 = vld [vmem:[%s10546_s25 + $0x68] sm:$0xff]  ;;  %v7150_v42 = vpack.c.bf16 %v1091_v39, %v1090_v38  ;;  %v1092_v44 = vld [vmem:[%s10545_s21 + $0x70] sm:$0xff]  ;;  %v1093_v45 = vld [vmem:[%s10545_s21 + $0x78] sm:$0xff]  ;;  %v9155_v34 = vsub.s32 2, %v9076_v63  ;;  %s10562_s21 = sld [smem:[#allocation49_spill]] }
 0x15a   : > { %v7126_v43 = vpack.c.bf16 %v1075_v41, %v1074_v40  ;;  %v1076_v46 = vld [vmem:[%s10546_s25 + $0x70] sm:$0xff]  ;;  %v1077_v47 = vld [vmem:[%s10546_s25 + $0x78] sm:$0xff]  ;;  %v7153_v48 = vpack.c.bf16 %v1093_v45, %v1092_v44  ;;  %v1094_v53 = vld [vmem:[%s10547_s22] sm:$0xff] }
 0x15b   : > { %7139 = vmatpush3.bf16.msra.mxu1 %v7138_v18  ;;  %v7129_v51 = vpack.c.bf16 %v1077_v47, %v1076_v46  ;;  %v1095_v54 = vld [vmem:[%s10547_s22 + $0x8] sm:$0xff]  ;;  %v1096_v55 = vld [vmem:[%s10547_s22 + $0x10] sm:$0xff]  ;;  %v1097_v57 = vld [vmem:[%s10547_s22 + $0x18] sm:$0xff] }
 0x15c   : > { %7115 = vmatpush3.bf16.msra.mxu0 %v7114_v19  ;;  %7140 = vmatprep.subr.bf16.mxu1 %v8428_v0  ;;  %v7156_v56 = vpack.c.bf16 %v1095_v54, %v1094_v53  ;;  %v7159_v58 = vpack.c.bf16 %v1097_v57, %v1096_v55  ;;  %v1098_v59 = vld [vmem:[%s10547_s22 + $0x20] sm:$0xff]  ;;  %v1099_v60 = vld [vmem:[%s10547_s22 + $0x28] sm:$0xff]  ;;  %v1100_v2 = vld [vmem:[%s10547_s22 + $0x30] sm:$0xff] }
 0x15d   : > { %7116 = vmatprep.subr.bf16.mxu0 %v8428_v0  ;;  %v7162_v61 = vpack.c.bf16 %v1099_v60, %v1098_v59  ;;  %v1101_v3 = vld [vmem:[%s10547_s22 + $0x38] sm:$0xff]  ;;  %v9088_v6 = vld [vmem:[#allocation8] sm:$0x7]  ;;  %v1103_v8 = vld [vmem:[%s10547_s22 + $0x48] sm:$0xff] }
 0x15e   : > { %v7165_v4 = vpack.c.bf16 %v1101_v3, %v1100_v2  ;;  %v1102_v7 = vld [vmem:[%s10547_s22 + $0x40] sm:$0xff]  ;;  %v1205_v11 = vrot.slane %v9088_v6, %v9085_v5  ;;  %v1104_v12 = vld [vmem:[%s10547_s22 + $0x50] sm:$0xff]  ;;  %v1105_v13 = vld [vmem:[%s10547_s22 + $0x58] sm:$0xff]  ;;  %v1131_v14 = vrot.slane %v9088_v6, %v9097_v9  ;;  %v1279_v38 = vrot.slane %v9088_v6, %v9155_v34 }
 0x15f   : > { %7142 = vmatpush3.bf16.msra.mxu1 %v7141_v24  ;;  %v7168_v10 = vpack.c.bf16 %v1103_v8, %v1102_v7  ;;  %v7171_v15 = vpack.c.bf16 %v1105_v13, %v1104_v12  ;;  %v1106_v21 = vld [vmem:[%s10547_s22 + $0x60] sm:$0xff]  ;;  %v1107_v22 = vld [vmem:[%s10547_s22 + $0x68] sm:$0xff]  ;;  %v1109_v26 = vld [vmem:[%s10547_s22 + $0x78] sm:$0xff] }
 0x160   : > { %7118 = vmatpush3.bf16.msra.mxu0 %v7117_v25  ;;  %7143 = vmatprep.subr.bf16.mxu1 %v8428_v0  ;;  %v7174_v24 = vpack.c.bf16 %v1107_v22, %v1106_v21  ;;  %v1108_v25 = vld [vmem:[%s10547_s22 + $0x70] sm:$0xff]  ;;  %s10485_s22 = smov 112  }
 0x161   : > { %7119 = vmatprep.subr.bf16.mxu0 %v8428_v0  ;;  %v7177_v27 = vpack.c.bf16 %v1109_v26, %v1108_v25 }
 0x163   : > { %7145 = vmatpush3.bf16.msra.mxu1 %v7144_v30 }
 0x164   : > { %7121 = vmatpush3.bf16.msra.mxu0 %v7120_v31  ;;  %7146 = vmatprep.subr.bf16.mxu1 %v8428_v0 }
 0x165   : > { %7122 = vmatprep.subr.bf16.mxu0 %v8428_v0 }
 0x167   : > { %7148 = vmatpush3.bf16.msra.mxu1 %v7147_v36 }
 0x168   : > { %7124 = vmatpush3.bf16.msra.mxu0 %v7123_v37  ;;  %7149 = vmatprep.subr.bf16.mxu1 %v8428_v0 }
 0x169   : > { %7125 = vmatprep.subr.bf16.mxu0 %v8428_v0 }
 0x16b   : > { %7151 = vmatpush3.bf16.msra.mxu1 %v7150_v42 }
 0x16c   : > { %7127 = vmatpush3.bf16.msra.mxu0 %v7126_v43  ;;  %7152 = vmatprep.subr.bf16.mxu1 %v8428_v0 }
 0x16d   : > { %7128 = vmatprep.subr.bf16.mxu0 %v8428_v0 }
 0x16f   : > { %7154 = vmatpush3.bf16.msra.mxu1 %v7153_v48 }
 0x170   : > { %7130 = vmatpush3.bf16.msra.mxu0 %v7129_v51  ;;  %6464 = vmatprep.subr.mxu1 %v8430_v1 }
 0x171   : > { %7155 = vmatprep.subr.bf16.mxu0 %v8428_v0 }
 0x172   : > { %6427 = vmatmul.mubr.f32.vlgmr.msra.gmra.mrb[0].mxu1 %v9045_v52 }
 0x173   : > { %6392 = vmatmul.mubr.f32.vlgmr.msra.gmra.mrb[0].mxu0 %v9045_v52  ;;  %6466 = vmatprep.mubr.msk.f32.mxu1 %vm8429_vm0, %v8430_v1 }
 0x174   : > { %6461 = vmatprep.mubr.msk.f32.mxu0 %vm8429_vm0, %v8430_v1  ;;  %7157 = vmatpush3.bf16.msra.mxu0 %v7156_v56 }
 0x175   : > { %7158 = vmatprep.subr.bf16.mxu0 %v8428_v0 }
 0x178   : > { %7160 = vmatpush3.bf16.msra.mxu0 %v7159_v58 }
 0x179   : > { %7161 = vmatprep.subr.bf16.mxu0 %v8428_v0 }
 0x17c   : > { %7163 = vmatpush3.bf16.msra.mxu0 %v7162_v61 }
 0x17d   : > { %7164 = vmatprep.subr.bf16.mxu0 %v8428_v0 }
 0x180   : > { %7166 = vmatpush3.bf16.msra.mxu0 %v7165_v4 }
 0x181   : > { %7167 = vmatprep.subr.bf16.mxu0 %v8428_v0 }
 0x184   : > { %7169 = vmatpush3.bf16.msra.mxu0 %v7168_v10 }
 0x185   : > { %7170 = vmatprep.subr.bf16.mxu0 %v8428_v0 }
 0x188   : > { %7172 = vmatpush3.bf16.msra.mxu0 %v7171_v15 }
 0x189   : > { %7173 = vmatprep.subr.bf16.mxu0 %v8428_v0 }
 0x18c   : > { %7175 = vmatpush3.bf16.msra.mxu0 %v7174_v24 }
 0x18d   : > { %7176 = vmatprep.subr.bf16.mxu0 %v8428_v0 }
 0x190   : > { %7178 = vmatpush3.bf16.msra.mxu0 %v7177_v27 }
 0x191   : > { %7179 = vmatprep.subr.bf16.mxu0 %v8428_v0 }
 0x193   : > { %6462 = vmatmul.mubr.f32.vlgmr.msra.gmra.mrb[2].mxu0 %v9045_v52 }
 0x194   : > { %6536 = vmatprep.mubr.msk.f32.mxu0 %vm8429_vm0, %v8430_v1 }
 0x245   : > { %v1272_v16 = vpop.f32.mrb[0].mxu1 }
 0x246   : > { %v1273_v17 = vadd.f32 %v1272_v16, %v1205_v11  ;;  %v6428_v18 = vpop.f32.mrb[1].mxu1  ;;  %v1198_v19 = vpop.f32.mrb[0].mxu0 }
 0x247   : > { %v6393_v20 = vpop.f32.mrb[1].mxu0  ;;  %v1199_v23 = vadd.f32 %v1198_v19, %v1131_v14 }
 0x248   : > { %1360 = vrot.lane.b32.xlu1 %v1273_v17, %s8431_s12  ;;  %1358 = vrot.lane.b32.xlu0 %v1273_v17, %s10473_s1 }
 0x249   : > { %6465 = vmatpush3.xpose.msk.msra.mxu1 %vm1374_vm1, %v1273_v17 }
 0x24a   : > { %6469 = vmatprep.subr.mxu1 %v8430_v1 }
 0x24c   : > { %6467 = vmatmul.mubr.msk.f32.vlgmr.msra.gmra.mrb[2].mxu1 %vm1374_vm1, %v1199_v23  ;;  %1353 = vrot.lane.b32.xlu1 %v1199_v23, %s8431_s12 }
 0x24d   : > { %1351 = vrot.lane.b32.xlu0 %v1199_v23, %s10473_s1  ;;  %6471 = vmatprep.mubr.msk.f32.mxu1 %vm8429_vm0, %v8430_v1 }
 0x250   : > { %1355 = vrot.lane.b32.xlu1 %v1199_v23, %s10471_s20 }
 0x251   : > { %1362 = vrot.lane.b32.xlu0 %v1273_v17, %s10471_s20 }
 0x266   : > { %v1346_v39 = vpop.f32.mrb[2].mxu0 }
 0x267   : > { %v1347_v40 = vadd.f32 %v1346_v39, %v1279_v38  ;;  %v6463_v41 = vpop.f32.mrb[3].mxu0  ;;  %v1116_v39 = vld [vmem:[#allocation7 + $0x30] sm:$0xff] }
 0x2ba   : > { %v1359_v28 = vpop.permute.xlu0 %1358  ;;  %v1361_v29 = vpop.permute.xlu1 %1360 }
 0x2bb   : > { %6470 = vmatpush3.xpose.msk.msra.mxu1 %vm1374_vm1, %v1359_v28 }
 0x2bc   : > { %6474 = vmatprep.subr.mxu1 %v8430_v1 }
 0x2be   : > { %v1354_v31 = vpop.permute.xlu1 %1353 }
 0x2bf   : > { %v1352_v30 = vpop.permute.xlu0 %1351 }
 0x2c0   : > { %6472 = vmatmul.mubr.msk.f32.vlgmr.msra.gmra.mrb[4].mxu1 %vm1374_vm1, %v1352_v30  ;;  %v1111_v30 = vld [vmem:[#allocation7 + $0x8] sm:$0xff] }
 0x2c1   : > { %6475 = vmatpush3.xpose.msk.msra.mxu1 %vm1374_vm1, %v1361_v29  ;;  %6476 = vmatprep.mubr.msk.f32.mxu1 %vm8429_vm0, %v8430_v1  ;;  %v1110_v29 = vld [vmem:[#allocation7] sm:$0xff] }
 0x2c2   : > { %6479 = vmatprep.subr.mxu1 %v8430_v1  ;;  %v1356_v33 = vpop.permute.xlu1 %1355 }
 0x2c3   : > { %v1363_v32 = vpop.permute.xlu0 %1362 }
 0x2c4   : > { %6477 = vmatmul.mubr.msk.f32.vlgmr.msra.gmra.mrb[6].mxu1 %vm1374_vm1, %v1354_v31  ;;  %v1112_v31 = vld [vmem:[#allocation7 + $0x10] sm:$0xff] }
 0x2c5   : > { %6480 = vmatpush3.xpose.msk.msra.mxu1 %vm1374_vm1, %v1363_v32  ;;  %6481 = vmatprep.mubr.msk.f32.mxu1 %vm8429_vm0, %v8430_v1  ;;  %v7180_v32 = vpack.c.bf16 %v1111_v30, %v1110_v29  ;;  %v1052_v29 = vld [vmem:[%s9236_s28] sm:$0xff] }
 0x2c6   : > { %6484 = vmatprep.subr.mxu1 %v8430_v1 }
 0x2c7   : > { %7181 = vmatpush3.bf16.msra.mxu0 %v7180_v32 }
 0x2c8   : > { %6482 = vmatmul.mubr.msk.f32.vlgmr.msra.gmra.mrb[8].mxu1 %vm1374_vm1, %v1356_v33  ;;  %v1113_v33 = vld [vmem:[#allocation7 + $0x18] sm:$0xff]  ;;  %7182 = vmatprep.subr.bf16.mxu0 %v8428_v0 }
 0x2c9   : > { %6486 = vmatprep.mubr.msk.f32.mxu1 %vm8429_vm0, %v8430_v1  ;;  %6485 = vmatpush3.msra.mxu1 %v1347_v40 }
 0x2ca   : > { %6489 = vmatprep.subr.mxu1 %v8430_v1 }
 0x31f   : > { %v1445_v35 = vpop.f32.mrb[2].mxu1 }
 0x320   : > { %v6468_v36 = vpop.f32.mrb[3].mxu1  ;;  %v1672_v37 = vsel %vm1671_vm2, %v1445_v35, -inf }
 0x321   : > { %1673 = vmax.xlane.f32.xlu0 %v1672_v37  ;;  %v1114_v36 = vld [vmem:[#allocation7 + $0x20] sm:$0xff]  ;;  %v1115_v37 = vld [vmem:[#allocation7 + $0x28] sm:$0xff] }
 0x322   : > { %v7186_v38 = vpack.c.bf16 %v1115_v37, %v1114_v36  ;;  %v2135_v36 = vld [vmem:[%s10552_s0 + $0x10] sm:$0xff]  ;;  %v2136_v37 = vld [vmem:[%s10552_s0 + $0x18] sm:$0xff] }
 0x393   : > { %v1519_v42 = vpop.f32.mrb[4].mxu1 }
 0x394   : > { %v6473_v43 = vpop.f32.mrb[5].mxu1  ;;  %v1675_v44 = vsel %vm1671_vm2, %v1519_v42, -inf }
 0x395   : > { %1676 = vmax.xlane.f32.xlu1 %v1675_v44  ;;  %v1119_v43 = vld [vmem:[#allocation7 + $0x48] sm:$0xff] }
 0x397   : > { %v1593_v45 = vpop.f32.mrb[6].mxu1 }
 0x398   : > { %v6478_v46 = vpop.f32.mrb[7].mxu1  ;;  %v1678_v47 = vsel %vm1671_vm2, %v1593_v45, -inf }
 0x399   : > { %1679 = vmax.xlane.f32.xlu0 %v1678_v47  ;;  %v1120_v47 = vld [vmem:[#allocation7 + $0x50] sm:$0xff] }
 0x39b   : > { %v1667_v48 = vpop.f32.mrb[8].mxu1 }
 0x39c   : > { %v6483_v49 = vpop.f32.mrb[9].mxu1  ;;  %v1681_v51 = vsel %vm1671_vm2, %v1667_v48, -inf }
 0x39d   : > { %1682 = vmax.xlane.f32.xlu0 %v1681_v51  ;;  %v1122_v51 = vld [vmem:[#allocation7 + $0x60] sm:$0xff] }
 0x3a6   : > { %1365 = vrot.lane.b32.xlu1 %v1347_v40, %s10473_s1 }
 0x3ae   : > { %v1674_v53 = vpop.xlane.xlu0 %1673 }
 0x3af   : > { %v1684_v54 = vsub.f32 %v1445_v35, %v1674_v53  ;;  %v7183_v35 = vpack.c.bf16 %v1113_v33, %v1112_v31  ;;  %v1123_v53 = vld [vmem:[#allocation7 + $0x68] sm:$0xff] }
 0x3b1   : > { %v1688_v55 = vmul.f32 1.442695, %v1684_v54  ;;  %7184 = vmatpush3.bf16.msra.mxu0 %v7183_v35  ;;  %v7198_v54 = vpack.c.bf16 %v1123_v53, %v1122_v51  ;;  %v1053_v51 = vld [vmem:[%s9236_s28 + $0x8] sm:$0xff] }
 0x3b2   : > { %7185 = vmatprep.subr.bf16.mxu0 %v8428_v0 }
 0x3b3   : > { %7960 = vpow2.f32 %v1688_v55  ;;  %v1124_v55 = vld [vmem:[#allocation7 + $0x70] sm:$0xff] }
 0x3b5   : > { %7187 = vmatpush3.bf16.msra.mxu0 %v7186_v38  ;;  %v7207_v38 = vpack.c.bf16 %v2136_v37, %v2135_v36  ;;  %v9392_v37 = vld [vmem:[#allocation11] sm:$0x7] }
 0x3b6   : > { %7188 = vmatprep.subr.bf16.mxu0 %v8428_v0 }
 0x3bd   : > { %v7961_v56 = vpop.eup %7960 }
 0x3be   : > { %v1696_v57 = vsel %vm1671_vm2, %v7961_v56, 0.0 }
 0x3ca   : > { %1697 = vadd.xlane.f32.xlu1 %v1696_v57 }
 0x422   : > { %v1677_v58 = vpop.xlane.xlu1 %1676 }
 0x423   : > { %v1685_v59 = vsub.f32 %v1519_v42, %v1677_v58  ;;  %v1118_v42 = vld [vmem:[#allocation7 + $0x40] sm:$0xff] }
 0x424   : > { %v7192_v46 = vpack.c.bf16 %v1119_v43, %v1118_v42 }
 0x425   : > { %v1690_v60 = vmul.f32 1.442695, %v1685_v59 }
 0x426   : > { %v1680_v61 = vpop.xlane.xlu0 %1679  ;;  %v1366_v14 = vpop.permute.xlu1 %1365 }
 0x427   : > { %7962 = vpow2.f32 %v1690_v60  ;;  %v1686_v62 = vsub.f32 %v1593_v45, %v1680_v61 }
 0x429   : > { %v1692_v2 = vmul.f32 1.442695, %v1686_v62 }
 0x42a   : > { %v1683_v3 = vpop.xlane.xlu0 %1682 }
 0x42b   : > { %7964 = vpow2.f32 %v1692_v2  ;;  %v1687_v4 = vsub.f32 %v1667_v48, %v1683_v3  ;;  %v1121_v48 = vld [vmem:[#allocation7 + $0x58] sm:$0xff] }
 0x42c   : > { %v7195_v49 = vpack.c.bf16 %v1121_v48, %v1120_v47 }
 0x42d   : > { %v1694_v6 = vmul.f32 1.442695, %v1687_v4 }
 0x42f   : > { %7966 = vpow2.f32 %v1694_v6 }
 0x431   : > { %v7963_v7 = vpop.eup %7962 }
 0x432   : > { %v1699_v8 = vsel %vm1671_vm2, %v7963_v7, 0.0 }
 0x433   : > { %1700 = vadd.xlane.f32.xlu0 %v1699_v8 }
 0x435   : > { %v7965_v10 = vpop.eup %7964 }
 0x436   : > { %v1702_v11 = vsel %vm1671_vm2, %v7965_v10, 0.0 }
 0x437   : > { %1703 = vadd.xlane.f32.xlu1 %v1702_v11  ;;  %v5817_v11 = vld [vmem:[%s10548_s29] ss:$0 sm:$0xff]  ;;  %s10556_s29 = sld [smem:[#allocation40_spill]] }
 0x439   : > { %v7967_v12 = vpop.eup %7966 }
 0x43a   : > { %v1705_v13 = vsel %vm1671_vm2, %v7967_v12, 0.0 }
 0x43b   : > { %1706 = vadd.xlane.f32.xlu0 %v1705_v13 }
 0x448   : > { %1371 = vrot.lane.b32.xlu1 %v1347_v40, %s10471_s20 }
 0x451   : > { %1368 = vrot.lane.b32.xlu0 %v1347_v40, %s8431_s12  ;;  %v1117_v40 = vld [vmem:[#allocation7 + $0x38] sm:$0xff] }
 0x452   : > { %v7189_v41 = vpack.c.bf16 %v1117_v40, %v1116_v39 }
 0x454   : > { %7190 = vmatpush3.bf16.msra.mxu0 %v7189_v41 }
 0x455   : > { %7191 = vmatprep.subr.bf16.mxu0 %v8428_v0 }
 0x457   : > { %v1698_v15 = vpop.xlane.xlu1 %1697 }
 0x458   : > { %7968 = vrcp.f32 %v1698_v15  ;;  %7193 = vmatpush3.bf16.msra.mxu0 %v7192_v46 }
 0x459   : > { %7194 = vmatprep.subr.bf16.mxu0 %v8428_v0 }
 0x45c   : > { %7196 = vmatpush3.bf16.msra.mxu0 %v7195_v49 }
 0x45d   : > { %7197 = vmatprep.subr.bf16.mxu0 %v8428_v0 }
 0x460   : > { %7199 = vmatpush3.bf16.msra.mxu0 %v7198_v54  ;;  %v1054_v54 = vld [vmem:[%s9236_s28 + $0x10] sm:$0xff] }
 0x461   : > { %7200 = vmatprep.subr.bf16.mxu0 %v8428_v0 }
 0x462   : > { %v7969_v16 = vpop.eup %7968 }
 0x463   : > { %v1712_v17 = vmul.f32 %v7969_v16, %v7961_v56  ;;  %v1125_v56 = vld [vmem:[#allocation7 + $0x78] sm:$0xff] }
 0x464   : > { %v7201_v57 = vpack.c.bf16 %v1125_v56, %v1124_v55 }
 0x465   : > { %6487 = vmatmul.mubr.msk.f32.vlgmr.msra.gmra.mrb[10].mxu1 %vm1671_vm2, %v1712_v17 }
 0x466   : > { %6490 = vmatpush3.msra.mxu1 %v1366_v14  ;;  %6491 = vmatprep.mubr.msk.f32.mxu1 %vm8429_vm0, %v8430_v1 }
 0x467   : > { %6494 = vmatprep.subr.mxu1 %v8430_v1  ;;  %7202 = vmatpush3.bf16.msra.mxu0 %v7201_v57 }
 0x4c0   : > { %v1701_v18 = vpop.xlane.xlu0 %1700 }
 0x4c1   : > { %7970 = vrcp.f32 %v1701_v18 }
 0x4c4   : > { %v1704_v19 = vpop.xlane.xlu1 %1703 }
 0x4c5   : > { %7972 = vrcp.f32 %v1704_v19 }
 0x4c8   : > { %v1707_v20 = vpop.xlane.xlu0 %1706  ;;  %v1372_v26 = vpop.permute.xlu1 %1371 }
 0x4c9   : > { %7974 = vrcp.f32 %v1707_v20 }
 0x4cb   : > { %v7971_v21 = vpop.eup %7970 }
 0x4cc   : > { %v1369_v22 = vpop.permute.xlu0 %1368  ;;  %v1713_v23 = vmul.f32 %v7971_v21, %v7963_v7 }
 0x4ce   : > { %6492 = vmatmul.mubr.msk.f32.vlgmr.msra.gmra.mrb[12].mxu1 %vm1671_vm2, %v1713_v23 }
 0x4cf   : > { %v7973_v24 = vpop.eup %7972  ;;  %6495 = vmatpush3.msra.mxu1 %v1369_v22  ;;  %6496 = vmatprep.mubr.msk.f32.mxu1 %vm8429_vm0, %v8430_v1 }
 0x4d0   : > { %v1714_v25 = vmul.f32 %v7973_v24, %v7965_v10  ;;  %6499 = vmatprep.subr.mxu1 %v8430_v1 }
 0x4d2   : > { %6497 = vmatmul.mubr.msk.f32.vlgmr.msra.gmra.mrb[14].mxu1 %vm1671_vm2, %v1714_v25  ;;  %v2133_v25 = vld [vmem:[%s10552_s0] sm:$0xff] }
 0x4d3   : > { %v7975_v27 = vpop.eup %7974  ;;  %6500 = vmatpush3.msra.mxu1 %v1372_v26  ;;  %6501 = vmatprep.mubr.msk.f32.mxu1 %vm8429_vm0, %v8430_v1  ;;  %v2134_v26 = vld [vmem:[%s10552_s0 + $0x8] sm:$0xff] }
 0x4d4   : > { %v1715_v28 = vmul.f32 %v7975_v27, %v7967_v12  ;;  %7203 = vmatprep.subr.bf16.mxu1 %v8428_v0  ;;  %v7204_v30 = vpack.c.bf16 %v2134_v26, %v2133_v25  ;;  %v2143_v25 = vld [vmem:[%s10552_s0 + $0x50] sm:$0xff]  ;;  %v2144_v26 = vld [vmem:[%s10552_s0 + $0x58] sm:$0xff] }
 0x4d6   : > { %6502 = vmatmul.mubr.msk.f32.vlgmr.msra.gmra.mrb[16].mxu1 %vm1671_vm2, %v1715_v28 }
 0x4d7   : > { %6571 = vmatprep.mubr.msk.f32.mxu1 %vm8429_vm0, %v8430_v1  ;;  %7205 = vmatpush3.bf16.msra.mxu1 %v7204_v30  ;;  %v2146_v30 = vld [vmem:[%s10552_s0 + $0x68] sm:$0xff] }
 0x4d8   : > { %7206 = vmatprep.subr.bf16.mxu1 %v8428_v0 }
 0x4db   : > { %7208 = vmatpush3.bf16.msra.mxu1 %v7207_v38  ;;  %v2268_v38 = vrot.slane %v9392_v37, %v9085_v5 }
 0x4dc   : > { %7209 = vmatprep.subr.bf16.mxu1 %v8428_v0 }
 0x538   : > { %v1785_v44 = vpop.f32.mrb[10].mxu1 }
 0x539   : > { %v6488_v45 = vpop.f32.mrb[11].mxu1 }
 0x5a1   : > { %v1858_v58 = vpop.f32.mrb[12].mxu1 }
 0x5a2   : > { %2009 = vrot.lane.b32.xlu1 %v1858_v58, %s10471_s20  ;;  %v6493_v59 = vpop.f32.mrb[13].mxu1  ;;  %s10550_s20 = sld [smem:[#allocation29_spill]]  ;;  %v1055_v58 = vld [vmem:[%s9236_s28 + $0x18] sm:$0xff] }
 0x5a5   : > { %v1931_v60 = vpop.f32.mrb[14].mxu1 }
 0x5a6   : > { %2013 = vrot.lane.b32.xlu0 %v1931_v60, %s8431_s12  ;;  %v6498_v61 = vpop.f32.mrb[15].mxu1  ;;  %s10549_s12 = sld [smem:[#allocation39_spill]]  ;;  %v1056_v60 = vld [vmem:[%s9236_s28 + $0x20] sm:$0xff] }
 0x5a9   : > { %v2004_v62 = vpop.f32.mrb[16].mxu1 }
 0x5aa   : > { %2017 = vrot.lane.b32.xlu1 %v2004_v62, %s10473_s1  ;;  %v6503_v2 = vpop.f32.mrb[17].mxu1  ;;  %s9231_s1 = scalar_lea.vmem %s10550_s20, %s5945_s2  ;;  %s10555_s20 = smov 96  }
 0x5ab   : > { %v9248_v28 = vld [vmem:[%s9231_s1] sm:$0xff]  ;;  %v9288_v49 = vld [vmem:[%s9231_s1 + $0x8] sm:$0xff]  ;;  %v9292_v53 = vld [vmem:[%s9231_s1 + $0x10] sm:$0xff]  ;;  %s10483_s2 = smov 80  }
 0x5ac   : > { %v2149_v16 = vld [vmem:[%s10549_s12] sm:$0xff]  ;;  %v2150_v17 = vld [vmem:[%s10549_s12 + $0x8] sm:$0xff]  ;;  %v2151_v18 = vld [vmem:[%s10549_s12 + $0x10] sm:$0xff]  ;;  %v9252_v31 = vadd.f32 %v1052_v29, %v9248_v28  ;;  %v9296_v55 = vadd.f32 %v1053_v51, %v9288_v49  ;;  %v9299_v56 = vadd.f32 %v1054_v54, %v9292_v53 }
 0x5ad   : > { %v7227_v19 = vpack.c.bf16 %v2150_v17, %v2149_v16  ;;  %v2153_v21 = vld [vmem:[%s10549_s12 + $0x20] sm:$0xff]  ;;  %v2154_v22 = vld [vmem:[%s10549_s12 + $0x28] sm:$0xff]  ;;  %v2155_v24 = vld [vmem:[%s10549_s12 + $0x30] sm:$0xff] }
 0x5ae   : > { %v7235_v23 = vpack.c.bf16 %v2154_v22, %v2153_v21  ;;  %v2156_v27 = vld [vmem:[%s10549_s12 + $0x38] sm:$0xff]  ;;  %v2157_v33 = vld [vmem:[%s10549_s12 + $0x40] sm:$0xff]  ;;  %v2158_v35 = vld [vmem:[%s10549_s12 + $0x48] sm:$0xff] }
 0x5af   : > { %7228 = vmatprep.subr.bf16.mxu0 %v7227_v19  ;;  %v7239_v32 = vpack.c.bf16 %v2156_v27, %v2155_v24  ;;  %v7243_v39 = vpack.c.bf16 %v2158_v35, %v2157_v33  ;;  %v2159_v40 = vld [vmem:[%s10549_s12 + $0x50] sm:$0xff]  ;;  %v2160_v41 = vld [vmem:[%s10549_s12 + $0x58] sm:$0xff]  ;;  %v2161_v43 = vld [vmem:[%s10549_s12 + $0x60] sm:$0xff]  ;;  %v7219_v27 = vpack.c.bf16 %v2144_v26, %v2143_v25 }
 0x5b0   : > { %v7247_v42 = vpack.c.bf16 %v2160_v41, %v2159_v40  ;;  %v2163_v46 = vld [vmem:[%s10549_s12 + $0x70] sm:$0xff]  ;;  %v2164_v47 = vld [vmem:[%s10549_s12 + $0x78] sm:$0xff]  ;;  %v9306_v59 = vld [vmem:[%s9231_s1 + $0x20] sm:$0xff] }
 0x5b1   : > { %v7255_v48 = vpack.c.bf16 %v2164_v47, %v2163_v46  ;;  %v9302_v57 = vld [vmem:[%s9231_s1 + $0x18] sm:$0xff]  ;;  %v9316_v62 = vadd.f32 %v1056_v60, %v9306_v59  ;;  %v9319_v2 = vld [vmem:[%s9231_s1 + $0x28] sm:$0xff]  ;;  %v2141_v22 = vld [vmem:[%s10552_s0 + $0x40] sm:$0xff] }
 0x5b2   : > { %v9312_v61 = vadd.f32 %v1055_v58, %v9302_v57  ;;  %v2145_v29 = vld [vmem:[%s10552_s0 + $0x60] sm:$0xff]  ;;  %v2147_v33 = vld [vmem:[%s10552_s0 + $0x70] sm:$0xff]  ;;  %v2148_v35 = vld [vmem:[%s10552_s0 + $0x78] sm:$0xff] }
 0x5b3   : > { %v7225_v36 = vpack.c.bf16 %v2148_v35, %v2147_v33  ;;  %v2165_v35 = vld [vmem:[%s10556_s29] sm:$0xff] }
 0x614   : > { %v2010_v3 = vpop.permute.xlu1 %2009 }
 0x615   : > { %v2020_v6 = vsel %vm1374_vm1, %v1785_v44, %v2010_v3  ;;  %v2162_v44 = vld [vmem:[%s10549_s12 + $0x68] sm:$0xff] }
 0x616   : > { %v7251_v45 = vpack.c.bf16 %v2162_v44, %v2161_v43  ;;  %v1057_v3 = vld [vmem:[%s9236_s28 + $0x28] sm:$0xff] }
 0x618   : > { %v2014_v4 = vpop.permute.xlu0 %2013 }
 0x619   : > { %v2022_v7 = vsel %vm2021_vm3, %v2020_v6, %v2014_v4  ;;  %v9323_v4 = vld [vmem:[%s9231_s1 + $0x30] sm:$0xff] }
 0x61a   : > { %v1058_v6 = vld [vmem:[%s9236_s28 + $0x30] sm:$0xff] }
 0x61c   : > { %v2018_v8 = vpop.permute.xlu1 %2017 }
 0x61d   : > { %v2024_v10 = vsel %vm2023_vm4, %v2022_v7, %v2018_v8  ;;  %v9328_v7 = vadd.f32 %v1057_v3, %v9319_v2  ;;  %v9332_v8 = vadd.f32 %v1058_v6, %v9323_v4 }
 0x61e   : > { %6537 = vmatmul.mubr.f32.vlgmr.msra.gmra.mrb[4].mxu0 %v2024_v10  ;;  %v9335_v10 = vld [vmem:[%s9231_s1 + $0x38] sm:$0xff] }
 0x61f   : > { %7230 = vmatpush3.bf16.msra.mxu0 %v7227_v19  ;;  %6606 = vmatprep.mubr.f32.mxu0 %v9252_v31  ;;  %v2138_v19 = vld [vmem:[%s10552_s0 + $0x28] sm:$0xff] }
 0x6f1   : > { %v2097_v12 = vpop.f32.mrb[4].mxu0 }
 0x6f2   : > { %v2098_v13 = vadd.f32 %v5817_v11, %v2097_v12  ;;  %v6538_v14 = vpop.f32.mrb[5].mxu0  ;;  %v1059_v11 = vld [vmem:[%s9236_s28 + $0x38] sm:$0xff]  ;;  %s10560_s28 = sld [smem:[#allocation47_spill]] }
 0x6f3   : > { %v9340_v12 = vadd.f32 %v1059_v11, %v9335_v10 }
 0x6f4   : > { %v9202_v15 = vadd.f32 %v2098_v13, %v9045_v52  ;;  %v2152_v52 = vld [vmem:[%s10549_s12 + $0x18] sm:$0xff]  ;;  %s10564_s12 = smov 112  }
 0x6f5   : > { %v7231_v20 = vpack.c.bf16 %v2152_v52, %v2151_v18  ;;  %v2137_v18 = vld [vmem:[%s10552_s0 + $0x20] sm:$0xff] }
 0x6f6   : > { %2102 = vadd.xlane.f32.xlu0 %v9202_v15  ;;  %v7210_v52 = vpack.c.bf16 %v2138_v19, %v2137_v18 }
 0x6f7   : > { %7232 = vmatprep.subr.bf16.mxu0 %v7231_v20 }
 0x6f8   : > { %7234 = vmatpush3.bf16.msra.mxu0 %v7231_v20  ;;  %7211 = vmatpush3.bf16.msra.mxu1 %v7210_v52  ;;  %v2140_v20 = vld [vmem:[%s10552_s0 + $0x38] sm:$0xff] }
 0x6f9   : > { %7236 = vmatprep.subr.bf16.mxu0 %v7235_v23  ;;  %7212 = vmatprep.subr.bf16.mxu1 %v8428_v0 }
 0x6fc   : > { %7238 = vmatpush3.bf16.msra.mxu0 %v7235_v23  ;;  %v2142_v23 = vld [vmem:[%s10552_s0 + $0x48] sm:$0xff] }
 0x6fd   : > { %7240 = vmatprep.subr.bf16.mxu0 %v7239_v32  ;;  %v7216_v24 = vpack.c.bf16 %v2142_v23, %v2141_v22 }
 0x700   : > { %7242 = vmatpush3.bf16.msra.mxu0 %v7239_v32  ;;  %v7222_v32 = vpack.c.bf16 %v2146_v30, %v2145_v29 }
 0x701   : > { %7244 = vmatprep.subr.bf16.mxu0 %v7243_v39 }
 0x704   : > { %7246 = vmatpush3.bf16.msra.mxu0 %v7243_v39 }
 0x705   : > { %7248 = vmatprep.subr.bf16.mxu0 %v7247_v42 }
 0x708   : > { %7250 = vmatpush3.bf16.msra.mxu0 %v7247_v42 }
 0x709   : > { %7252 = vmatprep.subr.bf16.mxu0 %v7251_v45 }
 0x70c   : > { %7254 = vmatpush3.bf16.msra.mxu0 %v7251_v45 }
 0x70d   : > { %7256 = vmatprep.subr.bf16.mxu0 %v7255_v48 }
 0x710   : > { %7258 = vmatpush3.bf16.msra.mxu0 %v7255_v48 }
 0x711   : > { %7291 = vmatprep.subr.bf16.mxu0 %v8428_v0 }
 0x713   : > { %6607 = vmatmul.mubr.f32.vlgmr.msra.gmra.mrb[6].mxu0 %v9296_v55 }
 0x714   : > { %6609 = vmatprep.mubr.f32.mxu0 %v9299_v56 }
 0x717   : > { %6610 = vmatmul.mubr.f32.gmra.mrb[8].mxu0 %v9312_v61 }
 0x718   : > { %6612 = vmatprep.mubr.f32.mxu0 %v9316_v62 }
 0x71b   : > { %6613 = vmatmul.mubr.f32.gmra.mrb[10].mxu0 %v9328_v7 }
 0x71c   : > { %6615 = vmatprep.mubr.f32.mxu0 %v9332_v8 }
 0x71f   : > { %6616 = vmatmul.mubr.f32.gmra.mrb[12].mxu0 %v9340_v12 }
 0x720   : > { %6678 = vmatprep.mubr.msk.f32.mxu0 %vm8429_vm0, %v8430_v1 }
 0x783   : > { %v2103_v13 = vpop.xlane.xlu0 %2102 }
 0x784   : > { %v2105_v14 = vmul.f32 0.0078125, %v2103_v13 }
 0x786   : > { %v9347_v16 = vsub.f32 %v9202_v15, %v2105_v14  ;;  %v2139_v15 = vld [vmem:[%s10552_s0 + $0x30] sm:$0xff] }
 0x787   : > { %v7213_v21 = vpack.c.bf16 %v2140_v20, %v2139_v15 }
 0x788   : > { %v2107_v17 = vmul.f32 %v9347_v16, %v9347_v16 }
 0x789   : > { %7214 = vmatpush3.bf16.msra.mxu1 %v7213_v21 }
 0x78a   : > { %2108 = vadd.xlane.f32.xlu1 %v2107_v17  ;;  %7215 = vmatprep.subr.bf16.mxu1 %v8428_v0 }
 0x78d   : > { %7217 = vmatpush3.bf16.msra.mxu1 %v7216_v24  ;;  %v1060_v24 = vld [vmem:[%s10443_s26] sm:$0xff] }
 0x78e   : > { %7218 = vmatprep.subr.bf16.mxu1 %v8428_v0  ;;  %v2117_v25 = vrot.slane %v1060_v24, %v9097_v9  ;;  %v2122_v29 = vrot.slane %v1060_v24, %v9085_v5 }
 0x791   : > { %7220 = vmatpush3.bf16.msra.mxu1 %v7219_v27 }
 0x792   : > { %7221 = vmatprep.subr.bf16.mxu1 %v8428_v0 }
 0x795   : > { %7223 = vmatpush3.bf16.msra.mxu1 %v7222_v32 }
 0x796   : > { %7224 = vmatprep.subr.bf16.mxu1 %v8428_v0 }
 0x799   : > { %7226 = vmatpush3.bf16.msra.mxu1 %v7225_v36  ;;  %v2166_v36 = vld [vmem:[%s10556_s29 + $0x8] sm:$0xff] }
 0x7e6   : > { %v6608_v39 = vpop.f32.mrb[6].mxu0 }
 0x7e7   : > { %v2341_v40 = vadd.f32 %v6608_v39, %v2268_v38  ;;  %v2335_v41 = vpop.f32.mrb[7].mxu0 }
 0x7e8   : > { %v2336_v42 = vadd.f32 %v2335_v41, %v2268_v38 }
 0x7ea   : > { %v7292_v44 = vpack.c.bf16 %v2341_v40, %v2336_v42  ;;  %v6611_v45 = vpop.f32.mrb[8].mxu0  ;;  %v7780_v46 = vpack.i.bf16 %v2341_v40, %v2336_v42  ;;  %v2170_v40 = vld [vmem:[%s10556_s29 + $0x28] sm:$0xff]  ;;  %v2171_v42 = vld [vmem:[%s10556_s29 + $0x30] sm:$0xff] }
 0x7eb   : > { %v2351_v47 = vadd.f32 %v6611_v45, %v2268_v38  ;;  %v2345_v48 = vpop.f32.mrb[9].mxu0 }
 0x7ec   : > { %v2346_v51 = vadd.f32 %v2345_v48, %v2268_v38  ;;  %7781 = vrot.lane.b32.xlu0 %v7780_v46, %s10485_s22  ;;  %7294 = vmatpush3.bf16.xpose.msk.msra.mxu0 %vm9398_vm6, %v7292_v44  ;;  %v2172_v44 = vld [vmem:[%s10556_s29 + $0x38] sm:$0xff] }
 0x7ed   : > { %7295 = vmatprep.subr.bf16.mxu0 %v8428_v0  ;;  %v7271_v45 = vpack.c.bf16 %v2172_v44, %v2171_v42 }
 0x7ee   : > { %v6614_v54 = vpop.f32.mrb[10].mxu0  ;;  %v9406_v58 = vpack.i.bf16 %v2351_v47, %v2346_v51  ;;  %v7296_v6 = vpack.c.bf16 %v2351_v47, %v2346_v51  ;;  %v2174_v47 = vld [vmem:[%s10556_s29 + $0x48] sm:$0xff]  ;;  %v2175_v51 = vld [vmem:[%s10556_s29 + $0x50] sm:$0xff] }
 0x7ef   : > { %v2361_v60 = vadd.f32 %v6614_v54, %v2268_v38  ;;  %v2355_v3 = vpop.f32.mrb[11].mxu0  ;;  %v2176_v54 = vld [vmem:[%s10556_s29 + $0x58] sm:$0xff] }
 0x7f0   : > { %v2356_v11 = vadd.f32 %v2355_v3, %v2268_v38  ;;  %7786 = vrot.lane.b32.xlu1 %v9406_v58, %s10485_s22  ;;  %v2177_v3 = vld [vmem:[%s10556_s29 + $0x60] sm:$0xff] }
 0x7f2   : > { %v6617_v13 = vpop.f32.mrb[12].mxu0  ;;  %v9410_v14 = vpack.i.bf16 %v2361_v60, %v2356_v11  ;;  %v7300_v15 = vpack.c.bf16 %v2361_v60, %v2356_v11  ;;  %v7279_v60 = vpack.c.bf16 %v2176_v54, %v2175_v51 }
 0x7f3   : > { %v2371_v17 = vadd.f32 %v6617_v13, %v2268_v38  ;;  %v2365_v18 = vpop.f32.mrb[13].mxu0  ;;  %v2179_v13 = vld [vmem:[%s10556_s29 + $0x70] sm:$0xff] }
 0x7f4   : > { %v2366_v19 = vadd.f32 %v2365_v18, %v2268_v38  ;;  %7791 = vrot.lane.b32.xlu0 %v9410_v14, %s10485_s22  ;;  %7298 = vmatpush3.bf16.xpose.msk.msra.mxu0 %vm9398_vm6, %v7296_v6  ;;  %v7259_v38 = vpack.c.bf16 %v2166_v36, %v2165_v35  ;;  %v2178_v6 = vld [vmem:[%s10556_s29 + $0x68] sm:$0xff] }
 0x7f5   : > { %7299 = vmatprep.subr.bf16.mxu0 %v8428_v0  ;;  %v7283_v11 = vpack.c.bf16 %v2178_v6, %v2177_v3 }
 0x7f6   : > { %v9417_v52 = vpack.i.bf16 %v2371_v17, %v2366_v19  ;;  %v7304_v23 = vpack.c.bf16 %v2371_v17, %v2366_v19  ;;  %7260 = vmatprep.subr.bf16.mxu1 %v7259_v38  ;;  %v2180_v17 = vld [vmem:[%s10556_s29 + $0x78] sm:$0xff] }
 0x7f7   : > { %v7287_v18 = vpack.c.bf16 %v2180_v17, %v2179_v13 }
 0x7f8   : > { %7796 = vrot.lane.b32.xlu1 %v9417_v52, %s10485_s22  ;;  %7801 = vrot.lane.b32.xlu0 %v7780_v46, %s10555_s20 }
 0x7fc   : > { %7806 = vrot.lane.b32.xlu1 %v7780_v46, %s10483_s2  ;;  %7302 = vmatpush3.bf16.xpose.msk.msra.mxu0 %vm9398_vm6, %v7300_v15  ;;  %v2173_v46 = vld [vmem:[%s10556_s29 + $0x40] sm:$0xff] }
 0x7fd   : > { %7303 = vmatprep.subr.bf16.mxu0 %v8428_v0  ;;  %v7275_v48 = vpack.c.bf16 %v2174_v47, %v2173_v46 }
 0x800   : > { %7811 = vrot.lane.b32.xlu1 %v9406_v58, %s10555_s20 }
 0x804   : > { %7821 = vrot.lane.b32.xlu1 %v9410_v14, %s10555_s20  ;;  %7306 = vmatpush3.bf16.xpose.msk.msra.mxu0 %vm9398_vm6, %v7304_v23 }
 0x805   : > { %7323 = vmatprep.subr.bf16.mxu0 %v8428_v0 }
 0x808   : > { %7831 = vrot.lane.b32.xlu1 %v9417_v52, %s10555_s20 }
 0x817   : > { %v2109_v20 = vpop.xlane.xlu1 %2108 }
 0x818   : > { %v2110_v21 = vmul.f32 0.0078125, %v2109_v20 }
 0x81a   : > { %v2111_v22 = vadd.f32 1e-05, %v2110_v21 }
 0x81c   : > { %7976 = vrsqrt.f32 %v2111_v22 }
 0x826   : > { %v7977_v26 = vpop.eup %7976 }
 0x827   : > { %v2113_v27 = vmul.f32 %v7977_v26, %v9347_v16  ;;  %v2167_v16 = vld [vmem:[%s10556_s29 + $0x10] sm:$0xff] }
 0x829   : > { %v2118_v30 = vmul.f32 %v2117_v25, %v2113_v27 }
 0x82b   : > { %v9441_v32 = vadd.f32 %v2122_v29, %v2118_v30  ;;  %v2194_v29 = vrot.slane %v9392_v37, %v9097_v9 }
 0x82d   : > { %v2124_v33 = vadd.f32 %v9441_v32, %v9040_v50  ;;  %v2168_v50 = vld [vmem:[%s10556_s29 + $0x18] sm:$0xff] }
 0x82e   : > { %v7263_v39 = vpack.c.bf16 %v2168_v50, %v2167_v16 }
 0x82f   : > { %6572 = vmatmul.mubr.f32.vlgmr.msra.gmra.mrb[18].mxu1 %v2124_v33 }
 0x830   : > { %6650 = vmatprep.mubr.f32.mxu1 %v9248_v28  ;;  %v2169_v28 = vld [vmem:[%s10556_s29 + $0x20] sm:$0xff]  ;;  %7262 = vmatpush3.bf16.msra.mxu1 %v7259_v38 }
 0x831   : > { %7264 = vmatprep.subr.bf16.mxu1 %v7263_v39  ;;  %v7267_v41 = vpack.c.bf16 %v2170_v40, %v2169_v28 }
 0x834   : > { %7266 = vmatpush3.bf16.msra.mxu1 %v7263_v39 }
 0x835   : > { %7268 = vmatprep.subr.bf16.mxu1 %v7267_v41 }
 0x838   : > { %7270 = vmatpush3.bf16.msra.mxu1 %v7267_v41 }
 0x839   : > { %7272 = vmatprep.subr.bf16.mxu1 %v7271_v45 }
 0x83c   : > { %7274 = vmatpush3.bf16.msra.mxu1 %v7271_v45 }
 0x83d   : > { %7276 = vmatprep.subr.bf16.mxu1 %v7275_v48 }
 0x840   : > { %7278 = vmatpush3.bf16.msra.mxu1 %v7275_v48 }
 0x841   : > { %7280 = vmatprep.subr.bf16.mxu1 %v7279_v60 }
 0x844   : > { %7282 = vmatpush3.bf16.msra.mxu1 %v7279_v60 }
 0x845   : > { %7284 = vmatprep.subr.bf16.mxu1 %v7283_v11 }
 0x848   : > { %7286 = vmatpush3.bf16.msra.mxu1 %v7283_v11 }
 0x849   : > { %7288 = vmatprep.subr.bf16.mxu1 %v7287_v18 }
 0x84c   : > { %7290 = vmatpush3.bf16.msra.mxu1 %v7287_v18 }
 0x84d   : > { %7307 = vmatprep.subr.bf16.mxu1 %v8428_v0 }
 0x84f   : > { %6651 = vmatmul.mubr.f32.vlgmr.msra.gmra.mrb[20].mxu1 %v9288_v49 }
 0x850   : > { %6653 = vmatprep.mubr.f32.mxu1 %v9292_v53 }
 0x853   : > { %6654 = vmatmul.mubr.f32.gmra.mrb[22].mxu1 %v9302_v57 }
 0x854   : > { %6656 = vmatprep.mubr.f32.mxu1 %v9306_v59 }
 0x857   : > { %6657 = vmatmul.mubr.f32.gmra.mrb[24].mxu1 %v9319_v2 }
 0x858   : > { %6659 = vmatprep.mubr.f32.mxu1 %v9323_v4 }
 0x85b   : > { %6660 = vmatmul.mubr.f32.gmra.mrb[26].mxu1 %v9335_v10 }
 0x85c   : > { %6697 = vmatprep.mubr.msk.f32.mxu1 %vm8429_vm0, %v8430_v1 }
 0x85e   : > { %v7782_v19 = vpop.permute.xlu0 %7781 }
 0x85f   : > { %v7784_v15 = vunpack.i.h.bf16 %v7782_v19  ;;  %v7783_v20 = vunpack.i.l.bf16 %v7782_v19 }
 0x861   : > { %v7308_v21 = vpack.c.bf16 %v7784_v15, %v7783_v20 }
 0x862   : > { %v7787_v22 = vpop.permute.xlu1 %7786 }
 0x863   : > { %v7789_v23 = vunpack.i.h.bf16 %v7787_v22  ;;  %v7788_v24 = vunpack.i.l.bf16 %v7787_v22  ;;  %7310 = vmatpush3.bf16.xpose.msk.msra.mxu1 %vm9398_vm6, %v7308_v21  ;;  %v2377_v21 = vrot.slane %v9392_v37, %v9155_v34 }
 0x864   : > { %7311 = vmatprep.subr.bf16.mxu1 %v8428_v0 }
 0x865   : > { %v7312_v49 = vpack.c.bf16 %v7789_v23, %v7788_v24 }
 0x866   : > { %v7792_v53 = vpop.permute.xlu0 %7791 }
 0x867   : > { %v7794_v57 = vunpack.i.h.bf16 %v7792_v53  ;;  %v7793_v59 = vunpack.i.l.bf16 %v7792_v53 }
 0x869   : > { %v7316_v25 = vpack.c.bf16 %v7794_v57, %v7793_v59 }
 0x86a   : > { %v7797_v26 = vpop.permute.xlu1 %7796  ;;  %v7802_v10 = vpop.permute.xlu0 %7801 }
 0x86b   : > { %7314 = vmatpush3.bf16.xpose.msk.msra.mxu1 %vm9398_vm6, %v7312_v49  ;;  %v7799_v27 = vunpack.i.h.bf16 %v7797_v26  ;;  %v7798_v2 = vunpack.i.l.bf16 %v7797_v26  ;;  %v7804_v30 = vunpack.i.h.bf16 %v7802_v10  ;;  %v7803_v33 = vunpack.i.l.bf16 %v7802_v10 }
 0x86c   : > { %7315 = vmatprep.subr.bf16.mxu1 %v8428_v0 }
 0x86d   : > { %v7320_v4 = vpack.c.bf16 %v7799_v27, %v7798_v2  ;;  %v7324_v50 = vpack.c.bf16 %v7804_v30, %v7803_v33 }
 0x86e   : > { %v7807_v35 = vpop.permute.xlu1 %7806 }
 0x86f   : > { %v7809_v51 = vunpack.i.h.bf16 %v7807_v35  ;;  %v7808_v54 = vunpack.i.l.bf16 %v7807_v35 }
 0x872   : > { %v7812_v39 = vpop.permute.xlu1 %7811 }
 0x873   : > { %7318 = vmatpush3.bf16.xpose.msk.msra.mxu1 %vm9398_vm6, %v7316_v25  ;;  %v7814_v28 = vunpack.i.h.bf16 %v7812_v39  ;;  %v7813_v40 = vunpack.i.l.bf16 %v7812_v39 }
 0x874   : > { %7319 = vmatprep.subr.bf16.mxu1 %v8428_v0 }
 0x875   : > { %v7328_v41 = vpack.c.bf16 %v7814_v28, %v7813_v40 }
 0x876   : > { %v7822_v42 = vpop.permute.xlu1 %7821 }
 0x877   : > { %v7824_v44 = vunpack.i.h.bf16 %v7822_v42  ;;  %v7823_v45 = vunpack.i.l.bf16 %v7822_v42 }
 0x879   : > { %v7332_v46 = vpack.c.bf16 %v7824_v44, %v7823_v45 }
 0x87a   : > { %v7832_v47 = vpop.permute.xlu1 %7831 }
 0x87b   : > { %7322 = vmatpush3.bf16.xpose.msk.msra.mxu1 %vm9398_vm6, %v7320_v4  ;;  %v7833_v48 = vunpack.i.l.bf16 %v7832_v47 }
 0x87c   : > { %7339 = vmatprep.subr.bf16.mxu1 %v8428_v0 }
 0x902   : > { %v2261_v36 = vpop.f32.mrb[18].mxu1 }
 0x903   : > { %v2262_v16 = vadd.f32 %v2261_v36, %v2194_v29  ;;  %v6573_v38 = vpop.f32.mrb[19].mxu1 }
 0x905   : > { %2486 = vrot.lane.b32.xlu1 %v2262_v16, %s10555_s20  ;;  %2484 = vrot.lane.b32.xlu0 %v2262_v16, %s10485_s22 }
 0x906   : > { %6679 = vmatmul.mubr.msk.f32.vlgmr.msra.gmra.mrb[14].mxu0 %vm2626_vm5, %v2262_v16 }
 0x907   : > { %7326 = vmatpush3.bf16.xpose.msk.msra.mxu0 %vm9398_vm6, %v7324_v50  ;;  %6716 = vmatprep.mubr.msk.f32.mxu0 %vm8429_vm0, %v8430_v1 }
 0x908   : > { %7327 = vmatprep.subr.bf16.mxu0 %v8428_v0 }
 0x909   : > { %7816 = vrot.lane.b32.xlu0 %v9406_v58, %s10483_s2  ;;  %v7834_v58 = vunpack.i.h.bf16 %v7832_v47 }
 0x90d   : > { %7826 = vrot.lane.b32.xlu0 %v9410_v14, %s10483_s2  ;;  %v7336_v14 = vpack.c.bf16 %v7834_v58, %v7833_v48 }
 0x90f   : > { %7330 = vmatpush3.bf16.xpose.msk.msra.mxu0 %vm9398_vm6, %v7328_v41 }
 0x910   : > { %7331 = vmatprep.subr.bf16.mxu0 %v8428_v0 }
 0x911   : > { %7836 = vrot.lane.b32.xlu0 %v9417_v52, %s10483_s2  ;;  %v7340_v52 = vpack.c.bf16 %v7809_v51, %v7808_v54 }
 0x915   : > { %2488 = vrot.lane.b32.xlu0 %v2262_v16, %s10483_s2 }
 0x917   : > { %7334 = vmatpush3.bf16.xpose.msk.msra.mxu0 %vm9398_vm6, %v7332_v46 }
 0x918   : > { %7335 = vmatprep.subr.bf16.mxu0 %v8428_v0 }
 0x91f   : > { %7338 = vmatpush3.bf16.xpose.msk.msra.mxu0 %vm9398_vm6, %v7336_v14 }
 0x920   : > { %7355 = vmatprep.subr.bf16.mxu0 %v8428_v0 }
 0x922   : > { %v6652_v49 = vpop.f32.mrb[20].mxu1 }
 0x923   : > { %v2450_v53 = vadd.f32 %v6652_v49, %v2377_v21  ;;  %v2444_v57 = vpop.f32.mrb[21].mxu1 }
 0x924   : > { %v2445_v59 = vadd.f32 %v2444_v57, %v2377_v21 }
 0x926   : > { %v9559_v26 = vpack.i.bf16 %v2450_v53, %v2445_v59  ;;  %v7356_v27 = vpack.c.bf16 %v2450_v53, %v2445_v59  ;;  %v6655_v2 = vpop.f32.mrb[22].mxu1 }
 0x927   : > { %v2460_v4 = vadd.f32 %v6655_v2, %v2377_v21  ;;  %v2454_v10 = vpop.f32.mrb[23].mxu1 }
 0x928   : > { %7841 = vrot.lane.b32.xlu0 %v9559_v26, %s10485_s22  ;;  %v2455_v37 = vadd.f32 %v2454_v10, %v2377_v21 }
 0x92a   : > { %v6658_v29 = vpop.f32.mrb[24].mxu1  ;;  %v7359_v30 = vpack.c.bf16 %v2460_v4, %v2455_v37  ;;  %v7875_v28 = vpack.i.bf16 %v2460_v4, %v2455_v37 }
 0x92b   : > { %v2470_v33 = vadd.f32 %v6658_v29, %v2377_v21  ;;  %v2464_v35 = vpop.f32.mrb[25].mxu1 }
 0x92c   : > { %v2465_v36 = vadd.f32 %v2464_v35, %v2377_v21 }
 0x92e   : > { %v6661_v38 = vpop.f32.mrb[26].mxu1  ;;  %v7362_v50 = vpack.c.bf16 %v2470_v33, %v2465_v36  ;;  %v7850_v42 = vpack.i.bf16 %v2470_v33, %v2465_v36 }
 0x92f   : > { %v2474_v39 = vpop.f32.mrb[27].mxu1  ;;  %v2480_v40 = vadd.f32 %v6661_v38, %v2377_v21 }
 0x930   : > { %v2475_v41 = vadd.f32 %v2474_v39, %v2377_v21 }
 0x932   : > { %v7365_v44 = vpack.c.bf16 %v2480_v40, %v2475_v41  ;;  %v9572_v45 = vpack.i.bf16 %v2480_v40, %v2475_v41 }
 0x977   : > { %v2487_v60 = vpop.permute.xlu1 %2486  ;;  %v2485_v3 = vpop.permute.xlu0 %2484 }
 0x978   : > { %6698 = vmatmul.mubr.msk.f32.vlgmr.msra.gmra.mrb[28].mxu1 %vm2626_vm5, %v2485_v3  ;;  %6717 = vmatmul.mubr.msk.f32.vlgmr.msra.gmra.mrb[16].mxu0 %vm2626_vm5, %v2487_v60 }
 0x979   : > { %7342 = vmatpush3.bf16.xpose.msk.msra.mxu1 %vm9398_vm6, %v7340_v52  ;;  %6735 = vmatprep.mubr.msk.f32.mxu1 %vm8429_vm0, %v8430_v1 }
 0x97a   : > { %7343 = vmatprep.subr.bf16.mxu1 %v8428_v0  ;;  %6754 = vmatprep.mubr.msk.f32.mxu0 %vm8429_vm0, %v8430_v1 }
 0x97b   : > { %v7817_v6 = vpop.permute.xlu0 %7816  ;;  %7357 = vmatpush3.bf16.msra.mxu0 %v7356_v27 }
 0x97c   : > { %v7819_v11 = vunpack.i.h.bf16 %v7817_v6  ;;  %v7818_v13 = vunpack.i.l.bf16 %v7817_v6  ;;  %7358 = vmatprep.subr.bf16.mxu0 %v8428_v0 }
 0x97e   : > { %v7344_v17 = vpack.c.bf16 %v7819_v11, %v7818_v13 }
 0x97f   : > { %v7827_v18 = vpop.permute.xlu0 %7826  ;;  %7360 = vmatpush3.bf16.msra.mxu0 %v7359_v30 }
 0x980   : > { %v7829_v19 = vunpack.i.h.bf16 %v7827_v18  ;;  %v7828_v15 = vunpack.i.l.bf16 %v7827_v18  ;;  %7361 = vmatprep.subr.bf16.mxu0 %v8428_v0 }
 0x981   : > { %7346 = vmatpush3.bf16.xpose.msk.msra.mxu1 %vm9398_vm6, %v7344_v17 }
 0x982   : > { %7347 = vmatprep.subr.bf16.mxu1 %v8428_v0  ;;  %v7348_v20 = vpack.c.bf16 %v7829_v19, %v7828_v15 }
 0x983   : > { %v7837_v22 = vpop.permute.xlu0 %7836  ;;  %7363 = vmatpush3.bf16.msra.mxu0 %v7362_v50 }
 0x984   : > { %v7839_v23 = vunpack.i.h.bf16 %v7837_v22  ;;  %v7838_v24 = vunpack.i.l.bf16 %v7837_v22  ;;  %7364 = vmatprep.subr.bf16.mxu0 %v8428_v0 }
 0x986   : > { %v7352_v25 = vpack.c.bf16 %v7839_v23, %v7838_v24 }
 0x987   : > { %v2489_v16 = vpop.permute.xlu0 %2488  ;;  %7366 = vmatpush3.bf16.msra.mxu0 %v7365_v44 }
 0x988   : > { %7379 = vmatprep.subr.bf16.mxu0 %v8428_v0 }
 0x989   : > { %7350 = vmatpush3.bf16.xpose.msk.msra.mxu1 %vm9398_vm6, %v7348_v20 }
 0x98a   : > { %7351 = vmatprep.subr.bf16.mxu1 %v8428_v0 }
 0x991   : > { %7354 = vmatpush3.bf16.xpose.msk.msra.mxu1 %vm9398_vm6, %v7352_v25 }
 0x992   : > { %7367 = vmatprep.subr.bf16.mxu1 %v8428_v0 }
 0x998   : > { %6736 = vmatmul.mubr.msk.f32.vlgmr.msra.gmra.mrb[30].mxu1 %vm2626_vm5, %v2489_v16 }
 0x999   : > { %6773 = vmatprep.mubr.msk.f32.mxu1 %vm8429_vm0, %v8430_v1 }
 0x99a   : > { %v7842_v48 = vpop.permute.xlu0 %7841 }
 0x99b   : > { %v7844_v14 = vunpack.i.h.bf16 %v7842_v48  ;;  %v7843_v51 = vunpack.i.l.bf16 %v7842_v48 }
 0x99d   : > { %v7368_v54 = vpack.c.bf16 %v7844_v14, %v7843_v51 }
 0x99f   : > { %7369 = vmatpush3.bf16.msra.mxu1 %v7368_v54 }
 0x9a0   : > { %7370 = vmatprep.subr.bf16.mxu1 %v8428_v0 }
 0x9d9   : > { %v2711_v46 = vpop.f32.mrb[14].mxu0 }
 0x9da   : > { %v6680_v47 = vpop.f32.mrb[15].mxu0  ;;  %v2979_v58 = vsel %vm2021_vm3, %v2711_v46, -inf }
 0x9db   : > { %2980 = vmax.xlane.f32.xlu1 %v2979_v58 }
 0xa4b   : > { %v2799_v52 = vpop.f32.mrb[28].mxu1  ;;  %v2887_v60 = vpop.f32.mrb[16].mxu0 }
 0xa4c   : > { %v6699_v3 = vpop.f32.mrb[29].mxu1  ;;  %v6718_v6 = vpop.f32.mrb[17].mxu0  ;;  %v2982_v11 = vsel %vm2021_vm3, %v2799_v52, -inf  ;;  %v2985_v13 = vsel %vm2021_vm3, %v2887_v60, -inf }
 0xa4d   : > { %2983 = vmax.xlane.f32.xlu0 %v2982_v11 }
 0xa51   : > { %2986 = vmax.xlane.f32.xlu0 %v2985_v13 }
 0xa67   : > { %7851 = vrot.lane.b32.xlu0 %v7850_v42, %s10485_s22 }
 0xa68   : > { %v2981_v15 = vpop.xlane.xlu1 %2980 }
 0xa69   : > { %v2991_v20 = vsub.f32 %v2711_v46, %v2981_v15 }
 0xa6b   : > { %v2975_v17 = vpop.f32.mrb[30].mxu1  ;;  %7866 = vrot.lane.b32.xlu0 %v9559_v26, %s10483_s2  ;;  %v2995_v21 = vmul.f32 1.442695, %v2991_v20 }
 0xa6c   : > { %v6737_v18 = vpop.f32.mrb[31].mxu1  ;;  %v2988_v19 = vsel %vm2021_vm3, %v2975_v17, -inf }
 0xa6d   : > { %2989 = vmax.xlane.f32.xlu1 %v2988_v19  ;;  %7978 = vpow2.f32 %v2995_v21 }
 0xa6f   : > { %7876 = vrot.lane.b32.xlu0 %v7875_v28, %s10483_s2 }
 0xa77   : > { %v7979_v22 = vpop.eup %7978 }
 0xa78   : > { %v3003_v23 = vsel %vm2021_vm3, %v7979_v22, 0.0 }
 0xa7e   : > { %7846 = vrot.lane.b32.xlu1 %v7875_v28, %s10485_s22 }
 0xa82   : > { %7856 = vrot.lane.b32.xlu1 %v9572_v45, %s10485_s22  ;;  %s10565_s22 = smov 80  }
 0xa86   : > { %7861 = vrot.lane.b32.xlu1 %v9559_v26, %s10555_s20 }
 0xa8a   : > { %7871 = vrot.lane.b32.xlu1 %v7875_v28, %s10555_s20 }
 0xa8e   : > { %7881 = vrot.lane.b32.xlu1 %v7850_v42, %s10555_s20  ;;  %3004 = vadd.xlane.f32.xlu0 %v3003_v23 }
 0xaa4   : > { %7886 = vrot.lane.b32.xlu0 %v7850_v42, %s10483_s2 }
 0xada   : > { %v2984_v24 = vpop.xlane.xlu0 %2983 }
 0xadb   : > { %v2992_v49 = vsub.f32 %v2799_v52, %v2984_v24 }
 0xadd   : > { %v2997_v53 = vmul.f32 1.442695, %v2992_v49 }
 0xade   : > { %v2987_v57 = vpop.xlane.xlu0 %2986 }
 0xadf   : > { %7980 = vpow2.f32 %v2997_v53  ;;  %v2993_v59 = vsub.f32 %v2887_v60, %v2987_v57 }
 0xae1   : > { %v2999_v25 = vmul.f32 1.442695, %v2993_v59 }
 0xae2   : > { %v7852_v30 = vpop.permute.xlu0 %7851 }
 0xae3   : > { %7982 = vpow2.f32 %v2999_v25  ;;  %v7854_v16 = vunpack.i.h.bf16 %v7852_v30  ;;  %v7853_v38 = vunpack.i.l.bf16 %v7852_v30 }
 0xae5   : > { %v7374_v28 = vpack.c.bf16 %v7854_v16, %v7853_v38 }
 0xae6   : > { %v7867_v47 = vpop.permute.xlu0 %7866 }
 0xae7   : > { %v7869_v23 = vunpack.i.h.bf16 %v7867_v47  ;;  %v7868_v24 = vunpack.i.l.bf16 %v7867_v47  ;;  %v2182_v47 = vld [vmem:[#allocation10 + $0x8] sm:$0xff] }
 0xae9   : > { %v9593_v27 = vpop.eup %7980 }
 0xaea   : > { %v3006_v26 = vsel %vm2021_vm3, %v9593_v27, 0.0  ;;  %v7877_v58 = vpop.permute.xlu0 %7876 }
 0xaeb   : > { %3007 = vadd.xlane.f32.xlu1 %v3006_v26  ;;  %v7392_v26 = vpack.c.bf16 %v7869_v23, %v7868_v24 }
 0xaed   : > { %v9597_v2 = vpop.eup %7982 }
 0xaee   : > { %v3009_v4 = vsel %vm2021_vm3, %v9597_v2, 0.0 }
 0xaef   : > { %3010 = vadd.xlane.f32.xlu1 %v3009_v4  ;;  %v7879_v4 = vunpack.i.h.bf16 %v7877_v58 }
 0xafa   : > { %v2990_v10 = vpop.xlane.xlu1 %2989 }
 0xafb   : > { %v2994_v37 = vsub.f32 %v2975_v17, %v2990_v10  ;;  %v7878_v10 = vunpack.i.l.bf16 %v7877_v58  ;;  %v2183_v58 = vld [vmem:[#allocation10 + $0x10] sm:$0xff] }
 0xafd   : > { %v3001_v29 = vmul.f32 1.442695, %v2994_v37 }
 0xafe   : > { %v7847_v33 = vpop.permute.xlu1 %7846 }
 0xaff   : > { %7984 = vpow2.f32 %v3001_v29  ;;  %v7849_v35 = vunpack.i.h.bf16 %v7847_v33  ;;  %v7848_v36 = vunpack.i.l.bf16 %v7847_v33  ;;  %v7395_v33 = vpack.c.bf16 %v7879_v4, %v7878_v10  ;;  %v3435_v4 = vld [vmem:[%s10433_s16 + $0x18] sm:$0xff]  ;;  %v3432_v10 = vld [vmem:[%s10433_s16] sm:$0xff] }
 0xb00   : > { %7891 = vrot.lane.b32.xlu1 %v9572_v45, %s10555_s20 }
 0xb01   : > { %v7371_v50 = vpack.c.bf16 %v7849_v35, %v7848_v36 }
 0xb02   : > { %v7857_v39 = vpop.permute.xlu1 %7856 }
 0xb03   : > { %7372 = vmatpush3.bf16.msra.mxu1 %v7371_v50  ;;  %v7859_v40 = vunpack.i.h.bf16 %v7857_v39  ;;  %v7858_v41 = vunpack.i.l.bf16 %v7857_v39 }
 0xb04   : > { %7373 = vmatprep.subr.bf16.mxu1 %v8428_v0 }
 0xb05   : > { %v7377_v44 = vpack.c.bf16 %v7859_v40, %v7858_v41 }
 0xb06   : > { %v7862_v14 = vpop.permute.xlu1 %7861 }
 0xb07   : > { %7375 = vmatpush3.bf16.msra.mxu1 %v7374_v28  ;;  %v7864_v54 = vunpack.i.h.bf16 %v7862_v14  ;;  %v7863_v52 = vunpack.i.l.bf16 %v7862_v14  ;;  %v2184_v14 = vld [vmem:[#allocation10 + $0x18] sm:$0xff] }
 0xb08   : > { %7376 = vmatprep.subr.bf16.mxu1 %v8428_v0 }
 0xb09   : > { %v9605_v42 = vpop.eup %7984  ;;  %v7380_v6 = vpack.c.bf16 %v7864_v54, %v7863_v52  ;;  %v2185_v54 = vld [vmem:[#allocation10 + $0x20] sm:$0xff]  ;;  %v2186_v52 = vld [vmem:[#allocation10 + $0x28] sm:$0xff] }
 0xb0a   : > { %v3012_v46 = vsel %vm2021_vm3, %v9605_v42, 0.0  ;;  %v7872_v51 = vpop.permute.xlu1 %7871 }
 0xb0b   : > { %3013 = vadd.xlane.f32.xlu0 %v3012_v46  ;;  %7378 = vmatpush3.bf16.msra.mxu1 %v7377_v44  ;;  %v7874_v11 = vunpack.i.h.bf16 %v7872_v51  ;;  %v7873_v13 = vunpack.i.l.bf16 %v7872_v51  ;;  %v2181_v46 = vld [vmem:[#allocation10] sm:$0xff]  ;;  %v7407_v51 = vpack.c.bf16 %v2184_v14, %v2183_v58 }
 0xb0c   : > { %7391 = vmatprep.subr.bf16.mxu1 %v8428_v0  ;;  %v3445_v58 = vld [vmem:[%s10433_s16 + $0x68] sm:$0xff] }
 0xb0d   : > { %v7383_v18 = vpack.c.bf16 %v7874_v11, %v7873_v13 }
 0xb0e   : > { %v7882_v17 = vpop.permute.xlu1 %7881 }
 0xb0f   : > { %v7884_v19 = vunpack.i.h.bf16 %v7882_v17 }
 0xb1b   : > { %v3005_v48 = vpop.xlane.xlu0 %3004 }
 0xb1c   : > { %7986 = vrcp.f32 %v3005_v48  ;;  %v7404_v48 = vpack.c.bf16 %v2182_v47, %v2181_v46 }
 0xb1f   : > { %v7887_v37 = vpop.permute.xlu0 %7886 }
 0xb20   : > { %v7888_v35 = vunpack.i.l.bf16 %v7887_v37 }
 0xb21   : > { %7896 = vrot.lane.b32.xlu0 %v9572_v45, %s10483_s2  ;;  %v7883_v45 = vunpack.i.l.bf16 %v7882_v17 }
 0xb23   : > { %v7386_v15 = vpack.c.bf16 %v7884_v19, %v7883_v45 }
 0xb26   : > { %v7987_v60 = vpop.eup %7986 }
 0xb27   : > { %v3019_v3 = vmul.f32 %v7987_v60, %v7979_v22  ;;  %v7410_v60 = vpack.c.bf16 %v2186_v52, %v2185_v54  ;;  %v3446_v54 = vld [vmem:[%s10433_s16 + $0x70] sm:$0xff] }
 0xb29   : > { %6755 = vmatmul.mubr.msk.f32.vlgmr.msra.gmra.mrb[18].mxu0 %vm2021_vm3, %v3019_v3  ;;  %v2187_v3 = vld [vmem:[#allocation10 + $0x30] sm:$0xff] }
 0xb2a   : > { %7381 = vmatpush3.bf16.msra.mxu0 %v7380_v6  ;;  %6792 = vmatprep.mubr.msk.f32.mxu0 %vm8429_vm0, %v8430_v1  ;;  %v2188_v6 = vld [vmem:[#allocation10 + $0x38] sm:$0xff] }
 0xb2b   : > { %7382 = vmatprep.subr.bf16.mxu0 %v8428_v0  ;;  %v7413_v13 = vpack.c.bf16 %v2188_v6, %v2187_v3  ;;  %v3448_v6 = vld [vmem:[%s10433_s16 + $0x80] sm:$0xff] }
 0xb2e   : > { %7384 = vmatpush3.bf16.msra.mxu0 %v7383_v18 }
 0xb2f   : > { %7385 = vmatprep.subr.bf16.mxu0 %v8428_v0 }
 0xb32   : > { %7387 = vmatpush3.bf16.msra.mxu0 %v7386_v15 }
 0xb33   : > { %7388 = vmatprep.subr.bf16.mxu0 %v8428_v0 }
 0xb78   : > { %v3008_v20 = vpop.xlane.xlu1 %3007 }
 0xb79   : > { %7988 = vrcp.f32 %v3008_v20 }
 0xb7c   : > { %v3011_v21 = vpop.xlane.xlu1 %3010 }
 0xb7d   : > { %7990 = vrcp.f32 %v3011_v21 }
 0xb80   : > { %v7892_v22 = vpop.permute.xlu1 %7891 }
 0xb81   : > { %v7894_v49 = vunpack.i.h.bf16 %v7892_v22  ;;  %v7893_v53 = vunpack.i.l.bf16 %v7892_v22 }
 0xb83   : > { %v7989_v57 = vpop.eup %7988  ;;  %v7389_v59 = vpack.c.bf16 %v7894_v49, %v7893_v53  ;;  %v5858_v49 = vld [vmem:[#allocation13] ss:$0 sm:$0xff] }
 0xb84   : > { %v3020_v25 = vmul.f32 %v7989_v57, %v9593_v27  ;;  %v7889_v27 = vunpack.i.h.bf16 %v7887_v37 }
 0xb85   : > { %7390 = vmatpush3.bf16.msra.mxu0 %v7389_v59 }
 0xb86   : > { %6774 = vmatmul.mubr.msk.f32.vlgmr.msra.gmra.mrb[32].mxu1 %vm2021_vm3, %v3020_v25  ;;  %7403 = vmatprep.subr.bf16.mxu0 %v8428_v0  ;;  %v7398_v36 = vpack.c.bf16 %v7889_v27, %v7888_v35  ;;  %v3436_v35 = vld [vmem:[%s10433_s16 + $0x20] sm:$0xff] }
 0xb87   : > { %v7991_v29 = vpop.eup %7990  ;;  %7393 = vmatpush3.bf16.msra.mxu1 %v7392_v26  ;;  %6811 = vmatprep.mubr.msk.f32.mxu1 %vm8429_vm0, %v8430_v1  ;;  %v3433_v26 = vld [vmem:[%s10433_s16 + $0x8] sm:$0xff] }
 0xb88   : > { %7394 = vmatprep.subr.bf16.mxu1 %v8428_v0  ;;  %v3021_v30 = vmul.f32 %v7991_v29, %v9597_v2  ;;  %v7415_v37 = vpack.c.bf16 %v3435_v4, %v3433_v26  ;;  %v3434_v29 = vld [vmem:[%s10433_s16 + $0x10] sm:$0xff]  ;;  %v3460_v26 = vld [vmem:[%s10433_s16 + $0xe0] sm:$0xff] }
 0xb89   : > { %v3462_v4 = vld [vmem:[%s10433_s16 + $0xf0] sm:$0xff] }
 0xb8a   : > { %6793 = vmatmul.mubr.msk.f32.vlgmr.msra.gmra.mrb[20].mxu0 %vm2021_vm3, %v3021_v30  ;;  %v3439_v30 = vld [vmem:[%s10433_s16 + $0x38] sm:$0xff] }
 0xb8b   : > { %7396 = vmatpush3.bf16.msra.mxu1 %v7395_v33  ;;  %6830 = vmatprep.mubr.msk.f32.mxu0 %vm8429_vm0, %v8430_v1  ;;  %v7417_v33 = vpack.c.bf16 %v3434_v29, %v3432_v10  ;;  %v7445_v10 = vpack.c.bf16 %v3462_v4, %v3460_v26  ;;  %v3566_v29 = vld [vmem:[%s10558_s13 + $0x88] sm:$0xff] }
 0xb8c   : > { %7397 = vmatprep.subr.bf16.mxu1 %v8428_v0  ;;  %7405 = vmatpush3.bf16.msra.mxu0 %v7404_v48  ;;  %v3447_v48 = vld [vmem:[%s10433_s16 + $0x78] sm:$0xff] }
 0xb8d   : > { %7406 = vmatprep.subr.bf16.mxu0 %v8428_v0  ;;  %v7427_v14 = vpack.c.bf16 %v3447_v48, %v3445_v58  ;;  %v3572_v58 = vld [vmem:[%s10558_s13 + $0xb8] sm:$0xff] }
 0xb8f   : > { %7399 = vmatpush3.bf16.msra.mxu1 %v7398_v36  ;;  %v3438_v36 = vld [vmem:[%s10433_s16 + $0x30] sm:$0xff] }
 0xb90   : > { %7400 = vmatprep.subr.bf16.mxu1 %v8428_v0  ;;  %7408 = vmatpush3.bf16.msra.mxu0 %v7407_v51  ;;  %v3444_v51 = vld [vmem:[%s10433_s16 + $0x60] sm:$0xff] }
 0xb91   : > { %7409 = vmatprep.subr.bf16.mxu0 %v8428_v0  ;;  %v7429_v52 = vpack.c.bf16 %v3446_v54, %v3444_v51  ;;  %v3555_v51 = vld [vmem:[%s10558_s13 + $0x30] sm:$0xff]  ;;  %v3556_v54 = vld [vmem:[%s10558_s13 + $0x38] sm:$0xff] }
 0xb94   : > { %7411 = vmatpush3.bf16.msra.mxu0 %v7410_v60  ;;  %v3449_v60 = vld [vmem:[%s10433_s16 + $0x88] sm:$0xff] }
 0xb95   : > { %7412 = vmatprep.subr.bf16.mxu0 %v8428_v0 }
 0xb98   : > { %v3014_v16 = vpop.xlane.xlu0 %3013  ;;  %7414 = vmatpush3.bf16.msra.mxu0 %v7413_v13 }
 0xb99   : > { %7992 = vrcp.f32 %v3014_v16  ;;  %v3441_v16 = vld [vmem:[%s10433_s16 + $0x48] sm:$0xff] }
 0xb9c   : > { %v7897_v38 = vpop.permute.xlu0 %7896 }
 0xb9d   : > { %v7899_v50 = vunpack.i.h.bf16 %v7897_v38  ;;  %v7898_v2 = vunpack.i.l.bf16 %v7897_v38  ;;  %v3443_v38 = vld [vmem:[%s10433_s16 + $0x58] sm:$0xff] }
 0xb9f   : > { %v7401_v39 = vpack.c.bf16 %v7899_v50, %v7898_v2  ;;  %v7421_v50 = vpack.c.bf16 %v3438_v36, %v3436_v35  ;;  %v7423_v2 = vpack.c.bf16 %v3443_v38, %v3441_v16  ;;  %v3568_v35 = vld [vmem:[%s10558_s13 + $0x98] sm:$0xff]  ;;  %v3551_v38 = vld [vmem:[%s10558_s13 + $0x10] sm:$0xff] }
 0xba1   : > { %7402 = vmatpush3.bf16.msra.mxu1 %v7401_v39  ;;  %v3440_v39 = vld [vmem:[%s10433_s16 + $0x40] sm:$0xff] }
 0xba2   : > { %7416 = vmatprep.subr.bf16.mxu1 %v7415_v37  ;;  %v3565_v37 = vld [vmem:[%s10558_s13 + $0x80] sm:$0xff] }
 0xba3   : > { %v7993_v28 = vpop.eup %7992 }
 0xba4   : > { %v3022_v40 = vmul.f32 %v7993_v28, %v9605_v42  ;;  %v3442_v28 = vld [vmem:[%s10433_s16 + $0x50] sm:$0xff] }
 0xba6   : > { %6812 = vmatmul.mubr.msk.f32.vlgmr.msra.gmra.mrb[34].mxu1 %vm2021_vm3, %v3022_v40  ;;  %v7425_v40 = vpack.c.bf16 %v3442_v28, %v3440_v39  ;;  %v3570_v39 = vld [vmem:[%s10558_s13 + $0xa8] sm:$0xff] }
 0xba7   : > { %3540 = vmatprep.mubr.f32.mxu1 %v8430_v1  ;;  %7418 = vmatpush1.bf16.msra.mxu1 %v7417_v33  ;;  %v3550_v33 = vld [vmem:[%s10558_s13 + $0x8] sm:$0xff] }
 0xbfc   : > { %v3092_v41 = vpop.f32.mrb[18].mxu0 }
 0xbfd   : > { %v6756_v44 = vpop.f32.mrb[19].mxu0 }
 0xc59   : > { %v3165_v42 = vpop.f32.mrb[32].mxu1 }
 0xc5a   : > { %3316 = vrot.lane.b32.xlu1 %v3165_v42, %s10481_s18  ;;  %v6775_v11 = vpop.f32.mrb[33].mxu1  ;;  %v3451_v42 = vld [vmem:[%s10433_s16 + $0x98] sm:$0xff]  ;;  %s10563_s18 = sld [smem:[#allocation51_spill]] }
 0xc5b   : > { %v7431_v3 = vpack.c.bf16 %v3451_v42, %v3449_v60  ;;  %v3450_v11 = vld [vmem:[%s10433_s16 + $0x90] sm:$0xff]  ;;  %v3574_v60 = vld [vmem:[%s10558_s13 + $0xc8] sm:$0xff]  ;;  %v7461_v42 = vpack.c.bf16 %v3556_v54, %v3555_v51 }
 0xc5c   : > { %v7433_v13 = vpack.c.bf16 %v3450_v11, %v3448_v6  ;;  %v3557_v6 = vld [vmem:[%s10558_s13 + $0x40] sm:$0xff]  ;;  %v3558_v11 = vld [vmem:[%s10558_s13 + $0x48] sm:$0xff] }
 0xc5d   : > { %v3238_v17 = vpop.f32.mrb[20].mxu0 }
 0xc5e   : > { %3320 = vrot.lane.b32.xlu0 %v3238_v17, %s10557_s7  ;;  %v6794_v18 = vpop.f32.mrb[21].mxu0  ;;  %v3453_v17 = vld [vmem:[%s10433_s16 + $0xa8] sm:$0xff] }
 0xc5f   : > { %v3455_v18 = vld [vmem:[%s10433_s16 + $0xb8] sm:$0xff] }
 0xc79   : > { %v3311_v19 = vpop.f32.mrb[34].mxu1 }
 0xc7a   : > { %3324 = vrot.lane.b32.xlu1 %v3311_v19, %s10479_s23  ;;  %v6813_v45 = vpop.f32.mrb[35].mxu1  ;;  %v3452_v19 = vld [vmem:[%s10433_s16 + $0xa0] sm:$0xff] }
 0xc7b   : > { %v7435_v45 = vpack.c.bf16 %v3455_v18, %v3453_v17  ;;  %v3576_v17 = vld [vmem:[%s10558_s13 + $0xd8] sm:$0xff]  ;;  %v7465_v18 = vpack.c.bf16 %v3558_v11, %v3557_v6  ;;  %v3683_v6 = vld [vmem:[%s10560_s28 + $0x10] sm:$0xff] }
 0xc7c   : > { %v3684_v11 = vld [vmem:[%s10560_s28 + $0x18] sm:$0xff] }
 0xccc   : > { %v3317_v15 = vpop.permute.xlu1 %3316 }
 0xccd   : > { %v3327_v21 = vsel %vm2626_vm5, %v3092_v41, %v3317_v15  ;;  %v3454_v15 = vld [vmem:[%s10433_s16 + $0xb0] sm:$0xff] }
 0xcd0   : > { %v3321_v20 = vpop.permute.xlu0 %3320 }
 0xcd1   : > { %v3328_v22 = vsel %vm1374_vm1, %v3327_v21, %v3321_v20  ;;  %v3457_v20 = vld [vmem:[%s10433_s16 + $0xc8] sm:$0xff]  ;;  %v3459_v21 = vld [vmem:[%s10433_s16 + $0xd8] sm:$0xff] }
 0xcec   : > { %v3325_v23 = vpop.permute.xlu1 %3324 }
 0xced   : > { %v3330_v24 = vsel %vm3329_vm7, %v3328_v22, %v3325_v23  ;;  %v7437_v22 = vpack.c.bf16 %v3454_v15, %v3452_v19  ;;  %v7439_v23 = vpack.c.bf16 %v3459_v21, %v3457_v20  ;;  %v3560_v15 = vld [vmem:[%s10558_s13 + $0x58] sm:$0xff]  ;;  %v3577_v20 = vld [vmem:[%s10558_s13 + $0xe0] sm:$0xff]  ;;  %v3578_v21 = vld [vmem:[%s10558_s13 + $0xe8] sm:$0xff] }
 0xcee   : > { %6831 = vmatmul.mubr.msk.f32.vlgmr.msra.gmra.mrb[22].mxu0 %vm2021_vm3, %v3330_v24  ;;  %v3456_v24 = vld [vmem:[%s10433_s16 + $0xc0] sm:$0xff] }
 0xdc1   : > { %v3406_v53 = vpop.f32.mrb[22].mxu0 }
 0xdc2   : > { %v3407_v57 = vadd.f32 %v5858_v49, %v3406_v53  ;;  %v6832_v59 = vpop.f32.mrb[23].mxu0  ;;  %v3458_v49 = vld [vmem:[%s10433_s16 + $0xd0] sm:$0xff]  ;;  %v3461_v53 = vld [vmem:[%s10433_s16 + $0xe8] sm:$0xff] }
 0xdc3   : > { %v7441_v59 = vpack.c.bf16 %v3458_v49, %v3456_v24 }
 0xdc4   : > { %v3410_v25 = vadd.f32 %v3407_v57, %v9441_v32  ;;  %v3437_v32 = vld [vmem:[%s10433_s16 + $0x28] sm:$0xff]  ;;  %v3463_v57 = vld [vmem:[%s10433_s16 + $0xf8] sm:$0xff] }
 0xdc5   : > { %v7419_v27 = vpack.c.bf16 %v3439_v30, %v3437_v32  ;;  %v3549_v32 = vld [vmem:[%s10558_s13] sm:$0xff]  ;;  %v7447_v30 = vpack.c.bf16 %v3566_v29, %v3565_v37 }
 0xdc6   : > { %3411 = vadd.xlane.f32.xlu0 %v3410_v25  ;;  %v7449_v36 = vpack.c.bf16 %v3550_v33, %v3549_v32  ;;  %v3561_v32 = vld [vmem:[%s10558_s13 + $0x60] sm:$0xff] }
 0xdc7   : > { %7420 = vmatprep.subr.bf16.mxu1 %v7419_v27  ;;  %v3567_v27 = vld [vmem:[%s10558_s13 + $0x90] sm:$0xff]  ;;  %7448 = vmatprep.subr.bf16.mxu0 %v7447_v30  ;;  %v3562_v30 = vld [vmem:[%s10558_s13 + $0x68] sm:$0xff] }
 0xdc8   : > { %7422 = vmatpush1.bf16.msra.mxu1 %v7421_v50  ;;  %v7451_v16 = vpack.c.bf16 %v3568_v35, %v3567_v27  ;;  %v3552_v50 = vld [vmem:[%s10558_s13 + $0x18] sm:$0xff]  ;;  %7450 = vmatpush3.bf16.msra.mxu0 %v7449_v36  ;;  %v7473_v33 = vpack.c.bf16 %v3562_v30, %v3561_v32  ;;  %v3694_v32 = vld [vmem:[%s10560_s28 + $0x68] sm:$0xff] }
 0xdc9   : > { %7424 = vmatprep.subr.bf16.mxu1 %v7423_v2  ;;  %v3569_v2 = vld [vmem:[%s10558_s13 + $0xa0] sm:$0xff]  ;;  %v7453_v28 = vpack.c.bf16 %v3552_v50, %v3551_v38  ;;  %v3580_v27 = vld [vmem:[%s10558_s13 + $0xf8] sm:$0xff] }
 0xdca   : > { %7452 = vmatprep.subr.bf16.mxu0 %v7451_v16  ;;  %v3564_v36 = vld [vmem:[%s10558_s13 + $0x78] sm:$0xff]  ;;  %v3464_v38 = vld [vmem:[%s10559_s17] sm:$0x3]  ;;  %s10566_s17 = scalar_lea.vmem [#allocation5], %s8892_s19 }
 0xdcb   : > { %v3469_v50 = vrot.slane %v3464_v38, %v9097_v9 }
 0xdcc   : > { %7426 = vmatpush1.bf16.msra.mxu1 %v7425_v40  ;;  %v7455_v40 = vpack.c.bf16 %v3570_v39, %v3569_v2  ;;  %7454 = vmatpush3.bf16.msra.mxu0 %v7453_v28  ;;  %v3473_v2 = vrot.slane %v3464_v38, %v9085_v5  ;;  %v3716_v38 = vld [vmem:[%s10562_s21 + $0x18] sm:$0xff] }
 0xdcd   : > { %7428 = vmatprep.subr.bf16.mxu1 %v7427_v14 }
 0xdce   : > { %7456 = vmatprep.subr.bf16.mxu0 %v7455_v40 }
 0xdd0   : > { %7430 = vmatpush1.bf16.msra.mxu1 %v7429_v52  ;;  %v3573_v52 = vld [vmem:[%s10558_s13 + $0xc0] sm:$0xff] }
 0xdd1   : > { %7432 = vmatprep.subr.bf16.mxu1 %v7431_v3  ;;  %v7463_v3 = vpack.c.bf16 %v3574_v60, %v3573_v52  ;;  %v3681_v60 = vld [vmem:[%s10560_s28] sm:$0xff] }
 0xdd4   : > { %7434 = vmatpush1.bf16.msra.mxu1 %v7433_v13  ;;  %v3575_v13 = vld [vmem:[%s10558_s13 + $0xd0] sm:$0xff] }
 0xdd5   : > { %7436 = vmatprep.subr.bf16.mxu1 %v7435_v45  ;;  %v7467_v19 = vpack.c.bf16 %v3576_v17, %v3575_v13  ;;  %v3559_v45 = vld [vmem:[%s10558_s13 + $0x50] sm:$0xff]  ;;  %v3685_v13 = vld [vmem:[%s10560_s28 + $0x20] sm:$0xff]  ;;  %v7483_v17 = vpack.c.bf16 %v3684_v11, %v3683_v6  ;;  %v3724_v6 = vld [vmem:[%s10562_s21 + $0x58] sm:$0xff] }
 0xdd8   : > { %7438 = vmatpush1.bf16.msra.mxu1 %v7437_v22  ;;  %v7469_v22 = vpack.c.bf16 %v3560_v15, %v3559_v45  ;;  %v3687_v45 = vld [vmem:[%s10560_s28 + $0x30] sm:$0xff]  ;;  %v3688_v15 = vld [vmem:[%s10560_s28 + $0x38] sm:$0xff] }
 0xdd9   : > { %7440 = vmatprep.subr.bf16.mxu1 %v7439_v23  ;;  %v7471_v23 = vpack.c.bf16 %v3578_v21, %v3577_v20  ;;  %v7491_v20 = vpack.c.bf16 %v3688_v15, %v3687_v45  ;;  %v3697_v21 = vld [vmem:[%s10561_s6] sm:$0xff]  ;;  %v3726_v45 = vld [vmem:[%s10562_s21 + $0x68] sm:$0xff] }
 0xddc   : > { %7442 = vmatpush1.bf16.msra.mxu1 %v7441_v59  ;;  %v9826_v59 = vld [vmem:[%s10443_s26] sm:$0xff] }
 0xe53   : > { %v3412_v41 = vpop.xlane.xlu0 %3411 }
 0xe54   : > { %v3413_v44 = vmul.f32 0.0078125, %v3412_v41  ;;  %v3553_v41 = vld [vmem:[%s10558_s13 + $0x20] sm:$0xff] }
 0xe56   : > { %v9680_v46 = vsub.f32 %v3410_v25, %v3413_v44  ;;  %v7443_v25 = vpack.c.bf16 %v3463_v57, %v3461_v53  ;;  %v3554_v44 = vld [vmem:[%s10558_s13 + $0x28] sm:$0xff]  ;;  %v3429_v57 = vsub.s32 3, %v9076_v63 }
 0xe57   : > { %v7457_v48 = vpack.c.bf16 %v3554_v44, %v3553_v41 }
 0xe58   : > { %v3415_v47 = vmul.f32 %v9680_v46, %v9680_v46  ;;  %7444 = vmatprep.subr.bf16.mxu1 %v7443_v25  ;;  %v3425_v25 = vrot.slane %v9826_v59, %v9155_v34 }
 0xe59   : > { %7446 = vmatpush1.bf16.msra.mxu1 %v7445_v10  ;;  %7458 = vmatpush3.bf16.msra.mxu0 %v7457_v48  ;;  %v3430_v10 = vrot.slane %v9826_v59, %v3429_v57  ;;  %v5860_v48 = vld [vmem:[#allocation14] ss:$0 sm:$0xff]  ;;  %v3700_v57 = vld [vmem:[%s10561_s6 + $0x18] sm:$0xff] }
 0xe5a   : > { %3416 = vadd.xlane.f32.xlu1 %v3415_v47  ;;  %v3571_v47 = vld [vmem:[%s10558_s13 + $0xb0] sm:$0xff] }
 0xe5b   : > { %v7459_v14 = vpack.c.bf16 %v3572_v58, %v3571_v47 }
 0xe5d   : > { %7460 = vmatprep.subr.bf16.mxu0 %v7459_v14 }
 0xe5e   : > { %7462 = vmatpush3.bf16.msra.mxu0 %v7461_v42  ;;  %v3682_v42 = vld [vmem:[%s10560_s28 + $0x8] sm:$0xff] }
 0xe5f   : > { %7464 = vmatprep.subr.bf16.mxu0 %v7463_v3  ;;  %v7479_v3 = vpack.c.bf16 %v3682_v42, %v3681_v60  ;;  %v3706_v60 = vld [vmem:[%s10561_s6 + $0x48] sm:$0xff] }
 0xe61   : > { %7480 = vmatprep.subr.bf16.mxu1 %v7479_v3 }
 0xe62   : > { %7466 = vmatpush3.bf16.msra.mxu0 %v7465_v18  ;;  %v3686_v18 = vld [vmem:[%s10560_s28 + $0x28] sm:$0xff] }
 0xe63   : > { %7468 = vmatprep.subr.bf16.mxu0 %v7467_v19  ;;  %v7487_v19 = vpack.c.bf16 %v3686_v18, %v3685_v13  ;;  %v3707_v13 = vld [vmem:[%s10561_s6 + $0x50] sm:$0xff] }
 0xe66   : > { %7470 = vmatpush3.bf16.msra.mxu0 %v7469_v22  ;;  %v3698_v22 = vld [vmem:[%s10561_s6 + $0x8] sm:$0xff] }
 0xe67   : > { %7472 = vmatprep.subr.bf16.mxu0 %v7471_v23  ;;  %v3689_v23 = vld [vmem:[%s10560_s28 + $0x40] sm:$0xff] }
 0xe6a   : > { %7474 = vmatpush3.bf16.msra.mxu0 %v7473_v33  ;;  %v3695_v33 = vld [vmem:[%s10560_s28 + $0x70] sm:$0xff] }
 0xee7   : > { %v3417_v24 = vpop.xlane.xlu1 %3416 }
 0xee8   : > { %v3418_v49 = vmul.f32 0.0078125, %v3417_v24  ;;  %v3690_v24 = vld [vmem:[%s10560_s28 + $0x48] sm:$0xff] }
 0xeea   : > { %v3419_v53 = vadd.f32 1e-05, %v3418_v49  ;;  %v7512_v49 = vpack.c.bf16 %v3698_v22, %v3697_v21  ;;  %v3710_v21 = vld [vmem:[%s10561_s6 + $0x68] sm:$0xff] }
 0xeec   : > { %7994 = vrsqrt.f32 %v3419_v53  ;;  %v3699_v53 = vld [vmem:[%s10561_s6 + $0x10] sm:$0xff] }
 0xef6   : > { %v7995_v26 = vpop.eup %7994 }
 0xef7   : > { %v3421_v4 = vmul.f32 %v7995_v26, %v9680_v46  ;;  %v3579_v46 = vld [vmem:[%s10558_s13 + $0xf0] sm:$0xff]  ;;  %v7495_v26 = vpack.c.bf16 %v3690_v24, %v3689_v23  ;;  %v3728_v24 = vld [vmem:[%s10562_s21 + $0x78] sm:$0xff] }
 0xef8   : > { %v7475_v35 = vpack.c.bf16 %v3580_v27, %v3579_v46  ;;  %v3696_v46 = vld [vmem:[%s10560_s28 + $0x78] sm:$0xff]  ;;  %v3727_v23 = vld [vmem:[%s10562_s21 + $0x70] sm:$0xff] }
 0xef9   : > { %v3426_v37 = vmul.f32 %v3425_v25, %v3421_v4  ;;  %v7515_v25 = vpack.c.bf16 %v3700_v57, %v3699_v53  ;;  %v3691_v4 = vld [vmem:[%s10560_s28 + $0x50] sm:$0xff]  ;;  %v7507_v27 = vpack.c.bf16 %v3696_v46, %v3695_v33  ;;  %v7557_v53 = vpack.c.bf16 %v3728_v24, %v3727_v23  ;;  %v3712_v57 = vld [vmem:[%s10561_s6 + $0x78] sm:$0xff] }
 0xefa   : > { %7476 = vmatprep.subr.bf16.mxu0 %v7475_v35  ;;  %v3713_v35 = vld [vmem:[%s10562_s21] sm:$0xff] }
 0xefb   : > { %v3431_v29 = vadd.f32 %v3430_v10, %v3426_v37  ;;  %v3692_v10 = vld [vmem:[%s10560_s28 + $0x58] sm:$0xff] }
 0xefc   : > { %v7499_v37 = vpack.c.bf16 %v3692_v10, %v3691_v4 }
 0xefd   : > { %3541 = vmatmul.mubr.f32.vlgmr.msra.gmra.mrb[36].mxu1 %v3431_v29 }
 0xefe   : > { %6865 = vmatprep.mubr.f32.mxu1 %v9252_v31  ;;  %v3563_v31 = vld [vmem:[%s10558_s13 + $0x70] sm:$0xff]  ;;  %7482 = vmatpush3.bf16.msra.mxu1 %v7479_v3  ;;  %s1024_s13 = scalar_lea.vmem [#allocation17], %s8892_s19 }
 0xeff   : > { %v7477_v16 = vpack.c.bf16 %v3564_v36, %v3563_v31  ;;  %7484 = vmatprep.subr.bf16.mxu1 %v7483_v17  ;;  %v3714_v31 = vld [vmem:[%s10562_s21 + $0x8] sm:$0xff]  ;;  %v3723_v3 = vld [vmem:[%s10562_s21 + $0x50] sm:$0xff] }
 0xf00   : > { %v7536_v36 = vpack.c.bf16 %v3714_v31, %v3713_v35  ;;  %v7551_v11 = vpack.c.bf16 %v3724_v6, %v3723_v3 }
 0xf01   : > { %7478 = vmatpush3.bf16.msra.mxu0 %v7477_v16  ;;  %v3715_v16 = vld [vmem:[%s10562_s21 + $0x10] sm:$0xff] }
 0xf02   : > { %7511 = vmatprep.subr.bf16.mxu0 %v8428_v0  ;;  %7486 = vmatpush3.bf16.msra.mxu1 %v7483_v17  ;;  %v3708_v17 = vld [vmem:[%s10561_s6 + $0x58] sm:$0xff] }
 0xf03   : > { %7488 = vmatprep.subr.bf16.mxu1 %v7487_v19  ;;  %v7527_v18 = vpack.c.bf16 %v3708_v17, %v3707_v13 }
 0xf06   : > { %7490 = vmatpush3.bf16.msra.mxu1 %v7487_v19  ;;  %v3725_v19 = vld [vmem:[%s10562_s21 + $0x60] sm:$0xff] }
 0xf07   : > { %7492 = vmatprep.subr.bf16.mxu1 %v7491_v20  ;;  %v7554_v15 = vpack.c.bf16 %v3726_v45, %v3725_v19 }
 0xf0a   : > { %7494 = vmatpush3.bf16.msra.mxu1 %v7491_v20  ;;  %v3709_v20 = vld [vmem:[%s10561_s6 + $0x60] sm:$0xff] }
 0xf0b   : > { %7496 = vmatprep.subr.bf16.mxu1 %v7495_v26  ;;  %v7530_v22 = vpack.c.bf16 %v3710_v21, %v3709_v20 }
 0xf0e   : > { %7498 = vmatpush3.bf16.msra.mxu1 %v7495_v26  ;;  %v10040_v26 = vld [vmem:[%s10563_s18] sm:$0x7]  ;;  %s10570_s18 = sld [smem:[#allocation53_spill]] }
 0xf0f   : > { %7500 = vmatprep.subr.bf16.mxu1 %v7499_v37  ;;  %v3742_v4 = vrot.slane %v10040_v26, %v9097_v9 }
 0xf12   : > { %7502 = vmatpush3.bf16.msra.mxu1 %v7499_v37 }
 0xfd0   : > { %v3542_v39 = vpop.f32.mrb[36].mxu1 }
 0xfd1   : > { %v3543_v28 = vadd.f32 %v3542_v39, %v3469_v50  ;;  %v3544_v40 = vpop.f32.mrb[37].mxu1  ;;  %v7539_v50 = vpack.c.bf16 %v3716_v38, %v3715_v16  ;;  %v3718_v39 = vld [vmem:[%s10562_s21 + $0x28] sm:$0xff] }
 0xfd2   : > { %v3545_v41 = vadd.f32 %v3544_v40, %v3473_v2  ;;  %v3717_v2 = vld [vmem:[%s10562_s21 + $0x20] sm:$0xff]  ;;  %v3719_v40 = vld [vmem:[%s10562_s21 + $0x30] sm:$0xff] }
 0xfd3   : > { %v3547_v47 = vmax.f32 %v3543_v28, 0.0 }
 0xfd4   : > { %v3548_v44 = vmax.f32 %v3545_v41, 0.0  ;;  %v3720_v41 = vld [vmem:[%s10562_s21 + $0x38] sm:$0xff] }
 0xfd6   : > { %3652 = vmatprep.mubr.f32.mxu0 %v3548_v44  ;;  %v7545_v44 = vpack.c.bf16 %v3720_v41, %v3719_v40  ;;  %v3672_v40 = vsub.s32 4, %v9076_v63  ;;  %v3677_v41 = vsub.s32 5, %v9076_v63 }
 0xfd7   : > { %3653 = vmatmul.mubr.f32.vlgmr.msra.gmra.mrb[24].mxu0 %v3547_v47  ;;  %v3703_v47 = vld [vmem:[%s10561_s6 + $0x30] sm:$0xff] }
 0xfd8   : > { %6909 = vmatprep.mubr.msk.f32.mxu0 %vm8429_vm0, %v8430_v1  ;;  %7513 = vmatpush3.bf16.msra.mxu0 %v7512_v49  ;;  %v3711_v49 = vld [vmem:[%s10561_s6 + $0x70] sm:$0xff] }
 0xfd9   : > { %7514 = vmatprep.subr.bf16.mxu0 %v8428_v0 }
 0xfdc   : > { %7516 = vmatpush3.bf16.msra.mxu0 %v7515_v25  ;;  %v7533_v25 = vpack.c.bf16 %v3712_v57, %v3711_v49 }
 0xfdd   : > { %7517 = vmatprep.subr.bf16.mxu0 %v8428_v0 }
0x10aa   : > { %v6210_v58 = vpop.f32.mrb[24].mxu0 }
0x10ab   : > { %v6211_v14 = vpop.f32.mrb[25].mxu0 }
0x10ac   : > { %v6212_v51 = vadd.f32 %v6211_v14, %v6210_v58  ;;  %v3704_v58 = vld [vmem:[%s10561_s6 + $0x38] sm:$0xff]  ;;  %v3721_v14 = vld [vmem:[%s10562_s21 + $0x40] sm:$0xff] }
0x10ae   : > { %v3655_v54 = vadd.f32 %v6212_v51, %v5860_v48  ;;  %v7521_v48 = vpack.c.bf16 %v3704_v58, %v3703_v47  ;;  %v3722_v51 = vld [vmem:[%s10562_s21 + $0x48] sm:$0xff] }
0x10b0   : > { %v9859_v52 = vadd.f32 %v3655_v54, %v3431_v29  ;;  %v3693_v29 = vld [vmem:[%s10560_s28 + $0x60] sm:$0xff]  ;;  %v7548_v54 = vpack.c.bf16 %v3722_v51, %v3721_v14 }
0x10b1   : > { %v7503_v30 = vpack.c.bf16 %v3694_v32, %v3693_v29 }
0x10b2   : > { %3659 = vadd.xlane.f32.xlu0 %v9859_v52 }
0x10b3   : > { %7504 = vmatprep.subr.bf16.mxu1 %v7503_v30 }
0x10b4   : > { %7506 = vmatpush3.bf16.msra.mxu1 %v7503_v30 }
0x10b5   : > { %7508 = vmatprep.subr.bf16.mxu1 %v7507_v27 }
0x10b8   : > { %7510 = vmatpush3.bf16.msra.mxu1 %v7507_v27 }
0x10b9   : > { %7535 = vmatprep.subr.bf16.mxu1 %v8428_v0 }
0x10bb   : > { %6866 = vmatmul.mubr.f32.vlgmr.msra.gmra.mrb[38].mxu1 %v9296_v55  ;;  %v7542_v55 = vpack.c.bf16 %v3718_v39, %v3717_v2 }
0x10bc   : > { %6868 = vmatprep.mubr.f32.mxu1 %v9299_v56  ;;  %7537 = vmatpush3.bf16.msra.mxu1 %v7536_v36 }
0x10bd   : > { %7538 = vmatprep.subr.bf16.mxu1 %v8428_v0 }
0x10bf   : > { %6869 = vmatmul.mubr.f32.gmra.mrb[40].mxu1 %v9312_v61 }
0x10c0   : > { %6871 = vmatprep.mubr.f32.mxu1 %v9316_v62  ;;  %7540 = vmatpush3.bf16.msra.mxu1 %v7539_v50 }
0x10c1   : > { %7541 = vmatprep.subr.bf16.mxu1 %v8428_v0 }
0x10c3   : > { %6872 = vmatmul.mubr.f32.gmra.mrb[42].mxu1 %v9328_v7  ;;  %v3701_v7 = vld [vmem:[%s10561_s6 + $0x20] sm:$0xff] }
0x10c4   : > { %6874 = vmatprep.mubr.f32.mxu1 %v9332_v8  ;;  %7543 = vmatpush3.bf16.msra.mxu1 %v7542_v55  ;;  %v3702_v8 = vld [vmem:[%s10561_s6 + $0x28] sm:$0xff] }
0x10c5   : > { %7544 = vmatprep.subr.bf16.mxu1 %v8428_v0 }
0x10c7   : > { %6875 = vmatmul.mubr.f32.gmra.mrb[44].mxu1 %v9340_v12  ;;  %v7518_v12 = vpack.c.bf16 %v3702_v8, %v3701_v7 }
0x10c8   : > { %6944 = vmatprep.mubr.msk.f32.mxu1 %vm8429_vm0, %v8430_v1  ;;  %7546 = vmatpush3.bf16.msra.mxu1 %v7545_v44  ;;  %v3673_v44 = vrot.slane %v9826_v59, %v3672_v40 }
0x10c9   : > { %7519 = vmatpush3.bf16.msra.mxu0 %v7518_v12  ;;  %7547 = vmatprep.subr.bf16.mxu1 %v8428_v0 }
0x10ca   : > { %7520 = vmatprep.subr.bf16.mxu0 %v8428_v0 }
0x10cc   : > { %7549 = vmatpush3.bf16.msra.mxu1 %v7548_v54  ;;  %v8031_v54 = vld [vmem:[%s10566_s17] sm:$0xff]  ;;  %s5526_s17 = scalar_lea.sflag [#allocation4], %s8889_s14 }
0x10cd   : > { %7522 = vmatpush3.bf16.msra.mxu0 %v7521_v48  ;;  %7550 = vmatprep.subr.bf16.mxu1 %v8428_v0  ;;  %v3678_v48 = vrot.slane %v9826_v59, %v3677_v41 }
0x10ce   : > { %7523 = vmatprep.subr.bf16.mxu0 %v8428_v0 }
0x10d0   : > { %7552 = vmatpush3.bf16.msra.mxu1 %v7551_v11 }
0x10d1   : > { %7553 = vmatprep.subr.bf16.mxu1 %v8428_v0 }
0x10d4   : > { %7555 = vmatpush3.bf16.msra.mxu1 %v7554_v15 }
0x10d5   : > { %7556 = vmatprep.subr.bf16.mxu1 %v8428_v0 }
0x10d8   : > { %7558 = vmatpush3.bf16.msra.mxu1 %v7557_v53 }
0x10d9   : > { %7575 = vmatprep.subr.bf16.mxu1 %v8428_v0 }
0x113f   : > { %v3660_v56 = vpop.xlane.xlu0 %3659 }
0x1140   : > { %v3661_v61 = vmul.f32 0.0078125, %v3660_v56 }
0x1142   : > { %v9956_v62 = vsub.f32 %v9859_v52, %v3661_v61  ;;  %v3705_v52 = vld [vmem:[%s10561_s6 + $0x40] sm:$0xff] }
0x1143   : > { %v7524_v42 = vpack.c.bf16 %v3706_v60, %v3705_v52 }
0x1144   : > { %v3663_v28 = vmul.f32 %v9956_v62, %v9956_v62 }
0x1145   : > { %7525 = vmatpush3.bf16.msra.mxu0 %v7524_v42 }
0x1146   : > { %3664 = vadd.xlane.f32.xlu0 %v3663_v28  ;;  %7526 = vmatprep.subr.bf16.mxu0 %v8428_v0 }
0x1149   : > { %7528 = vmatpush3.bf16.msra.mxu0 %v7527_v18 }
0x114a   : > { %7529 = vmatprep.subr.bf16.mxu0 %v8428_v0 }
0x114d   : > { %7531 = vmatpush3.bf16.msra.mxu0 %v7530_v22 }
0x114e   : > { %7532 = vmatprep.subr.bf16.mxu0 %v8428_v0 }
0x1151   : > { %7534 = vmatpush3.bf16.msra.mxu0 %v7533_v25 }
0x1152   : > { %7559 = vmatprep.subr.bf16.mxu0 %v8428_v0 }
0x118e   : > { %v6867_v10 = vpop.f32.mrb[38].mxu1 }
0x118f   : > { %v3815_v37 = vadd.f32 %v6867_v10, %v3742_v4  ;;  %v3809_v29 = vpop.f32.mrb[39].mxu1  ;;  %v3851_v10 = vrot.slane %v10040_v26, %v9085_v5 }
0x1190   : > { %v3810_v32 = vadd.f32 %v3809_v29, %v3742_v4 }
0x1192   : > { %v7560_v30 = vpack.c.bf16 %v3815_v37, %v3810_v32  ;;  %v6870_v33 = vpop.f32.mrb[40].mxu1  ;;  %v7900_v46 = vpack.i.bf16 %v3815_v37, %v3810_v32 }
0x1193   : > { %v3825_v27 = vadd.f32 %v6870_v33, %v3742_v4  ;;  %v3819_v35 = vpop.f32.mrb[41].mxu1 }
0x1194   : > { %v3820_v31 = vadd.f32 %v3819_v35, %v3742_v4  ;;  %7901 = vrot.lane.b32.xlu1 %v7900_v46, %s10564_s12 }
0x1196   : > { %v6873_v36 = vpop.f32.mrb[42].mxu1  ;;  %v10045_v16 = vpack.i.bf16 %v3825_v27, %v3820_v31  ;;  %v7564_v59 = vpack.c.bf16 %v3825_v27, %v3820_v31 }
0x1197   : > { %v3835_v38 = vadd.f32 %v6873_v36, %v3742_v4  ;;  %v3829_v50 = vpop.f32.mrb[43].mxu1 }
0x1198   : > { %v3830_v2 = vadd.f32 %v3829_v50, %v3742_v4  ;;  %7906 = vrot.lane.b32.xlu0 %v10045_v16, %s10564_s12 }
0x119a   : > { %v6876_v9 = vpop.f32.mrb[44].mxu1  ;;  %v10049_v39 = vpack.i.bf16 %v3835_v38, %v3830_v2 }
0x119b   : > { %v3845_v55 = vadd.f32 %v6876_v9, %v3742_v4  ;;  %v3839_v56 = vpop.f32.mrb[45].mxu1 }
0x119c   : > { %v3840_v61 = vadd.f32 %v3839_v56, %v3742_v4  ;;  %7911 = vrot.lane.b32.xlu1 %v10049_v39, %s10564_s12  ;;  %7921 = vrot.lane.b32.xlu0 %v7900_v46, %s10555_s20 }
0x119e   : > { %v10054_v28 = vpack.i.bf16 %v3845_v55, %v3840_v61  ;;  %v7572_v60 = vpack.c.bf16 %v3845_v55, %v3840_v61 }
0x11a0   : > { %7916 = vrot.lane.b32.xlu1 %v10054_v28, %s10564_s12 }
0x11a4   : > { %7926 = vrot.lane.b32.xlu1 %v7900_v46, %s10565_s22 }
0x11a8   : > { %7931 = vrot.lane.b32.xlu1 %v10045_v16, %s10555_s20 }
0x11ac   : > { %7941 = vrot.lane.b32.xlu1 %v10049_v39, %s10555_s20 }
0x11b0   : > { %7951 = vrot.lane.b32.xlu1 %v10054_v28, %s10555_s20 }
0x11d3   : > { %v3665_v7 = vpop.xlane.xlu0 %3664 }
0x11d4   : > { %v3666_v8 = vmul.f32 0.0078125, %v3665_v7 }
0x11d6   : > { %v3667_v12 = vadd.f32 1e-05, %v3666_v8 }
0x11d8   : > { %7996 = vrsqrt.f32 %v3667_v12 }
0x11e2   : > { %v7997_v47 = vpop.eup %7996 }
0x11e3   : > { %v3669_v58 = vmul.f32 %v7997_v47, %v9956_v62  ;;  %v7568_v62 = vpack.c.bf16 %v3835_v38, %v3830_v2 }
0x11e5   : > { %v3674_v14 = vmul.f32 %v3673_v44, %v3669_v58 }
0x11e7   : > { %v3679_v51 = vadd.f32 %v3678_v48, %v3674_v14 }
0x11e9   : > { %6945 = vmatmul.mubr.f32.vlgmr.msra.gmra.mrb[46].mxu1 %v3679_v51  ;;  %v3680_v52 = vadd.f32 %v8031_v54, %v3679_v51  ;;  %5516 = vst [vmem:[%s1024_s13] sm:$0xff] %v3679_v51 }
0x11ea   : > { %6982 = vmatprep.mubr.msk.f32.mxu1 %vm8429_vm0, %v8430_v1 }
0x11eb   : > { %6910 = vmatmul.mubr.f32.vlgmr.msra.gmra.mrb[26].mxu0 %v3680_v52 }
0x11ec   : > { %7562 = vmatpush3.bf16.xpose.msk.msra.mxu0 %vm9398_vm6, %v7560_v30  ;;  %6963 = vmatprep.mubr.msk.f32.mxu0 %vm8429_vm0, %v8430_v1  ;;  %v3925_v30 = vrot.slane %v10040_v26, %v9155_v34 }
0x11ed   : > { %7563 = vmatprep.subr.bf16.mxu0 %v8428_v0 }
0x11f4   : > { %7566 = vmatpush3.bf16.xpose.msk.msra.mxu0 %vm9398_vm6, %v7564_v59 }
0x11f5   : > { %7567 = vmatprep.subr.bf16.mxu0 %v8428_v0 }
0x11fc   : > { %7570 = vmatpush3.bf16.xpose.msk.msra.mxu0 %vm9398_vm6, %v7568_v62 }
0x11fd   : > { %7571 = vmatprep.subr.bf16.mxu0 %v8428_v0 }
0x1204   : > { %7574 = vmatpush3.bf16.xpose.msk.msra.mxu0 %vm9398_vm6, %v7572_v60 }
0x1205   : > { %7591 = vmatprep.subr.bf16.mxu0 %v8428_v0 }
0x1206   : > { %v7902_v42 = vpop.permute.xlu1 %7901 }
0x1207   : > { %v7904_v3 = vunpack.i.h.bf16 %v7902_v42  ;;  %v7903_v6 = vunpack.i.l.bf16 %v7902_v42 }
0x1209   : > { %v7576_v11 = vpack.c.bf16 %v7904_v3, %v7903_v6 }
0x120a   : > { %v7907_v13 = vpop.permute.xlu0 %7906 }
0x120b   : > { %v7909_v17 = vunpack.i.h.bf16 %v7907_v13  ;;  %v7908_v18 = vunpack.i.l.bf16 %v7907_v13  ;;  %7578 = vmatpush3.bf16.xpose.msk.msra.mxu1 %vm9398_vm6, %v7576_v11 }
0x120c   : > { %7579 = vmatprep.subr.bf16.mxu1 %v8428_v0 }
0x120d   : > { %v7580_v19 = vpack.c.bf16 %v7909_v17, %v7908_v18 }
0x120e   : > { %v7912_v45 = vpop.permute.xlu1 %7911  ;;  %v7922_v53 = vpop.permute.xlu0 %7921 }
0x120f   : > { %v7914_v15 = vunpack.i.h.bf16 %v7912_v45  ;;  %v7913_v20 = vunpack.i.l.bf16 %v7912_v45  ;;  %v7924_v25 = vunpack.i.h.bf16 %v7922_v53  ;;  %v7923_v4 = vunpack.i.l.bf16 %v7922_v53 }
0x1211   : > { %v7584_v21 = vpack.c.bf16 %v7914_v15, %v7913_v20  ;;  %v7592_v33 = vpack.c.bf16 %v7924_v25, %v7923_v4 }
0x1212   : > { %v7917_v22 = vpop.permute.xlu1 %7916 }
0x1213   : > { %7582 = vmatpush3.bf16.xpose.msk.msra.mxu1 %vm9398_vm6, %v7580_v19  ;;  %v7919_v23 = vunpack.i.h.bf16 %v7917_v22  ;;  %v7918_v24 = vunpack.i.l.bf16 %v7917_v22 }
0x1214   : > { %7583 = vmatprep.subr.bf16.mxu1 %v8428_v0 }
0x1215   : > { %v7588_v49 = vpack.c.bf16 %v7919_v23, %v7918_v24 }
0x1216   : > { %v7927_v57 = vpop.permute.xlu1 %7926 }
0x1217   : > { %v7929_v56 = vunpack.i.h.bf16 %v7927_v57  ;;  %v7928_v61 = vunpack.i.l.bf16 %v7927_v57 }
0x1219   : > { %v7608_v7 = vpack.c.bf16 %v7929_v56, %v7928_v61 }
0x121a   : > { %v7932_v35 = vpop.permute.xlu1 %7931 }
0x121b   : > { %7586 = vmatpush3.bf16.xpose.msk.msra.mxu1 %vm9398_vm6, %v7584_v21  ;;  %v7934_v5 = vunpack.i.h.bf16 %v7932_v35  ;;  %v7933_v36 = vunpack.i.l.bf16 %v7932_v35 }
0x121c   : > { %7587 = vmatprep.subr.bf16.mxu1 %v8428_v0 }
0x121d   : > { %v7596_v34 = vpack.c.bf16 %v7934_v5, %v7933_v36 }
0x121e   : > { %v7942_v26 = vpop.permute.xlu1 %7941 }
0x121f   : > { %v7944_v38 = vunpack.i.h.bf16 %v7942_v26  ;;  %v7943_v50 = vunpack.i.l.bf16 %v7942_v26 }
0x1222   : > { %v7952_v2 = vpop.permute.xlu1 %7951 }
0x1223   : > { %7590 = vmatpush3.bf16.xpose.msk.msra.mxu1 %vm9398_vm6, %v7588_v49  ;;  %v7954_v9 = vunpack.i.h.bf16 %v7952_v2 }
0x1224   : > { %7607 = vmatprep.subr.bf16.mxu1 %v8428_v0 }
0x12bc   : > { %v3992_v37 = vpop.f32.mrb[46].mxu1 }
0x12bd   : > { %v6946_v29 = vpop.f32.mrb[47].mxu1  ;;  %v3993_v31 = vadd.f32 %v3992_v37, %v3925_v30 }
0x12be   : > { %v3918_v32 = vpop.f32.mrb[26].mxu0 }
0x12bf   : > { %v3919_v46 = vadd.f32 %v3918_v32, %v3851_v10  ;;  %v6911_v27 = vpop.f32.mrb[27].mxu0 }
0x12c1   : > { %4055 = vrot.lane.b32.xlu1 %v3919_v46, %s10555_s20  ;;  %4053 = vrot.lane.b32.xlu0 %v3919_v46, %s10564_s12 }
0x12c2   : > { %6964 = vmatmul.mubr.msk.f32.vlgmr.msra.gmra.mrb[28].mxu0 %vm2626_vm5, %v3919_v46 }
0x12c3   : > { %7594 = vmatpush3.bf16.xpose.msk.msra.mxu0 %vm9398_vm6, %v7592_v33  ;;  %7001 = vmatprep.mubr.msk.f32.mxu0 %vm8429_vm0, %v8430_v1 }
0x12c4   : > { %7595 = vmatprep.subr.bf16.mxu0 %v8428_v0 }
0x12c5   : > { %4060 = vrot.lane.b32.xlu1 %v3993_v31, %s10564_s12  ;;  %7936 = vrot.lane.b32.xlu0 %v10045_v16, %s10565_s22  ;;  %v7600_v16 = vpack.c.bf16 %v7944_v38, %v7943_v50 }
0x12c9   : > { %4063 = vrot.lane.b32.xlu1 %v3993_v31, %s10555_s20  ;;  %7946 = vrot.lane.b32.xlu0 %v10049_v39, %s10565_s22  ;;  %v7953_v39 = vunpack.i.l.bf16 %v7952_v2  ;;  %s10567_s20 = smov 16  }
0x12cb   : > { %7598 = vmatpush3.bf16.xpose.msk.msra.mxu0 %vm9398_vm6, %v7596_v34  ;;  %v7604_v55 = vpack.c.bf16 %v7954_v9, %v7953_v39 }
0x12cc   : > { %7599 = vmatprep.subr.bf16.mxu0 %v8428_v0 }
0x12cd   : > { %4066 = vrot.lane.b32.xlu1 %v3993_v31, %s10565_s22  ;;  %7956 = vrot.lane.b32.xlu0 %v10054_v28, %s10565_s22 }
0x12d1   : > { %4057 = vrot.lane.b32.xlu0 %v3919_v46, %s10565_s22  ;;  %s5544_s22 = sshll.u32 %s1024_s13, 4  ;;  %s5545_s22 = int_to_ptr.vmem [resolvable:$true] %s5544_s22 }
0x12d3   : > { %7602 = vmatpush3.bf16.xpose.msk.msra.mxu0 %vm9398_vm6, %v7600_v16 }
0x12d4   : > { %7603 = vmatprep.subr.bf16.mxu0 %v8428_v0 }
0x12db   : > { %7606 = vmatpush3.bf16.xpose.msk.msra.mxu0 %vm9398_vm6, %v7604_v55 }
0x12dc   : > { %7023 = vmatprep.subr.mxu0 %v3993_v31 }
0x1333   : > { %v4056_v28 = vpop.permute.xlu1 %4055  ;;  %v4054_v8 = vpop.permute.xlu0 %4053 }
0x1334   : > { %6983 = vmatmul.mubr.msk.f32.vlgmr.msra.gmra.mrb[48].mxu1 %vm2626_vm5, %v4054_v8  ;;  %7002 = vmatmul.mubr.msk.f32.vlgmr.msra.gmra.mrb[30].mxu0 %vm2626_vm5, %v4056_v28 }
0x1335   : > { %7610 = vmatpush3.bf16.xpose.msk.msra.mxu1 %vm9398_vm6, %v7608_v7  ;;  %7024 = vmatpush3.msra.mxu0 %v3993_v31 }
0x1336   : > { %7611 = vmatprep.subr.bf16.mxu1 %v8428_v0  ;;  %7020 = vmatprep.mubr.msk.f32.mxu1 %vm8429_vm0, %v8430_v1 }
0x1337   : > { %v10140_v12 = vpop.permute.xlu1 %4060  ;;  %v7937_v40 = vpop.permute.xlu0 %7936 }
0x1338   : > { %v7939_v41 = vunpack.i.h.bf16 %v7937_v40  ;;  %v7938_v44 = vunpack.i.l.bf16 %v7937_v40  ;;  %7037 = vmatprep.subr.mxu0 %v10140_v12 }
0x133a   : > { %v7612_v47 = vpack.c.bf16 %v7939_v41, %v7938_v44 }
0x133b   : > { %v7947_v58 = vpop.permute.xlu0 %7946  ;;  %v4064_v62 = vpop.permute.xlu1 %4063 }
0x133c   : > { %v7949_v48 = vunpack.i.h.bf16 %v7947_v58  ;;  %v7948_v14 = vunpack.i.l.bf16 %v7947_v58 }
0x133d   : > { %7614 = vmatpush3.bf16.xpose.msk.msra.mxu1 %vm9398_vm6, %v7612_v47 }
0x133e   : > { %7615 = vmatprep.subr.bf16.mxu1 %v8428_v0  ;;  %v7616_v51 = vpack.c.bf16 %v7949_v48, %v7948_v14 }
0x133f   : > { %v7957_v54 = vpop.permute.xlu0 %7956 }
0x1340   : > { %v7959_v1 = vunpack.i.h.bf16 %v7957_v54  ;;  %v7958_v52 = vunpack.i.l.bf16 %v7957_v54 }
0x1342   : > { %v7620_v59 = vpack.c.bf16 %v7959_v1, %v7958_v52 }
0x1343   : > { %v4058_v60 = vpop.permute.xlu0 %4057 }
0x1345   : > { %7618 = vmatpush3.bf16.xpose.msk.msra.mxu1 %vm9398_vm6, %v7616_v51 }
0x1346   : > { %7619 = vmatprep.subr.bf16.mxu1 %v8428_v0 }
0x134d   : > { %7622 = vmatpush3.bf16.xpose.msk.msra.mxu1 %vm9398_vm6, %v7620_v59 }
0x134e   : > { %7051 = vmatprep.subr.mxu1 %v4064_v62 }
0x1354   : > { %7021 = vmatmul.mubr.msk.f32.vlgmr.msra.gmra.mrb[50].mxu1 %vm2626_vm5, %v4058_v60 }
0x1355   : > { %7052 = vmatpush3.msra.mxu1 %v4064_v62 }
0x1395   : > { %v4153_v42 = vpop.f32.mrb[28].mxu0 }
0x1396   : > { %v4421_v3 = vsel %vm2021_vm3, %v4153_v42, -inf  ;;  %v6965_v6 = vpop.f32.mrb[29].mxu0 }
0x1397   : > { %v4422_v11 = vrot.slane %v4421_v3, 4 }
0x1399   : > { %v4423_v13 = vmax.f32 %v4421_v3, %v4422_v11 }
0x139b   : > { %v4424_v17 = vrot.slane %v4423_v13, 2 }
0x139d   : > { %v4425_v0 = vmax.f32 %v4423_v13, %v4424_v17 }
0x139f   : > { %v4426_v18 = vrot.slane %v4425_v0, 1 }
0x13a1   : > { %v4427_v19 = vmax.f32 %v4425_v0, %v4426_v18 }
0x13a3   : > { %v4449_v45 = vsub.f32 %v4153_v42, %v4427_v19 }
0x13a5   : > { %v4453_v15 = vmul.f32 1.442695, %v4449_v45 }
0x13a7   : > { %7998 = vpow2.f32 %v4453_v15 }
0x13b1   : > { %v7999_v43 = vpop.eup %7998 }
0x13b2   : > { %v4461_v20 = vsel %vm2021_vm3, %v7999_v43, 0.0 }
0x13b3   : > { %v4462_v21 = vrot.slane %v4461_v20, 4 }
0x13b5   : > { %v4463_v22 = vadd.f32 %v4462_v21, %v4461_v20 }
0x13b7   : > { %v4464_v23 = vrot.slane %v4463_v22, 2 }
0x13b9   : > { %v4465_v24 = vadd.f32 %v4464_v23, %v4463_v22 }
0x13bb   : > { %v4466_v49 = vrot.slane %v4465_v24, 1 }
0x13bd   : > { %v4467_v53 = vadd.f32 %v4466_v49, %v4465_v24 }
0x13bf   : > { %8000 = vrcp.f32 %v4467_v53 }
0x13c9   : > { %v8001_v57 = vpop.eup %8000 }
0x13ca   : > { %v4493_v25 = vmul.f32 %v8001_v57, %v7999_v43 }
0x13cc   : > { %4497 = vxpose.xlu0.b32.start.end [1/1] (short) (narrow) %v4493_v25, 64 }
0x1407   : > { %v4241_v4 = vpop.f32.mrb[48].mxu1  ;;  %v4329_v10 = vpop.f32.mrb[30].mxu0 }
0x1408   : > { %v4428_v37 = vsel %vm2021_vm3, %v4241_v4, -inf  ;;  %v4435_v29 = vsel %vm2021_vm3, %v4329_v10, -inf  ;;  %v6984_v32 = vpop.f32.mrb[49].mxu1  ;;  %v7003_v30 = vpop.f32.mrb[31].mxu0 }
0x1409   : > { %v4429_v33 = vrot.slane %v4428_v37, 4  ;;  %v4436_v46 = vrot.slane %v4435_v29, 4 }
0x140b   : > { %v4430_v27 = vmax.f32 %v4428_v37, %v4429_v33  ;;  %v4437_v35 = vmax.f32 %v4435_v29, %v4436_v46 }
0x140d   : > { %v4431_v31 = vrot.slane %v4430_v27, 2  ;;  %v4438_v5 = vrot.slane %v4437_v35, 2 }
0x140f   : > { %v4432_v36 = vmax.f32 %v4430_v27, %v4431_v31  ;;  %v4439_v34 = vmax.f32 %v4437_v35, %v4438_v5 }
0x1411   : > { %v4433_v26 = vrot.slane %v4432_v36, 1  ;;  %v4440_v38 = vrot.slane %v4439_v34, 1 }
0x1413   : > { %v4434_v50 = vmax.f32 %v4432_v36, %v4433_v26  ;;  %v4441_v16 = vmax.f32 %v4439_v34, %v4440_v38 }
0x1415   : > { %v4450_v2 = vsub.f32 %v4241_v4, %v4434_v50  ;;  %v4451_v9 = vsub.f32 %v4329_v10, %v4441_v16  ;;  %v4067_v10 = vpop.permute.xlu1 %4066 }
0x1417   : > { %v4455_v39 = vmul.f32 1.442695, %v4450_v2  ;;  %v4457_v55 = vmul.f32 1.442695, %v4451_v9 }
0x1419   : > { %8002 = vpow2.f32 %v4455_v39 }
0x141a   : > { %8004 = vpow2.f32 %v4457_v55 }
0x1423   : > { %v8003_v56 = vpop.eup %8002 }
0x1424   : > { %v8005_v61 = vpop.eup %8004  ;;  %v4468_v7 = vsel %vm2021_vm3, %v8003_v56, 0.0 }
0x1425   : > { %v4469_v28 = vrot.slane %v4468_v7, 4  ;;  %v4475_v8 = vsel %vm2021_vm3, %v8005_v61, 0.0 }
0x1426   : > { %v4476_v40 = vrot.slane %v4475_v8, 4 }
0x1427   : > { %v4470_v41 = vadd.f32 %v4469_v28, %v4468_v7  ;;  %v4417_v44 = vpop.f32.mrb[50].mxu1 }
0x1428   : > { %v4477_v47 = vadd.f32 %v4476_v40, %v4475_v8  ;;  %v4442_v58 = vsel %vm2021_vm3, %v4417_v44, -inf  ;;  %v7022_v48 = vpop.f32.mrb[51].mxu1 }
0x1429   : > { %v4471_v14 = vrot.slane %v4470_v41, 2  ;;  %v4443_v51 = vrot.slane %v4442_v58, 4 }
0x142a   : > { %v4478_v54 = vrot.slane %v4477_v47, 2 }
0x142b   : > { %v4472_v1 = vadd.f32 %v4471_v14, %v4470_v41  ;;  %v4444_v52 = vmax.f32 %v4442_v58, %v4443_v51 }
0x142c   : > { %v4479_v59 = vadd.f32 %v4478_v54, %v4477_v47 }
0x142d   : > { %v4445_v62 = vrot.slane %v4444_v52, 2  ;;  %v4473_v60 = vrot.slane %v4472_v1, 1 }
0x142e   : > { %v4480_v42 = vrot.slane %v4479_v59, 1 }
0x142f   : > { %v4446_v3 = vmax.f32 %v4444_v52, %v4445_v62  ;;  %v4474_v6 = vadd.f32 %v4473_v60, %v4472_v1 }
0x1430   : > { %v4481_v11 = vadd.f32 %v4480_v42, %v4479_v59 }
0x1431   : > { %v4447_v13 = vrot.slane %v4446_v3, 1  ;;  %8006 = vrcp.f32 %v4474_v6 }
0x1432   : > { %8008 = vrcp.f32 %v4481_v11 }
0x1433   : > { %v4448_v17 = vmax.f32 %v4446_v3, %v4447_v13 }
0x1435   : > { %v4452_v0 = vsub.f32 %v4417_v44, %v4448_v17 }
0x1437   : > { %v4459_v18 = vmul.f32 1.442695, %v4452_v0 }
0x1439   : > { %8010 = vpow2.f32 %v4459_v18  ;;  %v3729_v18 = vld [vmem:[#allocation16] sm:$0xff] }
0x143b   : > { %v8007_v19 = vpop.eup %8006 }
0x143c   : > { %v8009_v45 = vpop.eup %8008  ;;  %v4494_v15 = vmul.f32 %v8007_v19, %v8003_v56  ;;  %v3730_v19 = vld [vmem:[#allocation16 + $0x8] sm:$0xff] }
0x143d   : > { %v4495_v43 = vmul.f32 %v8009_v45, %v8005_v61 }
0x143e   : > { %4658 = vxpose.xlu1.b32.start.end [1/1] (short) (narrow) %v4494_v15, 64  ;;  %v7623_v15 = vpack.c.bf16 %v3730_v19, %v3729_v18 }
0x143f   : > { %4819 = vxpose.xlu0.b32.start.end [1/1] (short) (narrow) %v4495_v43, 64  ;;  %v3731_v43 = vld [vmem:[#allocation16 + $0x10] sm:$0xff] }
0x1440   : > { %7624 = vmatprep.subr.bf16.mxu1 %v7623_v15 }
0x1443   : > { %v8011_v20 = vpop.eup %8010 }
0x1444   : > { %v4482_v21 = vsel %vm2021_vm3, %v8011_v20, 0.0 }
0x1445   : > { %v4483_v22 = vrot.slane %v4482_v21, 4 }
0x1447   : > { %v4484_v23 = vadd.f32 %v4483_v22, %v4482_v21 }
0x1449   : > { %v4485_v24 = vrot.slane %v4484_v23, 2 }
0x144b   : > { %v4486_v49 = vadd.f32 %v4485_v24, %v4484_v23 }
0x144c   : > { %v4513_v53 = vpop.trf.xlu0 }
0x144d   : > { %7025 = vmatprep.mubr.msk.f32.mxu0 %vm1671_vm2, %v4513_v53  ;;  %v4487_v57 = vrot.slane %v4486_v49, 1  ;;  %v3734_v53 = vld [vmem:[#allocation16 + $0x28] sm:$0xff] }
0x144f   : > { %v4488_v25 = vadd.f32 %v4487_v57, %v4486_v49  ;;  %v3733_v49 = vld [vmem:[#allocation16 + $0x20] sm:$0xff] }
0x1450   : > { %v4514_v4 = vpop.trf.xlu0 }
0x1451   : > { %7026 = vmatmul.mubr.msk.f32.vlgmr.msra.gmra.mrb[32].mxu0 %vm1671_vm2, %v4514_v4  ;;  %8012 = vrcp.f32 %v4488_v25  ;;  %v7631_v25 = vpack.c.bf16 %v3734_v53, %v3733_v49  ;;  %v3735_v4 = vld [vmem:[#allocation16 + $0x30] sm:$0xff] }
0x1452   : > { %7038 = vmatpush3.msra.mxu0 %v10140_v12 }
0x1453   : > { %7065 = vmatprep.subr.mxu0 %v4067_v10 }
0x1454   : > { %v4515_v37 = vpop.trf.xlu0 }
0x1455   : > { %7028 = vmatprep.mubr.msk.f32.mxu0 %vm1671_vm2, %v4515_v37 }
0x1458   : > { %v4516_v29 = vpop.trf.xlu0 }
0x1459   : > { %7029 = vmatmul.mubr.msk.f32.gmra.mrb[34].mxu0 %vm1671_vm2, %v4516_v29 }
0x145b   : > { %v8013_v32 = vpop.eup %8012 }
0x145c   : > { %v4496_v30 = vmul.f32 %v8013_v32, %v8011_v20  ;;  %v4517_v33 = vpop.trf.xlu0  ;;  %v3732_v20 = vld [vmem:[#allocation16 + $0x18] sm:$0xff] }
0x145d   : > { %7031 = vmatprep.mubr.msk.f32.mxu0 %vm1671_vm2, %v4517_v33  ;;  %v7627_v21 = vpack.c.bf16 %v3732_v20, %v3731_v43 }
0x145e   : > { %4980 = vxpose.xlu1.b32.start.end [1/1] (short) (narrow) %v4496_v30, 64 }
0x1460   : > { %v4518_v46 = vpop.trf.xlu0 }
0x1461   : > { %7032 = vmatmul.mubr.msk.f32.gmra.mrb[36].mxu0 %vm1671_vm2, %v4518_v46 }
0x1464   : > { %v4519_v27 = vpop.trf.xlu0 }
0x1465   : > { %7034 = vmatprep.mubr.msk.f32.mxu0 %vm1671_vm2, %v4519_v27 }
0x1468   : > { %v4520_v12 = vpop.trf.xlu0 }
0x1469   : > { %7035 = vmatmul.mubr.msk.f32.gmra.mrb[38].mxu0 %vm1671_vm2, %v4520_v12 }
0x14be   : > { %v4674_v35 = vpop.trf.xlu1 }
0x14bf   : > { %v4835_v31 = vpop.trf.xlu0  ;;  %7039 = vmatprep.mubr.msk.f32.mxu0 %vm1671_vm2, %v4674_v35 }
0x14c0   : > { %7053 = vmatprep.mubr.msk.f32.mxu1 %vm1671_vm2, %v4835_v31 }
0x14c2   : > { %v4675_v5 = vpop.trf.xlu1 }
0x14c3   : > { %v4836_v36 = vpop.trf.xlu0  ;;  %7040 = vmatmul.mubr.msk.f32.vlgmr.msra.gmra.mrb[40].mxu0 %vm1671_vm2, %v4675_v5 }
0x14c4   : > { %7054 = vmatmul.mubr.msk.f32.vlgmr.msra.gmra.mrb[52].mxu1 %vm1671_vm2, %v4836_v36  ;;  %7066 = vmatpush3.msra.mxu0 %v4067_v10  ;;  %v3736_v10 = vld [vmem:[#allocation16 + $0x38] sm:$0xff] }
0x14c5   : > { %7626 = vmatpush3.bf16.msra.mxu1 %v7623_v15  ;;  %v7635_v37 = vpack.c.bf16 %v3736_v10, %v3735_v4 }
0x14c6   : > { %v4676_v34 = vpop.trf.xlu1  ;;  %7628 = vmatprep.subr.bf16.mxu1 %v7627_v21 }
0x14c7   : > { %7042 = vmatprep.mubr.msk.f32.mxu0 %vm1671_vm2, %v4676_v34  ;;  %v4837_v26 = vpop.trf.xlu0 }
0x14c8   : > { %7056 = vmatprep.mubr.msk.f32.mxu1 %vm1671_vm2, %v4837_v26 }
0x14c9   : > { %7630 = vmatpush3.bf16.msra.mxu1 %v7627_v21 }
0x14ca   : > { %v4677_v38 = vpop.trf.xlu1  ;;  %7632 = vmatprep.subr.bf16.mxu1 %v7631_v25 }
0x14cb   : > { %7043 = vmatmul.mubr.msk.f32.gmra.mrb[42].mxu0 %vm1671_vm2, %v4677_v38  ;;  %v4838_v50 = vpop.trf.xlu0 }
0x14cc   : > { %7057 = vmatmul.mubr.msk.f32.gmra.mrb[54].mxu1 %vm1671_vm2, %v4838_v50 }
0x14cd   : > { %7634 = vmatpush3.bf16.msra.mxu1 %v7631_v25 }
0x14ce   : > { %v4678_v16 = vpop.trf.xlu1  ;;  %7636 = vmatprep.subr.bf16.mxu1 %v7635_v37 }
0x14cf   : > { %7045 = vmatprep.mubr.msk.f32.mxu0 %vm1671_vm2, %v4678_v16  ;;  %v4839_v2 = vpop.trf.xlu0 }
0x14d0   : > { %7059 = vmatprep.mubr.msk.f32.mxu1 %vm1671_vm2, %v4839_v2 }
0x14d1   : > { %7638 = vmatpush3.bf16.msra.mxu1 %v7635_v37 }
0x14d2   : > { %v4679_v9 = vpop.trf.xlu1 }
0x14d3   : > { %7046 = vmatmul.mubr.msk.f32.gmra.mrb[44].mxu0 %vm1671_vm2, %v4679_v9  ;;  %v4840_v39 = vpop.trf.xlu0 }
0x14d4   : > { %7060 = vmatmul.mubr.msk.f32.gmra.mrb[56].mxu1 %vm1671_vm2, %v4840_v39 }
0x14d6   : > { %v4680_v55 = vpop.trf.xlu1 }
0x14d7   : > { %7048 = vmatprep.mubr.msk.f32.mxu0 %vm1671_vm2, %v4680_v55  ;;  %v4841_v56 = vpop.trf.xlu0 }
0x14d8   : > { %7062 = vmatprep.mubr.msk.f32.mxu1 %vm1671_vm2, %v4841_v56 }
0x14da   : > { %v4681_v61 = vpop.trf.xlu1 }
0x14db   : > { %7049 = vmatmul.mubr.msk.f32.gmra.mrb[46].mxu0 %vm1671_vm2, %v4681_v61  ;;  %v4842_v7 = vpop.trf.xlu0 }
0x14dc   : > { %7063 = vmatmul.mubr.msk.f32.gmra.mrb[58].mxu1 %vm1671_vm2, %v4842_v7 }
0x14de   : > { %v4996_v28 = vpop.trf.xlu1 }
0x14df   : > { %7067 = vmatprep.mubr.msk.f32.mxu0 %vm1671_vm2, %v4996_v28 }
0x14e2   : > { %v4997_v8 = vpop.trf.xlu1 }
0x14e3   : > { %7068 = vmatmul.mubr.msk.f32.vlgmr.msra.gmra.mrb[48].mxu0 %vm1671_vm2, %v4997_v8 }
0x14e6   : > { %v4998_v40 = vpop.trf.xlu1 }
0x14e7   : > { %7070 = vmatprep.mubr.msk.f32.mxu0 %vm1671_vm2, %v4998_v40 }
0x14ea   : > { %v4999_v41 = vpop.trf.xlu1 }
0x14eb   : > { %7071 = vmatmul.mubr.msk.f32.gmra.mrb[50].mxu0 %vm1671_vm2, %v4999_v41 }
0x14ee   : > { %v5000_v44 = vpop.trf.xlu1 }
0x14ef   : > { %7073 = vmatprep.mubr.msk.f32.mxu0 %vm1671_vm2, %v5000_v44 }
0x14f2   : > { %v5001_v47 = vpop.trf.xlu1 }
0x14f3   : > { %7074 = vmatmul.mubr.msk.f32.gmra.mrb[52].mxu0 %vm1671_vm2, %v5001_v47 }
0x14f6   : > { %v5002_v58 = vpop.trf.xlu1 }
0x14f7   : > { %7076 = vmatprep.mubr.msk.f32.mxu0 %vm1671_vm2, %v5002_v58 }
0x14fa   : > { %v5003_v48 = vpop.trf.xlu1 }
0x14fb   : > { %7077 = vmatmul.mubr.msk.f32.gmra.mrb[54].mxu0 %vm1671_vm2, %v5003_v48 }
0x1524   : > { %v10193_v14 = vpop.f32.mrb[32].mxu0 }
0x1525   : > { %v10195_v51 = vpop.f32.mrb[33].mxu0 }
0x152c   : > { %v10197_v54 = vpop.f32.mrb[34].mxu0 }
0x152d   : > { %v10199_v1 = vpop.f32.mrb[35].mxu0 }
0x1534   : > { %v10201_v52 = vpop.f32.mrb[36].mxu0 }
0x1535   : > { %v10203_v59 = vpop.f32.mrb[37].mxu0 }
0x153c   : > { %v10205_v62 = vpop.f32.mrb[38].mxu0 }
0x153d   : > { %v10207_v60 = vpop.f32.mrb[39].mxu0 }
0x1596   : > { %v7041_v42 = vpop.f32.mrb[40].mxu0 }
0x1597   : > { %v7055_v3 = vpop.f32.mrb[52].mxu1  ;;  %v4780_v6 = vpop.f32.mrb[41].mxu0  ;;  %5151 = vrot.lane.b32.xlu1 %v7041_v42, %s10567_s20 }
0x1598   : > { %5183 = vrot.lane.b32.xlu0 %v7055_v3, %s10557_s7  ;;  %v4941_v11 = vpop.f32.mrb[53].mxu1 }
0x159c   : > { %5149 = vrot.lane.b32.xlu0 %v4780_v6, %s10567_s20 }
0x159e   : > { %v7044_v13 = vpop.f32.mrb[42].mxu0 }
0x159f   : > { %v4790_v17 = vpop.f32.mrb[43].mxu0  ;;  %5155 = vrot.lane.b32.xlu1 %v7044_v13, %s10567_s20  ;;  %v7058_v0 = vpop.f32.mrb[54].mxu1 }
0x15a0   : > { %5181 = vrot.lane.b32.xlu0 %v4941_v11, %s10557_s7  ;;  %v4951_v45 = vpop.f32.mrb[55].mxu1 }
0x15a3   : > { %5187 = vrot.lane.b32.xlu1 %v7058_v0, %s10557_s7 }
0x15a4   : > { %5153 = vrot.lane.b32.xlu0 %v4790_v17, %s10567_s20 }
0x15a6   : > { %v7047_v22 = vpop.f32.mrb[44].mxu0 }
0x15a7   : > { %v4800_v23 = vpop.f32.mrb[45].mxu0  ;;  %5159 = vrot.lane.b32.xlu1 %v7047_v22, %s10567_s20  ;;  %v7061_v24 = vpop.f32.mrb[56].mxu1 }
0x15a8   : > { %5185 = vrot.lane.b32.xlu0 %v4951_v45, %s10557_s7  ;;  %v4961_v57 = vpop.f32.mrb[57].mxu1 }
0x15ab   : > { %5191 = vrot.lane.b32.xlu1 %v7061_v24, %s10557_s7 }
0x15ac   : > { %5157 = vrot.lane.b32.xlu0 %v4800_v23, %s10567_s20 }
0x15ae   : > { %v7050_v29 = vpop.f32.mrb[46].mxu0 }
0x15af   : > { %v4810_v32 = vpop.f32.mrb[47].mxu0  ;;  %5163 = vrot.lane.b32.xlu1 %v7050_v29, %s10567_s20  ;;  %v7064_v30 = vpop.f32.mrb[58].mxu1 }
0x15b0   : > { %5189 = vrot.lane.b32.xlu0 %v4961_v57, %s10557_s7  ;;  %v4971_v33 = vpop.f32.mrb[59].mxu1 }
0x15b3   : > { %5195 = vrot.lane.b32.xlu1 %v7064_v30, %s10557_s7  ;;  %v8032_v30 = vld [vmem:[%s9231_s1 + $0x8] sm:$0xff] }
0x15b4   : > { %5161 = vrot.lane.b32.xlu0 %v4810_v32, %s10567_s20  ;;  %s8297_s20 = scalar_lea.vmem %s5545_s22, 128 }
0x15b5   : > { %p8298_p10 = scmp.ne.s32.totalorder %s5545_s22, %s8297_s20 }
0x15b6   : > { %v7069_v46 = vpop.f32.mrb[48].mxu0 }
0x15b7   : > { %v5102_v27 = vpop.f32.mrb[49].mxu0  ;;  %5215 = vrot.lane.b32.xlu1 %v7069_v46, %s10568_s15  ;;  %v8033_v46 = vld [vmem:[%s9231_s1] sm:$0xff]  ;;  %p8299_p9 = pnand %p8298_p10, %p10571_p5 }
0x15b8   : > { %5193 = vrot.lane.b32.xlu0 %v4971_v33, %s10557_s7 }
0x15b9   : > { %p8300_p0 = pneg %p8299_p9 }
0x15bc   : > { %5213 = vrot.lane.b32.xlu0 %v5102_v27, %s10568_s15 }
0x15be   : > { %v7072_v12 = vpop.f32.mrb[50].mxu0 }
0x15bf   : > { %v5112_v35 = vpop.f32.mrb[51].mxu0  ;;  %5219 = vrot.lane.b32.xlu1 %v7072_v12, %s10568_s15 }
0x15c0   : > { %5217 = vrot.lane.b32.xlu0 %v5112_v35, %s10568_s15 }
0x15c6   : > { %v7075_v31 = vpop.f32.mrb[52].mxu0 }
0x15c7   : > { %v5122_v5 = vpop.f32.mrb[53].mxu0  ;;  %5223 = vrot.lane.b32.xlu1 %v7075_v31, %s10568_s15 }
0x15c8   : > { %5221 = vrot.lane.b32.xlu0 %v5122_v5, %s10568_s15  ;;  %v8034_v5 = vld [vmem:[%s9231_s1 + $0x18] sm:$0xff] }
0x15ce   : > { %v7078_v36 = vpop.f32.mrb[54].mxu0 }
0x15cf   : > { %v5132_v34 = vpop.f32.mrb[55].mxu0  ;;  %5227 = vrot.lane.b32.xlu1 %v7078_v36, %s10568_s15 }
0x15d0   : > { %5225 = vrot.lane.b32.xlu0 %v5132_v34, %s10568_s15  ;;  %s8438_s15 = smov [#allocation17]  }
0x15d1   : > { %s8301_s7 = sshll.u32 %s8438_s15, 4  ;;  %s8302_s7 = int_to_ptr.vmem [resolvable:$false] %s8301_s7 }
0x15d2   : > { %s8303_s23 = scalar_lea.vmem %s8302_s7, 256  ;;  %p8304_p7 = scmp.lt.s32.totalorder %s5545_s22, %s8302_s7 }
0x15d3   : > { %p8305_p11 = scmp.lt.s32.totalorder %s8303_s23, %s8297_s20 }
0x15d5   : > { %p8306_p8 = por %p8305_p11, %p8304_p7 }
0x15d7   : > { %p8307_p4 = pnand %p8306_p8, %p8300_p0 }
0x1609   : > { %v5152_v38 = vpop.permute.xlu1 %5151 }
0x160a   : > { %v5184_v26 = vpop.permute.xlu0 %5183  ;;  %v5238_v47 = vsel %vm2626_vm5, %v10193_v14, %v5152_v38 }
0x160b   : > { %v5246_v6 = vsel %vm1374_vm1, %v5238_v47, %v5184_v26  ;;  %v8035_v26 = vld [vmem:[%s9231_s1 + $0x10] sm:$0xff] }
0x160c   : > { %v8039_v47 = vld [vmem:[%s9231_s1 + $0x30] sm:$0xff] }
0x160e   : > { %v5150_v50 = vpop.permute.xlu0 %5149 }
0x160f   : > { %v5237_v58 = vsel %vm2626_vm5, %v10195_v51, %v5150_v50 }
0x1611   : > { %v5156_v16 = vpop.permute.xlu1 %5155 }
0x1612   : > { %v5182_v2 = vpop.permute.xlu0 %5181  ;;  %v5240_v51 = vsel %vm2626_vm5, %v10197_v54, %v5156_v16 }
0x1613   : > { %v5245_v42 = vsel %vm1374_vm1, %v5237_v58, %v5182_v2 }
0x1615   : > { %v5188_v9 = vpop.permute.xlu1 %5187 }
0x1616   : > { %v5154_v39 = vpop.permute.xlu0 %5153  ;;  %v5248_v19 = vsel %vm1374_vm1, %v5240_v51, %v5188_v9 }
0x1617   : > { %v5239_v17 = vsel %vm2626_vm5, %v10199_v1, %v5154_v39  ;;  %v8036_v39 = vld [vmem:[%s9231_s1 + $0x28] sm:$0xff] }
0x1619   : > { %v5160_v55 = vpop.permute.xlu1 %5159 }
0x161a   : > { %v5186_v56 = vpop.permute.xlu0 %5185  ;;  %v5242_v54 = vsel %vm2626_vm5, %v10201_v52, %v5160_v55 }
0x161b   : > { %v5247_v0 = vsel %vm1374_vm1, %v5239_v17, %v5186_v56  ;;  %v8037_v56 = vld [vmem:[%s9231_s1 + $0x20] sm:$0xff] }
0x161d   : > { %v5192_v61 = vpop.permute.xlu1 %5191 }
0x161e   : > { %v5158_v7 = vpop.permute.xlu0 %5157  ;;  %v5250_v22 = vsel %vm1374_vm1, %v5242_v54, %v5192_v61 }
0x161f   : > { %v5241_v1 = vsel %vm2626_vm5, %v10203_v59, %v5158_v7 }
0x1621   : > { %v5164_v28 = vpop.permute.xlu1 %5163 }
0x1622   : > { %v5190_v8 = vpop.permute.xlu0 %5189  ;;  %v5244_v52 = vsel %vm2626_vm5, %v10205_v62, %v5164_v28 }
0x1623   : > { %v5249_v20 = vsel %vm1374_vm1, %v5241_v1, %v5190_v8 }
0x1625   : > { %v5196_v41 = vpop.permute.xlu1 %5195 }
0x1626   : > { %v5162_v40 = vpop.permute.xlu0 %5161  ;;  %v5252_v25 = vsel %vm1374_vm1, %v5244_v52, %v5196_v41  ;;  %v8038_v41 = vld [vmem:[%s9231_s1 + $0x38] sm:$0xff]  ;;  %s5940_s1 = sshll.u32 %s8608_s10, 7 }
0x1627   : > { %v5243_v59 = vsel %vm2626_vm5, %v10207_v60, %v5162_v40  ;;  %v5929_v60 = vld [vmem:[%s10569_s27] ss:$0 sm:$0xff]  ;;  %s10320_s12 = scalar_lea.hbm %s10570_s18, %s5940_s1 }
0x1629   : > { %v5216_v48 = vpop.permute.xlu1 %5215 }
0x162a   : > { %v5194_v44 = vpop.permute.xlu0 %5193  ;;  %v5254_v13 = vsel %vm3329_vm7, %v5246_v6, %v5216_v48 }
0x162b   : > { %v5251_v53 = vsel %vm1374_vm1, %v5243_v59, %v5194_v44 }
0x162e   : > { %v5214_v3 = vpop.permute.xlu0 %5213 }
0x162f   : > { %v5253_v11 = vsel %vm3329_vm7, %v5245_v42, %v5214_v3 }
0x1630   : > { %7095 = vmatprep.mubr.msk.f32.mxu1 %vm2021_vm3, %v5253_v11 }
0x1631   : > { %7096 = vmatmul.mubr.msk.f32.vlgmr.msra.gmra.mrb[60].mxu1 %vm2021_vm3, %v5254_v13  ;;  %v5220_v14 = vpop.permute.xlu1 %5219 }
0x1632   : > { %v5218_v18 = vpop.permute.xlu0 %5217  ;;  %v5256_v15 = vsel %vm3329_vm7, %v5248_v19, %v5220_v14 }
0x1633   : > { %v5255_v45 = vsel %vm3329_vm7, %v5247_v0, %v5218_v18 }
0x1634   : > { %7098 = vmatprep.mubr.msk.f32.mxu1 %vm2021_vm3, %v5255_v45 }
0x1635   : > { %7099 = vmatmul.mubr.msk.f32.gmra.mrb[62].mxu1 %vm2021_vm3, %v5256_v15 }
0x1639   : > { %v5224_v43 = vpop.permute.xlu1 %5223 }
0x163a   : > { %v5222_v21 = vpop.permute.xlu0 %5221  ;;  %v5258_v24 = vsel %vm3329_vm7, %v5250_v22, %v5224_v43 }
0x163b   : > { %v5257_v23 = vsel %vm3329_vm7, %v5249_v20, %v5222_v21 }
0x163c   : > { %7101 = vmatprep.mubr.msk.f32.mxu1 %vm2021_vm3, %v5257_v23 }
0x163d   : > { %7102 = vmatmul.mubr.msk.f32.gmra.mrb[64].mxu1 %vm2021_vm3, %v5258_v24 }
0x1641   : > { %v5228_v49 = vpop.permute.xlu1 %5227 }
0x1642   : > { %v5226_v57 = vpop.permute.xlu0 %5225  ;;  %v5260_v10 = vsel %vm3329_vm7, %v5252_v25, %v5228_v49 }
0x1643   : > { %v5259_v4 = vsel %vm3329_vm7, %v5251_v53, %v5226_v57 }
0x1644   : > { %7104 = vmatprep.mubr.msk.f32.mxu1 %vm2021_vm3, %v5259_v4 }
0x1645   : > { %7105 = vmatmul.mubr.msk.f32.gmra.mrb[66].mxu1 %vm2021_vm3, %v5260_v10 }
0x1704   : > { %v7097_v37 = vpop.f32.mrb[60].mxu1 }
0x1705   : > { %v5363_v62 = vadd.f32 %v7097_v37, %v5929_v60  ;;  %v5357_v29 = vpop.f32.mrb[61].mxu1 }
0x1706   : > { %v5358_v32 = vadd.f32 %v5929_v60, %v5357_v29 }
0x1707   : > { %v5397_v33 = vadd.f32 %v8032_v30, %v5363_v62 }
0x1708   : > { %v5396_v27 = vadd.f32 %v8033_v46, %v5358_v32  ;;  %v7100_v12 = vpop.f32.mrb[62].mxu1 }
0x1709   : > { %5406 = vadd.xlane.f32.xlu1 %v5397_v33  ;;  %v5373_v35 = vadd.f32 %v7100_v12, %v5929_v60  ;;  %v5367_v31 = vpop.f32.mrb[63].mxu1 }
0x170a   : > { %5404 = vadd.xlane.f32.xlu0 %v5396_v27  ;;  %v5368_v34 = vadd.f32 %v5929_v60, %v5367_v31 }
0x170b   : > { %v5399_v36 = vadd.f32 %v8034_v5, %v5373_v35 }
0x170c   : > { %v5398_v38 = vadd.f32 %v8035_v26, %v5368_v34 }
0x170e   : > { %5410 = vadd.xlane.f32.xlu0 %v5399_v36 }
0x1710   : > { %v7103_v50 = vpop.f32.mrb[64].mxu1 }
0x1711   : > { %v5383_v16 = vadd.f32 %v7103_v50, %v5929_v60  ;;  %v5377_v2 = vpop.f32.mrb[65].mxu1 }
0x1712   : > { %5408 = vadd.xlane.f32.xlu0 %v5398_v38  ;;  %v5378_v9 = vadd.f32 %v5929_v60, %v5377_v2 }
0x1713   : > { %v5401_v55 = vadd.f32 %v8036_v39, %v5383_v16 }
0x1714   : > { %v5400_v61 = vadd.f32 %v8037_v56, %v5378_v9 }
0x1716   : > { %5414 = vadd.xlane.f32.xlu0 %v5401_v55  ;;  %5412 = vadd.xlane.f32.xlu1 %v5400_v61 }
0x1718   : > { %v7106_v7 = vpop.f32.mrb[66].mxu1 }
0x1719   : > { %v5393_v28 = vadd.f32 %v7106_v7, %v5929_v60  ;;  %v5387_v8 = vpop.f32.mrb[67].mxu1 }
0x171a   : > { %v5388_v40 = vadd.f32 %v5929_v60, %v5387_v8 }
0x171b   : > { %v5403_v44 = vadd.f32 %v8038_v41, %v5393_v28 }
0x171c   : > { %v5402_v58 = vadd.f32 %v8039_v47, %v5388_v40 }
0x171d   : > { %5418 = vadd.xlane.f32.xlu0 %v5403_v44 }
0x171e   : > { %5416 = vadd.xlane.f32.xlu1 %v5402_v58 }
0x1796   : > { %v5407_v48 = vpop.xlane.xlu1 %5406 }
0x1797   : > { %v5421_v42 = vmul.f32 0.0078125, %v5407_v48  ;;  %v5405_v3 = vpop.xlane.xlu0 %5404 }
0x1798   : > { %v5420_v6 = vmul.f32 0.0078125, %v5405_v3 }
0x1799   : > { %v10284_v11 = vsub.f32 %v5397_v33, %v5421_v42 }
0x179a   : > { %v10286_v13 = vsub.f32 %v5396_v27, %v5420_v6 }
0x179b   : > { %v5411_v17 = vpop.xlane.xlu0 %5410  ;;  %v5437_v14 = vmul.f32 %v10284_v11, %v10284_v11 }
0x179c   : > { %v5423_v51 = vmul.f32 0.0078125, %v5411_v17  ;;  %v5436_v0 = vmul.f32 %v10286_v13, %v10286_v13 }
0x179d   : > { %5446 = vadd.xlane.f32.xlu0 %v5437_v14 }
0x179e   : > { %v10292_v18 = vsub.f32 %v5399_v36, %v5423_v51  ;;  %5444 = vadd.xlane.f32.xlu1 %v5436_v0 }
0x179f   : > { %v5409_v19 = vpop.xlane.xlu0 %5408 }
0x17a0   : > { %v5422_v45 = vmul.f32 0.0078125, %v5409_v19  ;;  %v5439_v15 = vmul.f32 %v10292_v18, %v10292_v18 }
0x17a2   : > { %v10296_v1 = vsub.f32 %v5398_v38, %v5422_v45  ;;  %5450 = vadd.xlane.f32.xlu0 %v5439_v15 }
0x17a3   : > { %v5415_v43 = vpop.xlane.xlu0 %5414  ;;  %v5413_v54 = vpop.xlane.xlu1 %5412 }
0x17a4   : > { %v5425_v20 = vmul.f32 0.0078125, %v5415_v43  ;;  %v5424_v21 = vmul.f32 0.0078125, %v5413_v54  ;;  %v5438_v22 = vmul.f32 %v10296_v1, %v10296_v1 }
0x17a6   : > { %v10300_v23 = vsub.f32 %v5401_v55, %v5425_v20  ;;  %v10302_v24 = vsub.f32 %v5400_v61, %v5424_v21  ;;  %5448 = vadd.xlane.f32.xlu1 %v5438_v22 }
0x17a8   : > { %v5441_v59 = vmul.f32 %v10300_v23, %v10300_v23  ;;  %v5440_v49 = vmul.f32 %v10302_v24, %v10302_v24 }
0x17aa   : > { %5454 = vadd.xlane.f32.xlu0 %v5441_v59  ;;  %5452 = vadd.xlane.f32.xlu1 %v5440_v49  ;;  %v5419_v52 = vpop.xlane.xlu0 %5418 }
0x17ab   : > { %v5427_v53 = vmul.f32 0.0078125, %v5419_v52  ;;  %v5417_v57 = vpop.xlane.xlu1 %5416 }
0x17ac   : > { %v5426_v25 = vmul.f32 0.0078125, %v5417_v57 }
0x17ad   : > { %v10308_v4 = vsub.f32 %v5403_v44, %v5427_v53 }
0x17ae   : > { %v10310_v10 = vsub.f32 %v5402_v58, %v5426_v25 }
0x17af   : > { %v5443_v60 = vmul.f32 %v10308_v4, %v10308_v4 }
0x17b0   : > { %v5442_v37 = vmul.f32 %v10310_v10, %v10310_v10 }
0x17b1   : > { %5458 = vadd.xlane.f32.xlu0 %v5443_v60 }
0x17b2   : > { %5456 = vadd.xlane.f32.xlu1 %v5442_v37 }
0x17b3   : > { %8310 = shalt.err (!%p8307_p4)
}
0x17b4   : > { %s8311_s19 = scalar_lea.hbm %s10320_s12, 128  ;;  %s8315_s1 = scalar_lea.hbm %s10570_s18, 256 }
0x17b5   : > { %p8312_p12 = scmp.ne.s32.totalorder %s10320_s12, %s8311_s19  ;;  %p8316_p3 = scmp.lt.u32.totalorder %s10320_s12, %s10570_s18 }
0x17b6   : > { %p8317_p2 = scmp.lt.u32.totalorder %s8315_s1, %s8311_s19  ;;  %p8319_p10 = scmp.lt.u32.totalorder %s8311_s19, %s10320_s12 }
0x17b7   : > { %p8313_p13 = pnand %p8312_p12, %p10571_p5 }
0x17b8   : > { %p8318_p6 = por %p8317_p2, %p8316_p3 }
0x17b9   : > { %p8314_p1 = pneg %p8313_p13 }
0x17ba   : > { %p8320_p9 = por %p8319_p10, %p8318_p6 }
0x17bc   : > { %p8321_p0 = pnand %p8320_p9, %p8314_p1 }
0x17be   : > { %8324 = shalt.err (!%p8321_p0)
}
0x17bf   : > { %7671 = dma.vmem_to_hbm [thread:$0]  (%p10571_p5), %s5545_s22, 128, %s10320_s12, %s5526_s17   ;;  %v5494_v5 = vsub.s32 6, %v9076_v63  ;;  %v5506_v34 = vsub.s32 7, %v9076_v63  ;;  %v8040_v16 = vld [vmem:[%s10443_s26] sm:$0xff] }
0x17c0   : > { %s5800_s17 = sshll.u32 %s8889_s14, 6  ;;  %s5947_s15 = sshll.u32 %s8608_s10, 10 }
0x17c1   : > { %v5495_v2 = vrot.slane %v8040_v16, %v5494_v5  ;;  %v5507_v61 = vrot.slane %v8040_v16, %v5506_v34  ;;  %s10351_s20 = scalar_lea.vmem [#allocation18], %s5800_s17  ;;  %s10572_s13 = sld [smem:[#allocation54_spill]] }
0x17c2   : > { %s5557_s7 = sshll.u32 %s10351_s20, 4  ;;  %s5531_s1 = scalar_lea.sflag [#allocation19], %s8889_s14  ;;  %s10371_s7 = int_to_ptr.vmem [resolvable:$true] %s5557_s7 }
0x17c3   : > { %s8325_s2 = scalar_lea.vmem %s10371_s7, 1024  ;;  %s8439_s10 = smov [#allocation18]  }
0x17c4   : > { %p8326_p7 = scmp.ne.s32.totalorder %s10371_s7, %s8325_s2  ;;  %s8329_s0 = sshll.u32 %s8439_s10, 4  ;;  %s8330_s0 = int_to_ptr.vmem [resolvable:$false] %s8329_s0 }
0x17c5   : > { %s8331_s12 = scalar_lea.vmem %s8330_s0, 2048  ;;  %p8332_p4 = scmp.lt.s32.totalorder %s10371_s7, %s8330_s0 }
0x17c6   : > { %p8327_p11 = pnand %p8326_p7, %p10571_p5  ;;  %p8333_p12 = scmp.lt.s32.totalorder %s8331_s12, %s8325_s2 }
0x17c7   : > { %s10369_s27 = scalar_lea.hbm %s10572_s13, %s5947_s15 }
0x17c8   : > { %p8328_p8 = pneg %p8327_p11  ;;  %p8334_p13 = por %p8333_p12, %p8332_p4 }
0x17ca   : > { %p8335_p1 = pnand %p8334_p13, %p8328_p8 }
0x182a   : > { %v5447_v62 = vpop.xlane.xlu0 %5446 }
0x182b   : > { %v5461_v29 = vmul.f32 0.0078125, %v5447_v62  ;;  %v5445_v32 = vpop.xlane.xlu1 %5444 }
0x182c   : > { %v5460_v30 = vmul.f32 0.0078125, %v5445_v32 }
0x182d   : > { %v5469_v33 = vadd.f32 1e-05, %v5461_v29 }
0x182e   : > { %v5468_v46 = vadd.f32 1e-05, %v5460_v30 }
0x182f   : > { %8014 = vrsqrt.f32 %v5469_v33  ;;  %v5451_v27 = vpop.xlane.xlu0 %5450 }
0x1830   : > { %8016 = vrsqrt.f32 %v5468_v46  ;;  %v5463_v12 = vmul.f32 0.0078125, %v5451_v27 }
0x1832   : > { %v5471_v35 = vadd.f32 1e-05, %v5463_v12 }
0x1833   : > { %v5449_v31 = vpop.xlane.xlu1 %5448 }
0x1834   : > { %8018 = vrsqrt.f32 %v5471_v35  ;;  %v5462_v36 = vmul.f32 0.0078125, %v5449_v31 }
0x1836   : > { %v5470_v26 = vadd.f32 1e-05, %v5462_v36 }
0x1837   : > { %v5455_v38 = vpop.xlane.xlu0 %5454  ;;  %v5453_v50 = vpop.xlane.xlu1 %5452 }
0x1838   : > { %8020 = vrsqrt.f32 %v5470_v26  ;;  %v5465_v9 = vmul.f32 0.0078125, %v5455_v38  ;;  %v5464_v39 = vmul.f32 0.0078125, %v5453_v50 }
0x1839   : > { %v8015_v55 = vpop.eup %8014 }
0x183a   : > { %v8017_v56 = vpop.eup %8016  ;;  %v5485_v7 = vmul.f32 %v8015_v55, %v10284_v11  ;;  %v5473_v28 = vadd.f32 1e-05, %v5465_v9  ;;  %v5472_v8 = vadd.f32 1e-05, %v5464_v39 }
0x183b   : > { %v5484_v63 = vmul.f32 %v8017_v56, %v10286_v13 }
0x183c   : > { %v5497_v40 = vmul.f32 %v5495_v2, %v5485_v7  ;;  %8022 = vrsqrt.f32 %v5473_v28 }
0x183d   : > { %v5496_v41 = vmul.f32 %v5495_v2, %v5484_v63  ;;  %8024 = vrsqrt.f32 %v5472_v8 }
0x183e   : > { %v8019_v44 = vpop.eup %8018  ;;  %v5509_v47 = vadd.f32 %v5507_v61, %v5497_v40  ;;  %v5459_v58 = vpop.xlane.xlu0 %5458 }
0x183f   : > { %v5508_v48 = vadd.f32 %v5507_v61, %v5496_v41  ;;  %v5487_v42 = vmul.f32 %v8019_v44, %v10292_v18  ;;  %v5467_v3 = vmul.f32 0.0078125, %v5459_v58  ;;  %v5457_v6 = vpop.xlane.xlu1 %5456 }
0x1840   : > { %5518 = vst [vmem:[%s10351_s20 + $0x8] sm:$0xff] %v5509_v47  ;;  %v5466_v11 = vmul.f32 0.0078125, %v5457_v6 }
0x1841   : > { %5517 = vst [vmem:[%s10351_s20] sm:$0xff] %v5508_v48  ;;  %v5499_v13 = vmul.f32 %v5495_v2, %v5487_v42  ;;  %v5475_v17 = vadd.f32 1e-05, %v5467_v3 }
0x1842   : > { %v8021_v14 = vpop.eup %8020  ;;  %v5474_v51 = vadd.f32 1e-05, %v5466_v11 }
0x1843   : > { %v5511_v0 = vadd.f32 %v5507_v61, %v5499_v13  ;;  %v5486_v19 = vmul.f32 %v8021_v14, %v10296_v1  ;;  %8026 = vrsqrt.f32 %v5475_v17 }
0x1844   : > { %8028 = vrsqrt.f32 %v5474_v51 }
0x1845   : > { %5520 = vst [vmem:[%s10351_s20 + $0x18] sm:$0xff] %v5511_v0  ;;  %v5498_v18 = vmul.f32 %v5495_v2, %v5486_v19 }
0x1846   : > { %v8023_v45 = vpop.eup %8022 }
0x1847   : > { %v8025_v15 = vpop.eup %8024  ;;  %v5510_v43 = vadd.f32 %v5507_v61, %v5498_v18  ;;  %v5489_v54 = vmul.f32 %v8023_v45, %v10300_v23 }
0x1848   : > { %v5488_v20 = vmul.f32 %v8025_v15, %v10302_v24 }
0x1849   : > { %5519 = vst [vmem:[%s10351_s20 + $0x10] sm:$0xff] %v5510_v43  ;;  %v5501_v21 = vmul.f32 %v5495_v2, %v5489_v54 }
0x184a   : > { %v5500_v22 = vmul.f32 %v5495_v2, %v5488_v20 }
0x184b   : > { %v5513_v59 = vadd.f32 %v5507_v61, %v5501_v21 }
0x184c   : > { %v5512_v1 = vadd.f32 %v5507_v61, %v5500_v22 }
0x184d   : > { %v8027_v49 = vpop.eup %8026  ;;  %5522 = vst [vmem:[%s10351_s20 + $0x28] sm:$0xff] %v5513_v59 }
0x184e   : > { %v8029_v52 = vpop.eup %8028  ;;  %5521 = vst [vmem:[%s10351_s20 + $0x20] sm:$0xff] %v5512_v1  ;;  %v5491_v53 = vmul.f32 %v8027_v49, %v10308_v4 }
0x184f   : > { %v5490_v57 = vmul.f32 %v8029_v52, %v10310_v10 }
0x1850   : > { %v5503_v23 = vmul.f32 %v5495_v2, %v5491_v53 }
0x1851   : > { %v5502_v24 = vmul.f32 %v5495_v2, %v5490_v57 }
0x1852   : > { %v5515_v25 = vadd.f32 %v5507_v61, %v5503_v23 }
0x1853   : > { %v5514_v60 = vadd.f32 %v5507_v61, %v5502_v24 }
0x1854   : > { %5524 = vst [vmem:[%s10351_s20 + $0x38] sm:$0xff] %v5515_v25 }
0x1855   : > { %5523 = vst [vmem:[%s10351_s20 + $0x30] sm:$0xff] %v5514_v60 }
0x1856   : > { %8338 = shalt.err (!%p8335_p1)
}
0x1857   : > { %s8339_s22 = scalar_lea.hbm %s10369_s27, 1024  ;;  %s8343_s15 = scalar_lea.hbm %s10572_s13, 2048 }
0x1858   : > { %p8340_p3 = scmp.ne.s32.totalorder %s10369_s27, %s8339_s22  ;;  %p8344_p10 = scmp.lt.u32.totalorder %s10369_s27, %s10572_s13 }
0x1859   : > { %p8345_p9 = scmp.lt.u32.totalorder %s8343_s15, %s8339_s22  ;;  %p8347_p7 = scmp.lt.u32.totalorder %s8339_s22, %s10369_s27 }
0x185a   : > { %p8341_p2 = pnand %p8340_p3, %p10571_p5 }
0x185b   : > { %p8346_p0 = por %p8345_p9, %p8344_p10 }
0x185c   : > { %p8342_p6 = pneg %p8341_p2 }
0x185d   : > { %p8348_p11 = por %p8347_p7, %p8346_p0 }
0x185f   : > { %p8349_p8 = pnand %p8348_p11, %p8342_p6 }
0x1861   : > { %8352 = shalt.err (!%p8349_p8)
}
0x1862   : > { %s8440_s2 = smov 128   ;;  %s8441_s10 = smov 8  }
0x1863   : > { %7672 = dma.vmem_to_hbm [thread:$0]  (%p10571_p5), %s10371_s7, 1024, %s10369_s27, %s5531_s1, %s8440_s2, %s8440_s2, %s8441_s10  }
0x1864 PF: > { %s5572_s0 = sand.u32 1, %s8403_s8   ;;  %p10573_p4 = scmp.ne.s32.totalorder %s10531_s4, 0 }
0x1865   : > { %p10574_p12 = scmp.ge.s32.totalorder %s8415_s30, 2  ;;  %s5573_s12 = scalar_lea.sflag [#allocation4], %s5572_s0 }
0x1867   : > { %p7705_p13 = pnand %p10574_p12, %p10573_p4 }
0x1869   : > { %8394 = dma.done.wait (!%p7705_p13), %s5573_s12, 128  }
0x186a   : > { %8396 = vsyncadd (!%p7705_p13), %s5573_s12, 4294967168  ;;  %s5582_s22 = scalar_lea.sflag [#allocation19], %s5572_s0 }
0x186b   : > { %8398 = dma.done.wait (!%p7705_p13), %s5582_s22, 1024  }
0x186c   : > { %8400 = vsyncadd (!%p7705_p13), %s5582_s22, 4294966272  ;;  %p51_p5 = scmp.ge.s32.totalorder %s8790_s11, 4   ;;  %s10575_s8 = smov %s8407_s5 }
0x186d   : > { %s10576_s5 = smov %s8411_s9  ;;  %s10577_s9 = smov %s8802_s3 }
0x186e   : > { %s10578_s30 = smov %s8790_s11  ;;  %53 = sbr.rel (!%p51_p5) target bundleno = 40 (0x28), region = 237 }
0x1875   :  { %5587 = vsyncpa [#allocation3], 1 }
0x1876   :  { %5589 = vsyncpa [#allocation3 + $0x1], 1 }
0x1877   :  { %5590 = vsyncpa [#allocation6], 1 }
0x1878   :  { %5592 = vsyncpa [#allocation6 + $0x1], 1 }
0x1879   :  { %5593 = vsyncpa [#allocation9], 1 }
0x187a   :  { %5594 = vsyncpa [#allocation12], 1 }
0x187b   :  { %5595 = vsyncpa [#allocation15], 1 }
0x187c   :  { %5596 = vsyncpa [#allocation4], 1 }
0x187d   :  { %5598 = vsyncpa [#allocation4 + $0x1], 1 }
0x187e   :  { %5599 = vsyncpa [#allocation19], 1 }
0x187f   :  { %5601 = vsyncpa [#allocation19 + $0x1], 1 }

// kernel: tpu_custom_call.1
= control target key start
LH: loop header
LB: loop body
LE: loop exit
PB: predicated region body
PF: predicated region fallthrough
CT: control target
= control target key end

     0   :  { %s10417_s0 = inlined_call_operand.hbm [shape: f32[2,8,128], index: 0, kind: input, shape index: {}]   ;;  %s10418_s1 = inlined_call_operand.vmem [shape: f32[2,64,128], index: 1, kind: input, shape index: {}]   ;;  %s10419_s2 = inlined_call_operand.hbm [shape: f32[2,8,128], index: 2, kind: input, shape index: {}]   ;;  %s10420_s3 = inlined_call_operand.vmem [shape: f32[2,64,128], index: 3, kind: input, shape index: {}]   ;;  %s10421_s4 = inlined_call_operand.vmem [shape: f32[128,128], index: 4, kind: input, shape index: {}]   ;;  %s10422_s5 = inlined_call_operand.vmem [shape: f32[128,128], index: 5, kind: input, shape index: {}]   ;;  %s10423_s6 = inlined_call_operand.vmem [shape: f32[128,128], index: 6, kind: input, shape index: {}]   ;;  %s10424_s7 = inlined_call_operand.hbm [shape: f32[128,128], index: 7, kind: input, shape index: {}]   ;;  %s10425_s8 = inlined_call_operand.hbm [shape: f32[3,128], index: 8, kind: input, shape index: {}]   ;;  %s10426_s9 = inlined_call_operand.vmem [shape: f32[1,128], index: 9, kind: input, shape index: {}]   ;;  %s10427_s10 = inlined_call_operand.vmem [shape: f32[128,64], index: 10, kind: input, shape index: {}]   ;;  %s10428_s11 = inlined_call_operand.vmem [shape: f32[128,64], index: 11, kind: input, shape index: {}]   ;;  %s10429_s12 = inlined_call_operand.vmem [shape: f32[128,64], index: 12, kind: input, shape index: {}]   ;;  %s10430_s13 = inlined_call_operand.hbm [shape: f32[64,128], index: 13, kind: input, shape index: {}]   ;;  %s10431_s14 = inlined_call_operand.hbm [shape: f32[3,64], index: 14, kind: input, shape index: {}]   ;;  %s10432_s15 = inlined_call_operand.hbm [shape: f32[1,128], index: 15, kind: input, shape index: {}]   ;;  %s10433_s16 = inlined_call_operand.vmem [shape: f32[128,256], index: 16, kind: input, shape index: {}]   ;;  %s10434_s17 = inlined_call_operand.vmem [shape: f32[1,256], index: 17, kind: input, shape index: {}]   ;;  %s10435_s18 = inlined_call_operand.vmem [shape: f32[256,128], index: 18, kind: input, shape index: {}]   ;;  %s10436_s19 = inlined_call_operand.hbm [shape: f32[1,128], index: 19, kind: input, shape index: {}]   ;;  %s10437_s20 = inlined_call_operand.vmem [shape: f32[128,64], index: 20, kind: input, shape index: {}]   ;;  %s10438_s21 = inlined_call_operand.vmem [shape: f32[128,64], index: 21, kind: input, shape index: {}]   ;;  %s10439_s22 = inlined_call_operand.vmem [shape: f32[128,64], index: 22, kind: input, shape index: {}]   ;;  %s10440_s23 = inlined_call_operand.hbm [shape: f32[64,128], index: 23, kind: input, shape index: {}]   ;;  %s10441_s24 = inlined_call_operand.vmem [shape: f32[3,64], index: 24, kind: input, shape index: {}]   ;;  %s10442_s25 = inlined_call_operand.vmem [shape: f32[1,128], index: 25, kind: input, shape index: {}]   ;;  %s10443_s26 = inlined_call_operand.vmem [shape: f32[8,128], index: 26, kind: input, shape index: {}]   ;;  %s10444_s27 = inlined_call_operand.hbm [shape: f32[2,8,128], index: 27, kind: output, shape index: {0}]   ;;  %s10445_s28 = inlined_call_operand.hbm [shape: f32[2,64,128], index: 28, kind: output, shape index: {1}]  }
   0x1   :  { %10490 = sst [smem:[#allocation28_spill]] %s10417_s0 }
   0x2   :  { %10491 = sst [smem:[#allocation29_spill]] %s10418_s1 }
   0x3   :  { %10492 = sst [smem:[#allocation30_spill]] %s10419_s2 }
   0x4   :  { %10493 = sst [smem:[#allocation31_spill]] %s10420_s3 }
   0x5   :  { %10494 = sst [smem:[#allocation32_spill]] %s10421_s4 }
   0x6   :  { %10495 = sst [smem:[#allocation33_spill]] %s10422_s5 }
   0x7   :  { %10496 = sst [smem:[#allocation34_spill]] %s10423_s6 }
   0x8   :  { %10497 = sst [smem:[#allocation35_spill]] %s10424_s7 }
   0x9   :  { %10498 = sst [smem:[#allocation36_spill]] %s10425_s8 }
   0xa   :  { %10499 = sst [smem:[#allocation37_spill]] %s10426_s9 }
   0xb   :  { %10500 = sst [smem:[#allocation38_spill]] %s10427_s10 }
   0xc   :  { %10501 = sst [smem:[#allocation39_spill]] %s10428_s11 }
   0xd   :  { %10502 = sst [smem:[#allocation40_spill]] %s10429_s12 }
   0xe   :  { %10503 = sst [smem:[#allocation41_spill]] %s10430_s13 }
   0xf   :  { %10504 = sst [smem:[#allocation42_spill]] %s10431_s14 }
  0x10   :  { %10505 = sst [smem:[#allocation43_spill]] %s10432_s15 }
  0x11   :  { %10506 = sst [smem:[#allocation44_spill]] %s10434_s17 }
  0x12   :  { %10507 = sst [smem:[#allocation45_spill]] %s10435_s18 }
  0x13   :  { %10508 = sst [smem:[#allocation46_spill]] %s10436_s19 }
  0x14   :  { %10509 = sst [smem:[#allocation47_spill]] %s10437_s20 }
  0x15   :  { %10510 = sst [smem:[#allocation48_spill]] %s10438_s21 }
  0x16   :  { %10511 = sst [smem:[#allocation49_spill]] %s10439_s22 }
  0x17   :  { %10512 = sst [smem:[#allocation50_spill]] %s10440_s23 }
  0x18   :  { %10513 = sst [smem:[#allocation51_spill]] %s10441_s24 }
  0x19   :  { %10514 = sst [smem:[#allocation52_spill]] %s10442_s25 }
  0x1a   :  { %10515 = sst [smem:[#allocation53_spill]] %s10444_s27 }
  0x1b   :  { %10516 = sst [smem:[#allocation54_spill]] %s10445_s28 }
  0x1c   :  { %34 = vsyncpa [#allocation3], 0 }
  0x1d   :  { %36 = vsyncpa [#allocation3 + $0x1], 0 }
  0x1e   :  { %37 = vsyncpa [#allocation6], 0 }
  0x1f   :  { %39 = vsyncpa [#allocation6 + $0x1], 0 }
  0x20   :  { %40 = vsyncpa [#allocation9], 0 }
  0x21   :  { %41 = vsyncpa [#allocation12], 0 }
  0x22   :  { %42 = vsyncpa [#allocation15], 0 }
  0x23   :  { %43 = vsyncpa [#allocation4], 0 }
  0x24   :  { %45 = vsyncpa [#allocation4 + $0x1], 0 }
  0x25   :  { %46 = vsyncpa [#allocation19], 0 }
  0x26   :  { %48 = vsyncpa [#allocation19 + $0x1], 0  ;;  %s8587_s8 = smov 0   ;;  %s8589_s5 = smov 0  }
  0x27   :  { %s8591_s9 = smov 0   ;;  %s8593_s30 = smov 0  }
  0x28 LB: > { %s8417_s3 = smov [#allocation7]   ;;  %s8608_s10 = sadd.s32 4294967295, %s8415_s30   ;;  %s8415_s30 = sphi %s8593_s30, %s10578_s30   ;;  %s8411_s9 = sphi %s8591_s9, %s10577_s9   ;;  %s8407_s5 = sphi %s8589_s5, %s10576_s5   ;;  %s8403_s8 = sphi %s8587_s8, %s10575_s8  }
  0x29   : > { %s719_s6 = sshll.u32 %s8417_s3, 4  ;;  %p5776_p0 = scmp.ge.s32.totalorder %s8415_s30, 1  ;;  %s8613_s6 = int_to_ptr.vmem [resolvable:$true] %s719_s6 }
  0x2a   : > { %p10464_p1 = scmp.eq.s32.totalorder %s8608_s10, 0  ;;  %p698_p2 = scmp.lt.s32.totalorder %s8415_s30, 3 }
  0x2b   : > { %s8418_s11 = smov [#allocation8]   ;;  %s8419_s7 = smov [#allocation11]  }
  0x2c   : > { %p8615_p3 = pnand %p5776_p0, %p698_p2  ;;  %s733_s29 = sshll.u32 %s8418_s11, 4  ;;  %s8628_s29 = int_to_ptr.vmem [resolvable:$true] %s733_s29 }
  0x2d   : > { %s769_s12 = sshll.u32 %s8419_s7, 4  ;;  %s10519_s3 = sld [smem:[#allocation35_spill]]  ;;  %s8630_s12 = int_to_ptr.vmem [resolvable:$true] %s769_s12 }
  0x2e   : > { %s10517_s0 = scalar_select %p8615_p3, 1, 0 }
  0x2f   : > { %p7675_p5 = pneg %p8615_p3 }
  0x31   : > { %p8624_p6 = pnand %p7675_p5, %p10464_p1 }
  0x33   : > { %s8041_s28 = scalar_lea.hbm %s10519_s3, 2048  ;;  %p8640_p8 = pneg %p8624_p6 }
  0x34   : > { %p8042_p7 = scmp.ne.s32.totalorder %s10519_s3, %s8041_s28  ;;  %p8048_p11 = scmp.lt.u32.totalorder %s8041_s28, %s10519_s3 }
  0x36   : > { %p8044_p9 = pnand %p8640_p8, %p8042_p7 }
  0x38   : > { %p8045_p10 = pneg %p8044_p9 }
  0x3a   : > { %p8050_p12 = pnand %p8048_p11, %p8045_p10 }
  0x3c   : > { %8053 = shalt.err (!%p8050_p12)
}
  0x3d   : > { %s8054_s25 = scalar_lea.vmem %s8613_s6, 2048  ;;  %p8062_p5 = scmp.lt.s32.totalorder %s8613_s6, %s8613_s6 }
  0x3e   : > { %p8055_p13 = scmp.ne.s32.totalorder %s8613_s6, %s8054_s25  ;;  %p8063_p4 = scmp.lt.s32.totalorder %s8054_s25, %s8054_s25 }
  0x40   : > { %p8057_p0 = pnand %p8055_p13, %p8640_p8  ;;  %p8064_p7 = por %p8063_p4, %p8062_p5 }
  0x42   : > { %p8058_p2 = pneg %p8057_p0 }
  0x44   : > { %p8065_p9 = pnand %p8064_p7, %p8058_p2 }
  0x46   : > { %8068 = shalt.err (!%p8065_p9)
}
  0x47   : > { %s10462_s27 = smov 128   ;;  %s8421_s24 = smov 8  }
  0x48   : > { %7678 = dma.hbm_to_vmem [thread:$0]  (!%p8624_p6), %s10519_s3, 2048, %s8613_s6, [#allocation6], %s10462_s27, %s10462_s27, %s8421_s24  }
  0x49   : > { %s10521_s22 = sld [smem:[#allocation36_spill]] }
  0x4f   : > { %s8069_s25 = scalar_lea.hbm %s10521_s22, 64 }
  0x50   : > { %p8070_p4 = scmp.ne.s32.totalorder %s10521_s22, %s8069_s25  ;;  %p8076_p12 = scmp.lt.u32.totalorder %s8069_s25, %s10521_s22 }
  0x52   : > { %p8072_p10 = pnand %p8070_p4, %p8640_p8 }
  0x54   : > { %p8073_p11 = pneg %p8072_p10 }
  0x56   : > { %p8078_p13 = pnand %p8076_p12, %p8073_p11 }
  0x58   : > { %8081 = shalt.err (!%p8078_p13)
}
  0x59   : > { %s8082_s6 = scalar_lea.vmem %s8628_s29, 64  ;;  %p8090_p7 = scmp.lt.s32.totalorder %s8628_s29, %s8628_s29 }
  0x5a   : > { %p8083_p0 = scmp.ne.s32.totalorder %s8628_s29, %s8082_s6  ;;  %p8091_p9 = scmp.lt.s32.totalorder %s8082_s6, %s8082_s6 }
  0x5c   : > { %p8085_p2 = pnand %p8083_p0, %p8640_p8  ;;  %p8092_p4 = por %p8091_p9, %p8090_p7 }
  0x5e   : > { %p8086_p5 = pneg %p8085_p2 }
  0x60   : > { %p8093_p10 = pnand %p8092_p4, %p8086_p5 }
  0x62   : > { %8096 = shalt.err (!%p8093_p10)
}
  0x63   : > { %7681 = dma.hbm_to_vmem [thread:$0]  (!%p8624_p6), %s10521_s22, 64, %s8628_s29, [#allocation9]  }
  0x64   : > { %s10522_s14 = sld [smem:[#allocation42_spill]] }
  0x6a   : > { %s8097_s28 = scalar_lea.hbm %s10522_s14, 64 }
  0x6b   : > { %p8098_p11 = scmp.ne.s32.totalorder %s10522_s14, %s8097_s28  ;;  %p8104_p0 = scmp.lt.u32.totalorder %s8097_s28, %s10522_s14 }
  0x6d   : > { %p8100_p12 = pnand %p8098_p11, %p8640_p8 }
  0x6f   : > { %p8101_p13 = pneg %p8100_p12 }
  0x71   : > { %p8106_p2 = pnand %p8104_p0, %p8101_p13 }
  0x73   : > { %8109 = shalt.err (!%p8106_p2)
}
  0x74   : > { %s8110_s29 = scalar_lea.vmem %s8630_s12, 64  ;;  %p8118_p4 = scmp.lt.s32.totalorder %s8630_s12, %s8630_s12 }
  0x75   : > { %p8111_p5 = scmp.ne.s32.totalorder %s8630_s12, %s8110_s29  ;;  %p8119_p10 = scmp.lt.s32.totalorder %s8110_s29, %s8110_s29 }
  0x77   : > { %p8113_p7 = pnand %p8111_p5, %p8640_p8  ;;  %p8120_p11 = por %p8119_p10, %p8118_p4 }
  0x79   : > { %p8114_p9 = pneg %p8113_p7 }
  0x7b   : > { %p8121_p12 = pnand %p8120_p11, %p8114_p9 }
  0x7d   : > { %8124 = shalt.err (!%p8121_p12)
}
  0x7e   : > { %7687 = dma.hbm_to_vmem [thread:$0]  (!%p8624_p6), %s10522_s14, 64, %s8630_s12, [#allocation12]  }
  0x7f   : > { %s8422_s18 = smov [#allocation14]   ;;  %s8423_s21 = smov [#allocation10]  }
  0x80   : > { %s800_s20 = sshll.u32 %s8422_s18, 4  ;;  %s755_s28 = sshll.u32 %s8423_s21, 4  ;;  %s801_s20 = int_to_ptr.vmem [resolvable:$true] %s800_s20  ;;  %s756_s28 = int_to_ptr.vmem [resolvable:$true] %s755_s28 }
  0x81   : > { %s10523_s19 = sld [smem:[#allocation46_spill]] }
  0x87   : > { %s8125_s7 = scalar_lea.hbm %s10523_s19, 16 }
  0x88   : > { %p8126_p13 = scmp.ne.s32.totalorder %s10523_s19, %s8125_s7  ;;  %p8132_p5 = scmp.lt.u32.totalorder %s8125_s7, %s10523_s19 }
  0x8a   : > { %p8128_p0 = pnand %p8126_p13, %p8640_p8 }
  0x8c   : > { %p8129_p2 = pneg %p8128_p0 }
  0x8e   : > { %p8134_p7 = pnand %p8132_p5, %p8129_p2 }
  0x90   : > { %8137 = shalt.err (!%p8134_p7)
}
  0x91   : > { %s8138_s12 = scalar_lea.vmem %s801_s20, 16  ;;  %s8145_s17 = scalar_lea.vmem %s801_s20, 32 }
  0x92   : > { %p8139_p9 = scmp.ne.s32.totalorder %s801_s20, %s8138_s12  ;;  %p8146_p11 = scmp.lt.s32.totalorder %s801_s20, %s801_s20 }
  0x93   : > { %p8147_p12 = scmp.lt.s32.totalorder %s8145_s17, %s8138_s12 }
  0x94   : > { %p8141_p4 = pnand %p8139_p9, %p8640_p8 }
  0x95   : > { %p8148_p1 = por %p8147_p12, %p8146_p11 }
  0x96   : > { %p8142_p10 = pneg %p8141_p4 }
  0x98   : > { %p8149_p3 = pnand %p8148_p1, %p8142_p10 }
  0x9a   : > { %8152 = shalt.err (!%p8149_p3)
}
  0x9b   : > { %7693 = dma.hbm_to_vmem [thread:$0]  (!%p8624_p6), %s10523_s19, 16, %s801_s20, [#allocation15]  }
  0x9c   : > { %s10524_s13 = sld [smem:[#allocation41_spill]] }
  0xa2   : > { %s8153_s4 = scalar_lea.hbm %s10524_s13, 1024 }
  0xa3   : > { %p8154_p13 = scmp.ne.s32.totalorder %s10524_s13, %s8153_s4  ;;  %p8160_p3 = scmp.lt.u32.totalorder %s8153_s4, %s10524_s13 }
  0xa5   : > { %p8156_p0 = pnand %p8154_p13, %p8640_p8 }
  0xa7   : > { %p8157_p1 = pneg %p8156_p0 }
  0xa9   : > { %p8162_p2 = pnand %p8160_p3, %p8157_p1 }
  0xab   : > { %8165 = shalt.err (!%p8162_p2)
}
  0xac   : > { %s8166_s12 = scalar_lea.vmem %s756_s28, 1024  ;;  %p8174_p4 = scmp.lt.s32.totalorder %s756_s28, %s756_s28 }
  0xad   : > { %p8167_p5 = scmp.ne.s32.totalorder %s756_s28, %s8166_s12  ;;  %p8175_p10 = scmp.lt.s32.totalorder %s8166_s12, %s8166_s12 }
  0xaf   : > { %p8169_p7 = pnand %p8167_p5, %p8640_p8  ;;  %p8176_p11 = por %p8175_p10, %p8174_p4 }
  0xb1   : > { %p8170_p9 = pneg %p8169_p7 }
  0xb3   : > { %p8177_p12 = pnand %p8176_p11, %p8170_p9 }
  0xb5   : > { %8180 = shalt.err (!%p8177_p12)
}
  0xb6   : > { %s10525_s20 = smov 128   ;;  %s8424_s21 = smov [#allocation13]  }
  0xb7   : > { %7684 = dma.hbm_to_vmem [thread:$0]  (!%p8624_p6), %s10524_s13, 1024, %s756_s28, [#allocation9], %s10525_s20, %s10525_s20, %s8421_s24  }
  0xb8   : > { %s780_s27 = sshll.u32 %s8424_s21, 4  ;;  %s8425_s1 = smov [#allocation16]   ;;  %s781_s27 = int_to_ptr.vmem [resolvable:$true] %s780_s27 }
  0xb9   : > { %s819_s4 = sshll.u32 %s8425_s1, 4  ;;  %s10526_s15 = sld [smem:[#allocation43_spill]]  ;;  %s820_s4 = int_to_ptr.vmem [resolvable:$true] %s819_s4 }
  0xbf   : > { %s8181_s29 = scalar_lea.hbm %s10526_s15, 16 }
  0xc0   : > { %p8182_p13 = scmp.ne.s32.totalorder %s10526_s15, %s8181_s29  ;;  %p8188_p3 = scmp.lt.u32.totalorder %s8181_s29, %s10526_s15 }
  0xc2   : > { %p8184_p0 = pnand %p8182_p13, %p8640_p8 }
  0xc4   : > { %p8185_p1 = pneg %p8184_p0 }
  0xc6   : > { %p8190_p2 = pnand %p8188_p3, %p8185_p1 }
  0xc8   : > { %8193 = shalt.err (!%p8190_p2)
}
  0xc9   : > { %s8194_s28 = scalar_lea.vmem %s781_s27, 16  ;;  %s8201_s18 = scalar_lea.vmem %s781_s27, 32 }
  0xca   : > { %p8195_p5 = scmp.ne.s32.totalorder %s781_s27, %s8194_s28  ;;  %p8202_p4 = scmp.lt.s32.totalorder %s781_s27, %s781_s27 }
  0xcb   : > { %p8203_p10 = scmp.lt.s32.totalorder %s8201_s18, %s8194_s28 }
  0xcc   : > { %p8197_p7 = pnand %p8195_p5, %p8640_p8 }
  0xcd   : > { %p8204_p11 = por %p8203_p10, %p8202_p4 }
  0xce   : > { %p8198_p9 = pneg %p8197_p7 }
  0xd0   : > { %p8205_p12 = pnand %p8204_p11, %p8198_p9 }
  0xd2   : > { %8208 = shalt.err (!%p8205_p12)
}
  0xd3   : > { %7690 = dma.hbm_to_vmem [thread:$0]  (!%p8624_p6), %s10526_s15, 16, %s781_s27, [#allocation12]  }
  0xd4   : > { %s10527_s23 = sld [smem:[#allocation50_spill]] }
  0xda   : > { %s8209_s25 = scalar_lea.hbm %s10527_s23, 1024 }
  0xdb   : > { %p8210_p13 = scmp.ne.s32.totalorder %s10527_s23, %s8209_s25  ;;  %p8216_p3 = scmp.lt.u32.totalorder %s8209_s25, %s10527_s23 }
  0xdd   : > { %p8212_p0 = pnand %p8210_p13, %p8640_p8 }
  0xdf   : > { %p8213_p1 = pneg %p8212_p0 }
  0xe1   : > { %p8218_p2 = pnand %p8216_p3, %p8213_p1 }
  0xe3   : > { %8221 = shalt.err (!%p8218_p2)
}
  0xe4   : > { %s8222_s28 = scalar_lea.vmem %s820_s4, 1024  ;;  %p8230_p4 = scmp.lt.s32.totalorder %s820_s4, %s820_s4 }
  0xe5   : > { %p8223_p5 = scmp.ne.s32.totalorder %s820_s4, %s8222_s28  ;;  %p8231_p10 = scmp.lt.s32.totalorder %s8222_s28, %s8222_s28 }
  0xe7   : > { %p8225_p7 = pnand %p8223_p5, %p8640_p8  ;;  %p8232_p11 = por %p8231_p10, %p8230_p4 }
  0xe9   : > { %p8226_p9 = pneg %p8225_p7 }
  0xeb   : > { %p8233_p12 = pnand %p8232_p11, %p8226_p9 }
  0xed   : > { %8236 = shalt.err (!%p8233_p12)
}
  0xee   : > { %7696 = dma.hbm_to_vmem [thread:$0]  (!%p8624_p6), %s10527_s23, 1024, %s820_s4, [#allocation15], %s10525_s20, %s10525_s20, %s8421_s24  }
  0xef   : > { %s5775_s2 = sadd.s32 4294967294, %s8415_s30   ;;  %s8790_s11 = sadd.s32 1, %s8415_s30  }
  0xf0   : > { %s61_s21 = sadd.s32 1, %s8411_s9  ;;  %s58_s1 = ssub.s32 %s8415_s30, %s8790_s11 }
  0xf1   : > { %p68_p8 = scmp.ne.s32.totalorder %s8411_s9, %s8407_s5  ;;  %p59_p13 = scmp.eq.s32.totalorder %s58_s1, 0 }
  0xf2   : > { %p69_p0 = scmp.eq.s32.totalorder %s8415_s30, 0  ;;  %p74_p1 = scmp.ne.s32.totalorder %s8407_s5, %s8403_s8 }
  0xf3   : > { %p659_p3 = scmp.eq.s32.totalorder %s8608_s10, 1  ;;  %p10528_p5 = scmp.eq.s32.totalorder %s8608_s10, 0 }
  0xf4   : > { %s8802_s3 = scalar_select %p59_p13, %s8411_s9, %s61_s21  }
  0xf5   : > { %p70_p2 = por %p69_p0, %p68_p8  ;;  %p8806_p7 = por %p10528_p5, %p74_p1 }
  0xf6   : > { %p8810_p6 = por %p659_p3, %p68_p8  ;;  %p665_p9 = scmp.eq.s32.totalorder %s5775_s2, 1 }
  0xf7   : > { %s10529_s7 = scalar_select %p8806_p7, 1, 0 }
  0xf8   : > { %s10530_s24 = scalar_select %p8810_p6, 1, 0 }
  0xf9   : > { %p7718_p4 = scmp.lt.s32.totalorder %s8415_s30, 2  ;;  %s842_s20 = sand.u32 1, %s8411_s9  }
  0xfa   : > { %p8816_p10 = por %p665_p9, %p74_p1  ;;  %s8820_s25 = sshll.u32 %s842_s20, 3 }
  0xfb   : > { %s5786_s29 = sshll.u32 %s8415_s30, 7  ;;  %s10532_s17 = sld [smem:[#allocation28_spill]] }
  0xfc   : > { %s10531_s4 = scalar_select %p8816_p10, 1, 0 }
  0xfd   : > { %s846_s27 = scalar_lea.vmem [#allocation2], %s8820_s25  ;;  %p8829_p11 = pnand %p7718_p4, %p70_p2 }
  0xfe   : > { %s853_s18 = sshll.u32 %s846_s27, 4  ;;  %s10534_s13 = sld [smem:[#allocation30_spill]]  ;;  %s8833_s18 = int_to_ptr.vmem [resolvable:$true] %s853_s18 }
  0xff   : > { %s843_s12 = scalar_lea.sflag [#allocation3], %s842_s20  ;;  %p8239_p8 = pneg %p8829_p11 }
 0x101   : > { %s8826_s28 = scalar_lea.hbm %s10532_s17, %s5786_s29  ;;  %s8242_s19 = scalar_lea.hbm %s10532_s17, 256 }
 0x102   : > { %s8237_s14 = scalar_lea.hbm %s8826_s28, 128  ;;  %p8243_p1 = scmp.lt.u32.totalorder %s8826_s28, %s10532_s17 }
 0x103   : > { %p8238_p12 = scmp.ne.s32.totalorder %s8826_s28, %s8237_s14  ;;  %p8244_p3 = scmp.lt.u32.totalorder %s8242_s19, %s8237_s14 }
 0x104   : > { %s8838_s6 = scalar_lea.hbm %s10534_s13, %s5786_s29  ;;  %p8246_p5 = scmp.lt.u32.totalorder %s8237_s14, %s8826_s28 }
 0x105   : > { %p8240_p13 = pnand %p8239_p8, %p8238_p12  ;;  %p8245_p2 = por %p8244_p3, %p8243_p1 }
 0x107   : > { %p8241_p0 = pneg %p8240_p13  ;;  %p8247_p9 = por %p8246_p5, %p8245_p2 }
 0x109   : > { %p8248_p4 = pnand %p8247_p9, %p8241_p0 }
 0x10b   : > { %8251 = shalt.err (!%p8248_p4)
}
 0x10c   : > { %s8252_s20 = scalar_lea.vmem %s8833_s18, 128  ;;  %s8426_s15 = smov [#allocation2]  }
 0x10d   : > { %p8253_p12 = scmp.ne.s32.totalorder %s8833_s18, %s8252_s20  ;;  %s8257_s29 = sshll.u32 %s8426_s15, 4  ;;  %s8258_s29 = int_to_ptr.vmem [resolvable:$false] %s8257_s29 }
 0x10e   : > { %s8259_s22 = scalar_lea.vmem %s8258_s29, 256  ;;  %p8260_p6 = scmp.lt.s32.totalorder %s8833_s18, %s8258_s29 }
 0x10f   : > { %p8255_p13 = pnand %p8253_p12, %p8239_p8  ;;  %p8261_p1 = scmp.lt.s32.totalorder %s8259_s22, %s8252_s20 }
 0x111   : > { %p8256_p10 = pneg %p8255_p13  ;;  %p8262_p3 = por %p8261_p1, %p8260_p6 }
 0x113   : > { %p8263_p2 = pnand %p8262_p3, %p8256_p10 }
 0x115   : > { %8266 = shalt.err (!%p8263_p2)
}
 0x116   : > { %7700 = dma.hbm_to_vmem [thread:$0]  (!%p8829_p11), %s8826_s28, 128, %s8833_s18, %s843_s12  }
 0x117   : > { %s868_s14 = sand.u32 1, %s8415_s30   ;;  %s872_s19 = scalar_lea.vmem [#allocation5], %s8820_s25 }
 0x118   : > { %s879_s23 = sshll.u32 %s872_s19, 4  ;;  %s869_s21 = scalar_lea.sflag [#allocation6], %s868_s14  ;;  %s880_s23 = int_to_ptr.vmem [resolvable:$true] %s879_s23 }
 0x119   : > { %s8267_s1 = scalar_lea.hbm %s8838_s6, 128  ;;  %s8272_s15 = scalar_lea.hbm %s10534_s13, 256 }
 0x11a   : > { %p8268_p6 = scmp.ne.s32.totalorder %s8838_s6, %s8267_s1  ;;  %p8273_p5 = scmp.lt.u32.totalorder %s8838_s6, %s10534_s13 }
 0x11b   : > { %p8274_p9 = scmp.lt.u32.totalorder %s8272_s15, %s8267_s1  ;;  %p8276_p12 = scmp.lt.u32.totalorder %s8267_s1, %s8838_s6 }
 0x11c   : > { %p8270_p10 = pnand %p8268_p6, %p8239_p8 }
 0x11d   : > { %p8275_p4 = por %p8274_p9, %p8273_p5 }
 0x11e   : > { %p8271_p0 = pneg %p8270_p10 }
 0x11f   : > { %p8277_p13 = por %p8276_p12, %p8275_p4 }
 0x121   : > { %p8278_p1 = pnand %p8277_p13, %p8271_p0 }
 0x123   : > { %8281 = shalt.err (!%p8278_p1)
}
 0x124   : > { %s8282_s25 = scalar_lea.vmem %s880_s23, 128  ;;  %s8427_s28 = smov [#allocation5]  }
 0x125   : > { %p8283_p3 = scmp.ne.s32.totalorder %s880_s23, %s8282_s25  ;;  %s8287_s18 = sshll.u32 %s8427_s28, 4  ;;  %s8288_s18 = int_to_ptr.vmem [resolvable:$false] %s8287_s18 }
 0x126   : > { %s8289_s12 = scalar_lea.vmem %s8288_s18, 256  ;;  %p8290_p10 = scmp.lt.s32.totalorder %s880_s23, %s8288_s18 }
 0x127   : > { %p8285_p2 = pnand %p8283_p3, %p8239_p8  ;;  %p8291_p7 = scmp.lt.s32.totalorder %s8289_s12, %s8282_s25 }
 0x129   : > { %p8286_p6 = pneg %p8285_p2  ;;  %p8292_p5 = por %p8291_p7, %p8290_p10 }
 0x12b   : > { %p8293_p9 = pnand %p8292_p5, %p8286_p6 }
 0x12d   : > { %8296 = shalt.err (!%p8293_p9)
}
 0x12e   : > { %7703 = dma.hbm_to_vmem [thread:$0]  (!%p8829_p11), %s8838_s6, 128, %s880_s23, %s869_s21  }
 0x12f   : > { %p10535_p0 = scmp.ne.s32.totalorder %s10517_s0, 0 }
 0x130   : > { %s8889_s14 = sand.u32 (!%p10535_p0), 1, %s8407_s5   ;;  %p10536_p7 = scmp.ne.s32.totalorder (!%p10535_p0), %s10529_s7, 0 }
 0x131   : > { %896 = sbr.rel (%p10535_p0) target bundleno = 6244 (0x1864), region = 128  ;;  %s8892_s19 = sshll.u32 (!%p10535_p0), %s8889_s14, 3 }
 0x132   : > { %s899_s1 = scalar_lea.sflag (!%p10535_p0), [#allocation3], %s8889_s14  ;;  %s902_s27 = scalar_lea.vmem (!%p10535_p0), [#allocation2], %s8892_s19 }
 0x138   : > { %8370 = dma.done.wait (%p10536_p7), %s899_s1, 128  }
 0x139   : > { %8372 = vsyncadd (%p10536_p7), %s899_s1, 4294967168  ;;  %s907_s0 = sand.u32 1, %s8608_s10   ;;  %s10470_s6 = scalar_lea.vmem [#allocation5], %s8892_s19 }
 0x13a   : > { %s908_s2 = scalar_lea.sflag [#allocation6], %s907_s0 }
 0x13b   : > { %8374 = dma.done.wait (%p10536_p7), %s908_s2, 128  }
 0x13c   : > { %8376 = vsyncadd (%p10536_p7), %s908_s2, 4294967168  ;;  %p10537_p11 = scmp.eq.s32.totalorder %s8608_s10, 0 }
 0x13e   : > { %8378 = dma.done.wait (%p10537_p11), [#allocation6], 2048   ;;  %p10538_p8 = pmov %p10537_p11 }
 0x140   : > { %8380 = vsyncadd (%p10538_p8), [#allocation6], 4294965248  ;;  %p10539_p4 = pmov %p10538_p8 }
 0x142   : > { %8382 = dma.done.wait (%p10539_p4), [#allocation9], 1088   ;;  %p10540_p12 = pmov %p10539_p4 }
 0x143   : > { %p10541_p13 = pmov %p10539_p4 }
 0x144   : > { %8384 = vsyncadd (%p10540_p12), [#allocation9], 4294966208 }
 0x145   : > { %8386 = dma.done.wait (%p10541_p13), [#allocation12], 80   ;;  %p10542_p1 = pmov %p10539_p4 }
 0x147   : > { %8388 = vsyncadd (%p10542_p1), [#allocation12], 4294967216  ;;  %p10543_p3 = pmov %p10542_p1 }
 0x148   : > { %p10544_p2 = pmov %p10542_p1 }
 0x149   : > { %8390 = dma.done.wait (%p10543_p3), [#allocation15], 1040  }
 0x14a   : > { %8392 = vsyncadd (%p10544_p2), [#allocation15], 4294966256  ;;  %v8428_v0 = vmov 0.0|0.0   ;;  %vm8429_vm0 = vmmov 0   ;;  %v8430_v1 = vmov 0.0   ;;  %s10545_s21 = sld [smem:[#allocation33_spill]]  ;;  %v1128_v62 = vlaneseq }
 0x14b   : > { %7131 = vmatprep.subr.bf16.mxu1 %v8428_v0  ;;  %7107 = vmatprep.subr.bf16.mxu0 %v8428_v0  ;;  %s10546_s25 = sld [smem:[#allocation32_spill]]  ;;  %v1042_v49 = vld [vmem:[%s902_s27] sm:$0xff]  ;;  %v9040_v50 = vld [vmem:[%s10470_s6] sm:$0xff]  ;;  %s10547_s22 = sld [smem:[#allocation34_spill]]  ;;  %vm1374_vm1 = vcmask 261120   ;;  %vm1671_vm2 = vcmask 64512  }
 0x14c   : > { %6426 = vmatprep.mubr.msk.f32.mxu1 %vm8429_vm0, %v8430_v1  ;;  %6391 = vmatprep.mubr.msk.f32.mxu0 %vm8429_vm0, %v8430_v1  ;;  %v9045_v52 = vadd.f32 %v9040_v50, %v1042_v49  ;;  %v9076_v63 = vshrl.u32 %v1128_v62, 7  ;;  %s8431_s12 = smov 64   ;;  %s10473_s1 = smov 96   ;;  %vm2021_vm3 = vcmask 523264   ;;  %vm2023_vm4 = vcmask 785408  }
 0x14d   : > { %s10471_s20 = smov 32   ;;  %s10548_s29 = sld [smem:[#allocation37_spill]]  ;;  %vm2626_vm5 = vcmask 130048   ;;  %vm3329_vm7 = vcmask 392192  }
 0x14e   : > { %p1032_p6 = scmp.lt.s32.totalorder %s8608_s10, 1  ;;  %s10551_s13 = sld [smem:[#allocation31_spill]]  ;;  %vm9398_vm6 = vmpackc.low %vm2626_vm5, %vm2626_vm5 }
 0x14f   : > { %s10481_s18 = smov 16   ;;  %s10557_s7 = smov 32  }
 0x150   : > { %v1078_v2 = vld [vmem:[%s10545_s21] sm:$0xff]  ;;  %v1079_v3 = vld [vmem:[%s10545_s21 + $0x8] sm:$0xff]  ;;  %v1080_v7 = vld [vmem:[%s10545_s21 + $0x10] sm:$0xff]  ;;  %s1033_s0 = scalar_select %p1032_p6, %s8608_s10, 1 }
 0x151   : > { %v1062_v4 = vld [vmem:[%s10546_s25] sm:$0xff]  ;;  %v7132_v5 = vpack.c.bf16 %v1079_v3, %v1078_v2  ;;  %v1063_v6 = vld [vmem:[%s10546_s25 + $0x8] sm:$0xff]  ;;  %v1081_v8 = vld [vmem:[%s10545_s21 + $0x18] sm:$0xff]  ;;  %s10479_s23 = smov 48   ;;  %s10559_s17 = sld [smem:[#allocation44_spill]] }
 0x152   : > { %v7108_v9 = vpack.c.bf16 %v1063_v6, %v1062_v4  ;;  %v1064_v10 = vld [vmem:[%s10546_s25 + $0x10] sm:$0xff]  ;;  %v1065_v11 = vld [vmem:[%s10546_s25 + $0x18] sm:$0xff]  ;;  %v7135_v12 = vpack.c.bf16 %v1081_v8, %v1080_v7  ;;  %v1082_v14 = vld [vmem:[%s10545_s21 + $0x20] sm:$0xff]  ;;  %s5945_s2 = sshll.u32 %s1033_s0, 6  ;;  %s10552_s0 = sld [smem:[#allocation38_spill]] }
 0x153   : > { %7133 = vmatpush3.bf16.msra.mxu1 %v7132_v5  ;;  %v7111_v13 = vpack.c.bf16 %v1065_v11, %v1064_v10  ;;  %v1083_v15 = vld [vmem:[%s10545_s21 + $0x28] sm:$0xff]  ;;  %v1066_v16 = vld [vmem:[%s10546_s25 + $0x20] sm:$0xff]  ;;  %v1084_v20 = vld [vmem:[%s10545_s21 + $0x30] sm:$0xff]  ;;  %v9085_v5 = vsub.s32 1, %v9076_v63  ;;  %s10561_s6 = sld [smem:[#allocation48_spill]]  ;;  %s10568_s15 = smov 48  }
 0x154   : > { %7109 = vmatpush3.bf16.msra.mxu0 %v7108_v9  ;;  %7134 = vmatprep.subr.bf16.mxu1 %v8428_v0  ;;  %v1067_v17 = vld [vmem:[%s10546_s25 + $0x28] sm:$0xff]  ;;  %v7138_v18 = vpack.c.bf16 %v1083_v15, %v1082_v14  ;;  %v1085_v21 = vld [vmem:[%s10545_s21 + $0x38] sm:$0xff]  ;;  %v1068_v22 = vld [vmem:[%s10546_s25 + $0x30] sm:$0xff]  ;;  %v9097_v9 = vsub.s32 0, %v9076_v63  ;;  %s9236_s28 = scalar_lea.vmem %s10551_s13, %s5945_s2  ;;  %s10558_s13 = sld [smem:[#allocation45_spill]] }
 0x155   : > { %7110 = vmatprep.subr.bf16.mxu0 %v8428_v0  ;;  %v7114_v19 = vpack.c.bf16 %v1067_v17, %v1066_v16  ;;  %v1069_v23 = vld [vmem:[%s10546_s25 + $0x38] sm:$0xff]  ;;  %v7141_v24 = vpack.c.bf16 %v1085_v21, %v1084_v20  ;;  %v1086_v26 = vld [vmem:[%s10545_s21 + $0x40] sm:$0xff]  ;;  %v1087_v27 = vld [vmem:[%s10545_s21 + $0x48] sm:$0xff]  ;;  %s10569_s27 = sld [smem:[#allocation52_spill]]  ;;  %p10571_p5 = scmp.ne.s32.totalorder %s10530_s24, 0 }
 0x156   : > { %v7117_v25 = vpack.c.bf16 %v1069_v23, %v1068_v22  ;;  %v1070_v28 = vld [vmem:[%s10546_s25 + $0x40] sm:$0xff]  ;;  %v1071_v29 = vld [vmem:[%s10546_s25 + $0x48] sm:$0xff]  ;;  %v7144_v30 = vpack.c.bf16 %v1087_v27, %v1086_v26  ;;  %v1088_v32 = vld [vmem:[%s10545_s21 + $0x50] sm:$0xff] }
 0x157   : > { %7136 = vmatpush3.bf16.msra.mxu1 %v7135_v12  ;;  %v7120_v31 = vpack.c.bf16 %v1071_v29, %v1070_v28  ;;  %v1089_v33 = vld [vmem:[%s10545_s21 + $0x58] sm:$0xff]  ;;  %v1072_v34 = vld [vmem:[%s10546_s25 + $0x50] sm:$0xff]  ;;  %v1090_v38 = vld [vmem:[%s10545_s21 + $0x60] sm:$0xff] }
 0x158   : > { %7112 = vmatpush3.bf16.msra.mxu0 %v7111_v13  ;;  %7137 = vmatprep.subr.bf16.mxu1 %v8428_v0  ;;  %v1073_v35 = vld [vmem:[%s10546_s25 + $0x58] sm:$0xff]  ;;  %v7147_v36 = vpack.c.bf16 %v1089_v33, %v1088_v32  ;;  %v1091_v39 = vld [vmem:[%s10545_s21 + $0x68] sm:$0xff]  ;;  %v1074_v40 = vld [vmem:[%s10546_s25 + $0x60] sm:$0xff] }
 0x159   : > { %7113 = vmatprep.subr.bf16.mxu0 %v8428_v0  ;;  %v7123_v37 = vpack.c.bf16 %v1073_v35, %v1072_v34  ;;  %v1075_v41 = vld [vmem:[%s10546_s25 + $0x68] sm:$0xff]  ;;  %v7150_v42 = vpack.c.bf16 %v1091_v39, %v1090_v38  ;;  %v1092_v44 = vld [vmem:[%s10545_s21 + $0x70] sm:$0xff]  ;;  %v1093_v45 = vld [vmem:[%s10545_s21 + $0x78] sm:$0xff]  ;;  %v9155_v34 = vsub.s32 2, %v9076_v63  ;;  %s10562_s21 = sld [smem:[#allocation49_spill]] }
 0x15a   : > { %v7126_v43 = vpack.c.bf16 %v1075_v41, %v1074_v40  ;;  %v1076_v46 = vld [vmem:[%s10546_s25 + $0x70] sm:$0xff]  ;;  %v1077_v47 = vld [vmem:[%s10546_s25 + $0x78] sm:$0xff]  ;;  %v7153_v48 = vpack.c.bf16 %v1093_v45, %v1092_v44  ;;  %v1094_v53 = vld [vmem:[%s10547_s22] sm:$0xff] }
 0x15b   : > { %7139 = vmatpush3.bf16.msra.mxu1 %v7138_v18  ;;  %v7129_v51 = vpack.c.bf16 %v1077_v47, %v1076_v46  ;;  %v1095_v54 = vld [vmem:[%s10547_s22 + $0x8] sm:$0xff]  ;;  %v1096_v55 = vld [vmem:[%s10547_s22 + $0x10] sm:$0xff]  ;;  %v1097_v57 = vld [vmem:[%s10547_s22 + $0x18] sm:$0xff] }
 0x15c   : > { %7115 = vmatpush3.bf16.msra.mxu0 %v7114_v19  ;;  %7140 = vmatprep.subr.bf16.mxu1 %v8428_v0  ;;  %v7156_v56 = vpack.c.bf16 %v1095_v54, %v1094_v53  ;;  %v7159_v58 = vpack.c.bf16 %v1097_v57, %v1096_v55  ;;  %v1098_v59 = vld [vmem:[%s10547_s22 + $0x20] sm:$0xff]  ;;  %v1099_v60 = vld [vmem:[%s10547_s22 + $0x28] sm:$0xff]  ;;  %v1100_v2 = vld [vmem:[%s10547_s22 + $0x30] sm:$0xff] }
 0x15d   : > { %7116 = vmatprep.subr.bf16.mxu0 %v8428_v0  ;;  %v7162_v61 = vpack.c.bf16 %v1099_v60, %v1098_v59  ;;  %v1101_v3 = vld [vmem:[%s10547_s22 + $0x38] sm:$0xff]  ;;  %v9088_v6 = vld [vmem:[#allocation8] sm:$0x7]  ;;  %v1103_v8 = vld [vmem:[%s10547_s22 + $0x48] sm:$0xff] }
 0x15e   : > { %v7165_v4 = vpack.c.bf16 %v1101_v3, %v1100_v2  ;;  %v1102_v7 = vld [vmem:[%s10547_s22 + $0x40] sm:$0xff]  ;;  %v1205_v11 = vrot.slane %v9088_v6, %v9085_v5  ;;  %v1104_v12 = vld [vmem:[%s10547_s22 + $0x50] sm:$0xff]  ;;  %v1105_v13 = vld [vmem:[%s10547_s22 + $0x58] sm:$0xff]  ;;  %v1131_v14 = vrot.slane %v9088_v6, %v9097_v9  ;;  %v1279_v38 = vrot.slane %v9088_v6, %v9155_v34 }
 0x15f   : > { %7142 = vmatpush3.bf16.msra.mxu1 %v7141_v24  ;;  %v7168_v10 = vpack.c.bf16 %v1103_v8, %v1102_v7  ;;  %v7171_v15 = vpack.c.bf16 %v1105_v13, %v1104_v12  ;;  %v1106_v21 = vld [vmem:[%s10547_s22 + $0x60] sm:$0xff]  ;;  %v1107_v22 = vld [vmem:[%s10547_s22 + $0x68] sm:$0xff]  ;;  %v1109_v26 = vld [vmem:[%s10547_s22 + $0x78] sm:$0xff] }
 0x160   : > { %7118 = vmatpush3.bf16.msra.mxu0 %v7117_v25  ;;  %7143 = vmatprep.subr.bf16.mxu1 %v8428_v0  ;;  %v7174_v24 = vpack.c.bf16 %v1107_v22, %v1106_v21  ;;  %v1108_v25 = vld [vmem:[%s10547_s22 + $0x70] sm:$0xff]  ;;  %s10485_s22 = smov 112  }
 0x161   : > { %7119 = vmatprep.subr.bf16.mxu0 %v8428_v0  ;;  %v7177_v27 = vpack.c.bf16 %v1109_v26, %v1108_v25 }
 0x163   : > { %7145 = vmatpush3.bf16.msra.mxu1 %v7144_v30 }
 0x164   : > { %7121 = vmatpush3.bf16.msra.mxu0 %v7120_v31  ;;  %7146 = vmatprep.subr.bf16.mxu1 %v8428_v0 }
 0x165   : > { %7122 = vmatprep.subr.bf16.mxu0 %v8428_v0 }
 0x167   : > { %7148 = vmatpush3.bf16.msra.mxu1 %v7147_v36 }
 0x168   : > { %7124 = vmatpush3.bf16.msra.mxu0 %v7123_v37  ;;  %7149 = vmatprep.subr.bf16.mxu1 %v8428_v0 }
 0x169   : > { %7125 = vmatprep.subr.bf16.mxu0 %v8428_v0 }
 0x16b   : > { %7151 = vmatpush3.bf16.msra.mxu1 %v7150_v42 }
 0x16c   : > { %7127 = vmatpush3.bf16.msra.mxu0 %v7126_v43  ;;  %7152 = vmatprep.subr.bf16.mxu1 %v8428_v0 }
 0x16d   : > { %7128 = vmatprep.subr.bf16.mxu0 %v8428_v0 }
 0x16f   : > { %7154 = vmatpush3.bf16.msra.mxu1 %v7153_v48 }
 0x170   : > { %7130 = vmatpush3.bf16.msra.mxu0 %v7129_v51  ;;  %6464 = vmatprep.subr.mxu1 %v8430_v1 }
 0x171   : > { %7155 = vmatprep.subr.bf16.mxu0 %v8428_v0 }
 0x172   : > { %6427 = vmatmul.mubr.f32.vlgmr.msra.gmra.mrb[0].mxu1 %v9045_v52 }
 0x173   : > { %6392 = vmatmul.mubr.f32.vlgmr.msra.gmra.mrb[0].mxu0 %v9045_v52  ;;  %6466 = vmatprep.mubr.msk.f32.mxu1 %vm8429_vm0, %v8430_v1 }
 0x174   : > { %6461 = vmatprep.mubr.msk.f32.mxu0 %vm8429_vm0, %v8430_v1  ;;  %7157 = vmatpush3.bf16.msra.mxu0 %v7156_v56 }
 0x175   : > { %7158 = vmatprep.subr.bf16.mxu0 %v8428_v0 }
 0x178   : > { %7160 = vmatpush3.bf16.msra.mxu0 %v7159_v58 }
 0x179   : > { %7161 = vmatprep.subr.bf16.mxu0 %v8428_v0 }
 0x17c   : > { %7163 = vmatpush3.bf16.msra.mxu0 %v7162_v61 }
 0x17d   : > { %7164 = vmatprep.subr.bf16.mxu0 %v8428_v0 }
 0x180   : > { %7166 = vmatpush3.bf16.msra.mxu0 %v7165_v4 }
 0x181   : > { %7167 = vmatprep.subr.bf16.mxu0 %v8428_v0 }
 0x184   : > { %7169 = vmatpush3.bf16.msra.mxu0 %v7168_v10 }
 0x185   : > { %7170 = vmatprep.subr.bf16.mxu0 %v8428_v0 }
 0x188   : > { %7172 = vmatpush3.bf16.msra.mxu0 %v7171_v15 }
 0x189   : > { %7173 = vmatprep.subr.bf16.mxu0 %v8428_v0 }
 0x18c   : > { %7175 = vmatpush3.bf16.msra.mxu0 %v7174_v24 }
 0x18d   : > { %7176 = vmatprep.subr.bf16.mxu0 %v8428_v0 }
 0x190   : > { %7178 = vmatpush3.bf16.msra.mxu0 %v7177_v27 }
 0x191   : > { %7179 = vmatprep.subr.bf16.mxu0 %v8428_v0 }
 0x193   : > { %6462 = vmatmul.mubr.f32.vlgmr.msra.gmra.mrb[2].mxu0 %v9045_v52 }
 0x194   : > { %6536 = vmatprep.mubr.msk.f32.mxu0 %vm8429_vm0, %v8430_v1 }
 0x245   : > { %v1272_v16 = vpop.f32.mrb[0].mxu1 }
 0x246   : > { %v1273_v17 = vadd.f32 %v1272_v16, %v1205_v11  ;;  %v6428_v18 = vpop.f32.mrb[1].mxu1  ;;  %v1198_v19 = vpop.f32.mrb[0].mxu0 }
 0x247   : > { %v6393_v20 = vpop.f32.mrb[1].mxu0  ;;  %v1199_v23 = vadd.f32 %v1198_v19, %v1131_v14 }
 0x248   : > { %1360 = vrot.lane.b32.xlu1 %v1273_v17, %s8431_s12  ;;  %1358 = vrot.lane.b32.xlu0 %v1273_v17, %s10473_s1 }
 0x249   : > { %6465 = vmatpush3.xpose.msk.msra.mxu1 %vm1374_vm1, %v1273_v17 }
 0x24a   : > { %6469 = vmatprep.subr.mxu1 %v8430_v1 }
 0x24c   : > { %6467 = vmatmul.mubr.msk.f32.vlgmr.msra.gmra.mrb[2].mxu1 %vm1374_vm1, %v1199_v23  ;;  %1353 = vrot.lane.b32.xlu1 %v1199_v23, %s8431_s12 }
 0x24d   : > { %1351 = vrot.lane.b32.xlu0 %v1199_v23, %s10473_s1  ;;  %6471 = vmatprep.mubr.msk.f32.mxu1 %vm8429_vm0, %v8430_v1 }
 0x250   : > { %1355 = vrot.lane.b32.xlu1 %v1199_v23, %s10471_s20 }
 0x251   : > { %1362 = vrot.lane.b32.xlu0 %v1273_v17, %s10471_s20 }
 0x266   : > { %v1346_v39 = vpop.f32.mrb[2].mxu0 }
 0x267   : > { %v1347_v40 = vadd.f32 %v1346_v39, %v1279_v38  ;;  %v6463_v41 = vpop.f32.mrb[3].mxu0  ;;  %v1116_v39 = vld [vmem:[#allocation7 + $0x30] sm:$0xff] }
 0x2ba   : > { %v1359_v28 = vpop.permute.xlu0 %1358  ;;  %v1361_v29 = vpop.permute.xlu1 %1360 }
 0x2bb   : > { %6470 = vmatpush3.xpose.msk.msra.mxu1 %vm1374_vm1, %v1359_v28 }
 0x2bc   : > { %6474 = vmatprep.subr.mxu1 %v8430_v1 }
 0x2be   : > { %v1354_v31 = vpop.permute.xlu1 %1353 }
 0x2bf   : > { %v1352_v30 = vpop.permute.xlu0 %1351 }
 0x2c0   : > { %6472 = vmatmul.mubr.msk.f32.vlgmr.msra.gmra.mrb[4].mxu1 %vm1374_vm1, %v1352_v30  ;;  %v1111_v30 = vld [vmem:[#allocation7 + $0x8] sm:$0xff] }
 0x2c1   : > { %6475 = vmatpush3.xpose.msk.msra.mxu1 %vm1374_vm1, %v1361_v29  ;;  %6476 = vmatprep.mubr.msk.f32.mxu1 %vm8429_vm0, %v8430_v1  ;;  %v1110_v29 = vld [vmem:[#allocation7] sm:$0xff] }
 0x2c2   : > { %6479 = vmatprep.subr.mxu1 %v8430_v1  ;;  %v1356_v33 = vpop.permute.xlu1 %1355 }
 0x2c3   : > { %v1363_v32 = vpop.permute.xlu0 %1362 }
 0x2c4   : > { %6477 = vmatmul.mubr.msk.f32.vlgmr.msra.gmra.mrb[6].mxu1 %vm1374_vm1, %v1354_v31  ;;  %v1112_v31 = vld [vmem:[#allocation7 + $0x10] sm:$0xff] }
 0x2c5   : > { %6480 = vmatpush3.xpose.msk.msra.mxu1 %vm1374_vm1, %v1363_v32  ;;  %6481 = vmatprep.mubr.msk.f32.mxu1 %vm8429_vm0, %v8430_v1  ;;  %v7180_v32 = vpack.c.bf16 %v1111_v30, %v1110_v29  ;;  %v1052_v29 = vld [vmem:[%s9236_s28] sm:$0xff] }
 0x2c6   : > { %6484 = vmatprep.subr.mxu1 %v8430_v1 }
 0x2c7   : > { %7181 = vmatpush3.bf16.msra.mxu0 %v7180_v32 }
 0x2c8   : > { %6482 = vmatmul.mubr.msk.f32.vlgmr.msra.gmra.mrb[8].mxu1 %vm1374_vm1, %v1356_v33  ;;  %v1113_v33 = vld [vmem:[#allocation7 + $0x18] sm:$0xff]  ;;  %7182 = vmatprep.subr.bf16.mxu0 %v8428_v0 }
 0x2c9   : > { %6486 = vmatprep.mubr.msk.f32.mxu1 %vm8429_vm0, %v8430_v1  ;;  %6485 = vmatpush3.msra.mxu1 %v1347_v40 }
 0x2ca   : > { %6489 = vmatprep.subr.mxu1 %v8430_v1 }
 0x31f   : > { %v1445_v35 = vpop.f32.mrb[2].mxu1 }
 0x320   : > { %v6468_v36 = vpop.f32.mrb[3].mxu1  ;;  %v1672_v37 = vsel %vm1671_vm2, %v1445_v35, -inf }
 0x321   : > { %1673 = vmax.xlane.f32.xlu0 %v1672_v37  ;;  %v1114_v36 = vld [vmem:[#allocation7 + $0x20] sm:$0xff]  ;;  %v1115_v37 = vld [vmem:[#allocation7 + $0x28] sm:$0xff] }
 0x322   : > { %v7186_v38 = vpack.c.bf16 %v1115_v37, %v1114_v36  ;;  %v2135_v36 = vld [vmem:[%s10552_s0 + $0x10] sm:$0xff]  ;;  %v2136_v37 = vld [vmem:[%s10552_s0 + $0x18] sm:$0xff] }
 0x393   : > { %v1519_v42 = vpop.f32.mrb[4].mxu1 }
 0x394   : > { %v6473_v43 = vpop.f32.mrb[5].mxu1  ;;  %v1675_v44 = vsel %vm1671_vm2, %v1519_v42, -inf }
 0x395   : > { %1676 = vmax.xlane.f32.xlu1 %v1675_v44  ;;  %v1119_v43 = vld [vmem:[#allocation7 + $0x48] sm:$0xff] }
 0x397   : > { %v1593_v45 = vpop.f32.mrb[6].mxu1 }
 0x398   : > { %v6478_v46 = vpop.f32.mrb[7].mxu1  ;;  %v1678_v47 = vsel %vm1671_vm2, %v1593_v45, -inf }
 0x399   : > { %1679 = vmax.xlane.f32.xlu0 %v1678_v47  ;;  %v1120_v47 = vld [vmem:[#allocation7 + $0x50] sm:$0xff] }
 0x39b   : > { %v1667_v48 = vpop.f32.mrb[8].mxu1 }
 0x39c   : > { %v6483_v49 = vpop.f32.mrb[9].mxu1  ;;  %v1681_v51 = vsel %vm1671_vm2, %v1667_v48, -inf }
 0x39d   : > { %1682 = vmax.xlane.f32.xlu0 %v1681_v51  ;;  %v1122_v51 = vld [vmem:[#allocation7 + $0x60] sm:$0xff] }
 0x3a6   : > { %1365 = vrot.lane.b32.xlu1 %v1347_v40, %s10473_s1 }
 0x3ae   : > { %v1674_v53 = vpop.xlane.xlu0 %1673 }
 0x3af   : > { %v1684_v54 = vsub.f32 %v1445_v35, %v1674_v53  ;;  %v7183_v35 = vpack.c.bf16 %v1113_v33, %v1112_v31  ;;  %v1123_v53 = vld [vmem:[#allocation7 + $0x68] sm:$0xff] }
 0x3b1   : > { %v1688_v55 = vmul.f32 1.442695, %v1684_v54  ;;  %7184 = vmatpush3.bf16.msra.mxu0 %v7183_v35  ;;  %v7198_v54 = vpack.c.bf16 %v1123_v53, %v1122_v51  ;;  %v1053_v51 = vld [vmem:[%s9236_s28 + $0x8] sm:$0xff] }
 0x3b2   : > { %7185 = vmatprep.subr.bf16.mxu0 %v8428_v0 }
 0x3b3   : > { %7960 = vpow2.f32 %v1688_v55  ;;  %v1124_v55 = vld [vmem:[#allocation7 + $0x70] sm:$0xff] }
 0x3b5   : > { %7187 = vmatpush3.bf16.msra.mxu0 %v7186_v38  ;;  %v7207_v38 = vpack.c.bf16 %v2136_v37, %v2135_v36  ;;  %v9392_v37 = vld [vmem:[#allocation11] sm:$0x7] }
 0x3b6   : > { %7188 = vmatprep.subr.bf16.mxu0 %v8428_v0 }
 0x3bd   : > { %v7961_v56 = vpop.eup %7960 }
 0x3be   : > { %v1696_v57 = vsel %vm1671_vm2, %v7961_v56, 0.0 }
 0x3ca   : > { %1697 = vadd.xlane.f32.xlu1 %v1696_v57 }
 0x422   : > { %v1677_v58 = vpop.xlane.xlu1 %1676 }
 0x423   : > { %v1685_v59 = vsub.f32 %v1519_v42, %v1677_v58  ;;  %v1118_v42 = vld [vmem:[#allocation7 + $0x40] sm:$0xff] }
 0x424   : > { %v7192_v46 = vpack.c.bf16 %v1119_v43, %v1118_v42 }
 0x425   : > { %v1690_v60 = vmul.f32 1.442695, %v1685_v59 }
 0x426   : > { %v1680_v61 = vpop.xlane.xlu0 %1679  ;;  %v1366_v14 = vpop.permute.xlu1 %1365 }
 0x427   : > { %7962 = vpow2.f32 %v1690_v60  ;;  %v1686_v62 = vsub.f32 %v1593_v45, %v1680_v61 }
 0x429   : > { %v1692_v2 = vmul.f32 1.442695, %v1686_v62 }
 0x42a   : > { %v1683_v3 = vpop.xlane.xlu0 %1682 }
 0x42b   : > { %7964 = vpow2.f32 %v1692_v2  ;;  %v1687_v4 = vsub.f32 %v1667_v48, %v1683_v3  ;;  %v1121_v48 = vld [vmem:[#allocation7 + $0x58] sm:$0xff] }
 0x42c   : > { %v7195_v49 = vpack.c.bf16 %v1121_v48, %v1120_v47 }
 0x42d   : > { %v1694_v6 = vmul.f32 1.442695, %v1687_v4 }
 0x42f   : > { %7966 = vpow2.f32 %v1694_v6 }
 0x431   : > { %v7963_v7 = vpop.eup %7962 }
 0x432   : > { %v1699_v8 = vsel %vm1671_vm2, %v7963_v7, 0.0 }
 0x433   : > { %1700 = vadd.xlane.f32.xlu0 %v1699_v8 }
 0x435   : > { %v7965_v10 = vpop.eup %7964 }
 0x436   : > { %v1702_v11 = vsel %vm1671_vm2, %v7965_v10, 0.0 }
 0x437   : > { %1703 = vadd.xlane.f32.xlu1 %v1702_v11  ;;  %v5817_v11 = vld [vmem:[%s10548_s29] ss:$0 sm:$0xff]  ;;  %s10556_s29 = sld [smem:[#allocation40_spill]] }
 0x439   : > { %v7967_v12 = vpop.eup %7966 }
 0x43a   : > { %v1705_v13 = vsel %vm1671_vm2, %v7967_v12, 0.0 }
 0x43b   : > { %1706 = vadd.xlane.f32.xlu0 %v1705_v13 }
 0x448   : > { %1371 = vrot.lane.b32.xlu1 %v1347_v40, %s10471_s20 }
 0x451   : > { %1368 = vrot.lane.b32.xlu0 %v1347_v40, %s8431_s12  ;;  %v1117_v40 = vld [vmem:[#allocation7 + $0x38] sm:$0xff] }
 0x452   : > { %v7189_v41 = vpack.c.bf16 %v1117_v40, %v1116_v39 }
 0x454   : > { %7190 = vmatpush3.bf16.msra.mxu0 %v7189_v41 }
 0x455   : > { %7191 = vmatprep.subr.bf16.mxu0 %v8428_v0 }
 0x457   : > { %v1698_v15 = vpop.xlane.xlu1 %1697 }
 0x458   : > { %7968 = vrcp.f32 %v1698_v15  ;;  %7193 = vmatpush3.bf16.msra.mxu0 %v7192_v46 }
 0x459   : > { %7194 = vmatprep.subr.bf16.mxu0 %v8428_v0 }
 0x45c   : > { %7196 = vmatpush3.bf16.msra.mxu0 %v7195_v49 }
 0x45d   : > { %7197 = vmatprep.subr.bf16.mxu0 %v8428_v0 }
 0x460   : > { %7199 = vmatpush3.bf16.msra.mxu0 %v7198_v54  ;;  %v1054_v54 = vld [vmem:[%s9236_s28 + $0x10] sm:$0xff] }
 0x461   : > { %7200 = vmatprep.subr.bf16.mxu0 %v8428_v0 }
 0x462   : > { %v7969_v16 = vpop.eup %7968 }
 0x463   : > { %v1712_v17 = vmul.f32 %v7969_v16, %v7961_v56  ;;  %v1125_v56 = vld [vmem:[#allocation7 + $0x78] sm:$0xff] }
 0x464   : > { %v7201_v57 = vpack.c.bf16 %v1125_v56, %v1124_v55 }
 0x465   : > { %6487 = vmatmul.mubr.msk.f32.vlgmr.msra.gmra.mrb[10].mxu1 %vm1671_vm2, %v1712_v17 }
 0x466   : > { %6490 = vmatpush3.msra.mxu1 %v1366_v14  ;;  %6491 = vmatprep.mubr.msk.f32.mxu1 %vm8429_vm0, %v8430_v1 }
 0x467   : > { %6494 = vmatprep.subr.mxu1 %v8430_v1  ;;  %7202 = vmatpush3.bf16.msra.mxu0 %v7201_v57 }
 0x4c0   : > { %v1701_v18 = vpop.xlane.xlu0 %1700 }
 0x4c1   : > { %7970 = vrcp.f32 %v1701_v18 }
 0x4c4   : > { %v1704_v19 = vpop.xlane.xlu1 %1703 }
 0x4c5   : > { %7972 = vrcp.f32 %v1704_v19 }
 0x4c8   : > { %v1707_v20 = vpop.xlane.xlu0 %1706  ;;  %v1372_v26 = vpop.permute.xlu1 %1371 }
 0x4c9   : > { %7974 = vrcp.f32 %v1707_v20 }
 0x4cb   : > { %v7971_v21 = vpop.eup %7970 }
 0x4cc   : > { %v1369_v22 = vpop.permute.xlu0 %1368  ;;  %v1713_v23 = vmul.f32 %v7971_v21, %v7963_v7 }
 0x4ce   : > { %6492 = vmatmul.mubr.msk.f32.vlgmr.msra.gmra.mrb[12].mxu1 %vm1671_vm2, %v1713_v23 }
 0x4cf   : > { %v7973_v24 = vpop.eup %7972  ;;  %6495 = vmatpush3.msra.mxu1 %v1369_v22  ;;  %6496 = vmatprep.mubr.msk.f32.mxu1 %vm8429_vm0, %v8430_v1 }
 0x4d0   : > { %v1714_v25 = vmul.f32 %v7973_v24, %v7965_v10  ;;  %6499 = vmatprep.subr.mxu1 %v8430_v1 }
 0x4d2   : > { %6497 = vmatmul.mubr.msk.f32.vlgmr.msra.gmra.mrb[14].mxu1 %vm1671_vm2, %v1714_v25  ;;  %v2133_v25 = vld [vmem:[%s10552_s0] sm:$0xff] }
 0x4d3   : > { %v7975_v27 = vpop.eup %7974  ;;  %6500 = vmatpush3.msra.mxu1 %v1372_v26  ;;  %6501 = vmatprep.mubr.msk.f32.mxu1 %vm8429_vm0, %v8430_v1  ;;  %v2134_v26 = vld [vmem:[%s10552_s0 + $0x8] sm:$0xff] }
 0x4d4   : > { %v1715_v28 = vmul.f32 %v7975_v27, %v7967_v12  ;;  %7203 = vmatprep.subr.bf16.mxu1 %v8428_v0  ;;  %v7204_v30 = vpack.c.bf16 %v2134_v26, %v2133_v25  ;;  %v2143_v25 = vld [vmem:[%s10552_s0 + $0x50] sm:$0xff]  ;;  %v2144_v26 = vld [vmem:[%s10552_s0 + $0x58] sm:$0xff] }
 0x4d6   : > { %6502 = vmatmul.mubr.msk.f32.vlgmr.msra.gmra.mrb[16].mxu1 %vm1671_vm2, %v1715_v28 }
 0x4d7   : > { %6571 = vmatprep.mubr.msk.f32.mxu1 %vm8429_vm0, %v8430_v1  ;;  %7205 = vmatpush3.bf16.msra.mxu1 %v7204_v30  ;;  %v2146_v30 = vld [vmem:[%s10552_s0 + $0x68] sm:$0xff] }
 0x4d8   : > { %7206 = vmatprep.subr.bf16.mxu1 %v8428_v0 }
 0x4db   : > { %7208 = vmatpush3.bf16.msra.mxu1 %v7207_v38  ;;  %v2268_v38 = vrot.slane %v9392_v37, %v9085_v5 }
 0x4dc   : > { %7209 = vmatprep.subr.bf16.mxu1 %v8428_v0 }
 0x538   : > { %v1785_v44 = vpop.f32.mrb[10].mxu1 }
 0x539   : > { %v6488_v45 = vpop.f32.mrb[11].mxu1 }
 0x5a1   : > { %v1858_v58 = vpop.f32.mrb[12].mxu1 }
 0x5a2   : > { %2009 = vrot.lane.b32.xlu1 %v1858_v58, %s10471_s20  ;;  %v6493_v59 = vpop.f32.mrb[13].mxu1  ;;  %s10550_s20 = sld [smem:[#allocation29_spill]]  ;;  %v1055_v58 = vld [vmem:[%s9236_s28 + $0x18] sm:$0xff] }
 0x5a5   : > { %v1931_v60 = vpop.f32.mrb[14].mxu1 }
 0x5a6   : > { %2013 = vrot.lane.b32.xlu0 %v1931_v60, %s8431_s12  ;;  %v6498_v61 = vpop.f32.mrb[15].mxu1  ;;  %s10549_s12 = sld [smem:[#allocation39_spill]]  ;;  %v1056_v60 = vld [vmem:[%s9236_s28 + $0x20] sm:$0xff] }
 0x5a9   : > { %v2004_v62 = vpop.f32.mrb[16].mxu1 }
 0x5aa   : > { %2017 = vrot.lane.b32.xlu1 %v2004_v62, %s10473_s1  ;;  %v6503_v2 = vpop.f32.mrb[17].mxu1  ;;  %s9231_s1 = scalar_lea.vmem %s10550_s20, %s5945_s2  ;;  %s10555_s20 = smov 96  }
 0x5ab   : > { %v9248_v28 = vld [vmem:[%s9231_s1] sm:$0xff]  ;;  %v9288_v49 = vld [vmem:[%s9231_s1 + $0x8] sm:$0xff]  ;;  %v9292_v53 = vld [vmem:[%s9231_s1 + $0x10] sm:$0xff]  ;;  %s10483_s2 = smov 80  }
 0x5ac   : > { %v2149_v16 = vld [vmem:[%s10549_s12] sm:$0xff]  ;;  %v2150_v17 = vld [vmem:[%s10549_s12 + $0x8] sm:$0xff]  ;;  %v2151_v18 = vld [vmem:[%s10549_s12 + $0x10] sm:$0xff]  ;;  %v9252_v31 = vadd.f32 %v1052_v29, %v9248_v28  ;;  %v9296_v55 = vadd.f32 %v1053_v51, %v9288_v49  ;;  %v9299_v56 = vadd.f32 %v1054_v54, %v9292_v53 }
 0x5ad   : > { %v7227_v19 = vpack.c.bf16 %v2150_v17, %v2149_v16  ;;  %v2153_v21 = vld [vmem:[%s10549_s12 + $0x20] sm:$0xff]  ;;  %v2154_v22 = vld [vmem:[%s10549_s12 + $0x28] sm:$0xff]  ;;  %v2155_v24 = vld [vmem:[%s10549_s12 + $0x30] sm:$0xff] }
 0x5ae   : > { %v7235_v23 = vpack.c.bf16 %v2154_v22, %v2153_v21  ;;  %v2156_v27 = vld [vmem:[%s10549_s12 + $0x38] sm:$0xff]  ;;  %v2157_v33 = vld [vmem:[%s10549_s12 + $0x40] sm:$0xff]  ;;  %v2158_v35 = vld [vmem:[%s10549_s12 + $0x48] sm:$0xff] }
 0x5af   : > { %7228 = vmatprep.subr.bf16.mxu0 %v7227_v19  ;;  %v7239_v32 = vpack.c.bf16 %v2156_v27, %v2155_v24  ;;  %v7243_v39 = vpack.c.bf16 %v2158_v35, %v2157_v33  ;;  %v2159_v40 = vld [vmem:[%s10549_s12 + $0x50] sm:$0xff]  ;;  %v2160_v41 = vld [vmem:[%s10549_s12 + $0x58] sm:$0xff]  ;;  %v2161_v43 = vld [vmem:[%s10549_s12 + $0x60] sm:$0xff]  ;;  %v7219_v27 = vpack.c.bf16 %v2144_v26, %v2143_v25 }
 0x5b0   : > { %v7247_v42 = vpack.c.bf16 %v2160_v41, %v2159_v40  ;;  %v2163_v46 = vld [vmem:[%s10549_s12 + $0x70] sm:$0xff]  ;;  %v2164_v47 = vld [vmem:[%s10549_s12 + $0x78] sm:$0xff]  ;;  %v9306_v59 = vld [vmem:[%s9231_s1 + $0x20] sm:$0xff] }
 0x5b1   : > { %v7255_v48 = vpack.c.bf16 %v2164_v47, %v2163_v46  ;;  %v9302_v57 = vld [vmem:[%s9231_s1 + $0x18] sm:$0xff]  ;;  %v9316_v62 = vadd.f32 %v1056_v60, %v9306_v59  ;;  %v9319_v2 = vld [vmem:[%s9231_s1 + $0x28] sm:$0xff]  ;;  %v2141_v22 = vld [vmem:[%s10552_s0 + $0x40] sm:$0xff] }
 0x5b2   : > { %v9312_v61 = vadd.f32 %v1055_v58, %v9302_v57  ;;  %v2145_v29 = vld [vmem:[%s10552_s0 + $0x60] sm:$0xff]  ;;  %v2147_v33 = vld [vmem:[%s10552_s0 + $0x70] sm:$0xff]  ;;  %v2148_v35 = vld [vmem:[%s10552_s0 + $0x78] sm:$0xff] }
 0x5b3   : > { %v7225_v36 = vpack.c.bf16 %v2148_v35, %v2147_v33  ;;  %v2165_v35 = vld [vmem:[%s10556_s29] sm:$0xff] }
 0x614   : > { %v2010_v3 = vpop.permute.xlu1 %2009 }
 0x615   : > { %v2020_v6 = vsel %vm1374_vm1, %v1785_v44, %v2010_v3  ;;  %v2162_v44 = vld [vmem:[%s10549_s12 + $0x68] sm:$0xff] }
 0x616   : > { %v7251_v45 = vpack.c.bf16 %v2162_v44, %v2161_v43  ;;  %v1057_v3 = vld [vmem:[%s9236_s28 + $0x28] sm:$0xff] }
 0x618   : > { %v2014_v4 = vpop.permute.xlu0 %2013 }
 0x619   : > { %v2022_v7 = vsel %vm2021_vm3, %v2020_v6, %v2014_v4  ;;  %v9323_v4 = vld [vmem:[%s9231_s1 + $0x30] sm:$0xff] }
 0x61a   : > { %v1058_v6 = vld [vmem:[%s9236_s28 + $0x30] sm:$0xff] }
 0x61c   : > { %v2018_v8 = vpop.permute.xlu1 %2017 }
 0x61d   : > { %v2024_v10 = vsel %vm2023_vm4, %v2022_v7, %v2018_v8  ;;  %v9328_v7 = vadd.f32 %v1057_v3, %v9319_v2  ;;  %v9332_v8 = vadd.f32 %v1058_v6, %v9323_v4 }
 0x61e   : > { %6537 = vmatmul.mubr.f32.vlgmr.msra.gmra.mrb[4].mxu0 %v2024_v10  ;;  %v9335_v10 = vld [vmem:[%s9231_s1 + $0x38] sm:$0xff] }
 0x61f   : > { %7230 = vmatpush3.bf16.msra.mxu0 %v7227_v19  ;;  %6606 = vmatprep.mubr.f32.mxu0 %v9252_v31  ;;  %v2138_v19 = vld [vmem:[%s10552_s0 + $0x28] sm:$0xff] }
 0x6f1   : > { %v2097_v12 = vpop.f32.mrb[4].mxu0 }
 0x6f2   : > { %v2098_v13 = vadd.f32 %v5817_v11, %v2097_v12  ;;  %v6538_v14 = vpop.f32.mrb[5].mxu0  ;;  %v1059_v11 = vld [vmem:[%s9236_s28 + $0x38] sm:$0xff]  ;;  %s10560_s28 = sld [smem:[#allocation47_spill]] }
 0x6f3   : > { %v9340_v12 = vadd.f32 %v1059_v11, %v9335_v10 }
 0x6f4   : > { %v9202_v15 = vadd.f32 %v2098_v13, %v9045_v52  ;;  %v2152_v52 = vld [vmem:[%s10549_s12 + $0x18] sm:$0xff]  ;;  %s10564_s12 = smov 112  }
 0x6f5   : > { %v7231_v20 = vpack.c.bf16 %v2152_v52, %v2151_v18  ;;  %v2137_v18 = vld [vmem:[%s10552_s0 + $0x20] sm:$0xff] }
 0x6f6   : > { %2102 = vadd.xlane.f32.xlu0 %v9202_v15  ;;  %v7210_v52 = vpack.c.bf16 %v2138_v19, %v2137_v18 }
 0x6f7   : > { %7232 = vmatprep.subr.bf16.mxu0 %v7231_v20 }
 0x6f8   : > { %7234 = vmatpush3.bf16.msra.mxu0 %v7231_v20  ;;  %7211 = vmatpush3.bf16.msra.mxu1 %v7210_v52  ;;  %v2140_v20 = vld [vmem:[%s10552_s0 + $0x38] sm:$0xff] }
 0x6f9   : > { %7236 = vmatprep.subr.bf16.mxu0 %v7235_v23  ;;  %7212 = vmatprep.subr.bf16.mxu1 %v8428_v0 }
 0x6fc   : > { %7238 = vmatpush3.bf16.msra.mxu0 %v7235_v23  ;;  %v2142_v23 = vld [vmem:[%s10552_s0 + $0x48] sm:$0xff] }
 0x6fd   : > { %7240 = vmatprep.subr.bf16.mxu0 %v7239_v32  ;;  %v7216_v24 = vpack.c.bf16 %v2142_v23, %v2141_v22 }
 0x700   : > { %7242 = vmatpush3.bf16.msra.mxu0 %v7239_v32  ;;  %v7222_v32 = vpack.c.bf16 %v2146_v30, %v2145_v29 }
 0x701   : > { %7244 = vmatprep.subr.bf16.mxu0 %v7243_v39 }
 0x704   : > { %7246 = vmatpush3.bf16.msra.mxu0 %v7243_v39 }
 0x705   : > { %7248 = vmatprep.subr.bf16.mxu0 %v7247_v42 }
 0x708   : > { %7250 = vmatpush3.bf16.msra.mxu0 %v7247_v42 }
 0x709   : > { %7252 = vmatprep.subr.bf16.mxu0 %v7251_v45 }
 0x70c   : > { %7254 = vmatpush3.bf16.msra.mxu0 %v7251_v45 }
 0x70d   : > { %7256 = vmatprep.subr.bf16.mxu0 %v7255_v48 }
 0x710   : > { %7258 = vmatpush3.bf16.msra.mxu0 %v7255_v48 }
 0x711   : > { %7291 = vmatprep.subr.bf16.mxu0 %v8428_v0 }
 0x713   : > { %6607 = vmatmul.mubr.f32.vlgmr.msra.gmra.mrb[6].mxu0 %v9296_v55 }
 0x714   : > { %6609 = vmatprep.mubr.f32.mxu0 %v9299_v56 }
 0x717   : > { %6610 = vmatmul.mubr.f32.gmra.mrb[8].mxu0 %v9312_v61 }
 0x718   : > { %6612 = vmatprep.mubr.f32.mxu0 %v9316_v62 }
 0x71b   : > { %6613 = vmatmul.mubr.f32.gmra.mrb[10].mxu0 %v9328_v7 }
 0x71c   : > { %6615 = vmatprep.mubr.f32.mxu0 %v9332_v8 }
 0x71f   : > { %6616 = vmatmul.mubr.f32.gmra.mrb[12].mxu0 %v9340_v12 }
 0x720   : > { %6678 = vmatprep.mubr.msk.f32.mxu0 %vm8429_vm0, %v8430_v1 }
 0x783   : > { %v2103_v13 = vpop.xlane.xlu0 %2102 }
 0x784   : > { %v2105_v14 = vmul.f32 0.0078125, %v2103_v13 }
 0x786   : > { %v9347_v16 = vsub.f32 %v9202_v15, %v2105_v14  ;;  %v2139_v15 = vld [vmem:[%s10552_s0 + $0x30] sm:$0xff] }
 0x787   : > { %v7213_v21 = vpack.c.bf16 %v2140_v20, %v2139_v15 }
 0x788   : > { %v2107_v17 = vmul.f32 %v9347_v16, %v9347_v16 }
 0x789   : > { %7214 = vmatpush3.bf16.msra.mxu1 %v7213_v21 }
 0x78a   : > { %2108 = vadd.xlane.f32.xlu1 %v2107_v17  ;;  %7215 = vmatprep.subr.bf16.mxu1 %v8428_v0 }
 0x78d   : > { %7217 = vmatpush3.bf16.msra.mxu1 %v7216_v24  ;;  %v1060_v24 = vld [vmem:[%s10443_s26] sm:$0xff] }
 0x78e   : > { %7218 = vmatprep.subr.bf16.mxu1 %v8428_v0  ;;  %v2117_v25 = vrot.slane %v1060_v24, %v9097_v9  ;;  %v2122_v29 = vrot.slane %v1060_v24, %v9085_v5 }
 0x791   : > { %7220 = vmatpush3.bf16.msra.mxu1 %v7219_v27 }
 0x792   : > { %7221 = vmatprep.subr.bf16.mxu1 %v8428_v0 }
 0x795   : > { %7223 = vmatpush3.bf16.msra.mxu1 %v7222_v32 }
 0x796   : > { %7224 = vmatprep.subr.bf16.mxu1 %v8428_v0 }
 0x799   : > { %7226 = vmatpush3.bf16.msra.mxu1 %v7225_v36  ;;  %v2166_v36 = vld [vmem:[%s10556_s29 + $0x8] sm:$0xff] }
 0x7e6   : > { %v6608_v39 = vpop.f32.mrb[6].mxu0 }
 0x7e7   : > { %v2341_v40 = vadd.f32 %v6608_v39, %v2268_v38  ;;  %v2335_v41 = vpop.f32.mrb[7].mxu0 }
 0x7e8   : > { %v2336_v42 = vadd.f32 %v2335_v41, %v2268_v38 }
 0x7ea   : > { %v7292_v44 = vpack.c.bf16 %v2341_v40, %v2336_v42  ;;  %v6611_v45 = vpop.f32.mrb[8].mxu0  ;;  %v7780_v46 = vpack.i.bf16 %v2341_v40, %v2336_v42  ;;  %v2170_v40 = vld [vmem:[%s10556_s29 + $0x28] sm:$0xff]  ;;  %v2171_v42 = vld [vmem:[%s10556_s29 + $0x30] sm:$0xff] }
 0x7eb   : > { %v2351_v47 = vadd.f32 %v6611_v45, %v2268_v38  ;;  %v2345_v48 = vpop.f32.mrb[9].mxu0 }
 0x7ec   : > { %v2346_v51 = vadd.f32 %v2345_v48, %v2268_v38  ;;  %7781 = vrot.lane.b32.xlu0 %v7780_v46, %s10485_s22  ;;  %7294 = vmatpush3.bf16.xpose.msk.msra.mxu0 %vm9398_vm6, %v7292_v44  ;;  %v2172_v44 = vld [vmem:[%s10556_s29 + $0x38] sm:$0xff] }
 0x7ed   : > { %7295 = vmatprep.subr.bf16.mxu0 %v8428_v0  ;;  %v7271_v45 = vpack.c.bf16 %v2172_v44, %v2171_v42 }
 0x7ee   : > { %v6614_v54 = vpop.f32.mrb[10].mxu0  ;;  %v9406_v58 = vpack.i.bf16 %v2351_v47, %v2346_v51  ;;  %v7296_v6 = vpack.c.bf16 %v2351_v47, %v2346_v51  ;;  %v2174_v47 = vld [vmem:[%s10556_s29 + $0x48] sm:$0xff]  ;;  %v2175_v51 = vld [vmem:[%s10556_s29 + $0x50] sm:$0xff] }
 0x7ef   : > { %v2361_v60 = vadd.f32 %v6614_v54, %v2268_v38  ;;  %v2355_v3 = vpop.f32.mrb[11].mxu0  ;;  %v2176_v54 = vld [vmem:[%s10556_s29 + $0x58] sm:$0xff] }
 0x7f0   : > { %v2356_v11 = vadd.f32 %v2355_v3, %v2268_v38  ;;  %7786 = vrot.lane.b32.xlu1 %v9406_v58, %s10485_s22  ;;  %v2177_v3 = vld [vmem:[%s10556_s29 + $0x60] sm:$0xff] }
 0x7f2   : > { %v6617_v13 = vpop.f32.mrb[12].mxu0  ;;  %v9410_v14 = vpack.i.bf16 %v2361_v60, %v2356_v11  ;;  %v7300_v15 = vpack.c.bf16 %v2361_v60, %v2356_v11  ;;  %v7279_v60 = vpack.c.bf16 %v2176_v54, %v2175_v51 }
 0x7f3   : > { %v2371_v17 = vadd.f32 %v6617_v13, %v2268_v38  ;;  %v2365_v18 = vpop.f32.mrb[13].mxu0  ;;  %v2179_v13 = vld [vmem:[%s10556_s29 + $0x70] sm:$0xff] }
 0x7f4   : > { %v2366_v19 = vadd.f32 %v2365_v18, %v2268_v38  ;;  %7791 = vrot.lane.b32.xlu0 %v9410_v14, %s10485_s22  ;;  %7298 = vmatpush3.bf16.xpose.msk.msra.mxu0 %vm9398_vm6, %v7296_v6  ;;  %v7259_v38 = vpack.c.bf16 %v2166_v36, %v2165_v35  ;;  %v2178_v6 = vld [vmem:[%s10556_s29 + $0x68] sm:$0xff] }
 0x7f5   : > { %7299 = vmatprep.subr.bf16.mxu0 %v8428_v0  ;;  %v7283_v11 = vpack.c.bf16 %v2178_v6, %v2177_v3 }
 0x7f6   : > { %v9417_v52 = vpack.i.bf16 %v2371_v17, %v2366_v19  ;;  %v7304_v23 = vpack.c.bf16 %v2371_v17, %v2366_v19  ;;  %7260 = vmatprep.subr.bf16.mxu1 %v7259_v38  ;;  %v2180_v17 = vld [vmem:[%s10556_s29 + $0x78] sm:$0xff] }
 0x7f7   : > { %v7287_v18 = vpack.c.bf16 %v2180_v17, %v2179_v13 }
 0x7f8   : > { %7796 = vrot.lane.b32.xlu1 %v9417_v52, %s10485_s22  ;;  %7801 = vrot.lane.b32.xlu0 %v7780_v46, %s10555_s20 }
 0x7fc   : > { %7806 = vrot.lane.b32.xlu1 %v7780_v46, %s10483_s2  ;;  %7302 = vmatpush3.bf16.xpose.msk.msra.mxu0 %vm9398_vm6, %v7300_v15  ;;  %v2173_v46 = vld [vmem:[%s10556_s29 + $0x40] sm:$0xff] }
 0x7fd   : > { %7303 = vmatprep.subr.bf16.mxu0 %v8428_v0  ;;  %v7275_v48 = vpack.c.bf16 %v2174_v47, %v2173_v46 }
 0x800   : > { %7811 = vrot.lane.b32.xlu1 %v9406_v58, %s10555_s20 }
 0x804   : > { %7821 = vrot.lane.b32.xlu1 %v9410_v14, %s10555_s20  ;;  %7306 = vmatpush3.bf16.xpose.msk.msra.mxu0 %vm9398_vm6, %v7304_v23 }
 0x805   : > { %7323 = vmatprep.subr.bf16.mxu0 %v8428_v0 }
 0x808   : > { %7831 = vrot.lane.b32.xlu1 %v9417_v52, %s10555_s20 }
 0x817   : > { %v2109_v20 = vpop.xlane.xlu1 %2108 }
 0x818   : > { %v2110_v21 = vmul.f32 0.0078125, %v2109_v20 }
 0x81a   : > { %v2111_v22 = vadd.f32 1e-05, %v2110_v21 }
 0x81c   : > { %7976 = vrsqrt.f32 %v2111_v22 }
 0x826   : > { %v7977_v26 = vpop.eup %7976 }
 0x827   : > { %v2113_v27 = vmul.f32 %v7977_v26, %v9347_v16  ;;  %v2167_v16 = vld [vmem:[%s10556_s29 + $0x10] sm:$0xff] }
 0x829   : > { %v2118_v30 = vmul.f32 %v2117_v25, %v2113_v27 }
 0x82b   : > { %v9441_v32 = vadd.f32 %v2122_v29, %v2118_v30  ;;  %v2194_v29 = vrot.slane %v9392_v37, %v9097_v9 }
 0x82d   : > { %v2124_v33 = vadd.f32 %v9441_v32, %v9040_v50  ;;  %v2168_v50 = vld [vmem:[%s10556_s29 + $0x18] sm:$0xff] }
 0x82e   : > { %v7263_v39 = vpack.c.bf16 %v2168_v50, %v2167_v16 }
 0x82f   : > { %6572 = vmatmul.mubr.f32.vlgmr.msra.gmra.mrb[18].mxu1 %v2124_v33 }
 0x830   : > { %6650 = vmatprep.mubr.f32.mxu1 %v9248_v28  ;;  %v2169_v28 = vld [vmem:[%s10556_s29 + $0x20] sm:$0xff]  ;;  %7262 = vmatpush3.bf16.msra.mxu1 %v7259_v38 }
 0x831   : > { %7264 = vmatprep.subr.bf16.mxu1 %v7263_v39  ;;  %v7267_v41 = vpack.c.bf16 %v2170_v40, %v2169_v28 }
 0x834   : > { %7266 = vmatpush3.bf16.msra.mxu1 %v7263_v39 }
 0x835   : > { %7268 = vmatprep.subr.bf16.mxu1 %v7267_v41 }
 0x838   : > { %7270 = vmatpush3.bf16.msra.mxu1 %v7267_v41 }
 0x839   : > { %7272 = vmatprep.subr.bf16.mxu1 %v7271_v45 }
 0x83c   : > { %7274 = vmatpush3.bf16.msra.mxu1 %v7271_v45 }
 0x83d   : > { %7276 = vmatprep.subr.bf16.mxu1 %v7275_v48 }
 0x840   : > { %7278 = vmatpush3.bf16.msra.mxu1 %v7275_v48 }
 0x841   : > { %7280 = vmatprep.subr.bf16.mxu1 %v7279_v60 }
 0x844   : > { %7282 = vmatpush3.bf16.msra.mxu1 %v7279_v60 }
 0x845   : > { %7284 = vmatprep.subr.bf16.mxu1 %v7283_v11 }
 0x848   : > { %7286 = vmatpush3.bf16.msra.mxu1 %v7283_v11 }
 0x849   : > { %7288 = vmatprep.subr.bf16.mxu1 %v7287_v18 }
 0x84c   : > { %7290 = vmatpush3.bf16.msra.mxu1 %v7287_v18 }
 0x84d   : > { %7307 = vmatprep.subr.bf16.mxu1 %v8428_v0 }
 0x84f   : > { %6651 = vmatmul.mubr.f32.vlgmr.msra.gmra.mrb[20].mxu1 %v9288_v49 }
 0x850   : > { %6653 = vmatprep.mubr.f32.mxu1 %v9292_v53 }
 0x853   : > { %6654 = vmatmul.mubr.f32.gmra.mrb[22].mxu1 %v9302_v57 }
 0x854   : > { %6656 = vmatprep.mubr.f32.mxu1 %v9306_v59 }
 0x857   : > { %6657 = vmatmul.mubr.f32.gmra.mrb[24].mxu1 %v9319_v2 }
 0x858   : > { %6659 = vmatprep.mubr.f32.mxu1 %v9323_v4 }
 0x85b   : > { %6660 = vmatmul.mubr.f32.gmra.mrb[26].mxu1 %v9335_v10 }
 0x85c   : > { %6697 = vmatprep.mubr.msk.f32.mxu1 %vm8429_vm0, %v8430_v1 }
 0x85e   : > { %v7782_v19 = vpop.permute.xlu0 %7781 }
 0x85f   : > { %v7784_v15 = vunpack.i.h.bf16 %v7782_v19  ;;  %v7783_v20 = vunpack.i.l.bf16 %v7782_v19 }
 0x861   : > { %v7308_v21 = vpack.c.bf16 %v7784_v15, %v7783_v20 }
 0x862   : > { %v7787_v22 = vpop.permute.xlu1 %7786 }
 0x863   : > { %v7789_v23 = vunpack.i.h.bf16 %v7787_v22  ;;  %v7788_v24 = vunpack.i.l.bf16 %v7787_v22  ;;  %7310 = vmatpush3.bf16.xpose.msk.msra.mxu1 %vm9398_vm6, %v7308_v21  ;;  %v2377_v21 = vrot.slane %v9392_v37, %v9155_v34 }
 0x864   : > { %7311 = vmatprep.subr.bf16.mxu1 %v8428_v0 }
 0x865   : > { %v7312_v49 = vpack.c.bf16 %v7789_v23, %v7788_v24 }
 0x866   : > { %v7792_v53 = vpop.permute.xlu0 %7791 }
 0x867   : > { %v7794_v57 = vunpack.i.h.bf16 %v7792_v53  ;;  %v7793_v59 = vunpack.i.l.bf16 %v7792_v53 }
 0x869   : > { %v7316_v25 = vpack.c.bf16 %v7794_v57, %v7793_v59 }
 0x86a   : > { %v7797_v26 = vpop.permute.xlu1 %7796  ;;  %v7802_v10 = vpop.permute.xlu0 %7801 }
 0x86b   : > { %7314 = vmatpush3.bf16.xpose.msk.msra.mxu1 %vm9398_vm6, %v7312_v49  ;;  %v7799_v27 = vunpack.i.h.bf16 %v7797_v26  ;;  %v7798_v2 = vunpack.i.l.bf16 %v7797_v26  ;;  %v7804_v30 = vunpack.i.h.bf16 %v7802_v10  ;;  %v7803_v33 = vunpack.i.l.bf16 %v7802_v10 }
 0x86c   : > { %7315 = vmatprep.subr.bf16.mxu1 %v8428_v0 }
 0x86d   : > { %v7320_v4 = vpack.c.bf16 %v7799_v27, %v7798_v2  ;;  %v7324_v50 = vpack.c.bf16 %v7804_v30, %v7803_v33 }
 0x86e   : > { %v7807_v35 = vpop.permute.xlu1 %7806 }
 0x86f   : > { %v7809_v51 = vunpack.i.h.bf16 %v7807_v35  ;;  %v7808_v54 = vunpack.i.l.bf16 %v7807_v35 }
 0x872   : > { %v7812_v39 = vpop.permute.xlu1 %7811 }
 0x873   : > { %7318 = vmatpush3.bf16.xpose.msk.msra.mxu1 %vm9398_vm6, %v7316_v25  ;;  %v7814_v28 = vunpack.i.h.bf16 %v7812_v39  ;;  %v7813_v40 = vunpack.i.l.bf16 %v7812_v39 }
 0x874   : > { %7319 = vmatprep.subr.bf16.mxu1 %v8428_v0 }
 0x875   : > { %v7328_v41 = vpack.c.bf16 %v7814_v28, %v7813_v40 }
 0x876   : > { %v7822_v42 = vpop.permute.xlu1 %7821 }
 0x877   : > { %v7824_v44 = vunpack.i.h.bf16 %v7822_v42  ;;  %v7823_v45 = vunpack.i.l.bf16 %v7822_v42 }
 0x879   : > { %v7332_v46 = vpack.c.bf16 %v7824_v44, %v7823_v45 }
 0x87a   : > { %v7832_v47 = vpop.permute.xlu1 %7831 }
 0x87b   : > { %7322 = vmatpush3.bf16.xpose.msk.msra.mxu1 %vm9398_vm6, %v7320_v4  ;;  %v7833_v48 = vunpack.i.l.bf16 %v7832_v47 }
 0x87c   : > { %7339 = vmatprep.subr.bf16.mxu1 %v8428_v0 }
 0x902   : > { %v2261_v36 = vpop.f32.mrb[18].mxu1 }
 0x903   : > { %v2262_v16 = vadd.f32 %v2261_v36, %v2194_v29  ;;  %v6573_v38 = vpop.f32.mrb[19].mxu1 }
 0x905   : > { %2486 = vrot.lane.b32.xlu1 %v2262_v16, %s10555_s20  ;;  %2484 = vrot.lane.b32.xlu0 %v2262_v16, %s10485_s22 }
 0x906   : > { %6679 = vmatmul.mubr.msk.f32.vlgmr.msra.gmra.mrb[14].mxu0 %vm2626_vm5, %v2262_v16 }
 0x907   : > { %7326 = vmatpush3.bf16.xpose.msk.msra.mxu0 %vm9398_vm6, %v7324_v50  ;;  %6716 = vmatprep.mubr.msk.f32.mxu0 %vm8429_vm0, %v8430_v1 }
 0x908   : > { %7327 = vmatprep.subr.bf16.mxu0 %v8428_v0 }
 0x909   : > { %7816 = vrot.lane.b32.xlu0 %v9406_v58, %s10483_s2  ;;  %v7834_v58 = vunpack.i.h.bf16 %v7832_v47 }
 0x90d   : > { %7826 = vrot.lane.b32.xlu0 %v9410_v14, %s10483_s2  ;;  %v7336_v14 = vpack.c.bf16 %v7834_v58, %v7833_v48 }
 0x90f   : > { %7330 = vmatpush3.bf16.xpose.msk.msra.mxu0 %vm9398_vm6, %v7328_v41 }
 0x910   : > { %7331 = vmatprep.subr.bf16.mxu0 %v8428_v0 }
 0x911   : > { %7836 = vrot.lane.b32.xlu0 %v9417_v52, %s10483_s2  ;;  %v7340_v52 = vpack.c.bf16 %v7809_v51, %v7808_v54 }
 0x915   : > { %2488 = vrot.lane.b32.xlu0 %v2262_v16, %s10483_s2 }
 0x917   : > { %7334 = vmatpush3.bf16.xpose.msk.msra.mxu0 %vm9398_vm6, %v7332_v46 }
 0x918   : > { %7335 = vmatprep.subr.bf16.mxu0 %v8428_v0 }
 0x91f   : > { %7338 = vmatpush3.bf16.xpose.msk.msra.mxu0 %vm9398_vm6, %v7336_v14 }
 0x920   : > { %7355 = vmatprep.subr.bf16.mxu0 %v8428_v0 }
 0x922   : > { %v6652_v49 = vpop.f32.mrb[20].mxu1 }
 0x923   : > { %v2450_v53 = vadd.f32 %v6652_v49, %v2377_v21  ;;  %v2444_v57 = vpop.f32.mrb[21].mxu1 }
 0x924   : > { %v2445_v59 = vadd.f32 %v2444_v57, %v2377_v21 }
 0x926   : > { %v9559_v26 = vpack.i.bf16 %v2450_v53, %v2445_v59  ;;  %v7356_v27 = vpack.c.bf16 %v2450_v53, %v2445_v59  ;;  %v6655_v2 = vpop.f32.mrb[22].mxu1 }
 0x927   : > { %v2460_v4 = vadd.f32 %v6655_v2, %v2377_v21  ;;  %v2454_v10 = vpop.f32.mrb[23].mxu1 }
 0x928   : > { %7841 = vrot.lane.b32.xlu0 %v9559_v26, %s10485_s22  ;;  %v2455_v37 = vadd.f32 %v2454_v10, %v2377_v21 }
 0x92a   : > { %v6658_v29 = vpop.f32.mrb[24].mxu1  ;;  %v7359_v30 = vpack.c.bf16 %v2460_v4, %v2455_v37  ;;  %v7875_v28 = vpack.i.bf16 %v2460_v4, %v2455_v37 }
 0x92b   : > { %v2470_v33 = vadd.f32 %v6658_v29, %v2377_v21  ;;  %v2464_v35 = vpop.f32.mrb[25].mxu1 }
 0x92c   : > { %v2465_v36 = vadd.f32 %v2464_v35, %v2377_v21 }
 0x92e   : > { %v6661_v38 = vpop.f32.mrb[26].mxu1  ;;  %v7362_v50 = vpack.c.bf16 %v2470_v33, %v2465_v36  ;;  %v7850_v42 = vpack.i.bf16 %v2470_v33, %v2465_v36 }
 0x92f   : > { %v2474_v39 = vpop.f32.mrb[27].mxu1  ;;  %v2480_v40 = vadd.f32 %v6661_v38, %v2377_v21 }
 0x930   : > { %v2475_v41 = vadd.f32 %v2474_v39, %v2377_v21 }
 0x932   : > { %v7365_v44 = vpack.c.bf16 %v2480_v40, %v2475_v41  ;;  %v9572_v45 = vpack.i.bf16 %v2480_v40, %v2475_v41 }
 0x977   : > { %v2487_v60 = vpop.permute.xlu1 %2486  ;;  %v2485_v3 = vpop.permute.xlu0 %2484 }
 0x978   : > { %6698 = vmatmul.mubr.msk.f32.vlgmr.msra.gmra.mrb[28].mxu1 %vm2626_vm5, %v2485_v3  ;;  %6717 = vmatmul.mubr.msk.f32.vlgmr.msra.gmra.mrb[16].mxu0 %vm2626_vm5, %v2487_v60 }
 0x979   : > { %7342 = vmatpush3.bf16.xpose.msk.msra.mxu1 %vm9398_vm6, %v7340_v52  ;;  %6735 = vmatprep.mubr.msk.f32.mxu1 %vm8429_vm0, %v8430_v1 }
 0x97a   : > { %7343 = vmatprep.subr.bf16.mxu1 %v8428_v0  ;;  %6754 = vmatprep.mubr.msk.f32.mxu0 %vm8429_vm0, %v8430_v1 }
 0x97b   : > { %v7817_v6 = vpop.permute.xlu0 %7816  ;;  %7357 = vmatpush3.bf16.msra.mxu0 %v7356_v27 }
 0x97c   : > { %v7819_v11 = vunpack.i.h.bf16 %v7817_v6  ;;  %v7818_v13 = vunpack.i.l.bf16 %v7817_v6  ;;  %7358 = vmatprep.subr.bf16.mxu0 %v8428_v0 }
 0x97e   : > { %v7344_v17 = vpack.c.bf16 %v7819_v11, %v7818_v13 }
 0x97f   : > { %v7827_v18 = vpop.permute.xlu0 %7826  ;;  %7360 = vmatpush3.bf16.msra.mxu0 %v7359_v30 }
 0x980   : > { %v7829_v19 = vunpack.i.h.bf16 %v7827_v18  ;;  %v7828_v15 = vunpack.i.l.bf16 %v7827_v18  ;;  %7361 = vmatprep.subr.bf16.mxu0 %v8428_v0 }
 0x981   : > { %7346 = vmatpush3.bf16.xpose.msk.msra.mxu1 %vm9398_vm6, %v7344_v17 }
 0x982   : > { %7347 = vmatprep.subr.bf16.mxu1 %v8428_v0  ;;  %v7348_v20 = vpack.c.bf16 %v7829_v19, %v7828_v15 }
 0x983   : > { %v7837_v22 = vpop.permute.xlu0 %7836  ;;  %7363 = vmatpush3.bf16.msra.mxu0 %v7362_v50 }
 0x984   : > { %v7839_v23 = vunpack.i.h.bf16 %v7837_v22  ;;  %v7838_v24 = vunpack.i.l.bf16 %v7837_v22  ;;  %7364 = vmatprep.subr.bf16.mxu0 %v8428_v0 }
 0x986   : > { %v7352_v25 = vpack.c.bf16 %v7839_v23, %v7838_v24 }
 0x987   : > { %v2489_v16 = vpop.permute.xlu0 %2488  ;;  %7366 = vmatpush3.bf16.msra.mxu0 %v7365_v44 }
 0x988   : > { %7379 = vmatprep.subr.bf16.mxu0 %v8428_v0 }
 0x989   : > { %7350 = vmatpush3.bf16.xpose.msk.msra.mxu1 %vm9398_vm6, %v7348_v20 }
 0x98a   : > { %7351 = vmatprep.subr.bf16.mxu1 %v8428_v0 }
 0x991   : > { %7354 = vmatpush3.bf16.xpose.msk.msra.mxu1 %vm9398_vm6, %v7352_v25 }
 0x992   : > { %7367 = vmatprep.subr.bf16.mxu1 %v8428_v0 }
 0x998   : > { %6736 = vmatmul.mubr.msk.f32.vlgmr.msra.gmra.mrb[30].mxu1 %vm2626_vm5, %v2489_v16 }
 0x999   : > { %6773 = vmatprep.mubr.msk.f32.mxu1 %vm8429_vm0, %v8430_v1 }
 0x99a   : > { %v7842_v48 = vpop.permute.xlu0 %7841 }
 0x99b   : > { %v7844_v14 = vunpack.i.h.bf16 %v7842_v48  ;;  %v7843_v51 = vunpack.i.l.bf16 %v7842_v48 }
 0x99d   : > { %v7368_v54 = vpack.c.bf16 %v7844_v14, %v7843_v51 }
 0x99f   : > { %7369 = vmatpush3.bf16.msra.mxu1 %v7368_v54 }
 0x9a0   : > { %7370 = vmatprep.subr.bf16.mxu1 %v8428_v0 }
 0x9d9   : > { %v2711_v46 = vpop.f32.mrb[14].mxu0 }
 0x9da   : > { %v6680_v47 = vpop.f32.mrb[15].mxu0  ;;  %v2979_v58 = vsel %vm2021_vm3, %v2711_v46, -inf }
 0x9db   : > { %2980 = vmax.xlane.f32.xlu1 %v2979_v58 }
 0xa4b   : > { %v2799_v52 = vpop.f32.mrb[28].mxu1  ;;  %v2887_v60 = vpop.f32.mrb[16].mxu0 }
 0xa4c   : > { %v6699_v3 = vpop.f32.mrb[29].mxu1  ;;  %v6718_v6 = vpop.f32.mrb[17].mxu0  ;;  %v2982_v11 = vsel %vm2021_vm3, %v2799_v52, -inf  ;;  %v2985_v13 = vsel %vm2021_vm3, %v2887_v60, -inf }
 0xa4d   : > { %2983 = vmax.xlane.f32.xlu0 %v2982_v11 }
 0xa51   : > { %2986 = vmax.xlane.f32.xlu0 %v2985_v13 }
 0xa67   : > { %7851 = vrot.lane.b32.xlu0 %v7850_v42, %s10485_s22 }
 0xa68   : > { %v2981_v15 = vpop.xlane.xlu1 %2980 }
 0xa69   : > { %v2991_v20 = vsub.f32 %v2711_v46, %v2981_v15 }
 0xa6b   : > { %v2975_v17 = vpop.f32.mrb[30].mxu1  ;;  %7866 = vrot.lane.b32.xlu0 %v9559_v26, %s10483_s2  ;;  %v2995_v21 = vmul.f32 1.442695, %v2991_v20 }
 0xa6c   : > { %v6737_v18 = vpop.f32.mrb[31].mxu1  ;;  %v2988_v19 = vsel %vm2021_vm3, %v2975_v17, -inf }
 0xa6d   : > { %2989 = vmax.xlane.f32.xlu1 %v2988_v19  ;;  %7978 = vpow2.f32 %v2995_v21 }
 0xa6f   : > { %7876 = vrot.lane.b32.xlu0 %v7875_v28, %s10483_s2 }
 0xa77   : > { %v7979_v22 = vpop.eup %7978 }
 0xa78   : > { %v3003_v23 = vsel %vm2021_vm3, %v7979_v22, 0.0 }
 0xa7e   : > { %7846 = vrot.lane.b32.xlu1 %v7875_v28, %s10485_s22 }
 0xa82   : > { %7856 = vrot.lane.b32.xlu1 %v9572_v45, %s10485_s22  ;;  %s10565_s22 = smov 80  }
 0xa86   : > { %7861 = vrot.lane.b32.xlu1 %v9559_v26, %s10555_s20 }
 0xa8a   : > { %7871 = vrot.lane.b32.xlu1 %v7875_v28, %s10555_s20 }
 0xa8e   : > { %7881 = vrot.lane.b32.xlu1 %v7850_v42, %s10555_s20  ;;  %3004 = vadd.xlane.f32.xlu0 %v3003_v23 }
 0xaa4   : > { %7886 = vrot.lane.b32.xlu0 %v7850_v42, %s10483_s2 }
 0xada   : > { %v2984_v24 = vpop.xlane.xlu0 %2983 }
 0xadb   : > { %v2992_v49 = vsub.f32 %v2799_v52, %v2984_v24 }
 0xadd   : > { %v2997_v53 = vmul.f32 1.442695, %v2992_v49 }
 0xade   : > { %v2987_v57 = vpop.xlane.xlu0 %2986 }
 0xadf   : > { %7980 = vpow2.f32 %v2997_v53  ;;  %v2993_v59 = vsub.f32 %v2887_v60, %v2987_v57 }
 0xae1   : > { %v2999_v25 = vmul.f32 1.442695, %v2993_v59 }
 0xae2   : > { %v7852_v30 = vpop.permute.xlu0 %7851 }
 0xae3   : > { %7982 = vpow2.f32 %v2999_v25  ;;  %v7854_v16 = vunpack.i.h.bf16 %v7852_v30  ;;  %v7853_v38 = vunpack.i.l.bf16 %v7852_v30 }
 0xae5   : > { %v7374_v28 = vpack.c.bf16 %v7854_v16, %v7853_v38 }
 0xae6   : > { %v7867_v47 = vpop.permute.xlu0 %7866 }
 0xae7   : > { %v7869_v23 = vunpack.i.h.bf16 %v7867_v47  ;;  %v7868_v24 = vunpack.i.l.bf16 %v7867_v47  ;;  %v2182_v47 = vld [vmem:[#allocation10 + $0x8] sm:$0xff] }
 0xae9   : > { %v9593_v27 = vpop.eup %7980 }
 0xaea   : > { %v3006_v26 = vsel %vm2021_vm3, %v9593_v27, 0.0  ;;  %v7877_v58 = vpop.permute.xlu0 %7876 }
 0xaeb   : > { %3007 = vadd.xlane.f32.xlu1 %v3006_v26  ;;  %v7392_v26 = vpack.c.bf16 %v7869_v23, %v7868_v24 }
 0xaed   : > { %v9597_v2 = vpop.eup %7982 }
 0xaee   : > { %v3009_v4 = vsel %vm2021_vm3, %v9597_v2, 0.0 }
 0xaef   : > { %3010 = vadd.xlane.f32.xlu1 %v3009_v4  ;;  %v7879_v4 = vunpack.i.h.bf16 %v7877_v58 }
 0xafa   : > { %v2990_v10 = vpop.xlane.xlu1 %2989 }
 0xafb   : > { %v2994_v37 = vsub.f32 %v2975_v17, %v2990_v10  ;;  %v7878_v10 = vunpack.i.l.bf16 %v7877_v58  ;;  %v2183_v58 = vld [vmem:[#allocation10 + $0x10] sm:$0xff] }
 0xafd   : > { %v3001_v29 = vmul.f32 1.442695, %v2994_v37 }
 0xafe   : > { %v7847_v33 = vpop.permute.xlu1 %7846 }
 0xaff   : > { %7984 = vpow2.f32 %v3001_v29  ;;  %v7849_v35 = vunpack.i.h.bf16 %v7847_v33  ;;  %v7848_v36 = vunpack.i.l.bf16 %v7847_v33  ;;  %v7395_v33 = vpack.c.bf16 %v7879_v4, %v7878_v10  ;;  %v3435_v4 = vld [vmem:[%s10433_s16 + $0x18] sm:$0xff]  ;;  %v3432_v10 = vld [vmem:[%s10433_s16] sm:$0xff] }
 0xb00   : > { %7891 = vrot.lane.b32.xlu1 %v9572_v45, %s10555_s20 }
 0xb01   : > { %v7371_v50 = vpack.c.bf16 %v7849_v35, %v7848_v36 }
 0xb02   : > { %v7857_v39 = vpop.permute.xlu1 %7856 }
 0xb03   : > { %7372 = vmatpush3.bf16.msra.mxu1 %v7371_v50  ;;  %v7859_v40 = vunpack.i.h.bf16 %v7857_v39  ;;  %v7858_v41 = vunpack.i.l.bf16 %v7857_v39 }
 0xb04   : > { %7373 = vmatprep.subr.bf16.mxu1 %v8428_v0 }
 0xb05   : > { %v7377_v44 = vpack.c.bf16 %v7859_v40, %v7858_v41 }
 0xb06   : > { %v7862_v14 = vpop.permute.xlu1 %7861 }
 0xb07   : > { %7375 = vmatpush3.bf16.msra.mxu1 %v7374_v28  ;;  %v7864_v54 = vunpack.i.h.bf16 %v7862_v14  ;;  %v7863_v52 = vunpack.i.l.bf16 %v7862_v14  ;;  %v2184_v14 = vld [vmem:[#allocation10 + $0x18] sm:$0xff] }
 0xb08   : > { %7376 = vmatprep.subr.bf16.mxu1 %v8428_v0 }
 0xb09   : > { %v9605_v42 = vpop.eup %7984  ;;  %v7380_v6 = vpack.c.bf16 %v7864_v54, %v7863_v52  ;;  %v2185_v54 = vld [vmem:[#allocation10 + $0x20] sm:$0xff]  ;;  %v2186_v52 = vld [vmem:[#allocation10 + $0x28] sm:$0xff] }
 0xb0a   : > { %v3012_v46 = vsel %vm2021_vm3, %v9605_v42, 0.0  ;;  %v7872_v51 = vpop.permute.xlu1 %7871 }
 0xb0b   : > { %3013 = vadd.xlane.f32.xlu0 %v3012_v46  ;;  %7378 = vmatpush3.bf16.msra.mxu1 %v7377_v44  ;;  %v7874_v11 = vunpack.i.h.bf16 %v7872_v51  ;;  %v7873_v13 = vunpack.i.l.bf16 %v7872_v51  ;;  %v2181_v46 = vld [vmem:[#allocation10] sm:$0xff]  ;;  %v7407_v51 = vpack.c.bf16 %v2184_v14, %v2183_v58 }
 0xb0c   : > { %7391 = vmatprep.subr.bf16.mxu1 %v8428_v0  ;;  %v3445_v58 = vld [vmem:[%s10433_s16 + $0x68] sm:$0xff] }
 0xb0d   : > { %v7383_v18 = vpack.c.bf16 %v7874_v11, %v7873_v13 }
 0xb0e   : > { %v7882_v17 = vpop.permute.xlu1 %7881 }
 0xb0f   : > { %v7884_v19 = vunpack.i.h.bf16 %v7882_v17 }
 0xb1b   : > { %v3005_v48 = vpop.xlane.xlu0 %3004 }
 0xb1c   : > { %7986 = vrcp.f32 %v3005_v48  ;;  %v7404_v48 = vpack.c.bf16 %v2182_v47, %v2181_v46 }
 0xb1f   : > { %v7887_v37 = vpop.permute.xlu0 %7886 }
 0xb20   : > { %v7888_v35 = vunpack.i.l.bf16 %v7887_v37 }
 0xb21   : > { %7896 = vrot.lane.b32.xlu0 %v9572_v45, %s10483_s2  ;;  %v7883_v45 = vunpack.i.l.bf16 %v7882_v17 }
 0xb23   : > { %v7386_v15 = vpack.c.bf16 %v7884_v19, %v7883_v45 }
 0xb26   : > { %v7987_v60 = vpop.eup %7986 }
 0xb27   : > { %v3019_v3 = vmul.f32 %v7987_v60, %v7979_v22  ;;  %v7410_v60 = vpack.c.bf16 %v2186_v52, %v2185_v54  ;;  %v3446_v54 = vld [vmem:[%s10433_s16 + $0x70] sm:$0xff] }
 0xb29   : > { %6755 = vmatmul.mubr.msk.f32.vlgmr.msra.gmra.mrb[18].mxu0 %vm2021_vm3, %v3019_v3  ;;  %v2187_v3 = vld [vmem:[#allocation10 + $0x30] sm:$0xff] }
 0xb2a   : > { %7381 = vmatpush3.bf16.msra.mxu0 %v7380_v6  ;;  %6792 = vmatprep.mubr.msk.f32.mxu0 %vm8429_vm0, %v8430_v1  ;;  %v2188_v6 = vld [vmem:[#allocation10 + $0x38] sm:$0xff] }
 0xb2b   : > { %7382 = vmatprep.subr.bf16.mxu0 %v8428_v0  ;;  %v7413_v13 = vpack.c.bf16 %v2188_v6, %v2187_v3  ;;  %v3448_v6 = vld [vmem:[%s10433_s16 + $0x80] sm:$0xff] }
 0xb2e   : > { %7384 = vmatpush3.bf16.msra.mxu0 %v7383_v18 }
 0xb2f   : > { %7385 = vmatprep.subr.bf16.mxu0 %v8428_v0 }
 0xb32   : > { %7387 = vmatpush3.bf16.msra.mxu0 %v7386_v15 }
 0xb33   : > { %7388 = vmatprep.subr.bf16.mxu0 %v8428_v0 }
 0xb78   : > { %v3008_v20 = vpop.xlane.xlu1 %3007 }
 0xb79   : > { %7988 = vrcp.f32 %v3008_v20 }
 0xb7c   : > { %v3011_v21 = vpop.xlane.xlu1 %3010 }
 0xb7d   : > { %7990 = vrcp.f32 %v3011_v21 }
 0xb80   : > { %v7892_v22 = vpop.permute.xlu1 %7891 }
 0xb81   : > { %v7894_v49 = vunpack.i.h.bf16 %v7892_v22  ;;  %v7893_v53 = vunpack.i.l.bf16 %v7892_v22 }
 0xb83   : > { %v7989_v57 = vpop.eup %7988  ;;  %v7389_v59 = vpack.c.bf16 %v7894_v49, %v7893_v53  ;;  %v5858_v49 = vld [vmem:[#allocation13] ss:$0 sm:$0xff] }
 0xb84   : > { %v3020_v25 = vmul.f32 %v7989_v57, %v9593_v27  ;;  %v7889_v27 = vunpack.i.h.bf16 %v7887_v37 }
 0xb85   : > { %7390 = vmatpush3.bf16.msra.mxu0 %v7389_v59 }
 0xb86   : > { %6774 = vmatmul.mubr.msk.f32.vlgmr.msra.gmra.mrb[32].mxu1 %vm2021_vm3, %v3020_v25  ;;  %7403 = vmatprep.subr.bf16.mxu0 %v8428_v0  ;;  %v7398_v36 = vpack.c.bf16 %v7889_v27, %v7888_v35  ;;  %v3436_v35 = vld [vmem:[%s10433_s16 + $0x20] sm:$0xff] }
 0xb87   : > { %v7991_v29 = vpop.eup %7990  ;;  %7393 = vmatpush3.bf16.msra.mxu1 %v7392_v26  ;;  %6811 = vmatprep.mubr.msk.f32.mxu1 %vm8429_vm0, %v8430_v1  ;;  %v3433_v26 = vld [vmem:[%s10433_s16 + $0x8] sm:$0xff] }
 0xb88   : > { %7394 = vmatprep.subr.bf16.mxu1 %v8428_v0  ;;  %v3021_v30 = vmul.f32 %v7991_v29, %v9597_v2  ;;  %v7415_v37 = vpack.c.bf16 %v3435_v4, %v3433_v26  ;;  %v3434_v29 = vld [vmem:[%s10433_s16 + $0x10] sm:$0xff]  ;;  %v3460_v26 = vld [vmem:[%s10433_s16 + $0xe0] sm:$0xff] }
 0xb89   : > { %v3462_v4 = vld [vmem:[%s10433_s16 + $0xf0] sm:$0xff] }
 0xb8a   : > { %6793 = vmatmul.mubr.msk.f32.vlgmr.msra.gmra.mrb[20].mxu0 %vm2021_vm3, %v3021_v30  ;;  %v3439_v30 = vld [vmem:[%s10433_s16 + $0x38] sm:$0xff] }
 0xb8b   : > { %7396 = vmatpush3.bf16.msra.mxu1 %v7395_v33  ;;  %6830 = vmatprep.mubr.msk.f32.mxu0 %vm8429_vm0, %v8430_v1  ;;  %v7417_v33 = vpack.c.bf16 %v3434_v29, %v3432_v10  ;;  %v7445_v10 = vpack.c.bf16 %v3462_v4, %v3460_v26  ;;  %v3566_v29 = vld [vmem:[%s10558_s13 + $0x88] sm:$0xff] }
 0xb8c   : > { %7397 = vmatprep.subr.bf16.mxu1 %v8428_v0  ;;  %7405 = vmatpush3.bf16.msra.mxu0 %v7404_v48  ;;  %v3447_v48 = vld [vmem:[%s10433_s16 + $0x78] sm:$0xff] }
 0xb8d   : > { %7406 = vmatprep.subr.bf16.mxu0 %v8428_v0  ;;  %v7427_v14 = vpack.c.bf16 %v3447_v48, %v3445_v58  ;;  %v3572_v58 = vld [vmem:[%s10558_s13 + $0xb8] sm:$0xff] }
 0xb8f   : > { %7399 = vmatpush3.bf16.msra.mxu1 %v7398_v36  ;;  %v3438_v36 = vld [vmem:[%s10433_s16 + $0x30] sm:$0xff] }
 0xb90   : > { %7400 = vmatprep.subr.bf16.mxu1 %v8428_v0  ;;  %7408 = vmatpush3.bf16.msra.mxu0 %v7407_v51  ;;  %v3444_v51 = vld [vmem:[%s10433_s16 + $0x60] sm:$0xff] }
 0xb91   : > { %7409 = vmatprep.subr.bf16.mxu0 %v8428_v0  ;;  %v7429_v52 = vpack.c.bf16 %v3446_v54, %v3444_v51  ;;  %v3555_v51 = vld [vmem:[%s10558_s13 + $0x30] sm:$0xff]  ;;  %v3556_v54 = vld [vmem:[%s10558_s13 + $0x38] sm:$0xff] }
 0xb94   : > { %7411 = vmatpush3.bf16.msra.mxu0 %v7410_v60  ;;  %v3449_v60 = vld [vmem:[%s10433_s16 + $0x88] sm:$0xff] }
 0xb95   : > { %7412 = vmatprep.subr.bf16.mxu0 %v8428_v0 }
 0xb98   : > { %v3014_v16 = vpop.xlane.xlu0 %3013  ;;  %7414 = vmatpush3.bf16.msra.mxu0 %v7413_v13 }
 0xb99   : > { %7992 = vrcp.f32 %v3014_v16  ;;  %v3441_v16 = vld [vmem:[%s10433_s16 + $0x48] sm:$0xff] }
 0xb9c   : > { %v7897_v38 = vpop.permute.xlu0 %7896 }
 0xb9d   : > { %v7899_v50 = vunpack.i.h.bf16 %v7897_v38  ;;  %v7898_v2 = vunpack.i.l.bf16 %v7897_v38  ;;  %v3443_v38 = vld [vmem:[%s10433_s16 + $0x58] sm:$0xff] }
 0xb9f   : > { %v7401_v39 = vpack.c.bf16 %v7899_v50, %v7898_v2  ;;  %v7421_v50 = vpack.c.bf16 %v3438_v36, %v3436_v35  ;;  %v7423_v2 = vpack.c.bf16 %v3443_v38, %v3441_v16  ;;  %v3568_v35 = vld [vmem:[%s10558_s13 + $0x98] sm:$0xff]  ;;  %v3551_v38 = vld [vmem:[%s10558_s13 + $0x10] sm:$0xff] }
 0xba1   : > { %7402 = vmatpush3.bf16.msra.mxu1 %v7401_v39  ;;  %v3440_v39 = vld [vmem:[%s10433_s16 + $0x40] sm:$0xff] }
 0xba2   : > { %7416 = vmatprep.subr.bf16.mxu1 %v7415_v37  ;;  %v3565_v37 = vld [vmem:[%s10558_s13 + $0x80] sm:$0xff] }
 0xba3   : > { %v7993_v28 = vpop.eup %7992 }
 0xba4   : > { %v3022_v40 = vmul.f32 %v7993_v28, %v9605_v42  ;;  %v3442_v28 = vld [vmem:[%s10433_s16 + $0x50] sm:$0xff] }
 0xba6   : > { %6812 = vmatmul.mubr.msk.f32.vlgmr.msra.gmra.mrb[34].mxu1 %vm2021_vm3, %v3022_v40  ;;  %v7425_v40 = vpack.c.bf16 %v3442_v28, %v3440_v39  ;;  %v3570_v39 = vld [vmem:[%s10558_s13 + $0xa8] sm:$0xff] }
 0xba7   : > { %3540 = vmatprep.mubr.f32.mxu1 %v8430_v1  ;;  %7418 = vmatpush1.bf16.msra.mxu1 %v7417_v33  ;;  %v3550_v33 = vld [vmem:[%s10558_s13 + $0x8] sm:$0xff] }
 0xbfc   : > { %v3092_v41 = vpop.f32.mrb[18].mxu0 }
 0xbfd   : > { %v6756_v44 = vpop.f32.mrb[19].mxu0 }
 0xc59   : > { %v3165_v42 = vpop.f32.mrb[32].mxu1 }
 0xc5a   : > { %3316 = vrot.lane.b32.xlu1 %v3165_v42, %s10481_s18  ;;  %v6775_v11 = vpop.f32.mrb[33].mxu1  ;;  %v3451_v42 = vld [vmem:[%s10433_s16 + $0x98] sm:$0xff]  ;;  %s10563_s18 = sld [smem:[#allocation51_spill]] }
 0xc5b   : > { %v7431_v3 = vpack.c.bf16 %v3451_v42, %v3449_v60  ;;  %v3450_v11 = vld [vmem:[%s10433_s16 + $0x90] sm:$0xff]  ;;  %v3574_v60 = vld [vmem:[%s10558_s13 + $0xc8] sm:$0xff]  ;;  %v7461_v42 = vpack.c.bf16 %v3556_v54, %v3555_v51 }
 0xc5c   : > { %v7433_v13 = vpack.c.bf16 %v3450_v11, %v3448_v6  ;;  %v3557_v6 = vld [vmem:[%s10558_s13 + $0x40] sm:$0xff]  ;;  %v3558_v11 = vld [vmem:[%s10558_s13 + $0x48] sm:$0xff] }
 0xc5d   : > { %v3238_v17 = vpop.f32.mrb[20].mxu0 }
 0xc5e   : > { %3320 = vrot.lane.b32.xlu0 %v3238_v17, %s10557_s7  ;;  %v6794_v18 = vpop.f32.mrb[21].mxu0  ;;  %v3453_v17 = vld [vmem:[%s10433_s16 + $0xa8] sm:$0xff] }
 0xc5f   : > { %v3455_v18 = vld [vmem:[%s10433_s16 + $0xb8] sm:$0xff] }
 0xc79   : > { %v3311_v19 = vpop.f32.mrb[34].mxu1 }
 0xc7a   : > { %3324 = vrot.lane.b32.xlu1 %v3311_v19, %s10479_s23  ;;  %v6813_v45 = vpop.f32.mrb[35].mxu1  ;;  %v3452_v19 = vld [vmem:[%s10433_s16 + $0xa0] sm:$0xff] }
 0xc7b   : > { %v7435_v45 = vpack.c.bf16 %v3455_v18, %v3453_v17  ;;  %v3576_v17 = vld [vmem:[%s10558_s13 + $0xd8] sm:$0xff]  ;;  %v7465_v18 = vpack.c.bf16 %v3558_v11, %v3557_v6  ;;  %v3683_v6 = vld [vmem:[%s10560_s28 + $0x10] sm:$0xff] }
 0xc7c   : > { %v3684_v11 = vld [vmem:[%s10560_s28 + $0x18] sm:$0xff] }
 0xccc   : > { %v3317_v15 = vpop.permute.xlu1 %3316 }
 0xccd   : > { %v3327_v21 = vsel %vm2626_vm5, %v3092_v41, %v3317_v15  ;;  %v3454_v15 = vld [vmem:[%s10433_s16 + $0xb0] sm:$0xff] }
 0xcd0   : > { %v3321_v20 = vpop.permute.xlu0 %3320 }
 0xcd1   : > { %v3328_v22 = vsel %vm1374_vm1, %v3327_v21, %v3321_v20  ;;  %v3457_v20 = vld [vmem:[%s10433_s16 + $0xc8] sm:$0xff]  ;;  %v3459_v21 = vld [vmem:[%s10433_s16 + $0xd8] sm:$0xff] }
 0xcec   : > { %v3325_v23 = vpop.permute.xlu1 %3324 }
 0xced   : > { %v3330_v24 = vsel %vm3329_vm7, %v3328_v22, %v3325_v23  ;;  %v7437_v22 = vpack.c.bf16 %v3454_v15, %v3452_v19  ;;  %v7439_v23 = vpack.c.bf16 %v3459_v21, %v3457_v20  ;;  %v3560_v15 = vld [vmem:[%s10558_s13 + $0x58] sm:$0xff]  ;;  %v3577_v20 = vld [vmem:[%s10558_s13 + $0xe0] sm:$0xff]  ;;  %v3578_v21 = vld [vmem:[%s10558_s13 + $0xe8] sm:$0xff] }
 0xcee   : > { %6831 = vmatmul.mubr.msk.f32.vlgmr.msra.gmra.mrb[22].mxu0 %vm2021_vm3, %v3330_v24  ;;  %v3456_v24 = vld [vmem:[%s10433_s16 + $0xc0] sm:$0xff] }
 0xdc1   : > { %v3406_v53 = vpop.f32.mrb[22].mxu0 }
 0xdc2   : > { %v3407_v57 = vadd.f32 %v5858_v49, %v3406_v53  ;;  %v6832_v59 = vpop.f32.mrb[23].mxu0  ;;  %v3458_v49 = vld [vmem:[%s10433_s16 + $0xd0] sm:$0xff]  ;;  %v3461_v53 = vld [vmem:[%s10433_s16 + $0xe8] sm:$0xff] }
 0xdc3   : > { %v7441_v59 = vpack.c.bf16 %v3458_v49, %v3456_v24 }
 0xdc4   : > { %v3410_v25 = vadd.f32 %v3407_v57, %v9441_v32  ;;  %v3437_v32 = vld [vmem:[%s10433_s16 + $0x28] sm:$0xff]  ;;  %v3463_v57 = vld [vmem:[%s10433_s16 + $0xf8] sm:$0xff] }
 0xdc5   : > { %v7419_v27 = vpack.c.bf16 %v3439_v30, %v3437_v32  ;;  %v3549_v32 = vld [vmem:[%s10558_s13] sm:$0xff]  ;;  %v7447_v30 = vpack.c.bf16 %v3566_v29, %v3565_v37 }
 0xdc6   : > { %3411 = vadd.xlane.f32.xlu0 %v3410_v25  ;;  %v7449_v36 = vpack.c.bf16 %v3550_v33, %v3549_v32  ;;  %v3561_v32 = vld [vmem:[%s10558_s13 + $0x60] sm:$0xff] }
 0xdc7   : > { %7420 = vmatprep.subr.bf16.mxu1 %v7419_v27  ;;  %v3567_v27 = vld [vmem:[%s10558_s13 + $0x90] sm:$0xff]  ;;  %7448 = vmatprep.subr.bf16.mxu0 %v7447_v30  ;;  %v3562_v30 = vld [vmem:[%s10558_s13 + $0x68] sm:$0xff] }
 0xdc8   : > { %7422 = vmatpush1.bf16.msra.mxu1 %v7421_v50  ;;  %v7451_v16 = vpack.c.bf16 %v3568_v35, %v3567_v27  ;;  %v3552_v50 = vld [vmem:[%s10558_s13 + $0x18] sm:$0xff]  ;;  %7450 = vmatpush3.bf16.msra.mxu0 %v7449_v36  ;;  %v7473_v33 = vpack.c.bf16 %v3562_v30, %v3561_v32  ;;  %v3694_v32 = vld [vmem:[%s10560_s28 + $0x68] sm:$0xff] }
 0xdc9   : > { %7424 = vmatprep.subr.bf16.mxu1 %v7423_v2  ;;  %v3569_v2 = vld [vmem:[%s10558_s13 + $0xa0] sm:$0xff]  ;;  %v7453_v28 = vpack.c.bf16 %v3552_v50, %v3551_v38  ;;  %v3580_v27 = vld [vmem:[%s10558_s13 + $0xf8] sm:$0xff] }
 0xdca   : > { %7452 = vmatprep.subr.bf16.mxu0 %v7451_v16  ;;  %v3564_v36 = vld [vmem:[%s10558_s13 + $0x78] sm:$0xff]  ;;  %v3464_v38 = vld [vmem:[%s10559_s17] sm:$0x3]  ;;  %s10566_s17 = scalar_lea.vmem [#allocation5], %s8892_s19 }
 0xdcb   : > { %v3469_v50 = vrot.slane %v3464_v38, %v9097_v9 }
 0xdcc   : > { %7426 = vmatpush1.bf16.msra.mxu1 %v7425_v40  ;;  %v7455_v40 = vpack.c.bf16 %v3570_v39, %v3569_v2  ;;  %7454 = vmatpush3.bf16.msra.mxu0 %v7453_v28  ;;  %v3473_v2 = vrot.slane %v3464_v38, %v9085_v5  ;;  %v3716_v38 = vld [vmem:[%s10562_s21 + $0x18] sm:$0xff] }
 0xdcd   : > { %7428 = vmatprep.subr.bf16.mxu1 %v7427_v14 }
 0xdce   : > { %7456 = vmatprep.subr.bf16.mxu0 %v7455_v40 }
 0xdd0   : > { %7430 = vmatpush1.bf16.msra.mxu1 %v7429_v52  ;;  %v3573_v52 = vld [vmem:[%s10558_s13 + $0xc0] sm:$0xff] }
 0xdd1   : > { %7432 = vmatprep.subr.bf16.mxu1 %v7431_v3  ;;  %v7463_v3 = vpack.c.bf16 %v3574_v60, %v3573_v52  ;;  %v3681_v60 = vld [vmem:[%s10560_s28] sm:$0xff] }
 0xdd4   : > { %7434 = vmatpush1.bf16.msra.mxu1 %v7433_v13  ;;  %v3575_v13 = vld [vmem:[%s10558_s13 + $0xd0] sm:$0xff] }
 0xdd5   : > { %7436 = vmatprep.subr.bf16.mxu1 %v7435_v45  ;;  %v7467_v19 = vpack.c.bf16 %v3576_v17, %v3575_v13  ;;  %v3559_v45 = vld [vmem:[%s10558_s13 + $0x50] sm:$0xff]  ;;  %v3685_v13 = vld [vmem:[%s10560_s28 + $0x20] sm:$0xff]  ;;  %v7483_v17 = vpack.c.bf16 %v3684_v11, %v3683_v6  ;;  %v3724_v6 = vld [vmem:[%s10562_s21 + $0x58] sm:$0xff] }
 0xdd8   : > { %7438 = vmatpush1.bf16.msra.mxu1 %v7437_v22  ;;  %v7469_v22 = vpack.c.bf16 %v3560_v15, %v3559_v45  ;;  %v3687_v45 = vld [vmem:[%s10560_s28 + $0x30] sm:$0xff]  ;;  %v3688_v15 = vld [vmem:[%s10560_s28 + $0x38] sm:$0xff] }
 0xdd9   : > { %7440 = vmatprep.subr.bf16.mxu1 %v7439_v23  ;;  %v7471_v23 = vpack.c.bf16 %v3578_v21, %v3577_v20  ;;  %v7491_v20 = vpack.c.bf16 %v3688_v15, %v3687_v45  ;;  %v3697_v21 = vld [vmem:[%s10561_s6] sm:$0xff]  ;;  %v3726_v45 = vld [vmem:[%s10562_s21 + $0x68] sm:$0xff] }
 0xddc   : > { %7442 = vmatpush1.bf16.msra.mxu1 %v7441_v59  ;;  %v9826_v59 = vld [vmem:[%s10443_s26] sm:$0xff] }
 0xe53   : > { %v3412_v41 = vpop.xlane.xlu0 %3411 }
 0xe54   : > { %v3413_v44 = vmul.f32 0.0078125, %v3412_v41  ;;  %v3553_v41 = vld [vmem:[%s10558_s13 + $0x20] sm:$0xff] }
 0xe56   : > { %v9680_v46 = vsub.f32 %v3410_v25, %v3413_v44  ;;  %v7443_v25 = vpack.c.bf16 %v3463_v57, %v3461_v53  ;;  %v3554_v44 = vld [vmem:[%s10558_s13 + $0x28] sm:$0xff]  ;;  %v3429_v57 = vsub.s32 3, %v9076_v63 }
 0xe57   : > { %v7457_v48 = vpack.c.bf16 %v3554_v44, %v3553_v41 }
 0xe58   : > { %v3415_v47 = vmul.f32 %v9680_v46, %v9680_v46  ;;  %7444 = vmatprep.subr.bf16.mxu1 %v7443_v25  ;;  %v3425_v25 = vrot.slane %v9826_v59, %v9155_v34 }
 0xe59   : > { %7446 = vmatpush1.bf16.msra.mxu1 %v7445_v10  ;;  %7458 = vmatpush3.bf16.msra.mxu0 %v7457_v48  ;;  %v3430_v10 = vrot.slane %v9826_v59, %v3429_v57  ;;  %v5860_v48 = vld [vmem:[#allocation14] ss:$0 sm:$0xff]  ;;  %v3700_v57 = vld [vmem:[%s10561_s6 + $0x18] sm:$0xff] }
 0xe5a   : > { %3416 = vadd.xlane.f32.xlu1 %v3415_v47  ;;  %v3571_v47 = vld [vmem:[%s10558_s13 + $0xb0] sm:$0xff] }
 0xe5b   : > { %v7459_v14 = vpack.c.bf16 %v3572_v58, %v3571_v47 }
 0xe5d   : > { %7460 = vmatprep.subr.bf16.mxu0 %v7459_v14 }
 0xe5e   : > { %7462 = vmatpush3.bf16.msra.mxu0 %v7461_v42  ;;  %v3682_v42 = vld [vmem:[%s10560_s28 + $0x8] sm:$0xff] }
 0xe5f   : > { %7464 = vmatprep.subr.bf16.mxu0 %v7463_v3  ;;  %v7479_v3 = vpack.c.bf16 %v3682_v42, %v3681_v60  ;;  %v3706_v60 = vld [vmem:[%s10561_s6 + $0x48] sm:$0xff] }
 0xe61   : > { %7480 = vmatprep.subr.bf16.mxu1 %v7479_v3 }
 0xe62   : > { %7466 = vmatpush3.bf16.msra.mxu0 %v7465_v18  ;;  %v3686_v18 = vld [vmem:[%s10560_s28 + $0x28] sm:$0xff] }
 0xe63   : > { %7468 = vmatprep.subr.bf16.mxu0 %v7467_v19  ;;  %v7487_v19 = vpack.c.bf16 %v3686_v18, %v3685_v13  ;;  %v3707_v13 = vld [vmem:[%s10561_s6 + $0x50] sm:$0xff] }
 0xe66   : > { %7470 = vmatpush3.bf16.msra.mxu0 %v7469_v22  ;;  %v3698_v22 = vld [vmem:[%s10561_s6 + $0x8] sm:$0xff] }
 0xe67   : > { %7472 = vmatprep.subr.bf16.mxu0 %v7471_v23  ;;  %v3689_v23 = vld [vmem:[%s10560_s28 + $0x40] sm:$0xff] }
 0xe6a   : > { %7474 = vmatpush3.bf16.msra.mxu0 %v7473_v33  ;;  %v3695_v33 = vld [vmem:[%s10560_s28 + $0x70] sm:$0xff] }
 0xee7   : > { %v3417_v24 = vpop.xlane.xlu1 %3416 }
 0xee8   : > { %v3418_v49 = vmul.f32 0.0078125, %v3417_v24  ;;  %v3690_v24 = vld [vmem:[%s10560_s28 + $0x48] sm:$0xff] }
 0xeea   : > { %v3419_v53 = vadd.f32 1e-05, %v3418_v49  ;;  %v7512_v49 = vpack.c.bf16 %v3698_v22, %v3697_v21  ;;  %v3710_v21 = vld [vmem:[%s10561_s6 + $0x68] sm:$0xff] }
 0xeec   : > { %7994 = vrsqrt.f32 %v3419_v53  ;;  %v3699_v53 = vld [vmem:[%s10561_s6 + $0x10] sm:$0xff] }
 0xef6   : > { %v7995_v26 = vpop.eup %7994 }
 0xef7   : > { %v3421_v4 = vmul.f32 %v7995_v26, %v9680_v46  ;;  %v3579_v46 = vld [vmem:[%s10558_s13 + $0xf0] sm:$0xff]  ;;  %v7495_v26 = vpack.c.bf16 %v3690_v24, %v3689_v23  ;;  %v3728_v24 = vld [vmem:[%s10562_s21 + $0x78] sm:$0xff] }
 0xef8   : > { %v7475_v35 = vpack.c.bf16 %v3580_v27, %v3579_v46  ;;  %v3696_v46 = vld [vmem:[%s10560_s28 + $0x78] sm:$0xff]  ;;  %v3727_v23 = vld [vmem:[%s10562_s21 + $0x70] sm:$0xff] }
 0xef9   : > { %v3426_v37 = vmul.f32 %v3425_v25, %v3421_v4  ;;  %v7515_v25 = vpack.c.bf16 %v3700_v57, %v3699_v53  ;;  %v3691_v4 = vld [vmem:[%s10560_s28 + $0x50] sm:$0xff]  ;;  %v7507_v27 = vpack.c.bf16 %v3696_v46, %v3695_v33  ;;  %v7557_v53 = vpack.c.bf16 %v3728_v24, %v3727_v23  ;;  %v3712_v57 = vld [vmem:[%s10561_s6 + $0x78] sm:$0xff] }
 0xefa   : > { %7476 = vmatprep.subr.bf16.mxu0 %v7475_v35  ;;  %v3713_v35 = vld [vmem:[%s10562_s21] sm:$0xff] }
 0xefb   : > { %v3431_v29 = vadd.f32 %v3430_v10, %v3426_v37  ;;  %v3692_v10 = vld [vmem:[%s10560_s28 + $0x58] sm:$0xff] }
 0xefc   : > { %v7499_v37 = vpack.c.bf16 %v3692_v10, %v3691_v4 }
 0xefd   : > { %3541 = vmatmul.mubr.f32.vlgmr.msra.gmra.mrb[36].mxu1 %v3431_v29 }
 0xefe   : > { %6865 = vmatprep.mubr.f32.mxu1 %v9252_v31  ;;  %v3563_v31 = vld [vmem:[%s10558_s13 + $0x70] sm:$0xff]  ;;  %7482 = vmatpush3.bf16.msra.mxu1 %v7479_v3  ;;  %s1024_s13 = scalar_lea.vmem [#allocation17], %s8892_s19 }
 0xeff   : > { %v7477_v16 = vpack.c.bf16 %v3564_v36, %v3563_v31  ;;  %7484 = vmatprep.subr.bf16.mxu1 %v7483_v17  ;;  %v3714_v31 = vld [vmem:[%s10562_s21 + $0x8] sm:$0xff]  ;;  %v3723_v3 = vld [vmem:[%s10562_s21 + $0x50] sm:$0xff] }
 0xf00   : > { %v7536_v36 = vpack.c.bf16 %v3714_v31, %v3713_v35  ;;  %v7551_v11 = vpack.c.bf16 %v3724_v6, %v3723_v3 }
 0xf01   : > { %7478 = vmatpush3.bf16.msra.mxu0 %v7477_v16  ;;  %v3715_v16 = vld [vmem:[%s10562_s21 + $0x10] sm:$0xff] }
 0xf02   : > { %7511 = vmatprep.subr.bf16.mxu0 %v8428_v0  ;;  %7486 = vmatpush3.bf16.msra.mxu1 %v7483_v17  ;;  %v3708_v17 = vld [vmem:[%s10561_s6 + $0x58] sm:$0xff] }
 0xf03   : > { %7488 = vmatprep.subr.bf16.mxu1 %v7487_v19  ;;  %v7527_v18 = vpack.c.bf16 %v3708_v17, %v3707_v13 }
 0xf06   : > { %7490 = vmatpush3.bf16.msra.mxu1 %v7487_v19  ;;  %v3725_v19 = vld [vmem:[%s10562_s21 + $0x60] sm:$0xff] }
 0xf07   : > { %7492 = vmatprep.subr.bf16.mxu1 %v7491_v20  ;;  %v7554_v15 = vpack.c.bf16 %v3726_v45, %v3725_v19 }
 0xf0a   : > { %7494 = vmatpush3.bf16.msra.mxu1 %v7491_v20  ;;  %v3709_v20 = vld [vmem:[%s10561_s6 + $0x60] sm:$0xff] }
 0xf0b   : > { %7496 = vmatprep.subr.bf16.mxu1 %v7495_v26  ;;  %v7530_v22 = vpack.c.bf16 %v3710_v21, %v3709_v20 }
 0xf0e   : > { %7498 = vmatpush3.bf16.msra.mxu1 %v7495_v26  ;;  %v10040_v26 = vld [vmem:[%s10563_s18] sm:$0x7]  ;;  %s10570_s18 = sld [smem:[#allocation53_spill]] }
 0xf0f   : > { %7500 = vmatprep.subr.bf16.mxu1 %v7499_v37  ;;  %v3742_v4 = vrot.slane %v10040_v26, %v9097_v9 }
 0xf12   : > { %7502 = vmatpush3.bf16.msra.mxu1 %v7499_v37 }
 0xfd0   : > { %v3542_v39 = vpop.f32.mrb[36].mxu1 }
 0xfd1   : > { %v3543_v28 = vadd.f32 %v3542_v39, %v3469_v50  ;;  %v3544_v40 = vpop.f32.mrb[37].mxu1  ;;  %v7539_v50 = vpack.c.bf16 %v3716_v38, %v3715_v16  ;;  %v3718_v39 = vld [vmem:[%s10562_s21 + $0x28] sm:$0xff] }
 0xfd2   : > { %v3545_v41 = vadd.f32 %v3544_v40, %v3473_v2  ;;  %v3717_v2 = vld [vmem:[%s10562_s21 + $0x20] sm:$0xff]  ;;  %v3719_v40 = vld [vmem:[%s10562_s21 + $0x30] sm:$0xff] }
 0xfd3   : > { %v3547_v47 = vmax.f32 %v3543_v28, 0.0 }
 0xfd4   : > { %v3548_v44 = vmax.f32 %v3545_v41, 0.0  ;;  %v3720_v41 = vld [vmem:[%s10562_s21 + $0x38] sm:$0xff] }
 0xfd6   : > { %3652 = vmatprep.mubr.f32.mxu0 %v3548_v44  ;;  %v7545_v44 = vpack.c.bf16 %v3720_v41, %v3719_v40  ;;  %v3672_v40 = vsub.s32 4, %v9076_v63  ;;  %v3677_v41 = vsub.s32 5, %v9076_v63 }
 0xfd7   : > { %3653 = vmatmul.mubr.f32.vlgmr.msra.gmra.mrb[24].mxu0 %v3547_v47  ;;  %v3703_v47 = vld [vmem:[%s10561_s6 + $0x30] sm:$0xff] }
 0xfd8   : > { %6909 = vmatprep.mubr.msk.f32.mxu0 %vm8429_vm0, %v8430_v1  ;;  %7513 = vmatpush3.bf16.msra.mxu0 %v7512_v49  ;;  %v3711_v49 = vld [vmem:[%s10561_s6 + $0x70] sm:$0xff] }
 0xfd9   : > { %7514 = vmatprep.subr.bf16.mxu0 %v8428_v0 }
 0xfdc   : > { %7516 = vmatpush3.bf16.msra.mxu0 %v7515_v25  ;;  %v7533_v25 = vpack.c.bf16 %v3712_v57, %v3711_v49 }
 0xfdd   : > { %7517 = vmatprep.subr.bf16.mxu0 %v8428_v0 }
0x10aa   : > { %v6210_v58 = vpop.f32.mrb[24].mxu0 }
0x10ab   : > { %v6211_v14 = vpop.f32.mrb[25].mxu0 }
0x10ac   : > { %v6212_v51 = vadd.f32 %v6211_v14, %v6210_v58  ;;  %v3704_v58 = vld [vmem:[%s10561_s6 + $0x38] sm:$0xff]  ;;  %v3721_v14 = vld [vmem:[%s10562_s21 + $0x40] sm:$0xff] }
0x10ae   : > { %v3655_v54 = vadd.f32 %v6212_v51, %v5860_v48  ;;  %v7521_v48 = vpack.c.bf16 %v3704_v58, %v3703_v47  ;;  %v3722_v51 = vld [vmem:[%s10562_s21 + $0x48] sm:$0xff] }
0x10b0   : > { %v9859_v52 = vadd.f32 %v3655_v54, %v3431_v29  ;;  %v3693_v29 = vld [vmem:[%s10560_s28 + $0x60] sm:$0xff]  ;;  %v7548_v54 = vpack.c.bf16 %v3722_v51, %v3721_v14 }
0x10b1   : > { %v7503_v30 = vpack.c.bf16 %v3694_v32, %v3693_v29 }
0x10b2   : > { %3659 = vadd.xlane.f32.xlu0 %v9859_v52 }
0x10b3   : > { %7504 = vmatprep.subr.bf16.mxu1 %v7503_v30 }
0x10b4   : > { %7506 = vmatpush3.bf16.msra.mxu1 %v7503_v30 }
0x10b5   : > { %7508 = vmatprep.subr.bf16.mxu1 %v7507_v27 }
0x10b8   : > { %7510 = vmatpush3.bf16.msra.mxu1 %v7507_v27 }
0x10b9   : > { %7535 = vmatprep.subr.bf16.mxu1 %v8428_v0 }
0x10bb   : > { %6866 = vmatmul.mubr.f32.vlgmr.msra.gmra.mrb[38].mxu1 %v9296_v55  ;;  %v7542_v55 = vpack.c.bf16 %v3718_v39, %v3717_v2 }
0x10bc   : > { %6868 = vmatprep.mubr.f32.mxu1 %v9299_v56  ;;  %7537 = vmatpush3.bf16.msra.mxu1 %v7536_v36 }
0x10bd   : > { %7538 = vmatprep.subr.bf16.mxu1 %v8428_v0 }
0x10bf   : > { %6869 = vmatmul.mubr.f32.gmra.mrb[40].mxu1 %v9312_v61 }
0x10c0   : > { %6871 = vmatprep.mubr.f32.mxu1 %v9316_v62  ;;  %7540 = vmatpush3.bf16.msra.mxu1 %v7539_v50 }
0x10c1   : > { %7541 = vmatprep.subr.bf16.mxu1 %v8428_v0 }
0x10c3   : > { %6872 = vmatmul.mubr.f32.gmra.mrb[42].mxu1 %v9328_v7  ;;  %v3701_v7 = vld [vmem:[%s10561_s6 + $0x20] sm:$0xff] }
0x10c4   : > { %6874 = vmatprep.mubr.f32.mxu1 %v9332_v8  ;;  %7543 = vmatpush3.bf16.msra.mxu1 %v7542_v55  ;;  %v3702_v8 = vld [vmem:[%s10561_s6 + $0x28] sm:$0xff] }
0x10c5   : > { %7544 = vmatprep.subr.bf16.mxu1 %v8428_v0 }
0x10c7   : > { %6875 = vmatmul.mubr.f32.gmra.mrb[44].mxu1 %v9340_v12  ;;  %v7518_v12 = vpack.c.bf16 %v3702_v8, %v3701_v7 }
0x10c8   : > { %6944 = vmatprep.mubr.msk.f32.mxu1 %vm8429_vm0, %v8430_v1  ;;  %7546 = vmatpush3.bf16.msra.mxu1 %v7545_v44  ;;  %v3673_v44 = vrot.slane %v9826_v59, %v3672_v40 }
0x10c9   : > { %7519 = vmatpush3.bf16.msra.mxu0 %v7518_v12  ;;  %7547 = vmatprep.subr.bf16.mxu1 %v8428_v0 }
0x10ca   : > { %7520 = vmatprep.subr.bf16.mxu0 %v8428_v0 }
0x10cc   : > { %7549 = vmatpush3.bf16.msra.mxu1 %v7548_v54  ;;  %v8031_v54 = vld [vmem:[%s10566_s17] sm:$0xff]  ;;  %s5526_s17 = scalar_lea.sflag [#allocation4], %s8889_s14 }
0x10cd   : > { %7522 = vmatpush3.bf16.msra.mxu0 %v7521_v48  ;;  %7550 = vmatprep.subr.bf16.mxu1 %v8428_v0  ;;  %v3678_v48 = vrot.slane %v9826_v59, %v3677_v41 }
0x10ce   : > { %7523 = vmatprep.subr.bf16.mxu0 %v8428_v0 }
0x10d0   : > { %7552 = vmatpush3.bf16.msra.mxu1 %v7551_v11 }
0x10d1   : > { %7553 = vmatprep.subr.bf16.mxu1 %v8428_v0 }
0x10d4   : > { %7555 = vmatpush3.bf16.msra.mxu1 %v7554_v15 }
0x10d5   : > { %7556 = vmatprep.subr.bf16.mxu1 %v8428_v0 }
0x10d8   : > { %7558 = vmatpush3.bf16.msra.mxu1 %v7557_v53 }
0x10d9   : > { %7575 = vmatprep.subr.bf16.mxu1 %v8428_v0 }
0x113f   : > { %v3660_v56 = vpop.xlane.xlu0 %3659 }
0x1140   : > { %v3661_v61 = vmul.f32 0.0078125, %v3660_v56 }
0x1142   : > { %v9956_v62 = vsub.f32 %v9859_v52, %v3661_v61  ;;  %v3705_v52 = vld [vmem:[%s10561_s6 + $0x40] sm:$0xff] }
0x1143   : > { %v7524_v42 = vpack.c.bf16 %v3706_v60, %v3705_v52 }
0x1144   : > { %v3663_v28 = vmul.f32 %v9956_v62, %v9956_v62 }
0x1145   : > { %7525 = vmatpush3.bf16.msra.mxu0 %v7524_v42 }
0x1146   : > { %3664 = vadd.xlane.f32.xlu0 %v3663_v28  ;;  %7526 = vmatprep.subr.bf16.mxu0 %v8428_v0 }
0x1149   : > { %7528 = vmatpush3.bf16.msra.mxu0 %v7527_v18 }
0x114a   : > { %7529 = vmatprep.subr.bf16.mxu0 %v8428_v0 }
0x114d   : > { %7531 = vmatpush3.bf16.msra.mxu0 %v7530_v22 }
0x114e   : > { %7532 = vmatprep.subr.bf16.mxu0 %v8428_v0 }
0x1151   : > { %7534 = vmatpush3.bf16.msra.mxu0 %v7533_v25 }
0x1152   : > { %7559 = vmatprep.subr.bf16.mxu0 %v8428_v0 }
0x118e   : > { %v6867_v10 = vpop.f32.mrb[38].mxu1 }
0x118f   : > { %v3815_v37 = vadd.f32 %v6867_v10, %v3742_v4  ;;  %v3809_v29 = vpop.f32.mrb[39].mxu1  ;;  %v3851_v10 = vrot.slane %v10040_v26, %v9085_v5 }
0x1190   : > { %v3810_v32 = vadd.f32 %v3809_v29, %v3742_v4 }
0x1192   : > { %v7560_v30 = vpack.c.bf16 %v3815_v37, %v3810_v32  ;;  %v6870_v33 = vpop.f32.mrb[40].mxu1  ;;  %v7900_v46 = vpack.i.bf16 %v3815_v37, %v3810_v32 }
0x1193   : > { %v3825_v27 = vadd.f32 %v6870_v33, %v3742_v4  ;;  %v3819_v35 = vpop.f32.mrb[41].mxu1 }
0x1194   : > { %v3820_v31 = vadd.f32 %v3819_v35, %v3742_v4  ;;  %7901 = vrot.lane.b32.xlu1 %v7900_v46, %s10564_s12 }
0x1196   : > { %v6873_v36 = vpop.f32.mrb[42].mxu1  ;;  %v10045_v16 = vpack.i.bf16 %v3825_v27, %v3820_v31  ;;  %v7564_v59 = vpack.c.bf16 %v3825_v27, %v3820_v31 }
0x1197   : > { %v3835_v38 = vadd.f32 %v6873_v36, %v3742_v4  ;;  %v3829_v50 = vpop.f32.mrb[43].mxu1 }
0x1198   : > { %v3830_v2 = vadd.f32 %v3829_v50, %v3742_v4  ;;  %7906 = vrot.lane.b32.xlu0 %v10045_v16, %s10564_s12 }
0x119a   : > { %v6876_v9 = vpop.f32.mrb[44].mxu1  ;;  %v10049_v39 = vpack.i.bf16 %v3835_v38, %v3830_v2 }
0x119b   : > { %v3845_v55 = vadd.f32 %v6876_v9, %v3742_v4  ;;  %v3839_v56 = vpop.f32.mrb[45].mxu1 }
0x119c   : > { %v3840_v61 = vadd.f32 %v3839_v56, %v3742_v4  ;;  %7911 = vrot.lane.b32.xlu1 %v10049_v39, %s10564_s12  ;;  %7921 = vrot.lane.b32.xlu0 %v7900_v46, %s10555_s20 }
0x119e   : > { %v10054_v28 = vpack.i.bf16 %v3845_v55, %v3840_v61  ;;  %v7572_v60 = vpack.c.bf16 %v3845_v55, %v3840_v61 }
0x11a0   : > { %7916 = vrot.lane.b32.xlu1 %v10054_v28, %s10564_s12 }
0x11a4   : > { %7926 = vrot.lane.b32.xlu1 %v7900_v46, %s10565_s22 }
0x11a8   : > { %7931 = vrot.lane.b32.xlu1 %v10045_v16, %s10555_s20 }
0x11ac   : > { %7941 = vrot.lane.b32.xlu1 %v10049_v39, %s10555_s20 }
0x11b0   : > { %7951 = vrot.lane.b32.xlu1 %v10054_v28, %s10555_s20 }
0x11d3   : > { %v3665_v7 = vpop.xlane.xlu0 %3664 }
0x11d4   : > { %v3666_v8 = vmul.f32 0.0078125, %v3665_v7 }
0x11d6   : > { %v3667_v12 = vadd.f32 1e-05, %v3666_v8 }
0x11d8   : > { %7996 = vrsqrt.f32 %v3667_v12 }
0x11e2   : > { %v7997_v47 = vpop.eup %7996 }
0x11e3   : > { %v3669_v58 = vmul.f32 %v7997_v47, %v9956_v62  ;;  %v7568_v62 = vpack.c.bf16 %v3835_v38, %v3830_v2 }
0x11e5   : > { %v3674_v14 = vmul.f32 %v3673_v44, %v3669_v58 }
0x11e7   : > { %v3679_v51 = vadd.f32 %v3678_v48, %v3674_v14 }
0x11e9   : > { %6945 = vmatmul.mubr.f32.vlgmr.msra.gmra.mrb[46].mxu1 %v3679_v51  ;;  %v3680_v52 = vadd.f32 %v8031_v54, %v3679_v51  ;;  %5516 = vst [vmem:[%s1024_s13] sm:$0xff] %v3679_v51 }
0x11ea   : > { %6982 = vmatprep.mubr.msk.f32.mxu1 %vm8429_vm0, %v8430_v1 }
0x11eb   : > { %6910 = vmatmul.mubr.f32.vlgmr.msra.gmra.mrb[26].mxu0 %v3680_v52 }
0x11ec   : > { %7562 = vmatpush3.bf16.xpose.msk.msra.mxu0 %vm9398_vm6, %v7560_v30  ;;  %6963 = vmatprep.mubr.msk.f32.mxu0 %vm8429_vm0, %v8430_v1  ;;  %v3925_v30 = vrot.slane %v10040_v26, %v9155_v34 }
0x11ed   : > { %7563 = vmatprep.subr.bf16.mxu0 %v8428_v0 }
0x11f4   : > { %7566 = vmatpush3.bf16.xpose.msk.msra.mxu0 %vm9398_vm6, %v7564_v59 }
0x11f5   : > { %7567 = vmatprep.subr.bf16.mxu0 %v8428_v0 }
0x11fc   : > { %7570 = vmatpush3.bf16.xpose.msk.msra.mxu0 %vm9398_vm6, %v7568_v62 }
0x11fd   : > { %7571 = vmatprep.subr.bf16.mxu0 %v8428_v0 }
0x1204   : > { %7574 = vmatpush3.bf16.xpose.msk.msra.mxu0 %vm9398_vm6, %v7572_v60 }
0x1205   : > { %7591 = vmatprep.subr.bf16.mxu0 %v8428_v0 }
0x1206   : > { %v7902_v42 = vpop.permute.xlu1 %7901 }
0x1207   : > { %v7904_v3 = vunpack.i.h.bf16 %v7902_v42  ;;  %v7903_v6 = vunpack.i.l.bf16 %v7902_v42 }
0x1209   : > { %v7576_v11 = vpack.c.bf16 %v7904_v3, %v7903_v6 }
0x120a   : > { %v7907_v13 = vpop.permute.xlu0 %7906 }
0x120b   : > { %v7909_v17 = vunpack.i.h.bf16 %v7907_v13  ;;  %v7908_v18 = vunpack.i.l.bf16 %v7907_v13  ;;  %7578 = vmatpush3.bf16.xpose.msk.msra.mxu1 %vm9398_vm6, %v7576_v11 }
0x120c   : > { %7579 = vmatprep.subr.bf16.mxu1 %v8428_v0 }
0x120d   : > { %v7580_v19 = vpack.c.bf16 %v7909_v17, %v7908_v18 }
0x120e   : > { %v7912_v45 = vpop.permute.xlu1 %7911  ;;  %v7922_v53 = vpop.permute.xlu0 %7921 }
0x120f   : > { %v7914_v15 = vunpack.i.h.bf16 %v7912_v45  ;;  %v7913_v20 = vunpack.i.l.bf16 %v7912_v45  ;;  %v7924_v25 = vunpack.i.h.bf16 %v7922_v53  ;;  %v7923_v4 = vunpack.i.l.bf16 %v7922_v53 }
0x1211   : > { %v7584_v21 = vpack.c.bf16 %v7914_v15, %v7913_v20  ;;  %v7592_v33 = vpack.c.bf16 %v7924_v25, %v7923_v4 }
0x1212   : > { %v7917_v22 = vpop.permute.xlu1 %7916 }
0x1213   : > { %7582 = vmatpush3.bf16.xpose.msk.msra.mxu1 %vm9398_vm6, %v7580_v19  ;;  %v7919_v23 = vunpack.i.h.bf16 %v7917_v22  ;;  %v7918_v24 = vunpack.i.l.bf16 %v7917_v22 }
0x1214   : > { %7583 = vmatprep.subr.bf16.mxu1 %v8428_v0 }
0x1215   : > { %v7588_v49 = vpack.c.bf16 %v7919_v23, %v7918_v24 }
0x1216   : > { %v7927_v57 = vpop.permute.xlu1 %7926 }
0x1217   : > { %v7929_v56 = vunpack.i.h.bf16 %v7927_v57  ;;  %v7928_v61 = vunpack.i.l.bf16 %v7927_v57 }
0x1219   : > { %v7608_v7 = vpack.c.bf16 %v7929_v56, %v7928_v61 }
0x121a   : > { %v7932_v35 = vpop.permute.xlu1 %7931 }
0x121b   : > { %7586 = vmatpush3.bf16.xpose.msk.msra.mxu1 %vm9398_vm6, %v7584_v21  ;;  %v7934_v5 = vunpack.i.h.bf16 %v7932_v35  ;;  %v7933_v36 = vunpack.i.l.bf16 %v7932_v35 }
0x121c   : > { %7587 = vmatprep.subr.bf16.mxu1 %v8428_v0 }
0x121d   : > { %v7596_v34 = vpack.c.bf16 %v7934_v5, %v7933_v36 }
0x121e   : > { %v7942_v26 = vpop.permute.xlu1 %7941 }
0x121f   : > { %v7944_v38 = vunpack.i.h.bf16 %v7942_v26  ;;  %v7943_v50 = vunpack.i.l.bf16 %v7942_v26 }
0x1222   : > { %v7952_v2 = vpop.permute.xlu1 %7951 }
0x1223   : > { %7590 = vmatpush3.bf16.xpose.msk.msra.mxu1 %vm9398_vm6, %v7588_v49  ;;  %v7954_v9 = vunpack.i.h.bf16 %v7952_v2 }
0x1224   : > { %7607 = vmatprep.subr.bf16.mxu1 %v8428_v0 }
0x12bc   : > { %v3992_v37 = vpop.f32.mrb[46].mxu1 }
0x12bd   : > { %v6946_v29 = vpop.f32.mrb[47].mxu1  ;;  %v3993_v31 = vadd.f32 %v3992_v37, %v3925_v30 }
0x12be   : > { %v3918_v32 = vpop.f32.mrb[26].mxu0 }
0x12bf   : > { %v3919_v46 = vadd.f32 %v3918_v32, %v3851_v10  ;;  %v6911_v27 = vpop.f32.mrb[27].mxu0 }
0x12c1   : > { %4055 = vrot.lane.b32.xlu1 %v3919_v46, %s10555_s20  ;;  %4053 = vrot.lane.b32.xlu0 %v3919_v46, %s10564_s12 }
0x12c2   : > { %6964 = vmatmul.mubr.msk.f32.vlgmr.msra.gmra.mrb[28].mxu0 %vm2626_vm5, %v3919_v46 }
0x12c3   : > { %7594 = vmatpush3.bf16.xpose.msk.msra.mxu0 %vm9398_vm6, %v7592_v33  ;;  %7001 = vmatprep.mubr.msk.f32.mxu0 %vm8429_vm0, %v8430_v1 }
0x12c4   : > { %7595 = vmatprep.subr.bf16.mxu0 %v8428_v0 }
0x12c5   : > { %4060 = vrot.lane.b32.xlu1 %v3993_v31, %s10564_s12  ;;  %7936 = vrot.lane.b32.xlu0 %v10045_v16, %s10565_s22  ;;  %v7600_v16 = vpack.c.bf16 %v7944_v38, %v7943_v50 }
0x12c9   : > { %4063 = vrot.lane.b32.xlu1 %v3993_v31, %s10555_s20  ;;  %7946 = vrot.lane.b32.xlu0 %v10049_v39, %s10565_s22  ;;  %v7953_v39 = vunpack.i.l.bf16 %v7952_v2  ;;  %s10567_s20 = smov 16  }
0x12cb   : > { %7598 = vmatpush3.bf16.xpose.msk.msra.mxu0 %vm9398_vm6, %v7596_v34  ;;  %v7604_v55 = vpack.c.bf16 %v7954_v9, %v7953_v39 }
0x12cc   : > { %7599 = vmatprep.subr.bf16.mxu0 %v8428_v0 }
0x12cd   : > { %4066 = vrot.lane.b32.xlu1 %v3993_v31, %s10565_s22  ;;  %7956 = vrot.lane.b32.xlu0 %v10054_v28, %s10565_s22 }
0x12d1   : > { %4057 = vrot.lane.b32.xlu0 %v3919_v46, %s10565_s22  ;;  %s5544_s22 = sshll.u32 %s1024_s13, 4  ;;  %s5545_s22 = int_to_ptr.vmem [resolvable:$true] %s5544_s22 }
0x12d3   : > { %7602 = vmatpush3.bf16.xpose.msk.msra.mxu0 %vm9398_vm6, %v7600_v16 }
0x12d4   : > { %7603 = vmatprep.subr.bf16.mxu0 %v8428_v0 }
0x12db   : > { %7606 = vmatpush3.bf16.xpose.msk.msra.mxu0 %vm9398_vm6, %v7604_v55 }
0x12dc   : > { %7023 = vmatprep.subr.mxu0 %v3993_v31 }
0x1333   : > { %v4056_v28 = vpop.permute.xlu1 %4055  ;;  %v4054_v8 = vpop.permute.xlu0 %4053 }
0x1334   : > { %6983 = vmatmul.mubr.msk.f32.vlgmr.msra.gmra.mrb[48].mxu1 %vm2626_vm5, %v4054_v8  ;;  %7002 = vmatmul.mubr.msk.f32.vlgmr.msra.gmra.mrb[30].mxu0 %vm2626_vm5, %v4056_v28 }
0x1335   : > { %7610 = vmatpush3.bf16.xpose.msk.msra.mxu1 %vm9398_vm6, %v7608_v7  ;;  %7024 = vmatpush3.msra.mxu0 %v3993_v31 }
0x1336   : > { %7611 = vmatprep.subr.bf16.mxu1 %v8428_v0  ;;  %7020 = vmatprep.mubr.msk.f32.mxu1 %vm8429_vm0, %v8430_v1 }
0x1337   : > { %v10140_v12 = vpop.permute.xlu1 %4060  ;;  %v7937_v40 = vpop.permute.xlu0 %7936 }
0x1338   : > { %v7939_v41 = vunpack.i.h.bf16 %v7937_v40  ;;  %v7938_v44 = vunpack.i.l.bf16 %v7937_v40  ;;  %7037 = vmatprep.subr.mxu0 %v10140_v12 }
0x133a   : > { %v7612_v47 = vpack.c.bf16 %v7939_v41, %v7938_v44 }
0x133b   : > { %v7947_v58 = vpop.permute.xlu0 %7946  ;;  %v4064_v62 = vpop.permute.xlu1 %4063 }
0x133c   : > { %v7949_v48 = vunpack.i.h.bf16 %v7947_v58  ;;  %v7948_v14 = vunpack.i.l.bf16 %v7947_v58 }
0x133d   : > { %7614 = vmatpush3.bf16.xpose.msk.msra.mxu1 %vm9398_vm6, %v7612_v47 }
0x133e   : > { %7615 = vmatprep.subr.bf16.mxu1 %v8428_v0  ;;  %v7616_v51 = vpack.c.bf16 %v7949_v48, %v7948_v14 }
0x133f   : > { %v7957_v54 = vpop.permute.xlu0 %7956 }
0x1340   : > { %v7959_v1 = vunpack.i.h.bf16 %v7957_v54  ;;  %v7958_v52 = vunpack.i.l.bf16 %v7957_v54 }
0x1342   : > { %v7620_v59 = vpack.c.bf16 %v7959_v1, %v7958_v52 }
0x1343   : > { %v4058_v60 = vpop.permute.xlu0 %4057 }
0x1345   : > { %7618 = vmatpush3.bf16.xpose.msk.msra.mxu1 %vm9398_vm6, %v7616_v51 }
0x1346   : > { %7619 = vmatprep.subr.bf16.mxu1 %v8428_v0 }
0x134d   : > { %7622 = vmatpush3.bf16.xpose.msk.msra.mxu1 %vm9398_vm6, %v7620_v59 }
0x134e   : > { %7051 = vmatprep.subr.mxu1 %v4064_v62 }
0x1354   : > { %7021 = vmatmul.mubr.msk.f32.vlgmr.msra.gmra.mrb[50].mxu1 %vm2626_vm5, %v4058_v60 }
0x1355   : > { %7052 = vmatpush3.msra.mxu1 %v4064_v62 }
0x1395   : > { %v4153_v42 = vpop.f32.mrb[28].mxu0 }
0x1396   : > { %v4421_v3 = vsel %vm2021_vm3, %v4153_v42, -inf  ;;  %v6965_v6 = vpop.f32.mrb[29].mxu0 }
0x1397   : > { %v4422_v11 = vrot.slane %v4421_v3, 4 }
0x1399   : > { %v4423_v13 = vmax.f32 %v4421_v3, %v4422_v11 }
0x139b   : > { %v4424_v17 = vrot.slane %v4423_v13, 2 }
0x139d   : > { %v4425_v0 = vmax.f32 %v4423_v13, %v4424_v17 }
0x139f   : > { %v4426_v18 = vrot.slane %v4425_v0, 1 }
0x13a1   : > { %v4427_v19 = vmax.f32 %v4425_v0, %v4426_v18 }
0x13a3   : > { %v4449_v45 = vsub.f32 %v4153_v42, %v4427_v19 }
0x13a5   : > { %v4453_v15 = vmul.f32 1.442695, %v4449_v45 }
0x13a7   : > { %7998 = vpow2.f32 %v4453_v15 }
0x13b1   : > { %v7999_v43 = vpop.eup %7998 }
0x13b2   : > { %v4461_v20 = vsel %vm2021_vm3, %v7999_v43, 0.0 }
0x13b3   : > { %v4462_v21 = vrot.slane %v4461_v20, 4 }
0x13b5   : > { %v4463_v22 = vadd.f32 %v4462_v21, %v4461_v20 }
0x13b7   : > { %v4464_v23 = vrot.slane %v4463_v22, 2 }
0x13b9   : > { %v4465_v24 = vadd.f32 %v4464_v23, %v4463_v22 }
0x13bb   : > { %v4466_v49 = vrot.slane %v4465_v24, 1 }
0x13bd   : > { %v4467_v53 = vadd.f32 %v4466_v49, %v4465_v24 }
0x13bf   : > { %8000 = vrcp.f32 %v4467_v53 }
0x13c9   : > { %v8001_v57 = vpop.eup %8000 }
0x13ca   : > { %v4493_v25 = vmul.f32 %v8001_v57, %v7999_v43 }
0x13cc   : > { %4497 = vxpose.xlu0.b32.start.end [1/1] (short) (narrow) %v4493_v25, 64 }
0x1407   : > { %v4241_v4 = vpop.f32.mrb[48].mxu1  ;;  %v4329_v10 = vpop.f32.mrb[30].mxu0 }
0x1408   : > { %v4428_v37 = vsel %vm2021_vm3, %v4241_v4, -inf  ;;  %v4435_v29 = vsel %vm2021_vm3, %v4329_v10, -inf  ;;  %v6984_v32 = vpop.f32.mrb[49].mxu1  ;;  %v7003_v30 = vpop.f32.mrb[31].mxu0 }
0x1409   : > { %v4429_v33 = vrot.slane %v4428_v37, 4  ;;  %v4436_v46 = vrot.slane %v4435_v29, 4 }
0x140b   : > { %v4430_v27 = vmax.f32 %v4428_v37, %v4429_v33  ;;  %v4437_v35 = vmax.f32 %v4435_v29, %v4436_v46 }
0x140d   : > { %v4431_v31 = vrot.slane %v4430_v27, 2  ;;  %v4438_v5 = vrot.slane %v4437_v35, 2 }
0x140f   : > { %v4432_v36 = vmax.f32 %v4430_v27, %v4431_v31  ;;  %v4439_v34 = vmax.f32 %v4437_v35, %v4438_v5 }
0x1411   : > { %v4433_v26 = vrot.slane %v4432_v36, 1  ;;  %v4440_v38 = vrot.slane %v4439_v34, 1 }
0x1413   : > { %v4434_v50 = vmax.f32 %v4432_v36, %v4433_v26  ;;  %v4441_v16 = vmax.f32 %v4439_v34, %v4440_v38 }
0x1415   : > { %v4450_v2 = vsub.f32 %v4241_v4, %v4434_v50  ;;  %v4451_v9 = vsub.f32 %v4329_v10, %v4441_v16  ;;  %v4067_v10 = vpop.permute.xlu1 %4066 }
0x1417   : > { %v4455_v39 = vmul.f32 1.442695, %v4450_v2  ;;  %v4457_v55 = vmul.f32 1.442695, %v4451_v9 }
0x1419   : > { %8002 = vpow2.f32 %v4455_v39 }
0x141a   : > { %8004 = vpow2.f32 %v4457_v55 }
0x1423   : > { %v8003_v56 = vpop.eup %8002 }
0x1424   : > { %v8005_v61 = vpop.eup %8004  ;;  %v4468_v7 = vsel %vm2021_vm3, %v8003_v56, 0.0 }
0x1425   : > { %v4469_v28 = vrot.slane %v4468_v7, 4  ;;  %v4475_v8 = vsel %vm2021_vm3, %v8005_v61, 0.0 }
0x1426   : > { %v4476_v40 = vrot.slane %v4475_v8, 4 }
0x1427   : > { %v4470_v41 = vadd.f32 %v4469_v28, %v4468_v7  ;;  %v4417_v44 = vpop.f32.mrb[50].mxu1 }
0x1428   : > { %v4477_v47 = vadd.f32 %v4476_v40, %v4475_v8  ;;  %v4442_v58 = vsel %vm2021_vm3, %v4417_v44, -inf  ;;  %v7022_v48 = vpop.f32.mrb[51].mxu1 }
0x1429   : > { %v4471_v14 = vrot.slane %v4470_v41, 2  ;;  %v4443_v51 = vrot.slane %v4442_v58, 4 }
0x142a   : > { %v4478_v54 = vrot.slane %v4477_v47, 2 }
0x142b   : > { %v4472_v1 = vadd.f32 %v4471_v14, %v4470_v41  ;;  %v4444_v52 = vmax.f32 %v4442_v58, %v4443_v51 }
0x142c   : > { %v4479_v59 = vadd.f32 %v4478_v54, %v4477_v47 }
0x142d   : > { %v4445_v62 = vrot.slane %v4444_v52, 2  ;;  %v4473_v60 = vrot.slane %v4472_v1, 1 }
0x142e   : > { %v4480_v42 = vrot.slane %v4479_v59, 1 }
0x142f   : > { %v4446_v3 = vmax.f32 %v4444_v52, %v4445_v62  ;;  %v4474_v6 = vadd.f32 %v4473_v60, %v4472_v1 }
0x1430   : > { %v4481_v11 = vadd.f32 %v4480_v42, %v4479_v59 }
0x1431   : > { %v4447_v13 = vrot.slane %v4446_v3, 1  ;;  %8006 = vrcp.f32 %v4474_v6 }
0x1432   : > { %8008 = vrcp.f32 %v4481_v11 }
0x1433   : > { %v4448_v17 = vmax.f32 %v4446_v3, %v4447_v13 }
0x1435   : > { %v4452_v0 = vsub.f32 %v4417_v44, %v4448_v17 }
0x1437   : > { %v4459_v18 = vmul.f32 1.442695, %v4452_v0 }
0x1439   : > { %8010 = vpow2.f32 %v4459_v18  ;;  %v3729_v18 = vld [vmem:[#allocation16] sm:$0xff] }
0x143b   : > { %v8007_v19 = vpop.eup %8006 }
0x143c   : > { %v8009_v45 = vpop.eup %8008  ;;  %v4494_v15 = vmul.f32 %v8007_v19, %v8003_v56  ;;  %v3730_v19 = vld [vmem:[#allocation16 + $0x8] sm:$0xff] }
0x143d   : > { %v4495_v43 = vmul.f32 %v8009_v45, %v8005_v61 }
0x143e   : > { %4658 = vxpose.xlu1.b32.start.end [1/1] (short) (narrow) %v4494_v15, 64  ;;  %v7623_v15 = vpack.c.bf16 %v3730_v19, %v3729_v18 }
0x143f   : > { %4819 = vxpose.xlu0.b32.start.end [1/1] (short) (narrow) %v4495_v43, 64  ;;  %v3731_v43 = vld [vmem:[#allocation16 + $0x10] sm:$0xff] }
0x1440   : > { %7624 = vmatprep.subr.bf16.mxu1 %v7623_v15 }
0x1443   : > { %v8011_v20 = vpop.eup %8010 }
0x1444   : > { %v4482_v21 = vsel %vm2021_vm3, %v8011_v20, 0.0 }
0x1445   : > { %v4483_v22 = vrot.slane %v4482_v21, 4 }
0x1447   : > { %v4484_v23 = vadd.f32 %v4483_v22, %v4482_v21 }
0x1449   : > { %v4485_v24 = vrot.slane %v4484_v23, 2 }
0x144b   : > { %v4486_v49 = vadd.f32 %v4485_v24, %v4484_v23 }
0x144c   : > { %v4513_v53 = vpop.trf.xlu0 }
0x144d   : > { %7025 = vmatprep.mubr.msk.f32.mxu0 %vm1671_vm2, %v4513_v53  ;;  %v4487_v57 = vrot.slane %v4486_v49, 1  ;;  %v3734_v53 = vld [vmem:[#allocation16 + $0x28] sm:$0xff] }
0x144f   : > { %v4488_v25 = vadd.f32 %v4487_v57, %v4486_v49  ;;  %v3733_v49 = vld [vmem:[#allocation16 + $0x20] sm:$0xff] }
0x1450   : > { %v4514_v4 = vpop.trf.xlu0 }
0x1451   : > { %7026 = vmatmul.mubr.msk.f32.vlgmr.msra.gmra.mrb[32].mxu0 %vm1671_vm2, %v4514_v4  ;;  %8012 = vrcp.f32 %v4488_v25  ;;  %v7631_v25 = vpack.c.bf16 %v3734_v53, %v3733_v49  ;;  %v3735_v4 = vld [vmem:[#allocation16 + $0x30] sm:$0xff] }
0x1452   : > { %7038 = vmatpush3.msra.mxu0 %v10140_v12 }
0x1453   : > { %7065 = vmatprep.subr.mxu0 %v4067_v10 }
0x1454   : > { %v4515_v37 = vpop.trf.xlu0 }
0x1455   : > { %7028 = vmatprep.mubr.msk.f32.mxu0 %vm1671_vm2, %v4515_v37 }
0x1458   : > { %v4516_v29 = vpop.trf.xlu0 }
0x1459   : > { %7029 = vmatmul.mubr.msk.f32.gmra.mrb[34].mxu0 %vm1671_vm2, %v4516_v29 }
0x145b   : > { %v8013_v32 = vpop.eup %8012 }
0x145c   : > { %v4496_v30 = vmul.f32 %v8013_v32, %v8011_v20  ;;  %v4517_v33 = vpop.trf.xlu0  ;;  %v3732_v20 = vld [vmem:[#allocation16 + $0x18] sm:$0xff] }
0x145d   : > { %7031 = vmatprep.mubr.msk.f32.mxu0 %vm1671_vm2, %v4517_v33  ;;  %v7627_v21 = vpack.c.bf16 %v3732_v20, %v3731_v43 }
0x145e   : > { %4980 = vxpose.xlu1.b32.start.end [1/1] (short) (narrow) %v4496_v30, 64 }
0x1460   : > { %v4518_v46 = vpop.trf.xlu0 }
0x1461   : > { %7032 = vmatmul.mubr.msk.f32.gmra.mrb[36].mxu0 %vm1671_vm2, %v4518_v46 }
0x1464   : > { %v4519_v27 = vpop.trf.xlu0 }
0x1465   : > { %7034 = vmatprep.mubr.msk.f32.mxu0 %vm1671_vm2, %v4519_v27 }
0x1468   : > { %v4520_v12 = vpop.trf.xlu0 }
0x1469   : > { %7035 = vmatmul.mubr.msk.f32.gmra.mrb[38].mxu0 %vm1671_vm2, %v4520_v12 }
0x14be   : > { %v4674_v35 = vpop.trf.xlu1 }
0x14bf   : > { %v4835_v31 = vpop.trf.xlu0  ;;  %7039 = vmatprep.mubr.msk.f32.mxu0 %vm1671_vm2, %v4674_v35 }
0x14c0   : > { %7053 = vmatprep.mubr.msk.f32.mxu1 %vm1671_vm2, %v4835_v31 }
0x14c2   : > { %v4675_v5 = vpop.trf.xlu1 }
0x14c3   : > { %v4836_v36 = vpop.trf.xlu0  ;;  %7040 = vmatmul.mubr.msk.f32.vlgmr.msra.gmra.mrb[40].mxu0 %vm1671_vm2, %v4675_v5 }
0x14c4   : > { %7054 = vmatmul.mubr.msk.f32.vlgmr.msra.gmra.mrb[52].mxu1 %vm1671_vm2, %v4836_v36  ;;  %7066 = vmatpush3.msra.mxu0 %v4067_v10  ;;  %v3736_v10 = vld [vmem:[#allocation16 + $0x38] sm:$0xff] }
0x14c5   : > { %7626 = vmatpush3.bf16.msra.mxu1 %v7623_v15  ;;  %v7635_v37 = vpack.c.bf16 %v3736_v10, %v3735_v4 }
0x14c6   : > { %v4676_v34 = vpop.trf.xlu1  ;;  %7628 = vmatprep.subr.bf16.mxu1 %v7627_v21 }
0x14c7   : > { %7042 = vmatprep.mubr.msk.f32.mxu0 %vm1671_vm2, %v4676_v34  ;;  %v4837_v26 = vpop.trf.xlu0 }
0x14c8   : > { %7056 = vmatprep.mubr.msk.f32.mxu1 %vm1671_vm2, %v4837_v26 }
0x14c9   : > { %7630 = vmatpush3.bf16.msra.mxu1 %v7627_v21 }
0x14ca   : > { %v4677_v38 = vpop.trf.xlu1  ;;  %7632 = vmatprep.subr.bf16.mxu1 %v7631_v25 }
0x14cb   : > { %7043 = vmatmul.mubr.msk.f32.gmra.mrb[42].mxu0 %vm1671_vm2, %v4677_v38  ;;  %v4838_v50 = vpop.trf.xlu0 }
0x14cc   : > { %7057 = vmatmul.mubr.msk.f32.gmra.mrb[54].mxu1 %vm1671_vm2, %v4838_v50 }
0x14cd   : > { %7634 = vmatpush3.bf16.msra.mxu1 %v7631_v25 }
0x14ce   : > { %v4678_v16 = vpop.trf.xlu1  ;;  %7636 = vmatprep.subr.bf16.mxu1 %v7635_v37 }
0x14cf   : > { %7045 = vmatprep.mubr.msk.f32.mxu0 %vm1671_vm2, %v4678_v16  ;;  %v4839_v2 = vpop.trf.xlu0 }
0x14d0   : > { %7059 = vmatprep.mubr.msk.f32.mxu1 %vm1671_vm2, %v4839_v2 }
0x14d1   : > { %7638 = vmatpush3.bf16.msra.mxu1 %v7635_v37 }
0x14d2   : > { %v4679_v9 = vpop.trf.xlu1 }
0x14d3   : > { %7046 = vmatmul.mubr.msk.f32.gmra.mrb[44].mxu0 %vm1671_vm2, %v4679_v9  ;;  %v4840_v39 = vpop.trf.xlu0 }
0x14d4   : > { %7060 = vmatmul.mubr.msk.f32.gmra.mrb[56].mxu1 %vm1671_vm2, %v4840_v39 }
0x14d6   : > { %v4680_v55 = vpop.trf.xlu1 }
0x14d7   : > { %7048 = vmatprep.mubr.msk.f32.mxu0 %vm1671_vm2, %v4680_v55  ;;  %v4841_v56 = vpop.trf.xlu0 }
0x14d8   : > { %7062 = vmatprep.mubr.msk.f32.mxu1 %vm1671_vm2, %v4841_v56 }
0x14da   : > { %v4681_v61 = vpop.trf.xlu1 }
0x14db   : > { %7049 = vmatmul.mubr.msk.f32.gmra.mrb[46].mxu0 %vm1671_vm2, %v4681_v61  ;;  %v4842_v7 = vpop.trf.xlu0 }
0x14dc   : > { %7063 = vmatmul.mubr.msk.f32.gmra.mrb[58].mxu1 %vm1671_vm2, %v4842_v7 }
0x14de   : > { %v4996_v28 = vpop.trf.xlu1 }
0x14df   : > { %7067 = vmatprep.mubr.msk.f32.mxu0 %vm1671_vm2, %v4996_v28 }
0x14e2   : > { %v4997_v8 = vpop.trf.xlu1 }
0x14e3   : > { %7068 = vmatmul.mubr.msk.f32.vlgmr.msra.gmra.mrb[48].mxu0 %vm1671_vm2, %v4997_v8 }
0x14e6   : > { %v4998_v40 = vpop.trf.xlu1 }
0x14e7   : > { %7070 = vmatprep.mubr.msk.f32.mxu0 %vm1671_vm2, %v4998_v40 }
0x14ea   : > { %v4999_v41 = vpop.trf.xlu1 }
0x14eb   : > { %7071 = vmatmul.mubr.msk.f32.gmra.mrb[50].mxu0 %vm1671_vm2, %v4999_v41 }
0x14ee   : > { %v5000_v44 = vpop.trf.xlu1 }
0x14ef   : > { %7073 = vmatprep.mubr.msk.f32.mxu0 %vm1671_vm2, %v5000_v44 }
0x14f2   : > { %v5001_v47 = vpop.trf.xlu1 }
0x14f3   : > { %7074 = vmatmul.mubr.msk.f32.gmra.mrb[52].mxu0 %vm1671_vm2, %v5001_v47 }
0x14f6   : > { %v5002_v58 = vpop.trf.xlu1 }
0x14f7   : > { %7076 = vmatprep.mubr.msk.f32.mxu0 %vm1671_vm2, %v5002_v58 }
0x14fa   : > { %v5003_v48 = vpop.trf.xlu1 }
0x14fb   : > { %7077 = vmatmul.mubr.msk.f32.gmra.mrb[54].mxu0 %vm1671_vm2, %v5003_v48 }
0x1524   : > { %v10193_v14 = vpop.f32.mrb[32].mxu0 }
0x1525   : > { %v10195_v51 = vpop.f32.mrb[33].mxu0 }
0x152c   : > { %v10197_v54 = vpop.f32.mrb[34].mxu0 }
0x152d   : > { %v10199_v1 = vpop.f32.mrb[35].mxu0 }
0x1534   : > { %v10201_v52 = vpop.f32.mrb[36].mxu0 }
0x1535   : > { %v10203_v59 = vpop.f32.mrb[37].mxu0 }
0x153c   : > { %v10205_v62 = vpop.f32.mrb[38].mxu0 }
0x153d   : > { %v10207_v60 = vpop.f32.mrb[39].mxu0 }
0x1596   : > { %v7041_v42 = vpop.f32.mrb[40].mxu0 }
0x1597   : > { %v7055_v3 = vpop.f32.mrb[52].mxu1  ;;  %v4780_v6 = vpop.f32.mrb[41].mxu0  ;;  %5151 = vrot.lane.b32.xlu1 %v7041_v42, %s10567_s20 }
0x1598   : > { %5183 = vrot.lane.b32.xlu0 %v7055_v3, %s10557_s7  ;;  %v4941_v11 = vpop.f32.mrb[53].mxu1 }
0x159c   : > { %5149 = vrot.lane.b32.xlu0 %v4780_v6, %s10567_s20 }
0x159e   : > { %v7044_v13 = vpop.f32.mrb[42].mxu0 }
0x159f   : > { %v4790_v17 = vpop.f32.mrb[43].mxu0  ;;  %5155 = vrot.lane.b32.xlu1 %v7044_v13, %s10567_s20  ;;  %v7058_v0 = vpop.f32.mrb[54].mxu1 }
0x15a0   : > { %5181 = vrot.lane.b32.xlu0 %v4941_v11, %s10557_s7  ;;  %v4951_v45 = vpop.f32.mrb[55].mxu1 }
0x15a3   : > { %5187 = vrot.lane.b32.xlu1 %v7058_v0, %s10557_s7 }
0x15a4   : > { %5153 = vrot.lane.b32.xlu0 %v4790_v17, %s10567_s20 }
0x15a6   : > { %v7047_v22 = vpop.f32.mrb[44].mxu0 }
0x15a7   : > { %v4800_v23 = vpop.f32.mrb[45].mxu0  ;;  %5159 = vrot.lane.b32.xlu1 %v7047_v22, %s10567_s20  ;;  %v7061_v24 = vpop.f32.mrb[56].mxu1 }
0x15a8   : > { %5185 = vrot.lane.b32.xlu0 %v4951_v45, %s10557_s7  ;;  %v4961_v57 = vpop.f32.mrb[57].mxu1 }
0x15ab   : > { %5191 = vrot.lane.b32.xlu1 %v7061_v24, %s10557_s7 }
0x15ac   : > { %5157 = vrot.lane.b32.xlu0 %v4800_v23, %s10567_s20 }
0x15ae   : > { %v7050_v29 = vpop.f32.mrb[46].mxu0 }
0x15af   : > { %v4810_v32 = vpop.f32.mrb[47].mxu0  ;;  %5163 = vrot.lane.b32.xlu1 %v7050_v29, %s10567_s20  ;;  %v7064_v30 = vpop.f32.mrb[58].mxu1 }
0x15b0   : > { %5189 = vrot.lane.b32.xlu0 %v4961_v57, %s10557_s7  ;;  %v4971_v33 = vpop.f32.mrb[59].mxu1 }
0x15b3   : > { %5195 = vrot.lane.b32.xlu1 %v7064_v30, %s10557_s7  ;;  %v8032_v30 = vld [vmem:[%s9231_s1 + $0x8] sm:$0xff] }
0x15b4   : > { %5161 = vrot.lane.b32.xlu0 %v4810_v32, %s10567_s20  ;;  %s8297_s20 = scalar_lea.vmem %s5545_s22, 128 }
0x15b5   : > { %p8298_p10 = scmp.ne.s32.totalorder %s5545_s22, %s8297_s20 }
0x15b6   : > { %v7069_v46 = vpop.f32.mrb[48].mxu0 }
0x15b7   : > { %v5102_v27 = vpop.f32.mrb[49].mxu0  ;;  %5215 = vrot.lane.b32.xlu1 %v7069_v46, %s10568_s15  ;;  %v8033_v46 = vld [vmem:[%s9231_s1] sm:$0xff]  ;;  %p8299_p9 = pnand %p8298_p10, %p10571_p5 }
0x15b8   : > { %5193 = vrot.lane.b32.xlu0 %v4971_v33, %s10557_s7 }
0x15b9   : > { %p8300_p0 = pneg %p8299_p9 }
0x15bc   : > { %5213 = vrot.lane.b32.xlu0 %v5102_v27, %s10568_s15 }
0x15be   : > { %v7072_v12 = vpop.f32.mrb[50].mxu0 }
0x15bf   : > { %v5112_v35 = vpop.f32.mrb[51].mxu0  ;;  %5219 = vrot.lane.b32.xlu1 %v7072_v12, %s10568_s15 }
0x15c0   : > { %5217 = vrot.lane.b32.xlu0 %v5112_v35, %s10568_s15 }
0x15c6   : > { %v7075_v31 = vpop.f32.mrb[52].mxu0 }
0x15c7   : > { %v5122_v5 = vpop.f32.mrb[53].mxu0  ;;  %5223 = vrot.lane.b32.xlu1 %v7075_v31, %s10568_s15 }
0x15c8   : > { %5221 = vrot.lane.b32.xlu0 %v5122_v5, %s10568_s15  ;;  %v8034_v5 = vld [vmem:[%s9231_s1 + $0x18] sm:$0xff] }
0x15ce   : > { %v7078_v36 = vpop.f32.mrb[54].mxu0 }
0x15cf   : > { %v5132_v34 = vpop.f32.mrb[55].mxu0  ;;  %5227 = vrot.lane.b32.xlu1 %v7078_v36, %s10568_s15 }
0x15d0   : > { %5225 = vrot.lane.b32.xlu0 %v5132_v34, %s10568_s15  ;;  %s8438_s15 = smov [#allocation17]  }
0x15d1   : > { %s8301_s7 = sshll.u32 %s8438_s15, 4  ;;  %s8302_s7 = int_to_ptr.vmem [resolvable:$false] %s8301_s7 }
0x15d2   : > { %s8303_s23 = scalar_lea.vmem %s8302_s7, 256  ;;  %p8304_p7 = scmp.lt.s32.totalorder %s5545_s22, %s8302_s7 }
0x15d3   : > { %p8305_p11 = scmp.lt.s32.totalorder %s8303_s23, %s8297_s20 }
0x15d5   : > { %p8306_p8 = por %p8305_p11, %p8304_p7 }
0x15d7   : > { %p8307_p4 = pnand %p8306_p8, %p8300_p0 }
0x1609   : > { %v5152_v38 = vpop.permute.xlu1 %5151 }
0x160a   : > { %v5184_v26 = vpop.permute.xlu0 %5183  ;;  %v5238_v47 = vsel %vm2626_vm5, %v10193_v14, %v5152_v38 }
0x160b   : > { %v5246_v6 = vsel %vm1374_vm1, %v5238_v47, %v5184_v26  ;;  %v8035_v26 = vld [vmem:[%s9231_s1 + $0x10] sm:$0xff] }
0x160c   : > { %v8039_v47 = vld [vmem:[%s9231_s1 + $0x30] sm:$0xff] }
0x160e   : > { %v5150_v50 = vpop.permute.xlu0 %5149 }
0x160f   : > { %v5237_v58 = vsel %vm2626_vm5, %v10195_v51, %v5150_v50 }
0x1611   : > { %v5156_v16 = vpop.permute.xlu1 %5155 }
0x1612   : > { %v5182_v2 = vpop.permute.xlu0 %5181  ;;  %v5240_v51 = vsel %vm2626_vm5, %v10197_v54, %v5156_v16 }
0x1613   : > { %v5245_v42 = vsel %vm1374_vm1, %v5237_v58, %v5182_v2 }
0x1615   : > { %v5188_v9 = vpop.permute.xlu1 %5187 }
0x1616   : > { %v5154_v39 = vpop.permute.xlu0 %5153  ;;  %v5248_v19 = vsel %vm1374_vm1, %v5240_v51, %v5188_v9 }
0x1617   : > { %v5239_v17 = vsel %vm2626_vm5, %v10199_v1, %v5154_v39  ;;  %v8036_v39 = vld [vmem:[%s9231_s1 + $0x28] sm:$0xff] }
0x1619   : > { %v5160_v55 = vpop.permute.xlu1 %5159 }
0x161a   : > { %v5186_v56 = vpop.permute.xlu0 %5185  ;;  %v5242_v54 = vsel %vm2626_vm5, %v10201_v52, %v5160_v55 }
0x161b   : > { %v5247_v0 = vsel %vm1374_vm1, %v5239_v17, %v5186_v56  ;;  %v8037_v56 = vld [vmem:[%s9231_s1 + $0x20] sm:$0xff] }
0x161d   : > { %v5192_v61 = vpop.permute.xlu1 %5191 }
0x161e   : > { %v5158_v7 = vpop.permute.xlu0 %5157  ;;  %v5250_v22 = vsel %vm1374_vm1, %v5242_v54, %v5192_v61 }
0x161f   : > { %v5241_v1 = vsel %vm2626_vm5, %v10203_v59, %v5158_v7 }
0x1621   : > { %v5164_v28 = vpop.permute.xlu1 %5163 }
0x1622   : > { %v5190_v8 = vpop.permute.xlu0 %5189  ;;  %v5244_v52 = vsel %vm2626_vm5, %v10205_v62, %v5164_v28 }
0x1623   : > { %v5249_v20 = vsel %vm1374_vm1, %v5241_v1, %v5190_v8 }
0x1625   : > { %v5196_v41 = vpop.permute.xlu1 %5195 }
0x1626   : > { %v5162_v40 = vpop.permute.xlu0 %5161  ;;  %v5252_v25 = vsel %vm1374_vm1, %v5244_v52, %v5196_v41  ;;  %v8038_v41 = vld [vmem:[%s9231_s1 + $0x38] sm:$0xff]  ;;  %s5940_s1 = sshll.u32 %s8608_s10, 7 }
0x1627   : > { %v5243_v59 = vsel %vm2626_vm5, %v10207_v60, %v5162_v40  ;;  %v5929_v60 = vld [vmem:[%s10569_s27] ss:$0 sm:$0xff]  ;;  %s10320_s12 = scalar_lea.hbm %s10570_s18, %s5940_s1 }
0x1629   : > { %v5216_v48 = vpop.permute.xlu1 %5215 }
0x162a   : > { %v5194_v44 = vpop.permute.xlu0 %5193  ;;  %v5254_v13 = vsel %vm3329_vm7, %v5246_v6, %v5216_v48 }
0x162b   : > { %v5251_v53 = vsel %vm1374_vm1, %v5243_v59, %v5194_v44 }
0x162e   : > { %v5214_v3 = vpop.permute.xlu0 %5213 }
0x162f   : > { %v5253_v11 = vsel %vm3329_vm7, %v5245_v42, %v5214_v3 }
0x1630   : > { %7095 = vmatprep.mubr.msk.f32.mxu1 %vm2021_vm3, %v5253_v11 }
0x1631   : > { %7096 = vmatmul.mubr.msk.f32.vlgmr.msra.gmra.mrb[60].mxu1 %vm2021_vm3, %v5254_v13  ;;  %v5220_v14 = vpop.permute.xlu1 %5219 }
0x1632   : > { %v5218_v18 = vpop.permute.xlu0 %5217  ;;  %v5256_v15 = vsel %vm3329_vm7, %v5248_v19, %v5220_v14 }
0x1633   : > { %v5255_v45 = vsel %vm3329_vm7, %v5247_v0, %v5218_v18 }
0x1634   : > { %7098 = vmatprep.mubr.msk.f32.mxu1 %vm2021_vm3, %v5255_v45 }
0x1635   : > { %7099 = vmatmul.mubr.msk.f32.gmra.mrb[62].mxu1 %vm2021_vm3, %v5256_v15 }
0x1639   : > { %v5224_v43 = vpop.permute.xlu1 %5223 }
0x163a   : > { %v5222_v21 = vpop.permute.xlu0 %5221  ;;  %v5258_v24 = vsel %vm3329_vm7, %v5250_v22, %v5224_v43 }
0x163b   : > { %v5257_v23 = vsel %vm3329_vm7, %v5249_v20, %v5222_v21 }
0x163c   : > { %7101 = vmatprep.mubr.msk.f32.mxu1 %vm2021_vm3, %v5257_v23 }
0x163d   : > { %7102 = vmatmul.mubr.msk.f32.gmra.mrb[64].mxu1 %vm2021_vm3, %v5258_v24 }
0x1641   : > { %v5228_v49 = vpop.permute.xlu1 %5227 }
0x1642   : > { %v5226_v57 = vpop.permute.xlu0 %5225  ;;  %v5260_v10 = vsel %vm3329_vm7, %v5252_v25, %v5228_v49 }
0x1643   : > { %v5259_v4 = vsel %vm3329_vm7, %v5251_v53, %v5226_v57 }
0x1644   : > { %7104 = vmatprep.mubr.msk.f32.mxu1 %vm2021_vm3, %v5259_v4 }
0x1645   : > { %7105 = vmatmul.mubr.msk.f32.gmra.mrb[66].mxu1 %vm2021_vm3, %v5260_v10 }
0x1704   : > { %v7097_v37 = vpop.f32.mrb[60].mxu1 }
0x1705   : > { %v5363_v62 = vadd.f32 %v7097_v37, %v5929_v60  ;;  %v5357_v29 = vpop.f32.mrb[61].mxu1 }
0x1706   : > { %v5358_v32 = vadd.f32 %v5929_v60, %v5357_v29 }
0x1707   : > { %v5397_v33 = vadd.f32 %v8032_v30, %v5363_v62 }
0x1708   : > { %v5396_v27 = vadd.f32 %v8033_v46, %v5358_v32  ;;  %v7100_v12 = vpop.f32.mrb[62].mxu1 }
0x1709   : > { %5406 = vadd.xlane.f32.xlu1 %v5397_v33  ;;  %v5373_v35 = vadd.f32 %v7100_v12, %v5929_v60  ;;  %v5367_v31 = vpop.f32.mrb[63].mxu1 }
0x170a   : > { %5404 = vadd.xlane.f32.xlu0 %v5396_v27  ;;  %v5368_v34 = vadd.f32 %v5929_v60, %v5367_v31 }
0x170b   : > { %v5399_v36 = vadd.f32 %v8034_v5, %v5373_v35 }
0x170c   : > { %v5398_v38 = vadd.f32 %v8035_v26, %v5368_v34 }
0x170e   : > { %5410 = vadd.xlane.f32.xlu0 %v5399_v36 }
0x1710   : > { %v7103_v50 = vpop.f32.mrb[64].mxu1 }
0x1711   : > { %v5383_v16 = vadd.f32 %v7103_v50, %v5929_v60  ;;  %v5377_v2 = vpop.f32.mrb[65].mxu1 }
0x1712   : > { %5408 = vadd.xlane.f32.xlu0 %v5398_v38  ;;  %v5378_v9 = vadd.f32 %v5929_v60, %v5377_v2 }
0x1713   : > { %v5401_v55 = vadd.f32 %v8036_v39, %v5383_v16 }
0x1714   : > { %v5400_v61 = vadd.f32 %v8037_v56, %v5378_v9 }
0x1716   : > { %5414 = vadd.xlane.f32.xlu0 %v5401_v55  ;;  %5412 = vadd.xlane.f32.xlu1 %v5400_v61 }
0x1718   : > { %v7106_v7 = vpop.f32.mrb[66].mxu1 }
0x1719   : > { %v5393_v28 = vadd.f32 %v7106_v7, %v5929_v60  ;;  %v5387_v8 = vpop.f32.mrb[67].mxu1 }
0x171a   : > { %v5388_v40 = vadd.f32 %v5929_v60, %v5387_v8 }
0x171b   : > { %v5403_v44 = vadd.f32 %v8038_v41, %v5393_v28 }
0x171c   : > { %v5402_v58 = vadd.f32 %v8039_v47, %v5388_v40 }
0x171d   : > { %5418 = vadd.xlane.f32.xlu0 %v5403_v44 }
0x171e   : > { %5416 = vadd.xlane.f32.xlu1 %v5402_v58 }
0x1796   : > { %v5407_v48 = vpop.xlane.xlu1 %5406 }
0x1797   : > { %v5421_v42 = vmul.f32 0.0078125, %v5407_v48  ;;  %v5405_v3 = vpop.xlane.xlu0 %5404 }
0x1798   : > { %v5420_v6 = vmul.f32 0.0078125, %v5405_v3 }
0x1799   : > { %v10284_v11 = vsub.f32 %v5397_v33, %v5421_v42 }
0x179a   : > { %v10286_v13 = vsub.f32 %v5396_v27, %v5420_v6 }
0x179b   : > { %v5411_v17 = vpop.xlane.xlu0 %5410  ;;  %v5437_v14 = vmul.f32 %v10284_v11, %v10284_v11 }
0x179c   : > { %v5423_v51 = vmul.f32 0.0078125, %v5411_v17  ;;  %v5436_v0 = vmul.f32 %v10286_v13, %v10286_v13 }
0x179d   : > { %5446 = vadd.xlane.f32.xlu0 %v5437_v14 }
0x179e   : > { %v10292_v18 = vsub.f32 %v5399_v36, %v5423_v51  ;;  %5444 = vadd.xlane.f32.xlu1 %v5436_v0 }
0x179f   : > { %v5409_v19 = vpop.xlane.xlu0 %5408 }
0x17a0   : > { %v5422_v45 = vmul.f32 0.0078125, %v5409_v19  ;;  %v5439_v15 = vmul.f32 %v10292_v18, %v10292_v18 }
0x17a2   : > { %v10296_v1 = vsub.f32 %v5398_v38, %v5422_v45  ;;  %5450 = vadd.xlane.f32.xlu0 %v5439_v15 }
0x17a3   : > { %v5415_v43 = vpop.xlane.xlu0 %5414  ;;  %v5413_v54 = vpop.xlane.xlu1 %5412 }
0x17a4   : > { %v5425_v20 = vmul.f32 0.0078125, %v5415_v43  ;;  %v5424_v21 = vmul.f32 0.0078125, %v5413_v54  ;;  %v5438_v22 = vmul.f32 %v10296_v1, %v10296_v1 }
0x17a6   : > { %v10300_v23 = vsub.f32 %v5401_v55, %v5425_v20  ;;  %v10302_v24 = vsub.f32 %v5400_v61, %v5424_v21  ;;  %5448 = vadd.xlane.f32.xlu1 %v5438_v22 }
0x17a8   : > { %v5441_v59 = vmul.f32 %v10300_v23, %v10300_v23  ;;  %v5440_v49 = vmul.f32 %v10302_v24, %v10302_v24 }
0x17aa   : > { %5454 = vadd.xlane.f32.xlu0 %v5441_v59  ;;  %5452 = vadd.xlane.f32.xlu1 %v5440_v49  ;;  %v5419_v52 = vpop.xlane.xlu0 %5418 }
0x17ab   : > { %v5427_v53 = vmul.f32 0.0078125, %v5419_v52  ;;  %v5417_v57 = vpop.xlane.xlu1 %5416 }
0x17ac   : > { %v5426_v25 = vmul.f32 0.0078125, %v5417_v57 }
0x17ad   : > { %v10308_v4 = vsub.f32 %v5403_v44, %v5427_v53 }
0x17ae   : > { %v10310_v10 = vsub.f32 %v5402_v58, %v5426_v25 }
0x17af   : > { %v5443_v60 = vmul.f32 %v10308_v4, %v10308_v4 }
0x17b0   : > { %v5442_v37 = vmul.f32 %v10310_v10, %v10310_v10 }
0x17b1   : > { %5458 = vadd.xlane.f32.xlu0 %v5443_v60 }
0x17b2   : > { %5456 = vadd.xlane.f32.xlu1 %v5442_v37 }
0x17b3   : > { %8310 = shalt.err (!%p8307_p4)
}
0x17b4   : > { %s8311_s19 = scalar_lea.hbm %s10320_s12, 128  ;;  %s8315_s1 = scalar_lea.hbm %s10570_s18, 256 }
0x17b5   : > { %p8312_p12 = scmp.ne.s32.totalorder %s10320_s12, %s8311_s19  ;;  %p8316_p3 = scmp.lt.u32.totalorder %s10320_s12, %s10570_s18 }
0x17b6   : > { %p8317_p2 = scmp.lt.u32.totalorder %s8315_s1, %s8311_s19  ;;  %p8319_p10 = scmp.lt.u32.totalorder %s8311_s19, %s10320_s12 }
0x17b7   : > { %p8313_p13 = pnand %p8312_p12, %p10571_p5 }
0x17b8   : > { %p8318_p6 = por %p8317_p2, %p8316_p3 }
0x17b9   : > { %p8314_p1 = pneg %p8313_p13 }
0x17ba   : > { %p8320_p9 = por %p8319_p10, %p8318_p6 }
0x17bc   : > { %p8321_p0 = pnand %p8320_p9, %p8314_p1 }
0x17be   : > { %8324 = shalt.err (!%p8321_p0)
}
0x17bf   : > { %7671 = dma.vmem_to_hbm [thread:$0]  (%p10571_p5), %s5545_s22, 128, %s10320_s12, %s5526_s17   ;;  %v5494_v5 = vsub.s32 6, %v9076_v63  ;;  %v5506_v34 = vsub.s32 7, %v9076_v63  ;;  %v8040_v16 = vld [vmem:[%s10443_s26] sm:$0xff] }
0x17c0   : > { %s5800_s17 = sshll.u32 %s8889_s14, 6  ;;  %s5947_s15 = sshll.u32 %s8608_s10, 10 }
0x17c1   : > { %v5495_v2 = vrot.slane %v8040_v16, %v5494_v5  ;;  %v5507_v61 = vrot.slane %v8040_v16, %v5506_v34  ;;  %s10351_s20 = scalar_lea.vmem [#allocation18], %s5800_s17  ;;  %s10572_s13 = sld [smem:[#allocation54_spill]] }
0x17c2   : > { %s5557_s7 = sshll.u32 %s10351_s20, 4  ;;  %s5531_s1 = scalar_lea.sflag [#allocation19], %s8889_s14  ;;  %s10371_s7 = int_to_ptr.vmem [resolvable:$true] %s5557_s7 }
0x17c3   : > { %s8325_s2 = scalar_lea.vmem %s10371_s7, 1024  ;;  %s8439_s10 = smov [#allocation18]  }
0x17c4   : > { %p8326_p7 = scmp.ne.s32.totalorder %s10371_s7, %s8325_s2  ;;  %s8329_s0 = sshll.u32 %s8439_s10, 4  ;;  %s8330_s0 = int_to_ptr.vmem [resolvable:$false] %s8329_s0 }
0x17c5   : > { %s8331_s12 = scalar_lea.vmem %s8330_s0, 2048  ;;  %p8332_p4 = scmp.lt.s32.totalorder %s10371_s7, %s8330_s0 }
0x17c6   : > { %p8327_p11 = pnand %p8326_p7, %p10571_p5  ;;  %p8333_p12 = scmp.lt.s32.totalorder %s8331_s12, %s8325_s2 }
0x17c7   : > { %s10369_s27 = scalar_lea.hbm %s10572_s13, %s5947_s15 }
0x17c8   : > { %p8328_p8 = pneg %p8327_p11  ;;  %p8334_p13 = por %p8333_p12, %p8332_p4 }
0x17ca   : > { %p8335_p1 = pnand %p8334_p13, %p8328_p8 }
0x182a   : > { %v5447_v62 = vpop.xlane.xlu0 %5446 }
0x182b   : > { %v5461_v29 = vmul.f32 0.0078125, %v5447_v62  ;;  %v5445_v32 = vpop.xlane.xlu1 %5444 }
0x182c   : > { %v5460_v30 = vmul.f32 0.0078125, %v5445_v32 }
0x182d   : > { %v5469_v33 = vadd.f32 1e-05, %v5461_v29 }
0x182e   : > { %v5468_v46 = vadd.f32 1e-05, %v5460_v30 }
0x182f   : > { %8014 = vrsqrt.f32 %v5469_v33  ;;  %v5451_v27 = vpop.xlane.xlu0 %5450 }
0x1830   : > { %8016 = vrsqrt.f32 %v5468_v46  ;;  %v5463_v12 = vmul.f32 0.0078125, %v5451_v27 }
0x1832   : > { %v5471_v35 = vadd.f32 1e-05, %v5463_v12 }
0x1833   : > { %v5449_v31 = vpop.xlane.xlu1 %5448 }
0x1834   : > { %8018 = vrsqrt.f32 %v5471_v35  ;;  %v5462_v36 = vmul.f32 0.0078125, %v5449_v31 }
0x1836   : > { %v5470_v26 = vadd.f32 1e-05, %v5462_v36 }
0x1837   : > { %v5455_v38 = vpop.xlane.xlu0 %5454  ;;  %v5453_v50 = vpop.xlane.xlu1 %5452 }
0x1838   : > { %8020 = vrsqrt.f32 %v5470_v26  ;;  %v5465_v9 = vmul.f32 0.0078125, %v5455_v38  ;;  %v5464_v39 = vmul.f32 0.0078125, %v5453_v50 }
0x1839   : > { %v8015_v55 = vpop.eup %8014 }
0x183a   : > { %v8017_v56 = vpop.eup %8016  ;;  %v5485_v7 = vmul.f32 %v8015_v55, %v10284_v11  ;;  %v5473_v28 = vadd.f32 1e-05, %v5465_v9  ;;  %v5472_v8 = vadd.f32 1e-05, %v5464_v39 }
0x183b   : > { %v5484_v63 = vmul.f32 %v8017_v56, %v10286_v13 }
0x183c   : > { %v5497_v40 = vmul.f32 %v5495_v2, %v5485_v7  ;;  %8022 = vrsqrt.f32 %v5473_v28 }
0x183d   : > { %v5496_v41 = vmul.f32 %v5495_v2, %v5484_v63  ;;  %8024 = vrsqrt.f32 %v5472_v8 }
0x183e   : > { %v8019_v44 = vpop.eup %8018  ;;  %v5509_v47 = vadd.f32 %v5507_v61, %v5497_v40  ;;  %v5459_v58 = vpop.xlane.xlu0 %5458 }
0x183f   : > { %v5508_v48 = vadd.f32 %v5507_v61, %v5496_v41  ;;  %v5487_v42 = vmul.f32 %v8019_v44, %v10292_v18  ;;  %v5467_v3 = vmul.f32 0.0078125, %v5459_v58  ;;  %v5457_v6 = vpop.xlane.xlu1 %5456 }
0x1840   : > { %5518 = vst [vmem:[%s10351_s20 + $0x8] sm:$0xff] %v5509_v47  ;;  %v5466_v11 = vmul.f32 0.0078125, %v5457_v6 }
0x1841   : > { %5517 = vst [vmem:[%s10351_s20] sm:$0xff] %v5508_v48  ;;  %v5499_v13 = vmul.f32 %v5495_v2, %v5487_v42  ;;  %v5475_v17 = vadd.f32 1e-05, %v5467_v3 }
0x1842   : > { %v8021_v14 = vpop.eup %8020  ;;  %v5474_v51 = vadd.f32 1e-05, %v5466_v11 }
0x1843   : > { %v5511_v0 = vadd.f32 %v5507_v61, %v5499_v13  ;;  %v5486_v19 = vmul.f32 %v8021_v14, %v10296_v1  ;;  %8026 = vrsqrt.f32 %v5475_v17 }
0x1844   : > { %8028 = vrsqrt.f32 %v5474_v51 }
0x1845   : > { %5520 = vst [vmem:[%s10351_s20 + $0x18] sm:$0xff] %v5511_v0  ;;  %v5498_v18 = vmul.f32 %v5495_v2, %v5486_v19 }
0x1846   : > { %v8023_v45 = vpop.eup %8022 }
0x1847   : > { %v8025_v15 = vpop.eup %8024  ;;  %v5510_v43 = vadd.f32 %v5507_v61, %v5498_v18  ;;  %v5489_v54 = vmul.f32 %v8023_v45, %v10300_v23 }
0x1848   : > { %v5488_v20 = vmul.f32 %v8025_v15, %v10302_v24 }
0x1849   : > { %5519 = vst [vmem:[%s10351_s20 + $0x10] sm:$0xff] %v5510_v43  ;;  %v5501_v21 = vmul.f32 %v5495_v2, %v5489_v54 }
0x184a   : > { %v5500_v22 = vmul.f32 %v5495_v2, %v5488_v20 }
0x184b   : > { %v5513_v59 = vadd.f32 %v5507_v61, %v5501_v21 }
0x184c   : > { %v5512_v1 = vadd.f32 %v5507_v61, %v5500_v22 }
0x184d   : > { %v8027_v49 = vpop.eup %8026  ;;  %5522 = vst [vmem:[%s10351_s20 + $0x28] sm:$0xff] %v5513_v59 }
0x184e   : > { %v8029_v52 = vpop.eup %8028  ;;  %5521 = vst [vmem:[%s10351_s20 + $0x20] sm:$0xff] %v5512_v1  ;;  %v5491_v53 = vmul.f32 %v8027_v49, %v10308_v4 }
0x184f   : > { %v5490_v57 = vmul.f32 %v8029_v52, %v10310_v10 }
0x1850   : > { %v5503_v23 = vmul.f32 %v5495_v2, %v5491_v53 }
0x1851   : > { %v5502_v24 = vmul.f32 %v5495_v2, %v5490_v57 }
0x1852   : > { %v5515_v25 = vadd.f32 %v5507_v61, %v5503_v23 }
0x1853   : > { %v5514_v60 = vadd.f32 %v5507_v61, %v5502_v24 }
0x1854   : > { %5524 = vst [vmem:[%s10351_s20 + $0x38] sm:$0xff] %v5515_v25 }
0x1855   : > { %5523 = vst [vmem:[%s10351_s20 + $0x30] sm:$0xff] %v5514_v60 }
0x1856   : > { %8338 = shalt.err (!%p8335_p1)
}
0x1857   : > { %s8339_s22 = scalar_lea.hbm %s10369_s27, 1024  ;;  %s8343_s15 = scalar_lea.hbm %s10572_s13, 2048 }
0x1858   : > { %p8340_p3 = scmp.ne.s32.totalorder %s10369_s27, %s8339_s22  ;;  %p8344_p10 = scmp.lt.u32.totalorder %s10369_s27, %s10572_s13 }
0x1859   : > { %p8345_p9 = scmp.lt.u32.totalorder %s8343_s15, %s8339_s22  ;;  %p8347_p7 = scmp.lt.u32.totalorder %s8339_s22, %s10369_s27 }
0x185a   : > { %p8341_p2 = pnand %p8340_p3, %p10571_p5 }
0x185b   : > { %p8346_p0 = por %p8345_p9, %p8344_p10 }
0x185c   : > { %p8342_p6 = pneg %p8341_p2 }
0x185d   : > { %p8348_p11 = por %p8347_p7, %p8346_p0 }
0x185f   : > { %p8349_p8 = pnand %p8348_p11, %p8342_p6 }
0x1861   : > { %8352 = shalt.err (!%p8349_p8)
}
0x1862   : > { %s8440_s2 = smov 128   ;;  %s8441_s10 = smov 8  }
0x1863   : > { %7672 = dma.vmem_to_hbm [thread:$0]  (%p10571_p5), %s10371_s7, 1024, %s10369_s27, %s5531_s1, %s8440_s2, %s8440_s2, %s8441_s10  }
0x1864 PF: > { %s5572_s0 = sand.u32 1, %s8403_s8   ;;  %p10573_p4 = scmp.ne.s32.totalorder %s10531_s4, 0 }
0x1865   : > { %p10574_p12 = scmp.ge.s32.totalorder %s8415_s30, 2  ;;  %s5573_s12 = scalar_lea.sflag [#allocation4], %s5572_s0 }
0x1867   : > { %p7705_p13 = pnand %p10574_p12, %p10573_p4 }
0x1869   : > { %8394 = dma.done.wait (!%p7705_p13), %s5573_s12, 128  }
0x186a   : > { %8396 = vsyncadd (!%p7705_p13), %s5573_s12, 4294967168  ;;  %s5582_s22 = scalar_lea.sflag [#allocation19], %s5572_s0 }
0x186b   : > { %8398 = dma.done.wait (!%p7705_p13), %s5582_s22, 1024  }
0x186c   : > { %8400 = vsyncadd (!%p7705_p13), %s5582_s22, 4294966272  ;;  %p51_p5 = scmp.ge.s32.totalorder %s8790_s11, 4   ;;  %s10575_s8 = smov %s8407_s5 }
0x186d   : > { %s10576_s5 = smov %s8411_s9  ;;  %s10577_s9 = smov %s8802_s3 }
0x186e   : > { %s10578_s30 = smov %s8790_s11  ;;  %53 = sbr.rel (!%p51_p5) target bundleno = 40 (0x28), region = 237 }
0x1875   :  { %5587 = vsyncpa [#allocation3], 1 }
0x1876   :  { %5589 = vsyncpa [#allocation3 + $0x1], 1 }
0x1877   :  { %5590 = vsyncpa [#allocation6], 1 }
0x1878   :  { %5592 = vsyncpa [#allocation6 + $0x1], 1 }
0x1879   :  { %5593 = vsyncpa [#allocation9], 1 }
0x187a   :  { %5594 = vsyncpa [#allocation12], 1 }
0x187b   :  { %5595 = vsyncpa [#allocation15], 1 }
0x187c   :  { %5596 = vsyncpa [#allocation4], 1 }
0x187d   :  { %5598 = vsyncpa [#allocation4 + $0x1], 1 }
0x187e   :  { %5599 = vsyncpa [#allocation19], 1 }
0x187f   :  { %5601 = vsyncpa [#allocation19 + $0x1], 1 }

</bundles_post_ra>
